<compile_context>
chip_gen: v5e
topology: v5e:2x2
jax: 0.10.0
libtpu: 0.0.40
codegen_flags: <defaults>
</compile_context>

<pallas_src>
import functools

import jax
import jax.numpy as jnp
from jax.experimental import pallas as pl
from jax.experimental.pallas import tpu as pltpu

EPS = 1e-5
LANES = 128
_VMEM_LIMIT_BYTES = 48 * 1024 * 1024  # explicit scoped-VMEM cap, headroom under v7x 64 MiB


def _round_up(x, m):
    return ((x + m - 1) // m) * m


def _pick_tile_h(h, target):
    th = max(1, min(h, target))
    while h % th:
        th -= 1
    return th


def _compiler_params(semantics):
    return pltpu.CompilerParams(dimension_semantics=semantics,
                                vmem_limit_bytes=_VMEM_LIMIT_BYTES)


# --------------------------------------------------------------------------------------
# Shared in-kernel helpers
# --------------------------------------------------------------------------------------
def _fill_halo(pad_ref, mid_ref, top_ref, bot_ref):
    """Fill the (TH+2, W+2, C) bf16 halo scratch for the current H-tile.

    Every element is rewritten on every grid step: interior from the tile block,
    top/bottom halo rows from clamped neighbour-row blocks (zeroed at the image edges),
    left/right halo columns with zeros.  No first-step-only init -> no megacore hazard.
    """
    thp2, wp2, cin = pad_ref.shape
    th, w = thp2 - 2, wp2 - 2
    dt = pad_ref.dtype
    hi = pl.program_id(1)
    h_last = pl.num_programs(1) - 1

    zcol = jnp.zeros((thp2, 1, cin), dt)
    pad_ref[:, 0:1, :] = zcol
    pad_ref[:, w + 1:w + 2, :] = zcol

    top_val = top_ref[...].astype(dt)
    bot_val = bot_ref[...].astype(dt)
    top = jnp.where(hi > 0, top_val, jnp.zeros_like(top_val)).reshape(1, w, cin)
    bot = jnp.where(hi < h_last, bot_val, jnp.zeros_like(bot_val)).reshape(1, w, cin)
    pad_ref[0:1, 1:w + 1, :] = top
    pad_ref[th + 1:th + 2, 1:w + 1, :] = bot
    pad_ref[1:th + 1, 1:w + 1, :] = mid_ref[...].astype(dt).reshape(th, w, cin)


def _tap_matmul(pad_ref, w_ref):
    """3x3 "same" conv of the halo-padded tile as 9 accumulating MXU matmuls.

    No im2col: each tap is a shifted (TH*W, Cin) bf16 view of the padded scratch dotted
    against its (Cin, Cout) weight slice (Cin is a multiple of 128, so the K-slice is
    sublane aligned); accumulation stays f32 in the MXU path.
    """
    thp2, wp2, cin = pad_ref.shape
    th, w = thp2 - 2, wp2 - 2
    cout = w_ref.shape[-1]
    xp = pad_ref[...]                        # single bf16 load of the padded tile
    acc = jnp.zeros((th * w, cout), jnp.float32)
    for dy in range(3):
        for dx in range(3):
            tap = xp[dy:dy + th, dx:dx + w, :].reshape(th * w, cin)
            t = dy * 3 + dx
            w_slice = w_ref[t * cin:(t + 1) * cin, :]
            acc = acc + jnp.dot(tap, w_slice, preferred_element_type=jnp.float32)
    return acc


# --------------------------------------------------------------------------------------
# Kernel A: 3x3 conv (+ bias, optional ReLU, optional fused residual add), H-tiled
# --------------------------------------------------------------------------------------
def _conv3x3_kernel(x_ref, top_ref, bot_ref, w_ref, b_ref, *rest,
                    apply_relu, has_residual):
    if has_residual:
        r_ref, o_ref, xpad_ref = rest
    else:
        o_ref, xpad_ref = rest

    _fill_halo(xpad_ref, x_ref, top_ref, bot_ref)
    acc = _tap_matmul(xpad_ref, w_ref)
    acc = acc + b_ref[...].astype(jnp.float32)
    if apply_relu:
        acc = jnp.maximum(acc, 0.0)
    _, th, w, cout = o_ref.shape
    out = acc.reshape(1, th, w, cout)
    if has_residual:
        out = out + r_ref[...].astype(jnp.float32)
    o_ref[...] = out.astype(o_ref.dtype)


def conv3x3(x, w_mat, b_row, *, apply_relu=False, residual=None,
            out_dtype=jnp.float32, tile_h):
    """x: (N,H,W,Cin); w_mat: (9*Cin, Cout) bf16 (K ordered ky,kx,cin); b_row: (1,Cout) f32."""
    n, h_dim, w_dim, cin = x.shape
    k, cout = w_mat.shape
    assert k == 9 * cin
    th = tile_h
    assert h_dim % th == 0
    ht = h_dim // th

    def mid_map(ni, hi):
        return (ni, hi, 0, 0)

    def top_map(ni, hi):
        return (ni, jnp.maximum(hi * th - 1, 0), 0, 0)

    def bot_map(ni, hi):
        return (ni, jnp.minimum(hi * th + th, h_dim - 1), 0, 0)

    def const_map(ni, hi):
        return (0, 0)

    in_specs = [
        pl.BlockSpec((1, th, w_dim, cin), mid_map),
        pl.BlockSpec((1, 1, w_dim, cin), top_map),
        pl.BlockSpec((1, 1, w_dim, cin), bot_map),
        # TODO(synk): single-buffer the constant-index weight/bias blocks
        # (pipeline_mode=pl.Buffered(1)) once verified on the target jax build.
        pl.BlockSpec((k, cout), const_map),
        pl.BlockSpec((1, cout), const_map),
    ]
    args = [x, x, x, w_mat, b_row]
    if residual is not None:
        in_specs.append(pl.BlockSpec((1, th, w_dim, cout), mid_map))
        args.append(residual)

    kernel = functools.partial(_conv3x3_kernel, apply_relu=apply_relu,
                               has_residual=residual is not None)
    return pl.pallas_call(
        kernel,
        out_shape=jax.ShapeDtypeStruct((n, h_dim, w_dim, cout), out_dtype),
        grid=(n, ht),
        in_specs=in_specs,
        out_specs=pl.BlockSpec((1, th, w_dim, cout), mid_map),
        scratch_shapes=[pltpu.VMEM((th + 2, w_dim + 2, cin), jnp.bfloat16)],
        compiler_params=_compiler_params(("parallel", "parallel")),
    )(*args)


# --------------------------------------------------------------------------------------
# Kernel B: BatchNorm2d(affine=False) training-mode stats, centered two-pass reduction
# --------------------------------------------------------------------------------------
def _bn_reduce_kernel(*refs, centered):
    if centered:
        x_ref, mean_ref, out_ref = refs
    else:
        x_ref, out_ref = refs

    @pl.when((pl.program_id(0) == 0) & (pl.program_id(1) == 0))
    def _():
        out_ref[...] = jnp.zeros_like(out_ref)

    c = x_ref.shape[-1]
    x = x_ref[...].astype(jnp.float32).reshape(-1, c)
    if centered:
        d = x - mean_ref[...]
        out_ref[...] += jnp.sum(d * d, axis=0, keepdims=True)
    else:
        out_ref[...] += jnp.sum(x, axis=0, keepdims=True)


def bn_stats(x, *, tile_h):
    """Per-channel mean and inv-std over (N,H,W) — centered (two-pass) variance."""
    n, h_dim, w_dim, c = x.shape
    th = tile_h
    ht = h_dim // th
    mid = pl.BlockSpec((1, th, w_dim, c), lambda ni, hi: (ni, hi, 0, 0))
    const = pl.BlockSpec((1, c), lambda ni, hi: (0, 0))
    cp = _compiler_params(("arbitrary", "arbitrary"))   # resident (1,C) accumulator

    sum_x = pl.pallas_call(
        functools.partial(_bn_reduce_kernel, centered=False),
        out_shape=jax.ShapeDtypeStruct((1, c), jnp.float32),
        grid=(n, ht), in_specs=[mid], out_specs=const, compiler_params=cp)(x)
    inv_count = 1.0 / float(n * h_dim * w_dim)
    mean = sum_x * inv_count

    sqsum = pl.pallas_call(
        functools.partial(_bn_reduce_kernel, centered=True),
        out_shape=jax.ShapeDtypeStruct((1, c), jnp.float32),
        grid=(n, ht), in_specs=[mid, const], out_specs=const, compiler_params=cp)(x, mean)
    var = sqsum * inv_count
    invstd = jax.lax.rsqrt(var + EPS)
    return mean, invstd


# --------------------------------------------------------------------------------------
# Kernel C: fused [gamma|beta] conv (Cout = 2C) + normalize + SPADE modulate + ReLU
# --------------------------------------------------------------------------------------
def _spade_modulate_kernel(x_ref, a_ref, a_top_ref, a_bot_ref, w_ref, b_ref,
                           mean_ref, invstd_ref, o_ref, apad_ref):
    _fill_halo(apad_ref, a_ref, a_top_ref, a_bot_ref)
    _, th, w, c = o_ref.shape
    gb = _tap_matmul(apad_ref, w_ref) + b_ref[...].astype(jnp.float32)
    gamma = gb[:, :c]                    # lane-aligned split (C is a multiple of 128)
    beta = gb[:, c:]
    x = x_ref[...].astype(jnp.float32).reshape(th * w, c)
    xn = (x - mean_ref[...]) * invstd_ref[...]
    out = jnp.maximum(xn * (1.0 + gamma) + beta, 0.0)   # SPADE modulate + following ReLU
    o_ref[...] = out.reshape(1, th, w, c).astype(o_ref.dtype)


def spade_modulate(x, actv, w_gb, b_gb, mean, invstd, *, tile_h,
                   out_dtype=jnp.bfloat16):
    n, h_dim, w_dim, c = x.shape
    ch = actv.shape[-1]
    k2, c2 = w_gb.shape
    assert k2 == 9 * ch and c2 == 2 * c
    th = tile_h
    ht = h_dim // th

    def mid_map(ni, hi):
        return (ni, hi, 0, 0)

    def top_map(ni, hi):
        return (ni, jnp.maximum(hi * th - 1, 0), 0, 0)

    def bot_map(ni, hi):
        return (ni, jnp.minimum(hi * th + th, h_dim - 1), 0, 0)

    def const_map(ni, hi):
        return (0, 0)

    return pl.pallas_call(
        _spade_modulate_kernel,
        out_shape=jax.ShapeDtypeStruct((n, h_dim, w_dim, c), out_dtype),
        grid=(n, ht),
        in_specs=[
            pl.BlockSpec((1, th, w_dim, c), mid_map),     # BN input tile
            pl.BlockSpec((1, th, w_dim, ch), mid_map),    # mask activation tile (bf16)
            pl.BlockSpec((1, 1, w_dim, ch), top_map),     # halo rows
            pl.BlockSpec((1, 1, w_dim, ch), bot_map),
            pl.BlockSpec((k2, c2), const_map),            # fused [gamma|beta] weights
            pl.BlockSpec((1, c2), const_map),
            pl.BlockSpec((1, c), const_map),              # mean
            pl.BlockSpec((1, c), const_map),              # inv-std
        ],
        out_specs=pl.BlockSpec((1, th, w_dim, c), mid_map),
        scratch_shapes=[pltpu.VMEM((th + 2, w_dim + 2, ch), jnp.bfloat16)],
        compiler_params=_compiler_params(("parallel", "parallel")),
    )(x, actv, actv, actv, w_gb, b_gb, mean, invstd)


# --------------------------------------------------------------------------------------
# Plain-JAX glue: lane padding, weight packing, mask resize, block wiring
# --------------------------------------------------------------------------------------
def _pad_last(a, target):
    pad = target - a.shape[-1]
    if pad == 0:
        return a
    widths = [(0, 0)] * (a.ndim - 1) + [(0, pad)]
    return jnp.pad(a, widths)


def _prep_conv(w, b, cin_p, cout_p):
    # w: (3,3,Cin,Cout) -> (9*cin_p, cout_p) bf16 ; b: (Cout,) -> (1, cout_p) f32
    cin, cout = w.shape[2], w.shape[3]
    w = jnp.pad(w, ((0, 0), (0, 0), (0, cin_p - cin), (0, cout_p - cout)))
    w_mat = w.reshape(9 * cin_p, cout_p).astype(jnp.bfloat16)
    b_row = jnp.pad(b, (0, cout_p - cout)).reshape(1, cout_p).astype(jnp.float32)
    return w_mat, b_row


def _prep_gamma_beta(wg, bg, wb, bb, cin_p, c_p):
    # Fuse gamma and beta convs into one conv with Cout = 2*c_p ([gamma | beta]).
    wg = jnp.pad(wg, ((0, 0), (0, 0), (0, cin_p - wg.shape[2]), (0, c_p - wg.shape[3])))
    wb = jnp.pad(wb, ((0, 0), (0, 0), (0, cin_p - wb.shape[2]), (0, c_p - wb.shape[3])))
    w = jnp.concatenate([wg, wb], axis=3).reshape(9 * cin_p, 2 * c_p).astype(jnp.bfloat16)
    b = jnp.concatenate([jnp.pad(bg, (0, c_p - bg.shape[0])),
                         jnp.pad(bb, (0, c_p - bb.shape[0]))]).reshape(1, 2 * c_p)
    return w, b.astype(jnp.float32)


def residual_spade_block(features, segm_mask, params, *, tile_h=64):
    """features: (N,H,W,Cin) NHWC f32 ; segm_mask: (N,h,w,num_bands) NHWC f32."""
    n, h_dim, w_dim, c_in = features.shape
    num_bands = segm_mask.shape[-1]
    c_out = params["w_conv2"].shape[3]
    hidden = params["spade1"]["w_shared"].shape[3]

    cin_p = _round_up(c_in, LANES)
    cmid_p = _round_up(params["w_conv1"].shape[3], LANES)
    cout_p = _round_up(c_out, LANES)
    bands_p = _round_up(num_bands, LANES)
    hid_p = _round_up(hidden, LANES)

    th = _pick_tile_h(h_dim, tile_h)

    # One-time lane padding; one shared bilinear mask resize
    # (F.interpolate(mode='bilinear', align_corners=False) => half-pixel, no antialias).
    x_p = _pad_last(features, cin_p)
    mask_r = jax.image.resize(segm_mask, (n, h_dim, w_dim, num_bands),
                              method="bilinear", antialias=False)
    mask_p = _pad_last(mask_r, bands_p)

    # BN stats of the block input are shared by spade1 and spade_skip (same tensor,
    # affine=False, training-mode batch statistics) -> computed once, reused.
    mean_x, invstd_x = bn_stats(x_p, tile_h=th)

    def spade(x_bn, mean, invstd, sp, c_p):
        w_sh, b_sh = _prep_conv(sp["w_shared"], sp["b_shared"], bands_p, hid_p)
        w_gb, b_gb = _prep_gamma_beta(sp["w_gamma"], sp["b_gamma"],
                                      sp["w_beta"], sp["b_beta"], hid_p, c_p)
        # Shared mask conv + ReLU, emitted bf16 (only ever consumed as an MXU operand).
        actv = conv3x3(mask_p, w_sh, b_sh, apply_relu=True,
                       out_dtype=jnp.bfloat16, tile_h=th)
        return spade_modulate(x_bn, actv, w_gb, b_gb, mean, invstd,
                              tile_h=th, out_dtype=jnp.bfloat16)

    w1, b1 = _prep_conv(params["w_conv1"], params["b_conv1"], cin_p, cmid_p)
    w2, b2 = _prep_conv(params["w_conv2"], params["b_conv2"], cmid_p, cout_p)
    ws, bs = _prep_conv(params["w_skip"], params["b_skip"], cin_p, cout_p)

    h1 = spade(x_p, mean_x, invstd_x, params["spade1"], cin_p)   # SPADE1 + ReLU (bf16)
    h1 = conv3x3(h1, w1, b1, tile_h=th)                          # spectral-norm conv1 (f32)
    # TODO(synk): fuse this stats pass into the conv1 epilogue ((1,C) grid accumulators).
    mean_h, invstd_h = bn_stats(h1, tile_h=th)
    h2 = spade(h1, mean_h, invstd_h, params["spade2"], cmid_p)   # SPADE2 + ReLU (bf16)
    h2 = conv3x3(h2, w2, b2, tile_h=th)                          # spectral-norm conv2 (f32)
    s = spade(x_p, mean_x, invstd_x, params["spade_skip"], cin_p)
    out_p = conv3x3(s, ws, bs, residual=h2, tile_h=th)           # skip conv + fused add
    return out_p[..., :c_out]                                    # drop lane padding


# --------------------------------------------------------------------------------------
# Deterministic parameter construction
# --------------------------------------------------------------------------------------
def _init_conv(key, cin, cout, scale=0.1):
    k1, k2 = jax.random.split(key)
    w = jax.random.normal(k1, (3, 3, cin, cout), jnp.float32) * scale
    b = jax.random.normal(k2, (cout,), jnp.float32) * scale
    return w, b


def _spectral_normalize(w):
    # PyTorch spectral_norm divides by the largest singular value of the
    # (Cout, Cin*Kh*Kw) matrix; exact value here (PyTorch: one power-iteration step).
    w_mat = jnp.transpose(w, (3, 2, 0, 1)).reshape(w.shape[3], -1)
    sigma = jnp.linalg.norm(w_mat, ord=2)
    return w / sigma


def _init_spade_params(key, norm_c, num_bands, hidden):
    k1, k2, k3 = jax.random.split(key, 3)
    w_s, b_s = _init_conv(k1, num_bands, hidden)
    w_g, b_g = _init_conv(k2, hidden, norm_c)
    w_b, b_b = _init_conv(k3, hidden, norm_c)
    return {"w_shared": w_s, "b_shared": b_s,
            "w_gamma": w_g, "b_gamma": b_g,
            "w_beta": w_b, "b_beta": b_b}


def init_residual_spade_params(key, in_features, out_features, num_bands, hidden):
    mid_features = min(in_features, out_features)
    keys = jax.random.split(key, 6)
    w1, b1 = _init_conv(keys[0], in_features, mid_features)
    w2, b2 = _init_conv(keys[1], mid_features, out_features)
    ws, bs = _init_conv(keys[2], in_features, out_features)
    return {
        "spade1": _init_spade_params(keys[3], in_features, num_bands, hidden),
        "spade2": _init_spade_params(keys[4], mid_features, num_bands, hidden),
        "spade_skip": _init_spade_params(keys[5], in_features, num_bands, hidden),
        "w_conv1": _spectral_normalize(w1), "b_conv1": b1,
        "w_conv2": _spectral_normalize(w2), "b_conv2": b2,
        "w_skip": _spectral_normalize(ws), "b_skip": bs,
    }


# --------------------------------------------------------------------------------------
if __name__ == "__main__":
    key = jax.random.PRNGKey(0)
    kx, km, kp = jax.random.split(key, 3)

    N, C_IN, C_OUT, H, W = 2, 4, 4, 16, 16
    NUM_BANDS = 3
    SPADE_HIDDEN = 32  # hidden width of the SPADE shared conv (small synthetic choice)

    # PyTorch-convention NCHW inputs.
    features_nchw = jax.random.normal(kx, (N, C_IN, H, W), jnp.float32)
    segm_mask_nchw = jax.random.normal(km, (N, NUM_BANDS, H, W), jnp.float32)

    # Convert to the kernel layout (NHWC).
    features = jnp.transpose(features_nchw, (0, 2, 3, 1))
    segm_mask = jnp.transpose(segm_mask_nchw, (0, 2, 3, 1))

    params = init_residual_spade_params(kp, C_IN, C_OUT, NUM_BANDS, SPADE_HIDDEN)

    # tile_h=8 -> two H-tiles at H=16, exercising the cross-tile halo path.
    fwd = jax.jit(functools.partial(residual_spade_block, tile_h=8))
    out = jax.block_until_ready(fwd(features, segm_mask, params))
    assert out.shape == (N, H, W, C_OUT), out.shape
    assert bool(jnp.all(jnp.isfinite(out)))
    print("KERNEL_OK")
</pallas_src>

<mosaic_0001>
module attributes {stable_mosaic.version = 11 : i64} {
  func.func @_bn_reduce_kernel(%arg0: i32, %arg1: i32, %arg2: memref<1x8x16x128xf32, #tpu.memory_space<vmem>>, %arg3: memref<1x128xf32, #tpu.memory_space<vmem>>) attributes {dimension_semantics = [#tpu.dimension_semantics<arbitrary>, #tpu.dimension_semantics<arbitrary>], iteration_bounds = array<i64: 2, 2>, scalar_prefetch = 0 : i64, scratch_operands = 0 : i64, tpu.core_type = #tpu.core_type<tc>, window_params = [{transform_indices = @transform_0, window_bounds = array<i64: 1, 8, 16, 128>}, {pipeline_mode = #tpu.pipeline_mode<synchronous>, transform_indices = @transform_1, window_bounds = array<i64: 1, 128>}]} {
    %c0_i32 = arith.constant 0 : i32
    %0 = arith.cmpi eq, %arg0, %c0_i32 : i32
    %c0_i32_0 = arith.constant 0 : i32
    %1 = arith.cmpi eq, %arg1, %c0_i32_0 : i32
    %2 = arith.andi %0, %1 : i1
    %3 = arith.extui %2 : i1 to i32
    %c0_i32_1 = arith.constant 0 : i32
    %4 = arith.cmpi ne, %3, %c0_i32_1 : i32
    scf.if %4 {
      %cst_9 = arith.constant 0.000000e+00 : f32
      %12 = vector.broadcast %cst_9 : f32 to vector<1x128xf32>
      %c0_10 = arith.constant 0 : index
      %c0_11 = arith.constant 0 : index
      %13 = vector.load %arg3[%c0_10, %c0_11] : memref<1x128xf32, #tpu.memory_space<vmem>>, vector<1x128xf32>
      tpu.vector_store %arg3[%c0_10, %c0_11], %12 {strides = array<i32>} : memref<1x128xf32, #tpu.memory_space<vmem>>, vector<1x128xf32>,
    } else {
    }
    %c0 = arith.constant 0 : index
    %c0_2 = arith.constant 0 : index
    %c0_3 = arith.constant 0 : index
    %c0_4 = arith.constant 0 : index
    %5 = vector.load %arg2[%c0, %c0_2, %c0_3, %c0_4] : memref<1x8x16x128xf32, #tpu.memory_space<vmem>>, vector<1x8x16x128xf32>
    %6 = vector.shape_cast %5 : vector<1x8x16x128xf32> to vector<128x128xf32>
    %c0_5 = arith.constant 0 : index
    %c0_6 = arith.constant 0 : index
    %7 = vector.load %arg3[%c0_5, %c0_6] : memref<1x128xf32, #tpu.memory_space<vmem>>, vector<1x128xf32>
    %cst = arith.constant dense<0.000000e+00> : vector<128xf32>
    %8 = vector.multi_reduction <add>, %6, %cst [0] : vector<128x128xf32> to vector<128xf32>
    %9 = vector.shape_cast %8 : vector<128xf32> to vector<1x128xf32>
    %10 = arith.addf %7, %9 : vector<1x128xf32>
    %c0_7 = arith.constant 0 : index
    %c0_8 = arith.constant 0 : index
    %11 = vector.load %arg3[%c0_7, %c0_8] : memref<1x128xf32, #tpu.memory_space<vmem>>, vector<1x128xf32>
    tpu.vector_store %arg3[%c0_7, %c0_8], %10 {strides = array<i32>} : memref<1x128xf32, #tpu.memory_space<vmem>>, vector<1x128xf32>,
    return
  }
  func.func @transform_0(%arg0: i32, %arg1: i32) -> (i32, i32, i32, i32) {
    %c0_i32 = arith.constant 0 : i32
    %c0_i32_0 = arith.constant 0 : i32
    %c0_i32_1 = arith.constant 0 : i32
    return %arg0, %arg1, %c0_i32, %c0_i32_0 : i32, i32, i32, i32
  }
  func.func @transform_1(%arg0: i32, %arg1: i32) -> (i32, i32) {
    %c0_i32 = arith.constant 0 : i32
    %c0_i32_0 = arith.constant 0 : i32
    %c0_i32_1 = arith.constant 0 : i32
    return %c0_i32, %c0_i32_0 : i32, i32
  }
}

module attributes {stable_mosaic.version = 11 : i64} {
  func.func @_bn_reduce_kernel(%arg0: i32, %arg1: i32, %arg2: memref<1x8x16x128xf32, #tpu.memory_space<vmem>>, %arg3: memref<1x128xf32, #tpu.memory_space<vmem>>, %arg4: memref<1x128xf32, #tpu.memory_space<vmem>>) attributes {dimension_semantics = [#tpu.dimension_semantics<arbitrary>, #tpu.dimension_semantics<arbitrary>], iteration_bounds = array<i64: 2, 2>, scalar_prefetch = 0 : i64, scratch_operands = 0 : i64, tpu.core_type = #tpu.core_type<tc>, window_params = [{transform_indices = @transform_0, window_bounds = array<i64: 1, 8, 16, 128>}, {pipeline_mode = #tpu.pipeline_mode<synchronous>, transform_indices = @transform_1, window_bounds = array<i64: 1, 128>}, {pipeline_mode = #tpu.pipeline_mode<synchronous>, transform_indices = @transform_2, window_bounds = array<i64: 1, 128>}]} {
    %c0_i32 = arith.constant 0 : i32
    %0 = arith.cmpi eq, %arg0, %c0_i32 : i32
    %c0_i32_0 = arith.constant 0 : i32
    %1 = arith.cmpi eq, %arg1, %c0_i32_0 : i32
    %2 = arith.andi %0, %1 : i1
    %3 = arith.extui %2 : i1 to i32
    %c0_i32_1 = arith.constant 0 : i32
    %4 = arith.cmpi ne, %3, %c0_i32_1 : i32
    scf.if %4 {
      %cst_11 = arith.constant 0.000000e+00 : f32
      %16 = vector.broadcast %cst_11 : f32 to vector<1x128xf32>
      %c0_12 = arith.constant 0 : index
      %c0_13 = arith.constant 0 : index
      %17 = vector.load %arg4[%c0_12, %c0_13] : memref<1x128xf32, #tpu.memory_space<vmem>>, vector<1x128xf32>
      tpu.vector_store %arg4[%c0_12, %c0_13], %16 {strides = array<i32>} : memref<1x128xf32, #tpu.memory_space<vmem>>, vector<1x128xf32>,
    } else {
    }
    %c0 = arith.constant 0 : index
    %c0_2 = arith.constant 0 : index
    %c0_3 = arith.constant 0 : index
    %c0_4 = arith.constant 0 : index
    %5 = vector.load %arg2[%c0, %c0_2, %c0_3, %c0_4] : memref<1x8x16x128xf32, #tpu.memory_space<vmem>>, vector<1x8x16x128xf32>
    %6 = vector.shape_cast %5 : vector<1x8x16x128xf32> to vector<128x128xf32>
    %c0_5 = arith.constant 0 : index
    %c0_6 = arith.constant 0 : index
    %7 = vector.load %arg3[%c0_5, %c0_6] : memref<1x128xf32, #tpu.memory_space<vmem>>, vector<1x128xf32>
    %8 = vector.broadcast %7 : vector<1x128xf32> to vector<128x128xf32>
    %9 = arith.subf %6, %8 : vector<128x128xf32>
    %c0_7 = arith.constant 0 : index
    %c0_8 = arith.constant 0 : index
    %10 = vector.load %arg4[%c0_7, %c0_8] : memref<1x128xf32, #tpu.memory_space<vmem>>, vector<1x128xf32>
    %11 = arith.mulf %9, %9 : vector<128x128xf32>
    %cst = arith.constant dense<0.000000e+00> : vector<128xf32>
    %12 = vector.multi_reduction <add>, %11, %cst [0] : vector<128x128xf32> to vector<128xf32>
    %13 = vector.shape_cast %12 : vector<128xf32> to vector<1x128xf32>
    %14 = arith.addf %10, %13 : vector<1x128xf32>
    %c0_9 = arith.constant 0 : index
    %c0_10 = arith.constant 0 : index
    %15 = vector.load %arg4[%c0_9, %c0_10] : memref<1x128xf32, #tpu.memory_space<vmem>>, vector<1x128xf32>
    tpu.vector_store %arg4[%c0_9, %c0_10], %14 {strides = array<i32>} : memref<1x128xf32, #tpu.memory_space<vmem>>, vector<1x128xf32>,
    return
  }
  func.func @transform_0(%arg0: i32, %arg1: i32) -> (i32, i32, i32, i32) {
    %c0_i32 = arith.constant 0 : i32
    %c0_i32_0 = arith.constant 0 : i32
    %c0_i32_1 = arith.constant 0 : i32
    return %arg0, %arg1, %c0_i32, %c0_i32_0 : i32, i32, i32, i32
  }
  func.func @transform_1(%arg0: i32, %arg1: i32) -> (i32, i32) {
    %c0_i32 = arith.constant 0 : i32
    %c0_i32_0 = arith.constant 0 : i32
    %c0_i32_1 = arith.constant 0 : i32
    return %c0_i32, %c0_i32_0 : i32, i32
  }
  func.func @transform_2(%arg0: i32, %arg1: i32) -> (i32, i32) {
    %c0_i32 = arith.constant 0 : i32
    %c0_i32_0 = arith.constant 0 : i32
    %c0_i32_1 = arith.constant 0 : i32
    return %c0_i32, %c0_i32_0 : i32, i32
  }
}

module attributes {stable_mosaic.version = 11 : i64} {
  func.func @_conv3x3_kernel(%arg0: i32, %arg1: i32, %arg2: memref<1x8x16x128xf32, #tpu.memory_space<vmem>>, %arg3: memref<1x1x16x128xf32, #tpu.memory_space<vmem>>, %arg4: memref<1x1x16x128xf32, #tpu.memory_space<vmem>>, %arg5: memref<1152x128xbf16, #tpu.memory_space<vmem>>, %arg6: memref<1x128xf32, #tpu.memory_space<vmem>>, %arg7: memref<1x8x16x128xbf16, #tpu.memory_space<vmem>>, %arg8: memref<10x18x128xbf16, #tpu.memory_space<vmem>>) attributes {dimension_semantics = [#tpu.dimension_semantics<parallel>, #tpu.dimension_semantics<parallel>], iteration_bounds = array<i64: 2, 2>, scalar_prefetch = 0 : i64, scratch_operands = 1 : i64, tpu.core_type = #tpu.core_type<tc>, window_params = [{transform_indices = @transform_0, window_bounds = array<i64: 1, 8, 16, 128>}, {transform_indices = @transform_1, window_bounds = array<i64: 1, 1, 16, 128>}, {transform_indices = @transform_2, window_bounds = array<i64: 1, 1, 16, 128>}, {pipeline_mode = #tpu.pipeline_mode<synchronous>, transform_indices = @transform_3, window_bounds = array<i64: 1152, 128>}, {pipeline_mode = #tpu.pipeline_mode<synchronous>, transform_indices = @transform_4, window_bounds = array<i64: 1, 128>}, {transform_indices = @transform_5, window_bounds = array<i64: 1, 8, 16, 128>}]} {
    %cst = arith.constant 0.000000e+00 : bf16
    %0 = vector.broadcast %cst : bf16 to vector<10x1x128xbf16>
    %c0 = arith.constant 0 : index
    %c0_0 = arith.constant 0 : index
    %c0_1 = arith.constant 0 : index
    %1 = vector.load %arg8[%c0, %c0_0, %c0_1] : memref<10x18x128xbf16, #tpu.memory_space<vmem>>, vector<10x1x128xbf16>
    tpu.vector_store %arg8[%c0, %c0_0, %c0_1], %0 {strides = array<i32>} : memref<10x18x128xbf16, #tpu.memory_space<vmem>>, vector<10x1x128xbf16>,
    %c0_2 = arith.constant 0 : index
    %c17 = arith.constant 17 : index
    %c0_3 = arith.constant 0 : index
    %2 = vector.load %arg8[%c0_2, %c17, %c0_3] : memref<10x18x128xbf16, #tpu.memory_space<vmem>>, vector<10x1x128xbf16>
    tpu.vector_store %arg8[%c0_2, %c17, %c0_3], %0 {strides = array<i32>} : memref<10x18x128xbf16, #tpu.memory_space<vmem>>, vector<10x1x128xbf16>,
    %c0_4 = arith.constant 0 : index
    %c0_5 = arith.constant 0 : index
    %c0_6 = arith.constant 0 : index
    %c0_7 = arith.constant 0 : index
    %3 = vector.load %arg3[%c0_4, %c0_5, %c0_6, %c0_7] : memref<1x1x16x128xf32, #tpu.memory_space<vmem>>, vector<1x1x16x128xf32>
    %4 = arith.truncf %3 : vector<1x1x16x128xf32> to vector<1x1x16x128xbf16>
    %c0_8 = arith.constant 0 : index
    %c0_9 = arith.constant 0 : index
    %c0_10 = arith.constant 0 : index
    %c0_11 = arith.constant 0 : index
    %5 = vector.load %arg4[%c0_8, %c0_9, %c0_10, %c0_11] : memref<1x1x16x128xf32, #tpu.memory_space<vmem>>, vector<1x1x16x128xf32>
    %6 = arith.truncf %5 : vector<1x1x16x128xf32> to vector<1x1x16x128xbf16>
    %c0_i32 = arith.constant 0 : i32
    %7 = arith.cmpi sgt, %arg1, %c0_i32 : i32
    %cst_12 = arith.constant 0.000000e+00 : bf16
    %8 = vector.broadcast %cst_12 : bf16 to vector<1x1x16x128xbf16>
    %9 = arith.select %7, %4, %8 : vector<1x1x16x128xbf16>
    %10 = vector.shape_cast %9 : vector<1x1x16x128xbf16> to vector<1x16x128xbf16>
    %c1_i32 = arith.constant 1 : i32
    %11 = arith.cmpi slt, %arg1, %c1_i32 : i32
    %cst_13 = arith.constant 0.000000e+00 : bf16
    %12 = vector.broadcast %cst_13 : bf16 to vector<1x1x16x128xbf16>
    %13 = arith.select %11, %6, %12 : vector<1x1x16x128xbf16>
    %14 = vector.shape_cast %13 : vector<1x1x16x128xbf16> to vector<1x16x128xbf16>
    %c0_14 = arith.constant 0 : index
    %c1 = arith.constant 1 : index
    %c0_15 = arith.constant 0 : index
    %15 = vector.load %arg8[%c0_14, %c1, %c0_15] : memref<10x18x128xbf16, #tpu.memory_space<vmem>>, vector<1x16x128xbf16>
    tpu.vector_store %arg8[%c0_14, %c1, %c0_15], %10 {strides = array<i32>} : memref<10x18x128xbf16, #tpu.memory_space<vmem>>, vector<1x16x128xbf16>,
    %c9 = arith.constant 9 : index
    %c1_16 = arith.constant 1 : index
    %c0_17 = arith.constant 0 : index
    %16 = vector.load %arg8[%c9, %c1_16, %c0_17] : memref<10x18x128xbf16, #tpu.memory_space<vmem>>, vector<1x16x128xbf16>
    tpu.vector_store %arg8[%c9, %c1_16, %c0_17], %14 {strides = array<i32>} : memref<10x18x128xbf16, #tpu.memory_space<vmem>>, vector<1x16x128xbf16>,
    %c0_18 = arith.constant 0 : index
    %c0_19 = arith.constant 0 : index
    %c0_20 = arith.constant 0 : index
    %c0_21 = arith.constant 0 : index
    %17 = vector.load %arg2[%c0_18, %c0_19, %c0_20, %c0_21] : memref<1x8x16x128xf32, #tpu.memory_space<vmem>>, vector<1x8x16x128xf32>
    %18 = arith.truncf %17 : vector<1x8x16x128xf32> to vector<1x8x16x128xbf16>
    %19 = vector.shape_cast %18 : vector<1x8x16x128xbf16> to vector<8x16x128xbf16>
    %c1_22 = arith.constant 1 : index
    %c1_23 = arith.constant 1 : index
    %c0_24 = arith.constant 0 : index
    %20 = vector.load %arg8[%c1_22, %c1_23, %c0_24] : memref<10x18x128xbf16, #tpu.memory_space<vmem>>, vector<8x16x128xbf16>
    tpu.vector_store %arg8[%c1_22, %c1_23, %c0_24], %19 {strides = array<i32>} : memref<10x18x128xbf16, #tpu.memory_space<vmem>>, vector<8x16x128xbf16>,
    %c0_25 = arith.constant 0 : index
    %c0_26 = arith.constant 0 : index
    %c0_27 = arith.constant 0 : index
    %21 = vector.load %arg8[%c0_25, %c0_26, %c0_27] : memref<10x18x128xbf16, #tpu.memory_space<vmem>>, vector<10x18x128xbf16>
    %cst_28 = arith.constant 0.000000e+00 : f32
    %22 = vector.broadcast %cst_28 : f32 to vector<128x128xf32>
    %23 = vector.extract_strided_slice %21 {offsets = [0, 0, 0], sizes = [8, 16, 128], strides = [1, 1, 1]} : vector<10x18x128xbf16> to vector<8x16x128xbf16>
    %24 = vector.shape_cast %23 : vector<8x16x128xbf16> to vector<128x128xbf16>
    %c0_29 = arith.constant 0 : index
    %c0_30 = arith.constant 0 : index
    %25 = vector.load %arg5[%c0_29, %c0_30] : memref<1152x128xbf16, #tpu.memory_space<vmem>>, vector<128x128xbf16>
    %cst_31 = arith.constant dense<0.000000e+00> : vector<128x128xf32>
    %26 = tpu.matmul %24, %25, %cst_31 {dimension_numbers = #tpu.dot_dimension_numbers<[1], [0], [0], [1], [0, 0, 1, 1], [], []>} : vector<128x128xbf16>, vector<128x128xbf16>, vector<128x128xf32> -> vector<128x128xf32>
    %27 = arith.addf %22, %26 : vector<128x128xf32>
    %28 = vector.extract_strided_slice %21 {offsets = [0, 1, 0], sizes = [8, 16, 128], strides = [1, 1, 1]} : vector<10x18x128xbf16> to vector<8x16x128xbf16>
    %29 = vector.shape_cast %28 : vector<8x16x128xbf16> to vector<128x128xbf16>
    %c128 = arith.constant 128 : index
    %c0_32 = arith.constant 0 : index
    %30 = vector.load %arg5[%c128, %c0_32] : memref<1152x128xbf16, #tpu.memory_space<vmem>>, vector<128x128xbf16>
    %cst_33 = arith.constant dense<0.000000e+00> : vector<128x128xf32>
    %31 = tpu.matmul %29, %30, %cst_33 {dimension_numbers = #tpu.dot_dimension_numbers<[1], [0], [0], [1], [0, 0, 1, 1], [], []>} : vector<128x128xbf16>, vector<128x128xbf16>, vector<128x128xf32> -> vector<128x128xf32>
    %32 = arith.addf %27, %31 : vector<128x128xf32>
    %33 = vector.extract_strided_slice %21 {offsets = [0, 2, 0], sizes = [8, 16, 128], strides = [1, 1, 1]} : vector<10x18x128xbf16> to vector<8x16x128xbf16>
    %34 = vector.shape_cast %33 : vector<8x16x128xbf16> to vector<128x128xbf16>
    %c256 = arith.constant 256 : index
    %c0_34 = arith.constant 0 : index
    %35 = vector.load %arg5[%c256, %c0_34] : memref<1152x128xbf16, #tpu.memory_space<vmem>>, vector<128x128xbf16>
    %cst_35 = arith.constant dense<0.000000e+00> : vector<128x128xf32>
    %36 = tpu.matmul %34, %35, %cst_35 {dimension_numbers = #tpu.dot_dimension_numbers<[1], [0], [0], [1], [0, 0, 1, 1], [], []>} : vector<128x128xbf16>, vector<128x128xbf16>, vector<128x128xf32> -> vector<128x128xf32>
    %37 = arith.addf %32, %36 : vector<128x128xf32>
    %38 = vector.extract_strided_slice %21 {offsets = [1, 0, 0], sizes = [8, 16, 128], strides = [1, 1, 1]} : vector<10x18x128xbf16> to vector<8x16x128xbf16>
    %39 = vector.shape_cast %38 : vector<8x16x128xbf16> to vector<128x128xbf16>
    %c384 = arith.constant 384 : index
    %c0_36 = arith.constant 0 : index
    %40 = vector.load %arg5[%c384, %c0_36] : memref<1152x128xbf16, #tpu.memory_space<vmem>>, vector<128x128xbf16>
    %cst_37 = arith.constant dense<0.000000e+00> : vector<128x128xf32>
    %41 = tpu.matmul %39, %40, %cst_37 {dimension_numbers = #tpu.dot_dimension_numbers<[1], [0], [0], [1], [0, 0, 1, 1], [], []>} : vector<128x128xbf16>, vector<128x128xbf16>, vector<128x128xf32> -> vector<128x128xf32>
    %42 = arith.addf %37, %41 : vector<128x128xf32>
    %43 = vector.extract_strided_slice %21 {offsets = [1, 1, 0], sizes = [8, 16, 128], strides = [1, 1, 1]} : vector<10x18x128xbf16> to vector<8x16x128xbf16>
    %44 = vector.shape_cast %43 : vector<8x16x128xbf16> to vector<128x128xbf16>
    %c512 = arith.constant 512 : index
    %c0_38 = arith.constant 0 : index
    %45 = vector.load %arg5[%c512, %c0_38] : memref<1152x128xbf16, #tpu.memory_space<vmem>>, vector<128x128xbf16>
    %cst_39 = arith.constant dense<0.000000e+00> : vector<128x128xf32>
    %46 = tpu.matmul %44, %45, %cst_39 {dimension_numbers = #tpu.dot_dimension_numbers<[1], [0], [0], [1], [0, 0, 1, 1], [], []>} : vector<128x128xbf16>, vector<128x128xbf16>, vector<128x128xf32> -> vector<128x128xf32>
    %47 = arith.addf %42, %46 : vector<128x128xf32>
    %48 = vector.extract_strided_slice %21 {offsets = [1, 2, 0], sizes = [8, 16, 128], strides = [1, 1, 1]} : vector<10x18x128xbf16> to vector<8x16x128xbf16>
    %49 = vector.shape_cast %48 : vector<8x16x128xbf16> to vector<128x128xbf16>
    %c640 = arith.constant 640 : index
    %c0_40 = arith.constant 0 : index
    %50 = vector.load %arg5[%c640, %c0_40] : memref<1152x128xbf16, #tpu.memory_space<vmem>>, vector<128x128xbf16>
    %cst_41 = arith.constant dense<0.000000e+00> : vector<128x128xf32>
    %51 = tpu.matmul %49, %50, %cst_41 {dimension_numbers = #tpu.dot_dimension_numbers<[1], [0], [0], [1], [0, 0, 1, 1], [], []>} : vector<128x128xbf16>, vector<128x128xbf16>, vector<128x128xf32> -> vector<128x128xf32>
    %52 = arith.addf %47, %51 : vector<128x128xf32>
    %53 = vector.extract_strided_slice %21 {offsets = [2, 0, 0], sizes = [8, 16, 128], strides = [1, 1, 1]} : vector<10x18x128xbf16> to vector<8x16x128xbf16>
    %54 = vector.shape_cast %53 : vector<8x16x128xbf16> to vector<128x128xbf16>
    %c768 = arith.constant 768 : index
    %c0_42 = arith.constant 0 : index
    %55 = vector.load %arg5[%c768, %c0_42] : memref<1152x128xbf16, #tpu.memory_space<vmem>>, vector<128x128xbf16>
    %cst_43 = arith.constant dense<0.000000e+00> : vector<128x128xf32>
    %56 = tpu.matmul %54, %55, %cst_43 {dimension_numbers = #tpu.dot_dimension_numbers<[1], [0], [0], [1], [0, 0, 1, 1], [], []>} : vector<128x128xbf16>, vector<128x128xbf16>, vector<128x128xf32> -> vector<128x128xf32>
    %57 = arith.addf %52, %56 : vector<128x128xf32>
    %58 = vector.extract_strided_slice %21 {offsets = [2, 1, 0], sizes = [8, 16, 128], strides = [1, 1, 1]} : vector<10x18x128xbf16> to vector<8x16x128xbf16>
    %59 = vector.shape_cast %58 : vector<8x16x128xbf16> to vector<128x128xbf16>
    %c896 = arith.constant 896 : index
    %c0_44 = arith.constant 0 : index
    %60 = vector.load %arg5[%c896, %c0_44] : memref<1152x128xbf16, #tpu.memory_space<vmem>>, vector<128x128xbf16>
    %cst_45 = arith.constant dense<0.000000e+00> : vector<128x128xf32>
    %61 = tpu.matmul %59, %60, %cst_45 {dimension_numbers = #tpu.dot_dimension_numbers<[1], [0], [0], [1], [0, 0, 1, 1], [], []>} : vector<128x128xbf16>, vector<128x128xbf16>, vector<128x128xf32> -> vector<128x128xf32>
    %62 = arith.addf %57, %61 : vector<128x128xf32>
    %63 = vector.extract_strided_slice %21 {offsets = [2, 2, 0], sizes = [8, 16, 128], strides = [1, 1, 1]} : vector<10x18x128xbf16> to vector<8x16x128xbf16>
    %64 = vector.shape_cast %63 : vector<8x16x128xbf16> to vector<128x128xbf16>
    %c1024 = arith.constant 1024 : index
    %c0_46 = arith.constant 0 : index
    %65 = vector.load %arg5[%c1024, %c0_46] : memref<1152x128xbf16, #tpu.memory_space<vmem>>, vector<128x128xbf16>
    %cst_47 = arith.constant dense<0.000000e+00> : vector<128x128xf32>
    %66 = tpu.matmul %64, %65, %cst_47 {dimension_numbers = #tpu.dot_dimension_numbers<[1], [0], [0], [1], [0, 0, 1, 1], [], []>} : vector<128x128xbf16>, vector<128x128xbf16>, vector<128x128xf32> -> vector<128x128xf32>
    %67 = arith.addf %62, %66 : vector<128x128xf32>
    %c0_48 = arith.constant 0 : index
    %c0_49 = arith.constant 0 : index
    %68 = vector.load %arg6[%c0_48, %c0_49] : memref<1x128xf32, #tpu.memory_space<vmem>>, vector<1x128xf32>
    %69 = vector.broadcast %68 : vector<1x128xf32> to vector<128x128xf32>
    %70 = arith.addf %67, %69 : vector<128x128xf32>
    %cst_50 = arith.constant 0.000000e+00 : f32
    %71 = vector.broadcast %cst_50 : f32 to vector<128x128xf32>
    %72 = arith.maximumf %70, %71 : vector<128x128xf32>
    %73 = vector.shape_cast %72 : vector<128x128xf32> to vector<1x8x16x128xf32>
    %74 = arith.truncf %73 : vector<1x8x16x128xf32> to vector<1x8x16x128xbf16>
    %c0_51 = arith.constant 0 : index
    %c0_52 = arith.constant 0 : index
    %c0_53 = arith.constant 0 : index
    %c0_54 = arith.constant 0 : index
    %75 = vector.load %arg7[%c0_51, %c0_52, %c0_53, %c0_54] : memref<1x8x16x128xbf16, #tpu.memory_space<vmem>>, vector<1x8x16x128xbf16>
    tpu.vector_store %arg7[%c0_51, %c0_52, %c0_53, %c0_54], %74 {strides = array<i32>} : memref<1x8x16x128xbf16, #tpu.memory_space<vmem>>, vector<1x8x16x128xbf16>,
    return
  }
  func.func @transform_0(%arg0: i32, %arg1: i32) -> (i32, i32, i32, i32) {
    %c0_i32 = arith.constant 0 : i32
    %c0_i32_0 = arith.constant 0 : i32
    %c0_i32_1 = arith.constant 0 : i32
    return %arg0, %arg1, %c0_i32, %c0_i32_0 : i32, i32, i32, i32
  }
  func.func @transform_1(%arg0: i32, %arg1: i32) -> (i32, i32, i32, i32) {
    %c8_i32 = arith.constant 8 : i32
    %0 = arith.muli %arg1, %c8_i32 : i32
    %c1_i32 = arith.constant 1 : i32
    %1 = arith.subi %0, %c1_i32 : i32
    %c0_i32 = arith.constant 0 : i32
    %2 = arith.maxsi %1, %c0_i32 : i32
    %c0_i32_0 = arith.constant 0 : i32
    %c0_i32_1 = arith.constant 0 : i32
    %c0_i32_2 = arith.constant 0 : i32
    return %arg0, %2, %c0_i32_0, %c0_i32_1 : i32, i32, i32, i32
  }
  func.func @transform_2(%arg0: i32, %arg1: i32) -> (i32, i32, i32, i32) {
    %c8_i32 = arith.constant 8 : i32
    %0 = arith.muli %arg1, %c8_i32 : i32
    %c8_i32_0 = arith.constant 8 : i32
    %1 = arith.addi %0, %c8_i32_0 : i32
    %c15_i32 = arith.constant 15 : i32
    %2 = arith.minsi %1, %c15_i32 : i32
    %c0_i32 = arith.constant 0 : i32
    %c0_i32_1 = arith.constant 0 : i32
    %c0_i32_2 = arith.constant 0 : i32
    return %arg0, %2, %c0_i32, %c0_i32_1 : i32, i32, i32, i32
  }
  func.func @transform_3(%arg0: i32, %arg1: i32) -> (i32, i32) {
    %c0_i32 = arith.constant 0 : i32
    %c0_i32_0 = arith.constant 0 : i32
    %c0_i32_1 = arith.constant 0 : i32
    return %c0_i32, %c0_i32_0 : i32, i32
  }
  func.func @transform_4(%arg0: i32, %arg1: i32) -> (i32, i32) {
    %c0_i32 = arith.constant 0 : i32
    %c0_i32_0 = arith.constant 0 : i32
    %c0_i32_1 = arith.constant 0 : i32
    return %c0_i32, %c0_i32_0 : i32, i32
  }
  func.func @transform_5(%arg0: i32, %arg1: i32) -> (i32, i32, i32, i32) {
    %c0_i32 = arith.constant 0 : i32
    %c0_i32_0 = arith.constant 0 : i32
    %c0_i32_1 = arith.constant 0 : i32
    return %arg0, %arg1, %c0_i32, %c0_i32_0 : i32, i32, i32, i32
  }
}

module attributes {stable_mosaic.version = 11 : i64} {
  func.func @_spade_modulate_kernel(%arg0: i32, %arg1: i32, %arg2: memref<1x8x16x128xf32, #tpu.memory_space<vmem>>, %arg3: memref<1x8x16x128xbf16, #tpu.memory_space<vmem>>, %arg4: memref<1x1x16x128xbf16, #tpu.memory_space<vmem>>, %arg5: memref<1x1x16x128xbf16, #tpu.memory_space<vmem>>, %arg6: memref<1152x256xbf16, #tpu.memory_space<vmem>>, %arg7: memref<1x256xf32, #tpu.memory_space<vmem>>, %arg8: memref<1x128xf32, #tpu.memory_space<vmem>>, %arg9: memref<1x128xf32, #tpu.memory_space<vmem>>, %arg10: memref<1x8x16x128xbf16, #tpu.memory_space<vmem>>, %arg11: memref<10x18x128xbf16, #tpu.memory_space<vmem>>) attributes {dimension_semantics = [#tpu.dimension_semantics<parallel>, #tpu.dimension_semantics<parallel>], iteration_bounds = array<i64: 2, 2>, scalar_prefetch = 0 : i64, scratch_operands = 1 : i64, tpu.core_type = #tpu.core_type<tc>, window_params = [{transform_indices = @transform_0, window_bounds = array<i64: 1, 8, 16, 128>}, {transform_indices = @transform_1, window_bounds = array<i64: 1, 8, 16, 128>}, {transform_indices = @transform_2, window_bounds = array<i64: 1, 1, 16, 128>}, {transform_indices = @transform_3, window_bounds = array<i64: 1, 1, 16, 128>}, {pipeline_mode = #tpu.pipeline_mode<synchronous>, transform_indices = @transform_4, window_bounds = array<i64: 1152, 256>}, {pipeline_mode = #tpu.pipeline_mode<synchronous>, transform_indices = @transform_5, window_bounds = array<i64: 1, 256>}, {pipeline_mode = #tpu.pipeline_mode<synchronous>, transform_indices = @transform_6, window_bounds = array<i64: 1, 128>}, {pipeline_mode = #tpu.pipeline_mode<synchronous>, transform_indices = @transform_7, window_bounds = array<i64: 1, 128>}, {transform_indices = @transform_8, window_bounds = array<i64: 1, 8, 16, 128>}]} {
    %cst = arith.constant 0.000000e+00 : bf16
    %0 = vector.broadcast %cst : bf16 to vector<10x1x128xbf16>
    %c0 = arith.constant 0 : index
    %c0_0 = arith.constant 0 : index
    %c0_1 = arith.constant 0 : index
    %1 = vector.load %arg11[%c0, %c0_0, %c0_1] : memref<10x18x128xbf16, #tpu.memory_space<vmem>>, vector<10x1x128xbf16>
    tpu.vector_store %arg11[%c0, %c0_0, %c0_1], %0 {strides = array<i32>} : memref<10x18x128xbf16, #tpu.memory_space<vmem>>, vector<10x1x128xbf16>,
    %c0_2 = arith.constant 0 : index
    %c17 = arith.constant 17 : index
    %c0_3 = arith.constant 0 : index
    %2 = vector.load %arg11[%c0_2, %c17, %c0_3] : memref<10x18x128xbf16, #tpu.memory_space<vmem>>, vector<10x1x128xbf16>
    tpu.vector_store %arg11[%c0_2, %c17, %c0_3], %0 {strides = array<i32>} : memref<10x18x128xbf16, #tpu.memory_space<vmem>>, vector<10x1x128xbf16>,
    %c0_4 = arith.constant 0 : index
    %c0_5 = arith.constant 0 : index
    %c0_6 = arith.constant 0 : index
    %c0_7 = arith.constant 0 : index
    %3 = vector.load %arg4[%c0_4, %c0_5, %c0_6, %c0_7] : memref<1x1x16x128xbf16, #tpu.memory_space<vmem>>, vector<1x1x16x128xbf16>
    %c0_8 = arith.constant 0 : index
    %c0_9 = arith.constant 0 : index
    %c0_10 = arith.constant 0 : index
    %c0_11 = arith.constant 0 : index
    %4 = vector.load %arg5[%c0_8, %c0_9, %c0_10, %c0_11] : memref<1x1x16x128xbf16, #tpu.memory_space<vmem>>, vector<1x1x16x128xbf16>
    %c0_i32 = arith.constant 0 : i32
    %5 = arith.cmpi sgt, %arg1, %c0_i32 : i32
    %cst_12 = arith.constant 0.000000e+00 : bf16
    %6 = vector.broadcast %cst_12 : bf16 to vector<1x1x16x128xbf16>
    %7 = arith.select %5, %3, %6 : vector<1x1x16x128xbf16>
    %8 = vector.shape_cast %7 : vector<1x1x16x128xbf16> to vector<1x16x128xbf16>
    %c1_i32 = arith.constant 1 : i32
    %9 = arith.cmpi slt, %arg1, %c1_i32 : i32
    %cst_13 = arith.constant 0.000000e+00 : bf16
    %10 = vector.broadcast %cst_13 : bf16 to vector<1x1x16x128xbf16>
    %11 = arith.select %9, %4, %10 : vector<1x1x16x128xbf16>
    %12 = vector.shape_cast %11 : vector<1x1x16x128xbf16> to vector<1x16x128xbf16>
    %c0_14 = arith.constant 0 : index
    %c1 = arith.constant 1 : index
    %c0_15 = arith.constant 0 : index
    %13 = vector.load %arg11[%c0_14, %c1, %c0_15] : memref<10x18x128xbf16, #tpu.memory_space<vmem>>, vector<1x16x128xbf16>
    tpu.vector_store %arg11[%c0_14, %c1, %c0_15], %8 {strides = array<i32>} : memref<10x18x128xbf16, #tpu.memory_space<vmem>>, vector<1x16x128xbf16>,
    %c9 = arith.constant 9 : index
    %c1_16 = arith.constant 1 : index
    %c0_17 = arith.constant 0 : index
    %14 = vector.load %arg11[%c9, %c1_16, %c0_17] : memref<10x18x128xbf16, #tpu.memory_space<vmem>>, vector<1x16x128xbf16>
    tpu.vector_store %arg11[%c9, %c1_16, %c0_17], %12 {strides = array<i32>} : memref<10x18x128xbf16, #tpu.memory_space<vmem>>, vector<1x16x128xbf16>,
    %c0_18 = arith.constant 0 : index
    %c0_19 = arith.constant 0 : index
    %c0_20 = arith.constant 0 : index
    %c0_21 = arith.constant 0 : index
    %15 = vector.load %arg3[%c0_18, %c0_19, %c0_20, %c0_21] : memref<1x8x16x128xbf16, #tpu.memory_space<vmem>>, vector<1x8x16x128xbf16>
    %16 = vector.shape_cast %15 : vector<1x8x16x128xbf16> to vector<8x16x128xbf16>
    %c1_22 = arith.constant 1 : index
    %c1_23 = arith.constant 1 : index
    %c0_24 = arith.constant 0 : index
    %17 = vector.load %arg11[%c1_22, %c1_23, %c0_24] : memref<10x18x128xbf16, #tpu.memory_space<vmem>>, vector<8x16x128xbf16>
    tpu.vector_store %arg11[%c1_22, %c1_23, %c0_24], %16 {strides = array<i32>} : memref<10x18x128xbf16, #tpu.memory_space<vmem>>, vector<8x16x128xbf16>,
    %c0_25 = arith.constant 0 : index
    %c0_26 = arith.constant 0 : index
    %c0_27 = arith.constant 0 : index
    %18 = vector.load %arg11[%c0_25, %c0_26, %c0_27] : memref<10x18x128xbf16, #tpu.memory_space<vmem>>, vector<10x18x128xbf16>
    %cst_28 = arith.constant 0.000000e+00 : f32
    %19 = vector.broadcast %cst_28 : f32 to vector<128x256xf32>
    %20 = vector.extract_strided_slice %18 {offsets = [0, 0, 0], sizes = [8, 16, 128], strides = [1, 1, 1]} : vector<10x18x128xbf16> to vector<8x16x128xbf16>
    %21 = vector.shape_cast %20 : vector<8x16x128xbf16> to vector<128x128xbf16>
    %c0_29 = arith.constant 0 : index
    %c0_30 = arith.constant 0 : index
    %22 = vector.load %arg6[%c0_29, %c0_30] : memref<1152x256xbf16, #tpu.memory_space<vmem>>, vector<128x256xbf16>
    %cst_31 = arith.constant dense<0.000000e+00> : vector<128x256xf32>
    %23 = tpu.matmul %21, %22, %cst_31 {dimension_numbers = #tpu.dot_dimension_numbers<[1], [0], [0], [1], [0, 0, 1, 1], [], []>} : vector<128x128xbf16>, vector<128x256xbf16>, vector<128x256xf32> -> vector<128x256xf32>
    %24 = arith.addf %19, %23 : vector<128x256xf32>
    %25 = vector.extract_strided_slice %18 {offsets = [0, 1, 0], sizes = [8, 16, 128], strides = [1, 1, 1]} : vector<10x18x128xbf16> to vector<8x16x128xbf16>
    %26 = vector.shape_cast %25 : vector<8x16x128xbf16> to vector<128x128xbf16>
    %c128 = arith.constant 128 : index
    %c0_32 = arith.constant 0 : index
    %27 = vector.load %arg6[%c128, %c0_32] : memref<1152x256xbf16, #tpu.memory_space<vmem>>, vector<128x256xbf16>
    %cst_33 = arith.constant dense<0.000000e+00> : vector<128x256xf32>
    %28 = tpu.matmul %26, %27, %cst_33 {dimension_numbers = #tpu.dot_dimension_numbers<[1], [0], [0], [1], [0, 0, 1, 1], [], []>} : vector<128x128xbf16>, vector<128x256xbf16>, vector<128x256xf32> -> vector<128x256xf32>
    %29 = arith.addf %24, %28 : vector<128x256xf32>
    %30 = vector.extract_strided_slice %18 {offsets = [0, 2, 0], sizes = [8, 16, 128], strides = [1, 1, 1]} : vector<10x18x128xbf16> to vector<8x16x128xbf16>
    %31 = vector.shape_cast %30 : vector<8x16x128xbf16> to vector<128x128xbf16>
    %c256 = arith.constant 256 : index
    %c0_34 = arith.constant 0 : index
    %32 = vector.load %arg6[%c256, %c0_34] : memref<1152x256xbf16, #tpu.memory_space<vmem>>, vector<128x256xbf16>
    %cst_35 = arith.constant dense<0.000000e+00> : vector<128x256xf32>
    %33 = tpu.matmul %31, %32, %cst_35 {dimension_numbers = #tpu.dot_dimension_numbers<[1], [0], [0], [1], [0, 0, 1, 1], [], []>} : vector<128x128xbf16>, vector<128x256xbf16>, vector<128x256xf32> -> vector<128x256xf32>
    %34 = arith.addf %29, %33 : vector<128x256xf32>
    %35 = vector.extract_strided_slice %18 {offsets = [1, 0, 0], sizes = [8, 16, 128], strides = [1, 1, 1]} : vector<10x18x128xbf16> to vector<8x16x128xbf16>
    %36 = vector.shape_cast %35 : vector<8x16x128xbf16> to vector<128x128xbf16>
    %c384 = arith.constant 384 : index
    %c0_36 = arith.constant 0 : index
    %37 = vector.load %arg6[%c384, %c0_36] : memref<1152x256xbf16, #tpu.memory_space<vmem>>, vector<128x256xbf16>
    %cst_37 = arith.constant dense<0.000000e+00> : vector<128x256xf32>
    %38 = tpu.matmul %36, %37, %cst_37 {dimension_numbers = #tpu.dot_dimension_numbers<[1], [0], [0], [1], [0, 0, 1, 1], [], []>} : vector<128x128xbf16>, vector<128x256xbf16>, vector<128x256xf32> -> vector<128x256xf32>
    %39 = arith.addf %34, %38 : vector<128x256xf32>
    %40 = vector.extract_strided_slice %18 {offsets = [1, 1, 0], sizes = [8, 16, 128], strides = [1, 1, 1]} : vector<10x18x128xbf16> to vector<8x16x128xbf16>
    %41 = vector.shape_cast %40 : vector<8x16x128xbf16> to vector<128x128xbf16>
    %c512 = arith.constant 512 : index
    %c0_38 = arith.constant 0 : index
    %42 = vector.load %arg6[%c512, %c0_38] : memref<1152x256xbf16, #tpu.memory_space<vmem>>, vector<128x256xbf16>
    %cst_39 = arith.constant dense<0.000000e+00> : vector<128x256xf32>
    %43 = tpu.matmul %41, %42, %cst_39 {dimension_numbers = #tpu.dot_dimension_numbers<[1], [0], [0], [1], [0, 0, 1, 1], [], []>} : vector<128x128xbf16>, vector<128x256xbf16>, vector<128x256xf32> -> vector<128x256xf32>
    %44 = arith.addf %39, %43 : vector<128x256xf32>
    %45 = vector.extract_strided_slice %18 {offsets = [1, 2, 0], sizes = [8, 16, 128], strides = [1, 1, 1]} : vector<10x18x128xbf16> to vector<8x16x128xbf16>
    %46 = vector.shape_cast %45 : vector<8x16x128xbf16> to vector<128x128xbf16>
    %c640 = arith.constant 640 : index
    %c0_40 = arith.constant 0 : index
    %47 = vector.load %arg6[%c640, %c0_40] : memref<1152x256xbf16, #tpu.memory_space<vmem>>, vector<128x256xbf16>
    %cst_41 = arith.constant dense<0.000000e+00> : vector<128x256xf32>
    %48 = tpu.matmul %46, %47, %cst_41 {dimension_numbers = #tpu.dot_dimension_numbers<[1], [0], [0], [1], [0, 0, 1, 1], [], []>} : vector<128x128xbf16>, vector<128x256xbf16>, vector<128x256xf32> -> vector<128x256xf32>
    %49 = arith.addf %44, %48 : vector<128x256xf32>
    %50 = vector.extract_strided_slice %18 {offsets = [2, 0, 0], sizes = [8, 16, 128], strides = [1, 1, 1]} : vector<10x18x128xbf16> to vector<8x16x128xbf16>
    %51 = vector.shape_cast %50 : vector<8x16x128xbf16> to vector<128x128xbf16>
    %c768 = arith.constant 768 : index
    %c0_42 = arith.constant 0 : index
    %52 = vector.load %arg6[%c768, %c0_42] : memref<1152x256xbf16, #tpu.memory_space<vmem>>, vector<128x256xbf16>
    %cst_43 = arith.constant dense<0.000000e+00> : vector<128x256xf32>
    %53 = tpu.matmul %51, %52, %cst_43 {dimension_numbers = #tpu.dot_dimension_numbers<[1], [0], [0], [1], [0, 0, 1, 1], [], []>} : vector<128x128xbf16>, vector<128x256xbf16>, vector<128x256xf32> -> vector<128x256xf32>
    %54 = arith.addf %49, %53 : vector<128x256xf32>
    %55 = vector.extract_strided_slice %18 {offsets = [2, 1, 0], sizes = [8, 16, 128], strides = [1, 1, 1]} : vector<10x18x128xbf16> to vector<8x16x128xbf16>
    %56 = vector.shape_cast %55 : vector<8x16x128xbf16> to vector<128x128xbf16>
    %c896 = arith.constant 896 : index
    %c0_44 = arith.constant 0 : index
    %57 = vector.load %arg6[%c896, %c0_44] : memref<1152x256xbf16, #tpu.memory_space<vmem>>, vector<128x256xbf16>
    %cst_45 = arith.constant dense<0.000000e+00> : vector<128x256xf32>
    %58 = tpu.matmul %56, %57, %cst_45 {dimension_numbers = #tpu.dot_dimension_numbers<[1], [0], [0], [1], [0, 0, 1, 1], [], []>} : vector<128x128xbf16>, vector<128x256xbf16>, vector<128x256xf32> -> vector<128x256xf32>
    %59 = arith.addf %54, %58 : vector<128x256xf32>
    %60 = vector.extract_strided_slice %18 {offsets = [2, 2, 0], sizes = [8, 16, 128], strides = [1, 1, 1]} : vector<10x18x128xbf16> to vector<8x16x128xbf16>
    %61 = vector.shape_cast %60 : vector<8x16x128xbf16> to vector<128x128xbf16>
    %c1024 = arith.constant 1024 : index
    %c0_46 = arith.constant 0 : index
    %62 = vector.load %arg6[%c1024, %c0_46] : memref<1152x256xbf16, #tpu.memory_space<vmem>>, vector<128x256xbf16>
    %cst_47 = arith.constant dense<0.000000e+00> : vector<128x256xf32>
    %63 = tpu.matmul %61, %62, %cst_47 {dimension_numbers = #tpu.dot_dimension_numbers<[1], [0], [0], [1], [0, 0, 1, 1], [], []>} : vector<128x128xbf16>, vector<128x256xbf16>, vector<128x256xf32> -> vector<128x256xf32>
    %64 = arith.addf %59, %63 : vector<128x256xf32>
    %c0_48 = arith.constant 0 : index
    %c0_49 = arith.constant 0 : index
    %65 = vector.load %arg7[%c0_48, %c0_49] : memref<1x256xf32, #tpu.memory_space<vmem>>, vector<1x256xf32>
    %66 = vector.broadcast %65 : vector<1x256xf32> to vector<128x256xf32>
    %67 = arith.addf %64, %66 : vector<128x256xf32>
    %68 = vector.extract_strided_slice %67 {offsets = [0, 0], sizes = [128, 128], strides = [1, 1]} : vector<128x256xf32> to vector<128x128xf32>
    %69 = vector.extract_strided_slice %67 {offsets = [0, 128], sizes = [128, 128], strides = [1, 1]} : vector<128x256xf32> to vector<128x128xf32>
    %c0_50 = arith.constant 0 : index
    %c0_51 = arith.constant 0 : index
    %c0_52 = arith.constant 0 : index
    %c0_53 = arith.constant 0 : index
    %70 = vector.load %arg2[%c0_50, %c0_51, %c0_52, %c0_53] : memref<1x8x16x128xf32, #tpu.memory_space<vmem>>, vector<1x8x16x128xf32>
    %71 = vector.shape_cast %70 : vector<1x8x16x128xf32> to vector<128x128xf32>
    %c0_54 = arith.constant 0 : index
    %c0_55 = arith.constant 0 : index
    %72 = vector.load %arg8[%c0_54, %c0_55] : memref<1x128xf32, #tpu.memory_space<vmem>>, vector<1x128xf32>
    %73 = vector.broadcast %72 : vector<1x128xf32> to vector<128x128xf32>
    %74 = arith.subf %71, %73 : vector<128x128xf32>
    %c0_56 = arith.constant 0 : index
    %c0_57 = arith.constant 0 : index
    %75 = vector.load %arg9[%c0_56, %c0_57] : memref<1x128xf32, #tpu.memory_space<vmem>>, vector<1x128xf32>
    %76 = vector.broadcast %75 : vector<1x128xf32> to vector<128x128xf32>
    %77 = arith.mulf %74, %76 : vector<128x128xf32>
    %cst_58 = arith.constant 1.000000e+00 : f32
    %78 = vector.broadcast %cst_58 : f32 to vector<128x128xf32>
    %79 = arith.addf %78, %68 : vector<128x128xf32>
    %80 = arith.mulf %77, %79 : vector<128x128xf32>
    %81 = arith.addf %80, %69 : vector<128x128xf32>
    %cst_59 = arith.constant 0.000000e+00 : f32
    %82 = vector.broadcast %cst_59 : f32 to vector<128x128xf32>
    %83 = arith.maximumf %81, %82 : vector<128x128xf32>
    %84 = vector.shape_cast %83 : vector<128x128xf32> to vector<1x8x16x128xf32>
    %85 = arith.truncf %84 : vector<1x8x16x128xf32> to vector<1x8x16x128xbf16>
    %c0_60 = arith.constant 0 : index
    %c0_61 = arith.constant 0 : index
    %c0_62 = arith.constant 0 : index
    %c0_63 = arith.constant 0 : index
    %86 = vector.load %arg10[%c0_60, %c0_61, %c0_62, %c0_63] : memref<1x8x16x128xbf16, #tpu.memory_space<vmem>>, vector<1x8x16x128xbf16>
    tpu.vector_store %arg10[%c0_60, %c0_61, %c0_62, %c0_63], %85 {strides = array<i32>} : memref<1x8x16x128xbf16, #tpu.memory_space<vmem>>, vector<1x8x16x128xbf16>,
    return
  }
  func.func @transform_0(%arg0: i32, %arg1: i32) -> (i32, i32, i32, i32) {
    %c0_i32 = arith.constant 0 : i32
    %c0_i32_0 = arith.constant 0 : i32
    %c0_i32_1 = arith.constant 0 : i32
    return %arg0, %arg1, %c0_i32, %c0_i32_0 : i32, i32, i32, i32
  }
  func.func @transform_1(%arg0: i32, %arg1: i32) -> (i32, i32, i32, i32) {
    %c0_i32 = arith.constant 0 : i32
    %c0_i32_0 = arith.constant 0 : i32
    %c0_i32_1 = arith.constant 0 : i32
    return %arg0, %arg1, %c0_i32, %c0_i32_0 : i32, i32, i32, i32
  }
  func.func @transform_2(%arg0: i32, %arg1: i32) -> (i32, i32, i32, i32) {
    %c8_i32 = arith.constant 8 : i32
    %0 = arith.muli %arg1, %c8_i32 : i32
    %c1_i32 = arith.constant 1 : i32
    %1 = arith.subi %0, %c1_i32 : i32
    %c0_i32 = arith.constant 0 : i32
    %2 = arith.maxsi %1, %c0_i32 : i32
    %c0_i32_0 = arith.constant 0 : i32
    %c0_i32_1 = arith.constant 0 : i32
    %c0_i32_2 = arith.constant 0 : i32
    return %arg0, %2, %c0_i32_0, %c0_i32_1 : i32, i32, i32, i32
  }
  func.func @transform_3(%arg0: i32, %arg1: i32) -> (i32, i32, i32, i32) {
    %c8_i32 = arith.constant 8 : i32
    %0 = arith.muli %arg1, %c8_i32 : i32
    %c8_i32_0 = arith.constant 8 : i32
    %1 = arith.addi %0, %c8_i32_0 : i32
    %c15_i32 = arith.constant 15 : i32
    %2 = arith.minsi %1, %c15_i32 : i32
    %c0_i32 = arith.constant 0 : i32
    %c0_i32_1 = arith.constant 0 : i32
    %c0_i32_2 = arith.constant 0 : i32
    return %arg0, %2, %c0_i32, %c0_i32_1 : i32, i32, i32, i32
  }
  func.func @transform_4(%arg0: i32, %arg1: i32) -> (i32, i32) {
    %c0_i32 = arith.constant 0 : i32
    %c0_i32_0 = arith.constant 0 : i32
    %c0_i32_1 = arith.constant 0 : i32
    return %c0_i32, %c0_i32_0 : i32, i32
  }
  func.func @transform_5(%arg0: i32, %arg1: i32) -> (i32, i32) {
    %c0_i32 = arith.constant 0 : i32
    %c0_i32_0 = arith.constant 0 : i32
    %c0_i32_1 = arith.constant 0 : i32
    return %c0_i32, %c0_i32_0 : i32, i32
  }
  func.func @transform_6(%arg0: i32, %arg1: i32) -> (i32, i32) {
    %c0_i32 = arith.constant 0 : i32
    %c0_i32_0 = arith.constant 0 : i32
    %c0_i32_1 = arith.constant 0 : i32
    return %c0_i32, %c0_i32_0 : i32, i32
  }
  func.func @transform_7(%arg0: i32, %arg1: i32) -> (i32, i32) {
    %c0_i32 = arith.constant 0 : i32
    %c0_i32_0 = arith.constant 0 : i32
    %c0_i32_1 = arith.constant 0 : i32
    return %c0_i32, %c0_i32_0 : i32, i32
  }
  func.func @transform_8(%arg0: i32, %arg1: i32) -> (i32, i32, i32, i32) {
    %c0_i32 = arith.constant 0 : i32
    %c0_i32_0 = arith.constant 0 : i32
    %c0_i32_1 = arith.constant 0 : i32
    return %arg0, %arg1, %c0_i32, %c0_i32_0 : i32, i32, i32, i32
  }
}

module attributes {stable_mosaic.version = 11 : i64} {
  func.func @_conv3x3_kernel(%arg0: i32, %arg1: i32, %arg2: memref<1x8x16x128xbf16, #tpu.memory_space<vmem>>, %arg3: memref<1x1x16x128xbf16, #tpu.memory_space<vmem>>, %arg4: memref<1x1x16x128xbf16, #tpu.memory_space<vmem>>, %arg5: memref<1152x128xbf16, #tpu.memory_space<vmem>>, %arg6: memref<1x128xf32, #tpu.memory_space<vmem>>, %arg7: memref<1x8x16x128xf32, #tpu.memory_space<vmem>>, %arg8: memref<10x18x128xbf16, #tpu.memory_space<vmem>>) attributes {dimension_semantics = [#tpu.dimension_semantics<parallel>, #tpu.dimension_semantics<parallel>], iteration_bounds = array<i64: 2, 2>, scalar_prefetch = 0 : i64, scratch_operands = 1 : i64, tpu.core_type = #tpu.core_type<tc>, window_params = [{transform_indices = @transform_0, window_bounds = array<i64: 1, 8, 16, 128>}, {transform_indices = @transform_1, window_bounds = array<i64: 1, 1, 16, 128>}, {transform_indices = @transform_2, window_bounds = array<i64: 1, 1, 16, 128>}, {pipeline_mode = #tpu.pipeline_mode<synchronous>, transform_indices = @transform_3, window_bounds = array<i64: 1152, 128>}, {pipeline_mode = #tpu.pipeline_mode<synchronous>, transform_indices = @transform_4, window_bounds = array<i64: 1, 128>}, {transform_indices = @transform_5, window_bounds = array<i64: 1, 8, 16, 128>}]} {
    %cst = arith.constant 0.000000e+00 : bf16
    %0 = vector.broadcast %cst : bf16 to vector<10x1x128xbf16>
    %c0 = arith.constant 0 : index
    %c0_0 = arith.constant 0 : index
    %c0_1 = arith.constant 0 : index
    %1 = vector.load %arg8[%c0, %c0_0, %c0_1] : memref<10x18x128xbf16, #tpu.memory_space<vmem>>, vector<10x1x128xbf16>
    tpu.vector_store %arg8[%c0, %c0_0, %c0_1], %0 {strides = array<i32>} : memref<10x18x128xbf16, #tpu.memory_space<vmem>>, vector<10x1x128xbf16>,
    %c0_2 = arith.constant 0 : index
    %c17 = arith.constant 17 : index
    %c0_3 = arith.constant 0 : index
    %2 = vector.load %arg8[%c0_2, %c17, %c0_3] : memref<10x18x128xbf16, #tpu.memory_space<vmem>>, vector<10x1x128xbf16>
    tpu.vector_store %arg8[%c0_2, %c17, %c0_3], %0 {strides = array<i32>} : memref<10x18x128xbf16, #tpu.memory_space<vmem>>, vector<10x1x128xbf16>,
    %c0_4 = arith.constant 0 : index
    %c0_5 = arith.constant 0 : index
    %c0_6 = arith.constant 0 : index
    %c0_7 = arith.constant 0 : index
    %3 = vector.load %arg3[%c0_4, %c0_5, %c0_6, %c0_7] : memref<1x1x16x128xbf16, #tpu.memory_space<vmem>>, vector<1x1x16x128xbf16>
    %c0_8 = arith.constant 0 : index
    %c0_9 = arith.constant 0 : index
    %c0_10 = arith.constant 0 : index
    %c0_11 = arith.constant 0 : index
    %4 = vector.load %arg4[%c0_8, %c0_9, %c0_10, %c0_11] : memref<1x1x16x128xbf16, #tpu.memory_space<vmem>>, vector<1x1x16x128xbf16>
    %c0_i32 = arith.constant 0 : i32
    %5 = arith.cmpi sgt, %arg1, %c0_i32 : i32
    %cst_12 = arith.constant 0.000000e+00 : bf16
    %6 = vector.broadcast %cst_12 : bf16 to vector<1x1x16x128xbf16>
    %7 = arith.select %5, %3, %6 : vector<1x1x16x128xbf16>
    %8 = vector.shape_cast %7 : vector<1x1x16x128xbf16> to vector<1x16x128xbf16>
    %c1_i32 = arith.constant 1 : i32
    %9 = arith.cmpi slt, %arg1, %c1_i32 : i32
    %cst_13 = arith.constant 0.000000e+00 : bf16
    %10 = vector.broadcast %cst_13 : bf16 to vector<1x1x16x128xbf16>
    %11 = arith.select %9, %4, %10 : vector<1x1x16x128xbf16>
    %12 = vector.shape_cast %11 : vector<1x1x16x128xbf16> to vector<1x16x128xbf16>
    %c0_14 = arith.constant 0 : index
    %c1 = arith.constant 1 : index
    %c0_15 = arith.constant 0 : index
    %13 = vector.load %arg8[%c0_14, %c1, %c0_15] : memref<10x18x128xbf16, #tpu.memory_space<vmem>>, vector<1x16x128xbf16>
    tpu.vector_store %arg8[%c0_14, %c1, %c0_15], %8 {strides = array<i32>} : memref<10x18x128xbf16, #tpu.memory_space<vmem>>, vector<1x16x128xbf16>,
    %c9 = arith.constant 9 : index
    %c1_16 = arith.constant 1 : index
    %c0_17 = arith.constant 0 : index
    %14 = vector.load %arg8[%c9, %c1_16, %c0_17] : memref<10x18x128xbf16, #tpu.memory_space<vmem>>, vector<1x16x128xbf16>
    tpu.vector_store %arg8[%c9, %c1_16, %c0_17], %12 {strides = array<i32>} : memref<10x18x128xbf16, #tpu.memory_space<vmem>>, vector<1x16x128xbf16>,
    %c0_18 = arith.constant 0 : index
    %c0_19 = arith.constant 0 : index
    %c0_20 = arith.constant 0 : index
    %c0_21 = arith.constant 0 : index
    %15 = vector.load %arg2[%c0_18, %c0_19, %c0_20, %c0_21] : memref<1x8x16x128xbf16, #tpu.memory_space<vmem>>, vector<1x8x16x128xbf16>
    %16 = vector.shape_cast %15 : vector<1x8x16x128xbf16> to vector<8x16x128xbf16>
    %c1_22 = arith.constant 1 : index
    %c1_23 = arith.constant 1 : index
    %c0_24 = arith.constant 0 : index
    %17 = vector.load %arg8[%c1_22, %c1_23, %c0_24] : memref<10x18x128xbf16, #tpu.memory_space<vmem>>, vector<8x16x128xbf16>
    tpu.vector_store %arg8[%c1_22, %c1_23, %c0_24], %16 {strides = array<i32>} : memref<10x18x128xbf16, #tpu.memory_space<vmem>>, vector<8x16x128xbf16>,
    %c0_25 = arith.constant 0 : index
    %c0_26 = arith.constant 0 : index
    %c0_27 = arith.constant 0 : index
    %18 = vector.load %arg8[%c0_25, %c0_26, %c0_27] : memref<10x18x128xbf16, #tpu.memory_space<vmem>>, vector<10x18x128xbf16>
    %cst_28 = arith.constant 0.000000e+00 : f32
    %19 = vector.broadcast %cst_28 : f32 to vector<128x128xf32>
    %20 = vector.extract_strided_slice %18 {offsets = [0, 0, 0], sizes = [8, 16, 128], strides = [1, 1, 1]} : vector<10x18x128xbf16> to vector<8x16x128xbf16>
    %21 = vector.shape_cast %20 : vector<8x16x128xbf16> to vector<128x128xbf16>
    %c0_29 = arith.constant 0 : index
    %c0_30 = arith.constant 0 : index
    %22 = vector.load %arg5[%c0_29, %c0_30] : memref<1152x128xbf16, #tpu.memory_space<vmem>>, vector<128x128xbf16>
    %cst_31 = arith.constant dense<0.000000e+00> : vector<128x128xf32>
    %23 = tpu.matmul %21, %22, %cst_31 {dimension_numbers = #tpu.dot_dimension_numbers<[1], [0], [0], [1], [0, 0, 1, 1], [], []>} : vector<128x128xbf16>, vector<128x128xbf16>, vector<128x128xf32> -> vector<128x128xf32>
    %24 = arith.addf %19, %23 : vector<128x128xf32>
    %25 = vector.extract_strided_slice %18 {offsets = [0, 1, 0], sizes = [8, 16, 128], strides = [1, 1, 1]} : vector<10x18x128xbf16> to vector<8x16x128xbf16>
    %26 = vector.shape_cast %25 : vector<8x16x128xbf16> to vector<128x128xbf16>
    %c128 = arith.constant 128 : index
    %c0_32 = arith.constant 0 : index
    %27 = vector.load %arg5[%c128, %c0_32] : memref<1152x128xbf16, #tpu.memory_space<vmem>>, vector<128x128xbf16>
    %cst_33 = arith.constant dense<0.000000e+00> : vector<128x128xf32>
    %28 = tpu.matmul %26, %27, %cst_33 {dimension_numbers = #tpu.dot_dimension_numbers<[1], [0], [0], [1], [0, 0, 1, 1], [], []>} : vector<128x128xbf16>, vector<128x128xbf16>, vector<128x128xf32> -> vector<128x128xf32>
    %29 = arith.addf %24, %28 : vector<128x128xf32>
    %30 = vector.extract_strided_slice %18 {offsets = [0, 2, 0], sizes = [8, 16, 128], strides = [1, 1, 1]} : vector<10x18x128xbf16> to vector<8x16x128xbf16>
    %31 = vector.shape_cast %30 : vector<8x16x128xbf16> to vector<128x128xbf16>
    %c256 = arith.constant 256 : index
    %c0_34 = arith.constant 0 : index
    %32 = vector.load %arg5[%c256, %c0_34] : memref<1152x128xbf16, #tpu.memory_space<vmem>>, vector<128x128xbf16>
    %cst_35 = arith.constant dense<0.000000e+00> : vector<128x128xf32>
    %33 = tpu.matmul %31, %32, %cst_35 {dimension_numbers = #tpu.dot_dimension_numbers<[1], [0], [0], [1], [0, 0, 1, 1], [], []>} : vector<128x128xbf16>, vector<128x128xbf16>, vector<128x128xf32> -> vector<128x128xf32>
    %34 = arith.addf %29, %33 : vector<128x128xf32>
    %35 = vector.extract_strided_slice %18 {offsets = [1, 0, 0], sizes = [8, 16, 128], strides = [1, 1, 1]} : vector<10x18x128xbf16> to vector<8x16x128xbf16>
    %36 = vector.shape_cast %35 : vector<8x16x128xbf16> to vector<128x128xbf16>
    %c384 = arith.constant 384 : index
    %c0_36 = arith.constant 0 : index
    %37 = vector.load %arg5[%c384, %c0_36] : memref<1152x128xbf16, #tpu.memory_space<vmem>>, vector<128x128xbf16>
    %cst_37 = arith.constant dense<0.000000e+00> : vector<128x128xf32>
    %38 = tpu.matmul %36, %37, %cst_37 {dimension_numbers = #tpu.dot_dimension_numbers<[1], [0], [0], [1], [0, 0, 1, 1], [], []>} : vector<128x128xbf16>, vector<128x128xbf16>, vector<128x128xf32> -> vector<128x128xf32>
    %39 = arith.addf %34, %38 : vector<128x128xf32>
    %40 = vector.extract_strided_slice %18 {offsets = [1, 1, 0], sizes = [8, 16, 128], strides = [1, 1, 1]} : vector<10x18x128xbf16> to vector<8x16x128xbf16>
    %41 = vector.shape_cast %40 : vector<8x16x128xbf16> to vector<128x128xbf16>
    %c512 = arith.constant 512 : index
    %c0_38 = arith.constant 0 : index
    %42 = vector.load %arg5[%c512, %c0_38] : memref<1152x128xbf16, #tpu.memory_space<vmem>>, vector<128x128xbf16>
    %cst_39 = arith.constant dense<0.000000e+00> : vector<128x128xf32>
    %43 = tpu.matmul %41, %42, %cst_39 {dimension_numbers = #tpu.dot_dimension_numbers<[1], [0], [0], [1], [0, 0, 1, 1], [], []>} : vector<128x128xbf16>, vector<128x128xbf16>, vector<128x128xf32> -> vector<128x128xf32>
    %44 = arith.addf %39, %43 : vector<128x128xf32>
    %45 = vector.extract_strided_slice %18 {offsets = [1, 2, 0], sizes = [8, 16, 128], strides = [1, 1, 1]} : vector<10x18x128xbf16> to vector<8x16x128xbf16>
    %46 = vector.shape_cast %45 : vector<8x16x128xbf16> to vector<128x128xbf16>
    %c640 = arith.constant 640 : index
    %c0_40 = arith.constant 0 : index
    %47 = vector.load %arg5[%c640, %c0_40] : memref<1152x128xbf16, #tpu.memory_space<vmem>>, vector<128x128xbf16>
    %cst_41 = arith.constant dense<0.000000e+00> : vector<128x128xf32>
    %48 = tpu.matmul %46, %47, %cst_41 {dimension_numbers = #tpu.dot_dimension_numbers<[1], [0], [0], [1], [0, 0, 1, 1], [], []>} : vector<128x128xbf16>, vector<128x128xbf16>, vector<128x128xf32> -> vector<128x128xf32>
    %49 = arith.addf %44, %48 : vector<128x128xf32>
    %50 = vector.extract_strided_slice %18 {offsets = [2, 0, 0], sizes = [8, 16, 128], strides = [1, 1, 1]} : vector<10x18x128xbf16> to vector<8x16x128xbf16>
    %51 = vector.shape_cast %50 : vector<8x16x128xbf16> to vector<128x128xbf16>
    %c768 = arith.constant 768 : index
    %c0_42 = arith.constant 0 : index
    %52 = vector.load %arg5[%c768, %c0_42] : memref<1152x128xbf16, #tpu.memory_space<vmem>>, vector<128x128xbf16>
    %cst_43 = arith.constant dense<0.000000e+00> : vector<128x128xf32>
    %53 = tpu.matmul %51, %52, %cst_43 {dimension_numbers = #tpu.dot_dimension_numbers<[1], [0], [0], [1], [0, 0, 1, 1], [], []>} : vector<128x128xbf16>, vector<128x128xbf16>, vector<128x128xf32> -> vector<128x128xf32>
    %54 = arith.addf %49, %53 : vector<128x128xf32>
    %55 = vector.extract_strided_slice %18 {offsets = [2, 1, 0], sizes = [8, 16, 128], strides = [1, 1, 1]} : vector<10x18x128xbf16> to vector<8x16x128xbf16>
    %56 = vector.shape_cast %55 : vector<8x16x128xbf16> to vector<128x128xbf16>
    %c896 = arith.constant 896 : index
    %c0_44 = arith.constant 0 : index
    %57 = vector.load %arg5[%c896, %c0_44] : memref<1152x128xbf16, #tpu.memory_space<vmem>>, vector<128x128xbf16>
    %cst_45 = arith.constant dense<0.000000e+00> : vector<128x128xf32>
    %58 = tpu.matmul %56, %57, %cst_45 {dimension_numbers = #tpu.dot_dimension_numbers<[1], [0], [0], [1], [0, 0, 1, 1], [], []>} : vector<128x128xbf16>, vector<128x128xbf16>, vector<128x128xf32> -> vector<128x128xf32>
    %59 = arith.addf %54, %58 : vector<128x128xf32>
    %60 = vector.extract_strided_slice %18 {offsets = [2, 2, 0], sizes = [8, 16, 128], strides = [1, 1, 1]} : vector<10x18x128xbf16> to vector<8x16x128xbf16>
    %61 = vector.shape_cast %60 : vector<8x16x128xbf16> to vector<128x128xbf16>
    %c1024 = arith.constant 1024 : index
    %c0_46 = arith.constant 0 : index
    %62 = vector.load %arg5[%c1024, %c0_46] : memref<1152x128xbf16, #tpu.memory_space<vmem>>, vector<128x128xbf16>
    %cst_47 = arith.constant dense<0.000000e+00> : vector<128x128xf32>
    %63 = tpu.matmul %61, %62, %cst_47 {dimension_numbers = #tpu.dot_dimension_numbers<[1], [0], [0], [1], [0, 0, 1, 1], [], []>} : vector<128x128xbf16>, vector<128x128xbf16>, vector<128x128xf32> -> vector<128x128xf32>
    %64 = arith.addf %59, %63 : vector<128x128xf32>
    %c0_48 = arith.constant 0 : index
    %c0_49 = arith.constant 0 : index
    %65 = vector.load %arg6[%c0_48, %c0_49] : memref<1x128xf32, #tpu.memory_space<vmem>>, vector<1x128xf32>
    %66 = vector.broadcast %65 : vector<1x128xf32> to vector<128x128xf32>
    %67 = arith.addf %64, %66 : vector<128x128xf32>
    %68 = vector.shape_cast %67 : vector<128x128xf32> to vector<1x8x16x128xf32>
    %c0_50 = arith.constant 0 : index
    %c0_51 = arith.constant 0 : index
    %c0_52 = arith.constant 0 : index
    %c0_53 = arith.constant 0 : index
    %69 = vector.load %arg7[%c0_50, %c0_51, %c0_52, %c0_53] : memref<1x8x16x128xf32, #tpu.memory_space<vmem>>, vector<1x8x16x128xf32>
    tpu.vector_store %arg7[%c0_50, %c0_51, %c0_52, %c0_53], %68 {strides = array<i32>} : memref<1x8x16x128xf32, #tpu.memory_space<vmem>>, vector<1x8x16x128xf32>,
    return
  }
  func.func @transform_0(%arg0: i32, %arg1: i32) -> (i32, i32, i32, i32) {
    %c0_i32 = arith.constant 0 : i32
    %c0_i32_0 = arith.constant 0 : i32
    %c0_i32_1 = arith.constant 0 : i32
    return %arg0, %arg1, %c0_i32, %c0_i32_0 : i32, i32, i32, i32
  }
  func.func @transform_1(%arg0: i32, %arg1: i32) -> (i32, i32, i32, i32) {
    %c8_i32 = arith.constant 8 : i32
    %0 = arith.muli %arg1, %c8_i32 : i32
    %c1_i32 = arith.constant 1 : i32
    %1 = arith.subi %0, %c1_i32 : i32
    %c0_i32 = arith.constant 0 : i32
    %2 = arith.maxsi %1, %c0_i32 : i32
    %c0_i32_0 = arith.constant 0 : i32
    %c0_i32_1 = arith.constant 0 : i32
    %c0_i32_2 = arith.constant 0 : i32
    return %arg0, %2, %c0_i32_0, %c0_i32_1 : i32, i32, i32, i32
  }
  func.func @transform_2(%arg0: i32, %arg1: i32) -> (i32, i32, i32, i32) {
    %c8_i32 = arith.constant 8 : i32
    %0 = arith.muli %arg1, %c8_i32 : i32
    %c8_i32_0 = arith.constant 8 : i32
    %1 = arith.addi %0, %c8_i32_0 : i32
    %c15_i32 = arith.constant 15 : i32
    %2 = arith.minsi %1, %c15_i32 : i32
    %c0_i32 = arith.constant 0 : i32
    %c0_i32_1 = arith.constant 0 : i32
    %c0_i32_2 = arith.constant 0 : i32
    return %arg0, %2, %c0_i32, %c0_i32_1 : i32, i32, i32, i32
  }
  func.func @transform_3(%arg0: i32, %arg1: i32) -> (i32, i32) {
    %c0_i32 = arith.constant 0 : i32
    %c0_i32_0 = arith.constant 0 : i32
    %c0_i32_1 = arith.constant 0 : i32
    return %c0_i32, %c0_i32_0 : i32, i32
  }
  func.func @transform_4(%arg0: i32, %arg1: i32) -> (i32, i32) {
    %c0_i32 = arith.constant 0 : i32
    %c0_i32_0 = arith.constant 0 : i32
    %c0_i32_1 = arith.constant 0 : i32
    return %c0_i32, %c0_i32_0 : i32, i32
  }
  func.func @transform_5(%arg0: i32, %arg1: i32) -> (i32, i32, i32, i32) {
    %c0_i32 = arith.constant 0 : i32
    %c0_i32_0 = arith.constant 0 : i32
    %c0_i32_1 = arith.constant 0 : i32
    return %arg0, %arg1, %c0_i32, %c0_i32_0 : i32, i32, i32, i32
  }
}

module attributes {stable_mosaic.version = 11 : i64} {
  func.func @_conv3x3_kernel(%arg0: i32, %arg1: i32, %arg2: memref<1x8x16x128xbf16, #tpu.memory_space<vmem>>, %arg3: memref<1x1x16x128xbf16, #tpu.memory_space<vmem>>, %arg4: memref<1x1x16x128xbf16, #tpu.memory_space<vmem>>, %arg5: memref<1152x128xbf16, #tpu.memory_space<vmem>>, %arg6: memref<1x128xf32, #tpu.memory_space<vmem>>, %arg7: memref<1x8x16x128xf32, #tpu.memory_space<vmem>>, %arg8: memref<1x8x16x128xf32, #tpu.memory_space<vmem>>, %arg9: memref<10x18x128xbf16, #tpu.memory_space<vmem>>) attributes {dimension_semantics = [#tpu.dimension_semantics<parallel>, #tpu.dimension_semantics<parallel>], iteration_bounds = array<i64: 2, 2>, scalar_prefetch = 0 : i64, scratch_operands = 1 : i64, tpu.core_type = #tpu.core_type<tc>, window_params = [{transform_indices = @transform_0, window_bounds = array<i64: 1, 8, 16, 128>}, {transform_indices = @transform_1, window_bounds = array<i64: 1, 1, 16, 128>}, {transform_indices = @transform_2, window_bounds = array<i64: 1, 1, 16, 128>}, {pipeline_mode = #tpu.pipeline_mode<synchronous>, transform_indices = @transform_3, window_bounds = array<i64: 1152, 128>}, {pipeline_mode = #tpu.pipeline_mode<synchronous>, transform_indices = @transform_4, window_bounds = array<i64: 1, 128>}, {transform_indices = @transform_5, window_bounds = array<i64: 1, 8, 16, 128>}, {transform_indices = @transform_6, window_bounds = array<i64: 1, 8, 16, 128>}]} {
    %cst = arith.constant 0.000000e+00 : bf16
    %0 = vector.broadcast %cst : bf16 to vector<10x1x128xbf16>
    %c0 = arith.constant 0 : index
    %c0_0 = arith.constant 0 : index
    %c0_1 = arith.constant 0 : index
    %1 = vector.load %arg9[%c0, %c0_0, %c0_1] : memref<10x18x128xbf16, #tpu.memory_space<vmem>>, vector<10x1x128xbf16>
    tpu.vector_store %arg9[%c0, %c0_0, %c0_1], %0 {strides = array<i32>} : memref<10x18x128xbf16, #tpu.memory_space<vmem>>, vector<10x1x128xbf16>,
    %c0_2 = arith.constant 0 : index
    %c17 = arith.constant 17 : index
    %c0_3 = arith.constant 0 : index
    %2 = vector.load %arg9[%c0_2, %c17, %c0_3] : memref<10x18x128xbf16, #tpu.memory_space<vmem>>, vector<10x1x128xbf16>
    tpu.vector_store %arg9[%c0_2, %c17, %c0_3], %0 {strides = array<i32>} : memref<10x18x128xbf16, #tpu.memory_space<vmem>>, vector<10x1x128xbf16>,
    %c0_4 = arith.constant 0 : index
    %c0_5 = arith.constant 0 : index
    %c0_6 = arith.constant 0 : index
    %c0_7 = arith.constant 0 : index
    %3 = vector.load %arg3[%c0_4, %c0_5, %c0_6, %c0_7] : memref<1x1x16x128xbf16, #tpu.memory_space<vmem>>, vector<1x1x16x128xbf16>
    %c0_8 = arith.constant 0 : index
    %c0_9 = arith.constant 0 : index
    %c0_10 = arith.constant 0 : index
    %c0_11 = arith.constant 0 : index
    %4 = vector.load %arg4[%c0_8, %c0_9, %c0_10, %c0_11] : memref<1x1x16x128xbf16, #tpu.memory_space<vmem>>, vector<1x1x16x128xbf16>
    %c0_i32 = arith.constant 0 : i32
    %5 = arith.cmpi sgt, %arg1, %c0_i32 : i32
    %cst_12 = arith.constant 0.000000e+00 : bf16
    %6 = vector.broadcast %cst_12 : bf16 to vector<1x1x16x128xbf16>
    %7 = arith.select %5, %3, %6 : vector<1x1x16x128xbf16>
    %8 = vector.shape_cast %7 : vector<1x1x16x128xbf16> to vector<1x16x128xbf16>
    %c1_i32 = arith.constant 1 : i32
    %9 = arith.cmpi slt, %arg1, %c1_i32 : i32
    %cst_13 = arith.constant 0.000000e+00 : bf16
    %10 = vector.broadcast %cst_13 : bf16 to vector<1x1x16x128xbf16>
    %11 = arith.select %9, %4, %10 : vector<1x1x16x128xbf16>
    %12 = vector.shape_cast %11 : vector<1x1x16x128xbf16> to vector<1x16x128xbf16>
    %c0_14 = arith.constant 0 : index
    %c1 = arith.constant 1 : index
    %c0_15 = arith.constant 0 : index
    %13 = vector.load %arg9[%c0_14, %c1, %c0_15] : memref<10x18x128xbf16, #tpu.memory_space<vmem>>, vector<1x16x128xbf16>
    tpu.vector_store %arg9[%c0_14, %c1, %c0_15], %8 {strides = array<i32>} : memref<10x18x128xbf16, #tpu.memory_space<vmem>>, vector<1x16x128xbf16>,
    %c9 = arith.constant 9 : index
    %c1_16 = arith.constant 1 : index
    %c0_17 = arith.constant 0 : index
    %14 = vector.load %arg9[%c9, %c1_16, %c0_17] : memref<10x18x128xbf16, #tpu.memory_space<vmem>>, vector<1x16x128xbf16>
    tpu.vector_store %arg9[%c9, %c1_16, %c0_17], %12 {strides = array<i32>} : memref<10x18x128xbf16, #tpu.memory_space<vmem>>, vector<1x16x128xbf16>,
    %c0_18 = arith.constant 0 : index
    %c0_19 = arith.constant 0 : index
    %c0_20 = arith.constant 0 : index
    %c0_21 = arith.constant 0 : index
    %15 = vector.load %arg2[%c0_18, %c0_19, %c0_20, %c0_21] : memref<1x8x16x128xbf16, #tpu.memory_space<vmem>>, vector<1x8x16x128xbf16>
    %16 = vector.shape_cast %15 : vector<1x8x16x128xbf16> to vector<8x16x128xbf16>
    %c1_22 = arith.constant 1 : index
    %c1_23 = arith.constant 1 : index
    %c0_24 = arith.constant 0 : index
    %17 = vector.load %arg9[%c1_22, %c1_23, %c0_24] : memref<10x18x128xbf16, #tpu.memory_space<vmem>>, vector<8x16x128xbf16>
    tpu.vector_store %arg9[%c1_22, %c1_23, %c0_24], %16 {strides = array<i32>} : memref<10x18x128xbf16, #tpu.memory_space<vmem>>, vector<8x16x128xbf16>,
    %c0_25 = arith.constant 0 : index
    %c0_26 = arith.constant 0 : index
    %c0_27 = arith.constant 0 : index
    %18 = vector.load %arg9[%c0_25, %c0_26, %c0_27] : memref<10x18x128xbf16, #tpu.memory_space<vmem>>, vector<10x18x128xbf16>
    %cst_28 = arith.constant 0.000000e+00 : f32
    %19 = vector.broadcast %cst_28 : f32 to vector<128x128xf32>
    %20 = vector.extract_strided_slice %18 {offsets = [0, 0, 0], sizes = [8, 16, 128], strides = [1, 1, 1]} : vector<10x18x128xbf16> to vector<8x16x128xbf16>
    %21 = vector.shape_cast %20 : vector<8x16x128xbf16> to vector<128x128xbf16>
    %c0_29 = arith.constant 0 : index
    %c0_30 = arith.constant 0 : index
    %22 = vector.load %arg5[%c0_29, %c0_30] : memref<1152x128xbf16, #tpu.memory_space<vmem>>, vector<128x128xbf16>
    %cst_31 = arith.constant dense<0.000000e+00> : vector<128x128xf32>
    %23 = tpu.matmul %21, %22, %cst_31 {dimension_numbers = #tpu.dot_dimension_numbers<[1], [0], [0], [1], [0, 0, 1, 1], [], []>} : vector<128x128xbf16>, vector<128x128xbf16>, vector<128x128xf32> -> vector<128x128xf32>
    %24 = arith.addf %19, %23 : vector<128x128xf32>
    %25 = vector.extract_strided_slice %18 {offsets = [0, 1, 0], sizes = [8, 16, 128], strides = [1, 1, 1]} : vector<10x18x128xbf16> to vector<8x16x128xbf16>
    %26 = vector.shape_cast %25 : vector<8x16x128xbf16> to vector<128x128xbf16>
    %c128 = arith.constant 128 : index
    %c0_32 = arith.constant 0 : index
    %27 = vector.load %arg5[%c128, %c0_32] : memref<1152x128xbf16, #tpu.memory_space<vmem>>, vector<128x128xbf16>
    %cst_33 = arith.constant dense<0.000000e+00> : vector<128x128xf32>
    %28 = tpu.matmul %26, %27, %cst_33 {dimension_numbers = #tpu.dot_dimension_numbers<[1], [0], [0], [1], [0, 0, 1, 1], [], []>} : vector<128x128xbf16>, vector<128x128xbf16>, vector<128x128xf32> -> vector<128x128xf32>
    %29 = arith.addf %24, %28 : vector<128x128xf32>
    %30 = vector.extract_strided_slice %18 {offsets = [0, 2, 0], sizes = [8, 16, 128], strides = [1, 1, 1]} : vector<10x18x128xbf16> to vector<8x16x128xbf16>
    %31 = vector.shape_cast %30 : vector<8x16x128xbf16> to vector<128x128xbf16>
    %c256 = arith.constant 256 : index
    %c0_34 = arith.constant 0 : index
    %32 = vector.load %arg5[%c256, %c0_34] : memref<1152x128xbf16, #tpu.memory_space<vmem>>, vector<128x128xbf16>
    %cst_35 = arith.constant dense<0.000000e+00> : vector<128x128xf32>
    %33 = tpu.matmul %31, %32, %cst_35 {dimension_numbers = #tpu.dot_dimension_numbers<[1], [0], [0], [1], [0, 0, 1, 1], [], []>} : vector<128x128xbf16>, vector<128x128xbf16>, vector<128x128xf32> -> vector<128x128xf32>
    %34 = arith.addf %29, %33 : vector<128x128xf32>
    %35 = vector.extract_strided_slice %18 {offsets = [1, 0, 0], sizes = [8, 16, 128], strides = [1, 1, 1]} : vector<10x18x128xbf16> to vector<8x16x128xbf16>
    %36 = vector.shape_cast %35 : vector<8x16x128xbf16> to vector<128x128xbf16>
    %c384 = arith.constant 384 : index
    %c0_36 = arith.constant 0 : index
    %37 = vector.load %arg5[%c384, %c0_36] : memref<1152x128xbf16, #tpu.memory_space<vmem>>, vector<128x128xbf16>
    %cst_37 = arith.constant dense<0.000000e+00> : vector<128x128xf32>
    %38 = tpu.matmul %36, %37, %cst_37 {dimension_numbers = #tpu.dot_dimension_numbers<[1], [0], [0], [1], [0, 0, 1, 1], [], []>} : vector<128x128xbf16>, vector<128x128xbf16>, vector<128x128xf32> -> vector<128x128xf32>
    %39 = arith.addf %34, %38 : vector<128x128xf32>
    %40 = vector.extract_strided_slice %18 {offsets = [1, 1, 0], sizes = [8, 16, 128], strides = [1, 1, 1]} : vector<10x18x128xbf16> to vector<8x16x128xbf16>
    %41 = vector.shape_cast %40 : vector<8x16x128xbf16> to vector<128x128xbf16>
    %c512 = arith.constant 512 : index
    %c0_38 = arith.constant 0 : index
    %42 = vector.load %arg5[%c512, %c0_38] : memref<1152x128xbf16, #tpu.memory_space<vmem>>, vector<128x128xbf16>
    %cst_39 = arith.constant dense<0.000000e+00> : vector<128x128xf32>
    %43 = tpu.matmul %41, %42, %cst_39 {dimension_numbers = #tpu.dot_dimension_numbers<[1], [0], [0], [1], [0, 0, 1, 1], [], []>} : vector<128x128xbf16>, vector<128x128xbf16>, vector<128x128xf32> -> vector<128x128xf32>
    %44 = arith.addf %39, %43 : vector<128x128xf32>
    %45 = vector.extract_strided_slice %18 {offsets = [1, 2, 0], sizes = [8, 16, 128], strides = [1, 1, 1]} : vector<10x18x128xbf16> to vector<8x16x128xbf16>
    %46 = vector.shape_cast %45 : vector<8x16x128xbf16> to vector<128x128xbf16>
    %c640 = arith.constant 640 : index
    %c0_40 = arith.constant 0 : index
    %47 = vector.load %arg5[%c640, %c0_40] : memref<1152x128xbf16, #tpu.memory_space<vmem>>, vector<128x128xbf16>
    %cst_41 = arith.constant dense<0.000000e+00> : vector<128x128xf32>
    %48 = tpu.matmul %46, %47, %cst_41 {dimension_numbers = #tpu.dot_dimension_numbers<[1], [0], [0], [1], [0, 0, 1, 1], [], []>} : vector<128x128xbf16>, vector<128x128xbf16>, vector<128x128xf32> -> vector<128x128xf32>
    %49 = arith.addf %44, %48 : vector<128x128xf32>
    %50 = vector.extract_strided_slice %18 {offsets = [2, 0, 0], sizes = [8, 16, 128], strides = [1, 1, 1]} : vector<10x18x128xbf16> to vector<8x16x128xbf16>
    %51 = vector.shape_cast %50 : vector<8x16x128xbf16> to vector<128x128xbf16>
    %c768 = arith.constant 768 : index
    %c0_42 = arith.constant 0 : index
    %52 = vector.load %arg5[%c768, %c0_42] : memref<1152x128xbf16, #tpu.memory_space<vmem>>, vector<128x128xbf16>
    %cst_43 = arith.constant dense<0.000000e+00> : vector<128x128xf32>
    %53 = tpu.matmul %51, %52, %cst_43 {dimension_numbers = #tpu.dot_dimension_numbers<[1], [0], [0], [1], [0, 0, 1, 1], [], []>} : vector<128x128xbf16>, vector<128x128xbf16>, vector<128x128xf32> -> vector<128x128xf32>
    %54 = arith.addf %49, %53 : vector<128x128xf32>
    %55 = vector.extract_strided_slice %18 {offsets = [2, 1, 0], sizes = [8, 16, 128], strides = [1, 1, 1]} : vector<10x18x128xbf16> to vector<8x16x128xbf16>
    %56 = vector.shape_cast %55 : vector<8x16x128xbf16> to vector<128x128xbf16>
    %c896 = arith.constant 896 : index
    %c0_44 = arith.constant 0 : index
    %57 = vector.load %arg5[%c896, %c0_44] : memref<1152x128xbf16, #tpu.memory_space<vmem>>, vector<128x128xbf16>
    %cst_45 = arith.constant dense<0.000000e+00> : vector<128x128xf32>
    %58 = tpu.matmul %56, %57, %cst_45 {dimension_numbers = #tpu.dot_dimension_numbers<[1], [0], [0], [1], [0, 0, 1, 1], [], []>} : vector<128x128xbf16>, vector<128x128xbf16>, vector<128x128xf32> -> vector<128x128xf32>
    %59 = arith.addf %54, %58 : vector<128x128xf32>
    %60 = vector.extract_strided_slice %18 {offsets = [2, 2, 0], sizes = [8, 16, 128], strides = [1, 1, 1]} : vector<10x18x128xbf16> to vector<8x16x128xbf16>
    %61 = vector.shape_cast %60 : vector<8x16x128xbf16> to vector<128x128xbf16>
    %c1024 = arith.constant 1024 : index
    %c0_46 = arith.constant 0 : index
    %62 = vector.load %arg5[%c1024, %c0_46] : memref<1152x128xbf16, #tpu.memory_space<vmem>>, vector<128x128xbf16>
    %cst_47 = arith.constant dense<0.000000e+00> : vector<128x128xf32>
    %63 = tpu.matmul %61, %62, %cst_47 {dimension_numbers = #tpu.dot_dimension_numbers<[1], [0], [0], [1], [0, 0, 1, 1], [], []>} : vector<128x128xbf16>, vector<128x128xbf16>, vector<128x128xf32> -> vector<128x128xf32>
    %64 = arith.addf %59, %63 : vector<128x128xf32>
    %c0_48 = arith.constant 0 : index
    %c0_49 = arith.constant 0 : index
    %65 = vector.load %arg6[%c0_48, %c0_49] : memref<1x128xf32, #tpu.memory_space<vmem>>, vector<1x128xf32>
    %66 = vector.broadcast %65 : vector<1x128xf32> to vector<128x128xf32>
    %67 = arith.addf %64, %66 : vector<128x128xf32>
    %68 = vector.shape_cast %67 : vector<128x128xf32> to vector<1x8x16x128xf32>
    %c0_50 = arith.constant 0 : index
    %c0_51 = arith.constant 0 : index
    %c0_52 = arith.constant 0 : index
    %c0_53 = arith.constant 0 : index
    %69 = vector.load %arg7[%c0_50, %c0_51, %c0_52, %c0_53] : memref<1x8x16x128xf32, #tpu.memory_space<vmem>>, vector<1x8x16x128xf32>
    %70 = arith.addf %68, %69 : vector<1x8x16x128xf32>
    %c0_54 = arith.constant 0 : index
    %c0_55 = arith.constant 0 : index
    %c0_56 = arith.constant 0 : index
    %c0_57 = arith.constant 0 : index
    %71 = vector.load %arg8[%c0_54, %c0_55, %c0_56, %c0_57] : memref<1x8x16x128xf32, #tpu.memory_space<vmem>>, vector<1x8x16x128xf32>
    tpu.vector_store %arg8[%c0_54, %c0_55, %c0_56, %c0_57], %70 {strides = array<i32>} : memref<1x8x16x128xf32, #tpu.memory_space<vmem>>, vector<1x8x16x128xf32>,
    return
  }
  func.func @transform_0(%arg0: i32, %arg1: i32) -> (i32, i32, i32, i32) {
    %c0_i32 = arith.constant 0 : i32
    %c0_i32_0 = arith.constant 0 : i32
    %c0_i32_1 = arith.constant 0 : i32
    return %arg0, %arg1, %c0_i32, %c0_i32_0 : i32, i32, i32, i32
  }
  func.func @transform_1(%arg0: i32, %arg1: i32) -> (i32, i32, i32, i32) {
    %c8_i32 = arith.constant 8 : i32
    %0 = arith.muli %arg1, %c8_i32 : i32
    %c1_i32 = arith.constant 1 : i32
    %1 = arith.subi %0, %c1_i32 : i32
    %c0_i32 = arith.constant 0 : i32
    %2 = arith.maxsi %1, %c0_i32 : i32
    %c0_i32_0 = arith.constant 0 : i32
    %c0_i32_1 = arith.constant 0 : i32
    %c0_i32_2 = arith.constant 0 : i32
    return %arg0, %2, %c0_i32_0, %c0_i32_1 : i32, i32, i32, i32
  }
  func.func @transform_2(%arg0: i32, %arg1: i32) -> (i32, i32, i32, i32) {
    %c8_i32 = arith.constant 8 : i32
    %0 = arith.muli %arg1, %c8_i32 : i32
    %c8_i32_0 = arith.constant 8 : i32
    %1 = arith.addi %0, %c8_i32_0 : i32
    %c15_i32 = arith.constant 15 : i32
    %2 = arith.minsi %1, %c15_i32 : i32
    %c0_i32 = arith.constant 0 : i32
    %c0_i32_1 = arith.constant 0 : i32
    %c0_i32_2 = arith.constant 0 : i32
    return %arg0, %2, %c0_i32, %c0_i32_1 : i32, i32, i32, i32
  }
  func.func @transform_3(%arg0: i32, %arg1: i32) -> (i32, i32) {
    %c0_i32 = arith.constant 0 : i32
    %c0_i32_0 = arith.constant 0 : i32
    %c0_i32_1 = arith.constant 0 : i32
    return %c0_i32, %c0_i32_0 : i32, i32
  }
  func.func @transform_4(%arg0: i32, %arg1: i32) -> (i32, i32) {
    %c0_i32 = arith.constant 0 : i32
    %c0_i32_0 = arith.constant 0 : i32
    %c0_i32_1 = arith.constant 0 : i32
    return %c0_i32, %c0_i32_0 : i32, i32
  }
  func.func @transform_5(%arg0: i32, %arg1: i32) -> (i32, i32, i32, i32) {
    %c0_i32 = arith.constant 0 : i32
    %c0_i32_0 = arith.constant 0 : i32
    %c0_i32_1 = arith.constant 0 : i32
    return %arg0, %arg1, %c0_i32, %c0_i32_0 : i32, i32, i32, i32
  }
  func.func @transform_6(%arg0: i32, %arg1: i32) -> (i32, i32, i32, i32) {
    %c0_i32 = arith.constant 0 : i32
    %c0_i32_0 = arith.constant 0 : i32
    %c0_i32_1 = arith.constant 0 : i32
    return %arg0, %arg1, %c0_i32, %c0_i32_0 : i32, i32, i32, i32
  }
}

</mosaic_0001>

<bundles_post_ra>
// kernel: residual_spade_block.13
= control target key start
LH: loop header
LB: loop body
LE: loop exit
PB: predicated region body
PF: predicated region fallthrough
CT: control target
= control target key end

     0   :  { %s330_s6 = smov 0   ;;  %s332_s7 = smov 0   ;;  %s405_s0 = inlined_call_operand.vmem [shape: f32[2,16,16,128], index: 0, kind: input, shape index: {}]   ;;  %s406_s1 = inlined_call_operand.vmem [shape: f32[1,128], index: 1, kind: output, shape index: {}]  }
   0x1   :  { %s334_s8 = smov 0   ;;  %s336_s9 = smov 0  }
   0x2   :  { %s338_s10 = smov 0  }
   0x3 LB: > { %s20_s11 = sadd.s32 1, %s309_s8  ;;  %s23_s12 = sadd.s32 1, %s313_s9  ;;  %s317_s10 = sphi %s338_s10, %s11_s10   ;;  %s313_s9 = sphi %s336_s9, %s410_s9   ;;  %s309_s8 = sphi %s334_s8, %s409_s8   ;;  %s305_s7 = sphi %s332_s7, %s408_s7   ;;  %s301_s6 = sphi %s330_s6, %s407_s6  }
   0x4   : > { %p21_p0 = scmp.ge.s32.totalorder %s20_s11, 2  ;;  %p231_p1 = scmp.ge.s32.totalorder %s317_s10, 1 }
   0x5   : > { %p102_p2 = scmp.lt.s32.totalorder %s317_s10, 5 }
   0x6   : > { %s412_s11 = smov (%p21_p0, %s20_s11), 0  ;;  %s414_s12 = smov (!%p21_p0, %s23_s12), %s313_s9 }
   0x7   : > { %p103_p3 = pnand %p231_p1, %p102_p2  ;;  %p25_p4 = scmp.ge.s32.totalorder %s414_s12, 2 }
   0x8   : > { %s232_s13 = sshll.u32 (!%p103_p3), %s301_s6, 3  ;;  %p123_p5 = scmp.lt.s32.totalorder (!%p103_p3), %s305_s7, 1 }
   0x9   : > { %s416_s12 = smov (%p25_p4, %s414_s12), 0  ;;  %106 = sbr.rel (%p103_p3) target bundleno = 69 (0x45), region = 24 }
   0xa   : > { %p125_p6 = scmp.lt.s32.totalorder (!%p103_p3), %s232_s13, 15  ;;  %p133_p7 = scmp.eq.s32.totalorder (!%p103_p3), %s305_s7, 0 }
   0xb   : > { %p134_p8 = scmp.eq.s32.totalorder (!%p103_p3), %s301_s6, 0 }
   0xd   : > { %p135_p9 = pnand (!%p103_p3), %p134_p8, %p133_p7 }
   0xe   : > { %s418_s7 = smov (!%p123_p5, %s305_s7), 1  ;;  %s420_s13 = smov (!%p125_p6, %s232_s13), 15 }
   0xf   : > { %s234_s14 = sshll.u32 %s418_s7, 5  ;;  %s233_s15 = sshll.u32 %s420_s13, 1 }
  0x10   : > { %s129_s16 = sadd.s32 %s234_s14, %s233_s15  ;;  %138 = sbr.rel (%p135_p9) target bundleno = 23 (0x17), region = 28 }
  0x11   : > { %s235_s17 = sshll.u32 %s129_s16, 3 }
  0x12   : > { %s363_s20 = scalar_lea.vmem %s405_s0, %s235_s17 }
  0x15   : > { %v319_v0 = vmov 0.0  }
  0x16   : > { %139 = vst [vmem:[%s406_s1] sm:$0x1] %v319_v0 }
  0x17 PF: > { %v140_v1 = vld [vmem:[%s363_s20] sm:$0xff]  ;;  %v141_v2 = vld [vmem:[%s363_s20 + $0x8] sm:$0xff]  ;;  %v142_v3 = vld [vmem:[%s363_s20 + $0x10] sm:$0xff] }
  0x18   : > { %v157_v4 = vadd.f32 %v141_v2, %v140_v1  ;;  %v143_v5 = vld [vmem:[%s363_s20 + $0x18] sm:$0xff]  ;;  %v144_v7 = vld [vmem:[%s363_s20 + $0x20] sm:$0xff]  ;;  %v145_v9 = vld [vmem:[%s363_s20 + $0x28] sm:$0xff] }
  0x19   : > { %v146_v11 = vld [vmem:[%s363_s20 + $0x30] sm:$0xff]  ;;  %v147_v13 = vld [vmem:[%s363_s20 + $0x38] sm:$0xff]  ;;  %v148_v15 = vld [vmem:[%s363_s20 + $0x40] sm:$0xff] }
  0x1a   : > { %v158_v6 = vadd.f32 %v157_v4, %v142_v3  ;;  %v149_v17 = vld [vmem:[%s363_s20 + $0x48] sm:$0xff]  ;;  %v150_v19 = vld [vmem:[%s363_s20 + $0x50] sm:$0xff]  ;;  %v151_v21 = vld [vmem:[%s363_s20 + $0x58] sm:$0xff] }
  0x1b   : > { %v152_v23 = vld [vmem:[%s363_s20 + $0x60] sm:$0xff]  ;;  %v153_v25 = vld [vmem:[%s363_s20 + $0x68] sm:$0xff]  ;;  %v154_v27 = vld [vmem:[%s363_s20 + $0x70] sm:$0xff] }
  0x1c   : > { %v159_v8 = vadd.f32 %v158_v6, %v143_v5  ;;  %v155_v29 = vld [vmem:[%s363_s20 + $0x78] sm:$0xff] }
  0x1d   : > { %v156_v37 = vld [vmem:[%s406_s1] sm:$0x1] }
  0x1e   : > { %v160_v10 = vadd.f32 %v159_v8, %v144_v7 }
  0x20   : > { %v161_v12 = vadd.f32 %v160_v10, %v145_v9 }
  0x22   : > { %v162_v14 = vadd.f32 %v161_v12, %v146_v11 }
  0x24   : > { %v163_v16 = vadd.f32 %v162_v14, %v147_v13 }
  0x26   : > { %v164_v18 = vadd.f32 %v163_v16, %v148_v15 }
  0x28   : > { %v165_v20 = vadd.f32 %v164_v18, %v149_v17 }
  0x2a   : > { %v166_v22 = vadd.f32 %v165_v20, %v150_v19 }
  0x2c   : > { %v167_v24 = vadd.f32 %v166_v22, %v151_v21 }
  0x2e   : > { %v168_v26 = vadd.f32 %v167_v24, %v152_v23 }
  0x30   : > { %v169_v28 = vadd.f32 %v168_v26, %v153_v25 }
  0x32   : > { %v170_v30 = vadd.f32 %v169_v28, %v154_v27 }
  0x34   : > { %v171_v31 = vadd.f32 %v170_v30, %v155_v29 }
  0x36   : > { %v172_v32 = vrot.slane %v171_v31, 4 }
  0x38   : > { %v173_v33 = vadd.f32 %v172_v32, %v171_v31 }
  0x3a   : > { %v174_v34 = vrot.slane %v173_v33, 2 }
  0x3c   : > { %v175_v35 = vadd.f32 %v174_v34, %v173_v33 }
  0x3e   : > { %v176_v36 = vrot.slane %v175_v35, 1 }
  0x40   : > { %v177_v38 = vadd.f32 %v176_v36, %v175_v35 }
  0x42   : > { %v178_v39 = vadd.f32 %v177_v38, %v156_v37 }
  0x44   : > { %179 = vst [vmem:[%s406_s1] sm:$0x1] %v178_v39 }
  0x45 PF: > { %s11_s10 = sadd.s32 1, %s317_s10   ;;  %s407_s6 = smov %s309_s8 }
  0x46   : > { %p8_p10 = scmp.ge.s32.totalorder %s11_s10, 6   ;;  %s408_s7 = smov %s313_s9 }
  0x47   : > { %s409_s8 = smov %s412_s11  ;;  %s410_s9 = smov %s416_s12 }
  0x48   :  { %10 = sbr.rel (!%p8_p10) target bundleno = 3 (0x3), region = 54 }

// kernel: residual_spade_block.14
= control target key start
LH: loop header
LB: loop body
LE: loop exit
PB: predicated region body
PF: predicated region fallthrough
CT: control target
= control target key end

     0   :  { %s399_s9 = smov 0   ;;  %s401_s10 = smov 0   ;;  %s477_s0 = inlined_call_operand.vmem [shape: f32[2,16,16,128], index: 0, kind: input, shape index: {}]   ;;  %s478_s1 = inlined_call_operand.vmem [shape: f32[1,128], index: 1, kind: input, shape index: {}]   ;;  %s479_s2 = inlined_call_operand.vmem [shape: f32[1,128], index: 2, kind: output, shape index: {}]  }
   0x1   :  { %s403_s11 = smov 0   ;;  %s405_s12 = smov 0  }
   0x2   :  { %s407_s13 = smov 0  }
   0x3 LB: > { %s21_s14 = sadd.s32 1, %s373_s11  ;;  %s24_s15 = sadd.s32 1, %s377_s12  ;;  %s381_s13 = sphi %s407_s13, %s12_s13   ;;  %s377_s12 = sphi %s405_s12, %s483_s12   ;;  %s373_s11 = sphi %s403_s11, %s482_s11   ;;  %s369_s10 = sphi %s401_s10, %s481_s10   ;;  %s365_s9 = sphi %s399_s9, %s480_s9  }
   0x4   : > { %p22_p0 = scmp.ge.s32.totalorder %s21_s14, 2  ;;  %p294_p1 = scmp.ge.s32.totalorder %s381_s13, 1 }
   0x5   : > { %p127_p2 = scmp.lt.s32.totalorder %s381_s13, 5 }
   0x6   : > { %s485_s14 = smov (%p22_p0, %s21_s14), 0  ;;  %s487_s15 = smov (!%p22_p0, %s24_s15), %s377_s12 }
   0x7   : > { %p128_p3 = pnand %p294_p1, %p127_p2  ;;  %p26_p4 = scmp.ge.s32.totalorder %s487_s15, 2 }
   0x8   : > { %s295_s16 = sshll.u32 (!%p128_p3), %s365_s9, 3  ;;  %p150_p5 = scmp.lt.s32.totalorder (!%p128_p3), %s369_s10, 1 }
   0x9   : > { %s489_s15 = smov (%p26_p4, %s487_s15), 0  ;;  %131 = sbr.rel (%p128_p3) target bundleno = 74 (0x4a), region = 28 }
   0xa   : > { %p152_p6 = scmp.lt.s32.totalorder (!%p128_p3), %s295_s16, 15  ;;  %p160_p7 = scmp.eq.s32.totalorder (!%p128_p3), %s369_s10, 0 }
   0xb   : > { %p161_p8 = scmp.eq.s32.totalorder (!%p128_p3), %s365_s9, 0 }
   0xd   : > { %p162_p9 = pnand (!%p128_p3), %p161_p8, %p160_p7 }
   0xe   : > { %s491_s10 = smov (!%p150_p5, %s369_s10), 1  ;;  %s493_s16 = smov (!%p152_p6, %s295_s16), 15 }
   0xf   : > { %s297_s17 = sshll.u32 %s491_s10, 5  ;;  %s296_s18 = sshll.u32 %s493_s16, 1 }
  0x10   : > { %s156_s19 = sadd.s32 %s297_s17, %s296_s18  ;;  %165 = sbr.rel (%p162_p9) target bundleno = 23 (0x17), region = 32 }
  0x11   : > { %s298_s20 = sshll.u32 %s156_s19, 3 }
  0x12   : > { %s432_s23 = scalar_lea.vmem %s477_s0, %s298_s20 }
  0x15   : > { %v383_v0 = vmov 0.0  }
  0x16   : > { %166 = vst [vmem:[%s479_s2] sm:$0x1] %v383_v0 }
  0x17 PF: > { %v167_v1 = vld [vmem:[%s432_s23] sm:$0xff]  ;;  %v168_v2 = vld [vmem:[%s432_s23 + $0x8] sm:$0xff]  ;;  %v169_v4 = vld [vmem:[%s432_s23 + $0x10] sm:$0xff] }
  0x18   : > { %v342_v3 = vld [vmem:[%s478_s1] ss:$0 sm:$0xff]  ;;  %v170_v7 = vld [vmem:[%s432_s23 + $0x18] sm:$0xff]  ;;  %v172_v13 = vld [vmem:[%s432_s23 + $0x28] sm:$0xff] }
  0x19   : > { %v187_v5 = vsub.f32 %v167_v1, %v342_v3  ;;  %v188_v6 = vsub.f32 %v168_v2, %v342_v3  ;;  %v189_v8 = vsub.f32 %v169_v4, %v342_v3  ;;  %v171_v9 = vld [vmem:[%s432_s23 + $0x20] sm:$0xff]  ;;  %v190_v10 = vsub.f32 %v170_v7, %v342_v3  ;;  %v173_v16 = vld [vmem:[%s432_s23 + $0x30] sm:$0xff]  ;;  %v174_v20 = vld [vmem:[%s432_s23 + $0x38] sm:$0xff] }
  0x1a   : > { %v191_v14 = vsub.f32 %v171_v9, %v342_v3  ;;  %v192_v17 = vsub.f32 %v172_v13, %v342_v3  ;;  %v193_v21 = vsub.f32 %v173_v16, %v342_v3  ;;  %v175_v24 = vld [vmem:[%s432_s23 + $0x40] sm:$0xff]  ;;  %v194_v25 = vsub.f32 %v174_v20, %v342_v3  ;;  %v176_v28 = vld [vmem:[%s432_s23 + $0x48] sm:$0xff]  ;;  %v177_v32 = vld [vmem:[%s432_s23 + $0x50] sm:$0xff] }
  0x1b   : > { %v204_v11 = vmul.f32 %v187_v5, %v187_v5  ;;  %v205_v12 = vmul.f32 %v188_v6, %v188_v6  ;;  %v206_v15 = vmul.f32 %v189_v8, %v189_v8  ;;  %v207_v18 = vmul.f32 %v190_v10, %v190_v10  ;;  %v178_v36 = vld [vmem:[%s432_s23 + $0x58] sm:$0xff]  ;;  %v179_v40 = vld [vmem:[%s432_s23 + $0x60] sm:$0xff]  ;;  %v180_v44 = vld [vmem:[%s432_s23 + $0x68] sm:$0xff] }
  0x1c   : > { %v208_v22 = vmul.f32 %v191_v14, %v191_v14  ;;  %v209_v26 = vmul.f32 %v192_v17, %v192_v17  ;;  %v195_v29 = vsub.f32 %v175_v24, %v342_v3  ;;  %v210_v30 = vmul.f32 %v193_v21, %v193_v21  ;;  %v181_v48 = vld [vmem:[%s432_s23 + $0x70] sm:$0xff]  ;;  %v182_v52 = vld [vmem:[%s432_s23 + $0x78] sm:$0xff] }
  0x1d   : > { %v220_v19 = vadd.f32 %v205_v12, %v204_v11  ;;  %v196_v33 = vsub.f32 %v176_v28, %v342_v3  ;;  %v211_v34 = vmul.f32 %v194_v25, %v194_v25  ;;  %v197_v37 = vsub.f32 %v177_v32, %v342_v3  ;;  %v203_v7 = vld [vmem:[%s479_s2] sm:$0x1] }
  0x1e   : > { %v212_v38 = vmul.f32 %v195_v29, %v195_v29  ;;  %v198_v41 = vsub.f32 %v178_v36, %v342_v3  ;;  %v199_v45 = vsub.f32 %v179_v40, %v342_v3  ;;  %v200_v49 = vsub.f32 %v180_v44, %v342_v3 }
  0x1f   : > { %v221_v23 = vadd.f32 %v220_v19, %v206_v15  ;;  %v213_v42 = vmul.f32 %v196_v33, %v196_v33  ;;  %v214_v46 = vmul.f32 %v197_v37, %v197_v37  ;;  %v201_v53 = vsub.f32 %v181_v48, %v342_v3 }
  0x20   : > { %v215_v50 = vmul.f32 %v198_v41, %v198_v41  ;;  %v216_v54 = vmul.f32 %v199_v45, %v199_v45  ;;  %v202_v56 = vsub.f32 %v182_v52, %v342_v3  ;;  %v217_v57 = vmul.f32 %v200_v49, %v200_v49 }
  0x21   : > { %v222_v27 = vadd.f32 %v221_v23, %v207_v18  ;;  %v218_v59 = vmul.f32 %v201_v53, %v201_v53 }
  0x22   : > { %v219_v61 = vmul.f32 %v202_v56, %v202_v56 }
  0x23   : > { %v223_v31 = vadd.f32 %v222_v27, %v208_v22 }
  0x25   : > { %v224_v35 = vadd.f32 %v223_v31, %v209_v26 }
  0x27   : > { %v225_v39 = vadd.f32 %v224_v35, %v210_v30 }
  0x29   : > { %v226_v43 = vadd.f32 %v225_v39, %v211_v34 }
  0x2b   : > { %v227_v47 = vadd.f32 %v226_v43, %v212_v38 }
  0x2d   : > { %v228_v51 = vadd.f32 %v227_v47, %v213_v42 }
  0x2f   : > { %v229_v55 = vadd.f32 %v228_v51, %v214_v46 }
  0x31   : > { %v230_v58 = vadd.f32 %v229_v55, %v215_v50 }
  0x33   : > { %v231_v60 = vadd.f32 %v230_v58, %v216_v54 }
  0x35   : > { %v232_v62 = vadd.f32 %v231_v60, %v217_v57 }
  0x37   : > { %v233_v63 = vadd.f32 %v232_v62, %v218_v59 }
  0x39   : > { %v234_v0 = vadd.f32 %v233_v63, %v219_v61 }
  0x3b   : > { %v235_v1 = vrot.slane %v234_v0, 4 }
  0x3d   : > { %v236_v2 = vadd.f32 %v235_v1, %v234_v0 }
  0x3f   : > { %v237_v4 = vrot.slane %v236_v2, 2 }
  0x41   : > { %v238_v5 = vadd.f32 %v237_v4, %v236_v2 }
  0x43   : > { %v239_v6 = vrot.slane %v238_v5, 1 }
  0x45   : > { %v240_v8 = vadd.f32 %v239_v6, %v238_v5 }
  0x47   : > { %v241_v9 = vadd.f32 %v240_v8, %v203_v7 }
  0x49   : > { %242 = vst [vmem:[%s479_s2] sm:$0x1] %v241_v9 }
  0x4a PF: > { %s12_s13 = sadd.s32 1, %s381_s13   ;;  %s480_s9 = smov %s373_s11 }
  0x4b   : > { %p9_p10 = scmp.ge.s32.totalorder %s12_s13, 6   ;;  %s481_s10 = smov %s377_s12 }
  0x4c   : > { %s482_s11 = smov %s485_s14  ;;  %s483_s12 = smov %s489_s15 }
  0x4d   :  { %11 = sbr.rel (!%p9_p10) target bundleno = 3 (0x3), region = 58 }

// kernel: residual_spade_block.15
= control target key start
LH: loop header
LB: loop body
LE: loop exit
PB: predicated region body
PF: predicated region fallthrough
CT: control target
= control target key end

     0   :  { %s3263_s18 = smov 0   ;;  %s3265_s19 = smov 0   ;;  %s4228_s0 = inlined_call_operand.vmem [shape: f32[2,16,16,128], index: 0, kind: input, shape index: {}, may-alias: {0,1,2}]   ;;  %s4229_s1 = inlined_call_operand.vmem [shape: f32[2,16,16,128], index: 1, kind: input, shape index: {}, may-alias: {0,1,2}]   ;;  %s4230_s2 = inlined_call_operand.vmem [shape: f32[2,16,16,128], index: 2, kind: input, shape index: {}, may-alias: {0,1,2}]   ;;  %s4231_s3 = inlined_call_operand.vmem [shape: bf16[1152,128], index: 3, kind: input, shape index: {}]   ;;  %s4232_s4 = inlined_call_operand.vmem [shape: f32[1,128], index: 4, kind: input, shape index: {}]   ;;  %s4233_s5 = inlined_call_operand.vmem [shape: bf16[2,16,16,128], index: 5, kind: output, shape index: {}]  }
   0x1   :  { %s3267_s20 = smov 0   ;;  %s3269_s21 = smov 0  }
   0x2   :  { %s3271_s22 = smov 0  }
   0x3 LB: > { %s24_s23 = sadd.s32 1, %s3223_s20  ;;  %s27_s24 = sadd.s32 1, %s3227_s21  ;;  %s3231_s22 = sphi %s3271_s22, %s15_s22   ;;  %s3227_s21 = sphi %s3269_s21, %s4250_s21   ;;  %s3223_s20 = sphi %s3267_s20, %s4249_s20   ;;  %s3219_s19 = sphi %s3265_s19, %s4248_s19   ;;  %s3215_s18 = sphi %s3263_s18, %s4247_s18  }
   0x4   : > { %p25_p0 = scmp.ge.s32.totalorder %s24_s23, 2  ;;  %p2631_p1 = scmp.ge.s32.totalorder %s3231_s22, 1 }
   0x5   : > { %p273_p2 = scmp.lt.s32.totalorder %s3231_s22, 5 }
   0x6   : > { %s4252_s23 = smov (%p25_p0, %s24_s23), 0  ;;  %s4254_s24 = smov (!%p25_p0, %s27_s24), %s3227_s21 }
   0x7   : > { %p274_p3 = pnand %p2631_p1, %p273_p2  ;;  %p29_p4 = scmp.ge.s32.totalorder %s4254_s24, 2 }
   0x8   : > { %s3299_s27 = sshll.u32 (!%p274_p3), %s3215_s18, 3  ;;  %p338_p5 = scmp.lt.s32.totalorder (!%p274_p3), %s3219_s19, 1 }
   0x9   : > { %s4256_s24 = smov (%p29_p4, %s4254_s24), 0  ;;  %277 = sbr.rel (%p274_p3) target bundleno = 511 (0x1ff), region = 40 }
   0xa   : > { %p340_p6 = scmp.lt.s32.totalorder (!%p274_p3), %s3299_s27, 15  ;;  %s3323_s7 = sadd.s32 (!%p274_p3), 4294967295, %s3299_s27 }
   0xb   : > { %p350_p7 = scmp.gt.s32.totalorder (!%p274_p3), %s3323_s7, 0  ;;  %p2638_p8 = scmp.lt.s32.totalorder (!%p274_p3), %s3323_s7, 15 }
   0xc   : > { %p467_p9 = scmp.gt.s32.totalorder (!%p274_p3), %s3215_s18, 0  ;;  %s366_s9 = sadd.s32 (!%p274_p3), 8, %s3299_s27 }
   0xd   : > { %p4062_p10 = scmp.lt.s32.totalorder (!%p274_p3), %s366_s9, 15  ;;  %p473_p11 = scmp.lt.s32.totalorder (!%p274_p3), %s3215_s18, 1 }
   0xe   : > { %v3024_v0 = vld [vmem:[%s4231_s3 + $0x78] sm:$0xff]  ;;  %vm394_vm0 = vcmask 1040384   ;;  %vm395_vm1 = vsmask.f32 256  ;;  %v3023_v1 = vld [vmem:[%s4231_s3 + $0x70] sm:$0xff]  ;;  %s4258_s19 = smov (!%p338_p5, %s3219_s19), 1 }
   0xf   : > { %3128 = vmatpush.bf16.msra.mxu1 %v3024_v0  ;;  %3129 = vmatpush.bf16.msra.mxu2 %v3024_v0  ;;  %vm3306_vm2 = vmand %vm394_vm0, %vm395_vm1  ;;  %vm427_vm3 = vsmask.f32 7938  ;;  %s341_s30 = scalar_select %p340_p6, %s3299_s27, 15  ;;  %v403_v3 = vld [vmem:[#allocation2 + $0x18] sm:$0x1]  ;;  %v3022_v8 = vld [vmem:[%s4231_s3 + $0x68] sm:$0xff] }
  0x10   : > { %3130 = vmatpush.bf16.msra.mxu3 %v3024_v0  ;;  %1124 = vmatpush.bf16.msra.mxu0 %v3024_v0  ;;  %vm3312_vm4 = vmand %vm394_vm0, %vm427_vm3  ;;  %v435_v5 = vld [vmem:[#allocation2 + $0x20] sm:$0x1]  ;;  %s3316_s6 = sshll.u32 %s4258_s19, 5  ;;  %v404_v6 = vsel %vm3306_vm2, 0, %v403_v3  ;;  %vm501_vm5 = vcmask 1043456   ;;  %v3020_v39 = vld [vmem:[%s4231_s3 + $0x58] sm:$0xff] }
  0x11   : > { %v436_v7 = vsel %vm3312_vm4, 0, %v435_v5  ;;  %s2633_s10 = sshll.u32 %s341_s30, 1  ;;  %405 = vst [vmem:[#allocation2 + $0x18] sm:$0x1] %v404_v6  ;;  %v409_v9 = vld [vmem:[#allocation2 + $0x30] sm:$0x1]  ;;  %vm3368_vm7 = vmand %vm501_vm5, %vm427_vm3 }
  0x12   : > { %s3329_s11 = sadd.s32 %s3316_s6, %s2633_s10  ;;  %437 = vst [vmem:[#allocation2 + $0x20] sm:$0x1] %v436_v7  ;;  %v410_v10 = vsel %vm3306_vm2, 0, %v409_v9  ;;  %v441_v11 = vld [vmem:[#allocation2 + $0x38] sm:$0x1]  ;;  %v3021_v13 = vld [vmem:[%s4231_s3 + $0x60] sm:$0xff] }
  0x13   : > { %3131 = vmatpush.bf16.msra.mxu1 %v3023_v1  ;;  %3132 = vmatpush.bf16.msra.mxu2 %v3023_v1  ;;  %s2635_s12 = sshll.u32 %s3329_s11, 3  ;;  %v415_v12 = vld [vmem:[#allocation2 + $0x48] sm:$0x1]  ;;  %411 = vst [vmem:[#allocation2 + $0x30] sm:$0x1] %v410_v10  ;;  %v442_v14 = vsel %vm3312_vm4, 0, %v441_v11 }
  0x14   : > { %3133 = vmatpush.bf16.msra.mxu3 %v3023_v1  ;;  %1125 = vmatpush.bf16.msra.mxu0 %v3023_v1  ;;  %s3341_s17 = scalar_lea.vmem %s4228_s0, %s2635_s12  ;;  %v416_v15 = vsel %vm3306_vm2, 0, %v415_v12  ;;  %v447_v16 = vld [vmem:[#allocation2 + $0x50] sm:$0x1]  ;;  %443 = vst [vmem:[#allocation2 + $0x38] sm:$0x1] %v442_v14  ;;  %v3018_v12 = vld [vmem:[%s4231_s3 + $0x48] sm:$0xff] }
  0x15   : > { %v540_v17 = vld [vmem:[%s3341_s17 + $0x10] sm:$0xff]  ;;  %v541_v18 = vld [vmem:[%s3341_s17 + $0x18] sm:$0xff]  ;;  %v448_v20 = vsel %vm3312_vm4, 0, %v447_v16  ;;  %417 = vst [vmem:[#allocation2 + $0x48] sm:$0x1] %v416_v15  ;;  %s351_s19 = scalar_select %p350_p7, %s3323_s7, 0 }
  0x16   : > { %v544_v19 = vld [vmem:[%s3341_s17 + $0x30] sm:$0xff]  ;;  %v556_v21 = vpack.c.bf16 %v540_v17, %v540_v17  ;;  %v557_v22 = vpack.c.bf16 %v541_v18, %v541_v18  ;;  %v545_v23 = vld [vmem:[%s3341_s17 + $0x38] sm:$0xff]  ;;  %vm479_vm6 = vsmask.f32 4368  ;;  %449 = vst [vmem:[#allocation2 + $0x50] sm:$0x1] %v448_v20 }
  0x17   : > { %3134 = vmatpush.bf16.msra.mxu1 %v3022_v8  ;;  %3135 = vmatpush.bf16.msra.mxu2 %v3022_v8  ;;  %v560_v24 = vpack.c.bf16 %v544_v19, %v544_v19  ;;  %v548_v25 = vld [vmem:[%s3341_s17 + $0x50] sm:$0xff]  ;;  %v549_v26 = vld [vmem:[%s3341_s17 + $0x58] sm:$0xff]  ;;  %v561_v27 = vpack.c.bf16 %v545_v23, %v545_v23  ;;  %s4260_s19 = smov (!%p2638_p8, %s351_s19), 15  ;;  %vm3378_vm8 = vmor %vm395_vm1, %vm479_vm6  ;;  %vm833_vm9 = vsmask.f32 3328  ;;  %vm1326_vm13 = vcmask 1042432  }
  0x18   : > { %3136 = vmatpush.bf16.msra.mxu3 %v3022_v8  ;;  %1126 = vmatpush.bf16.msra.mxu0 %v3022_v8  ;;  %v3358_v28 = vpack.c.bf16 %v548_v25, %v548_v25  ;;  %v3360_v29 = vpack.c.bf16 %v549_v26, %v549_v26  ;;  %v588_v30 = vshrl.u32 %v556_v21, 16  ;;  %v591_v31 = vshll.u32 %v556_v21, 16  ;;  %v738_v34 = vld [vmem:[#allocation2 + $0x18] sm:$0xf]  ;;  %v3384_v51 = vld [vmem:[#allocation2] sm:$0x1] }
  0x19   : > { %v596_v32 = vshrl.u32 %v557_v22, 16  ;;  %v599_v33 = vshll.u32 %v557_v22, 16  ;;  %v622_v35 = vshrl.u32 %v560_v24, 16  ;;  %v625_v36 = vshll.u32 %v560_v24, 16  ;;  %v742_v46 = vld [vmem:[#allocation2 + $0x20] sm:$0x1] }
  0x1a   : > { %v630_v37 = vshrl.u32 %v561_v27, 16  ;;  %v633_v38 = vshll.u32 %v561_v27, 16  ;;  %v590_v41 = vrot.slane %v588_v30, 7  ;;  %v656_v43 = vshrl.u32 %v3358_v28, 16  ;;  %v752_v56 = vld [vmem:[#allocation2 + $0x30] sm:$0xf] }
  0x1b   : > { %3137 = vmatpush.bf16.msra.mxu1 %v3021_v13  ;;  %3138 = vmatpush.bf16.msra.mxu2 %v3021_v13  ;;  %v598_v42 = vrot.slane %v596_v32, 7  ;;  %v659_v44 = vshll.u32 %v3358_v28, 16  ;;  %v624_v47 = vrot.slane %v622_v35, 7  ;;  %v664_v49 = vshrl.u32 %v3360_v29, 16  ;;  %s2643_s28 = sshll.u32 %s4260_s19, 1  ;;  %v3019_v62 = vld [vmem:[%s4231_s3 + $0x50] sm:$0xff] }
  0x1c   : > { %3139 = vmatpush.bf16.msra.mxu3 %v3021_v13  ;;  %1127 = vmatpush.bf16.msra.mxu0 %v3021_v13  ;;  %v632_v48 = vrot.slane %v630_v37, 7  ;;  %v667_v50 = vshll.u32 %v3360_v29, 16  ;;  %v593_v52 = vor.u32 %v591_v31, %v590_v41  ;;  %v594_v53 = vrot.slane %v590_v41, 4  ;;  %v756_v61 = vld [vmem:[#allocation2 + $0x38] sm:$0x1]  ;;  %s358_s29 = sadd.s32 %s2643_s28, %s3316_s6  ;;  %v542_v6 = vld [vmem:[%s3341_s17 + $0x20] sm:$0xff] }
  0x1d   : > { %v601_v54 = vor.u32 %v599_v33, %v598_v42  ;;  %v603_v55 = vrot.slane %v598_v42, 4  ;;  %v627_v57 = vor.u32 %v625_v36, %v624_v47  ;;  %v628_v58 = vrot.slane %v624_v47, 4  ;;  %v766_v5 = vld [vmem:[#allocation2 + $0x48] sm:$0xf]  ;;  %s2645_s8 = sshll.u32 %s358_s29, 3  ;;  %v3017_v32 = vld [vmem:[%s4231_s3 + $0x40] sm:$0xff] }
  0x1e   : > { %v635_v59 = vor.u32 %v633_v38, %v632_v48  ;;  %v637_v60 = vrot.slane %v632_v48, 4  ;;  %v739_v0 = vsel %vm3368_vm7, %v593_v52, %v738_v34  ;;  %v658_v3 = vrot.slane %v656_v43, 7  ;;  %v770_v9 = vld [vmem:[#allocation2 + $0x50] sm:$0x1]  ;;  %s360_s12 = scalar_lea.vmem %s4229_s1, %s2645_s8  ;;  %v3405_v10 = vld [vmem:[#allocation2 + $0x8] sm:$0x1] }
  0x1f   : > { %3140 = vmatpush.bf16.msra.mxu1 %v3020_v39  ;;  %3141 = vmatpush.bf16.msra.mxu2 %v3020_v39  ;;  %v602_v63 = vsel %vm3378_vm8, %v594_v53, %v601_v54  ;;  %v743_v1 = vsel %vm3306_vm2, %v603_v55, %v742_v46  ;;  %740 = vst [vmem:[#allocation2 + $0x18] sm:$0xf] %v739_v0  ;;  %v3407_v11 = vld [vmem:[#allocation2 + $0x24] sm:$0x1]  ;;  %v666_v15 = vrot.slane %v664_v49, 7  ;;  %v398_v16 = vsel %vm3306_vm2, 0, %v3384_v51 }
  0x20   : > { %3142 = vmatpush.bf16.msra.mxu3 %v3020_v39  ;;  %1128 = vmatpush.bf16.msra.mxu0 %v3020_v39  ;;  %v636_v7 = vsel %vm3378_vm8, %v628_v58, %v635_v59  ;;  %v753_v8 = vsel %vm3368_vm7, %v627_v57, %v752_v56  ;;  %741 = vst [vmem:[#allocation2 + $0x1c] sm:$0xf] %v602_v63  ;;  %v662_v14 = vrot.slane %v658_v3, 4  ;;  %v459_v17 = vld [vmem:[%s360_s12] sm:$0xff]  ;;  %vm834_vm10 = vsmask.f32 7440 }
  0x21   : > { %v661_v13 = vor.u32 %v659_v44, %v658_v3  ;;  %744 = vst [vmem:[#allocation2 + $0x20] sm:$0x1] %v743_v1  ;;  %v757_v18 = vsel %vm3306_vm2, %v637_v60, %v756_v61  ;;  %v430_v19 = vsel %vm3312_vm4, 0, %v3405_v10  ;;  %v460_v20 = vld [vmem:[%s360_s12 + $0x8] sm:$0xff]  ;;  %v461_v21 = vpack.c.bf16 %v459_v17, %v459_v17  ;;  %s468_s15 = scalar_select %p467_p9, 1, 0  ;;  %vm3493_vm12 = vmor %vm833_vm9, %vm834_vm10 }
  0x22   : > { %v558_v22 = vpack.c.bf16 %v542_v6, %v542_v6  ;;  %754 = vst [vmem:[#allocation2 + $0x30] sm:$0xf] %v753_v8  ;;  %v669_v23 = vor.u32 %v667_v50, %v666_v15  ;;  %v671_v24 = vrot.slane %v666_v15, 4  ;;  %v407_v26 = vsel %vm3306_vm2, 0, %v3407_v11  ;;  %v3427_v27 = vld [vmem:[#allocation2 + $0x2c] sm:$0x1] }
  0x23   : > { %3143 = vmatpush.bf16.msra.mxu1 %v3019_v62  ;;  %3144 = vmatpush.bf16.msra.mxu2 %v3019_v62  ;;  %v767_v25 = vsel %vm3368_vm7, %v661_v13, %v766_v5  ;;  %755 = vst [vmem:[#allocation2 + $0x34] sm:$0xf] %v636_v7  ;;  %v462_v28 = vpack.c.bf16 %v460_v20, %v460_v20  ;;  %v469_v29 = vstv %s468_s15  ;;  %v439_v30 = vsel %vm3312_vm4, 0, %v3427_v27  ;;  %v543_v35 = vld [vmem:[%s3341_s17 + $0x28] sm:$0xff]  ;;  %v546_v36 = vld [vmem:[%s3341_s17 + $0x40] sm:$0xff]  ;;  %v3032_v38 = vld [vmem:[%s4231_s3 + $0xb8] sm:$0xff] }
  0x24   : > { %3145 = vmatpush.bf16.msra.mxu3 %v3019_v62  ;;  %1129 = vmatpush.bf16.msra.mxu0 %v3019_v62  ;;  %v605_v31 = vshrl.u32 %v558_v22, 16  ;;  %758 = vst [vmem:[#allocation2 + $0x38] sm:$0x1] %v757_v18  ;;  %v670_v33 = vsel %vm3378_vm8, %v662_v14, %v669_v23  ;;  %v771_v34 = vsel %vm3306_vm2, %v671_v24, %v770_v9  ;;  %vm470_vm11 = vcmp.eq.s32.totalorder %v469_v29, 1  ;;  %v547_v37 = vld [vmem:[%s3341_s17 + $0x48] sm:$0xff]  ;;  %v3016_v46 = vld [vmem:[%s4231_s3 + $0x38] sm:$0xff] }
  0x25   : > { %768 = vst [vmem:[#allocation2 + $0x48] sm:$0xf] %v767_v25  ;;  %v3445_v39 = vsel %vm470_vm11, %v461_v21, 0  ;;  %v3447_v41 = vsel %vm470_vm11, %v462_v28, 0  ;;  %v608_v43 = vshll.u32 %v558_v22, 16  ;;  %v3040_v52 = vld [vmem:[%s4231_s3 + $0xf8] sm:$0xff]  ;;  %v3465_v53 = vpack.c.bf16 %v543_v35, %v543_v35 }
  0x26   : > { %v3449_v42 = vrot.slane %v605_v31, 7  ;;  %v3451_v44 = vld [vmem:[#allocation2 + $0x18] sm:$0xf]  ;;  %769 = vst [vmem:[#allocation2 + $0x4c] sm:$0xf] %v670_v33  ;;  %v482_v47 = vshrl.u32 %v3445_v39, 16  ;;  %v3467_v54 = vpack.c.bf16 %v546_v36, %v546_v36  ;;  %v3476_v59 = vpack.c.bf16 %v547_v37, %v547_v37 }
  0x27   : > { %3146 = vmatpush.bf16.msra.mxu1 %v3018_v12  ;;  %3147 = vmatpush.bf16.msra.mxu2 %v3018_v12  ;;  %v485_v48 = vshll.u32 %v3445_v39, 16  ;;  %v3458_v49 = vld [vmem:[#allocation2 + $0x1c] sm:$0xf]  ;;  %v885_v50 = vshrl.u32 %v3451_v44, 16  ;;  %v888_v51 = vshll.u32 %v3451_v44, 16  ;;  %v3038_v39 = vld [vmem:[%s4231_s3 + $0xe8] sm:$0xff] }
  0x28   : > { %3148 = vmatpush.bf16.msra.mxu3 %v3018_v12  ;;  %1130 = vmatpush.bf16.msra.mxu0 %v3018_v12  ;;  %772 = vst [vmem:[#allocation2 + $0x50] sm:$0x1] %v771_v34  ;;  %v3469_v55 = vld [vmem:[#allocation2 + $0x20] sm:$0x1]  ;;  %v894_v56 = vshll.u32 %v3458_v49, 16  ;;  %v898_v57 = vshrl.u32 %v3458_v49, 16  ;;  %v3474_v58 = vor.u32 %v608_v43, %v3449_v42 }
  0x29   : > { %399 = vst [vmem:[#allocation2] sm:$0x1] %v398_v16  ;;  %v887_v60 = vrot.slane %v885_v50, 4  ;;  %v890_v61 = vrot.slane %v888_v51, 5  ;;  %v904_v62 = vshll.u32 %v3469_v55, 16  ;;  %v3481_v0 = vrot.slane %v482_v47, 7 }
  0x2a   : > { %v3479_v63 = vld [vmem:[#allocation2 + $0x30] sm:$0xf]  ;;  %v896_v1 = vrot.slane %v894_v56, 5  ;;  %v900_v3 = vrot.slane %v898_v57, 4  ;;  %v3483_v5 = vld [vmem:[#allocation2 + $0x34] sm:$0xf] }
  0x2b   : > { %3149 = vmatpush.bf16.msra.mxu1 %v3017_v32  ;;  %3150 = vmatpush.bf16.msra.mxu2 %v3017_v32  ;;  %v933_v6 = vshrl.u32 %v3479_v63, 16  ;;  %v936_v7 = vshll.u32 %v3479_v63, 16  ;;  %v891_v8 = vor.u32 %v890_v61, %v887_v60  ;;  %v906_v9 = vrot.slane %v904_v62, 5  ;;  %v3487_v12 = vld [vmem:[#allocation2 + $0x38] sm:$0x1]  ;;  %v3031_v51 = vld [vmem:[%s4231_s3 + $0xb0] sm:$0xff] }
  0x2c   : > { %3151 = vmatpush.bf16.msra.mxu3 %v3017_v32  ;;  %v942_v13 = vshll.u32 %v3483_v5, 16  ;;  %v946_v14 = vshrl.u32 %v3483_v5, 16  ;;  %v901_v16 = vor.u32 %v900_v3, %v896_v1  ;;  %v952_v20 = vshll.u32 %v3487_v12, 16  ;;  %v3498_v21 = vld [vmem:[#allocation2 + $0x48] sm:$0xf]  ;;  %1131 = vmatpush.bf16.msra.mxu0 %v3017_v32  ;;  %v3039_v56 = vld [vmem:[%s4231_s3 + $0xf0] sm:$0xff] }
  0x2d   : > { %v935_v17 = vrot.slane %v933_v6, 4  ;;  %v938_v18 = vrot.slane %v936_v7, 5  ;;  %v892_v22 = vrot.slane %v891_v8, 4  ;;  %v3500_v25 = vld [vmem:[#allocation2 + $0x4c] sm:$0xf]  ;;  %v981_v28 = vshrl.u32 %v3498_v21, 16 }
  0x2e   : > { %v944_v23 = vrot.slane %v942_v13, 5  ;;  %v948_v24 = vrot.slane %v946_v14, 4  ;;  %v902_v29 = vrot.slane %v901_v16, 4  ;;  %v954_v33 = vrot.slane %v952_v20, 5  ;;  %431 = vst [vmem:[#allocation2 + $0x8] sm:$0x1] %v430_v19 }
  0x2f   : > { %1481 = vmatpush.bf16.msrb.mxu2 %v3032_v38  ;;  %1269 = vmatpush.bf16.msrb.mxu1 %v3016_v46  ;;  %v939_v31 = vor.u32 %v938_v18, %v935_v17  ;;  %v984_v34 = vshll.u32 %v3498_v21, 16  ;;  %v897_v35 = vsel %vm3493_vm12, %v892_v22, %v896_v1  ;;  %v3506_v37 = vld [vmem:[#allocation2 + $0x50] sm:$0x1]  ;;  %v983_v32 = vrot.slane %v981_v28, 4  ;;  %v3048_v61 = vld [vmem:[%s4231_s3 + $0x138] sm:$0xff]  ;;  %v3030_v8 = vld [vmem:[%s4231_s3 + $0xa8] sm:$0xff] }
  0x30   : > { %1616 = vmatpush.bf16.msrb.mxu3 %v3040_v52  ;;  %v949_v36 = vor.u32 %v948_v24, %v944_v23  ;;  %v990_v38 = vshll.u32 %v3500_v25, 16  ;;  %v907_v43 = vsel %vm3493_vm12, %v902_v29, %v906_v9  ;;  %v1048_v46 = vunpack.c.l.b16 %v897_v35  ;;  %v3015_v52 = vld [vmem:[%s4231_s3 + $0x30] sm:$0xff]  ;;  %v503_v7 = vld [vmem:[#allocation2] sm:$0xf]  ;;  %v3014_v9 = vld [vmem:[%s4231_s3 + $0x28] sm:$0xff]  ;;  %1773 = vmatpush.bf16.msrb.mxu0 %v3048_v61  ;;  %s4262_s9 = smov (!%p4062_p10, %s366_s9), 15 }
  0x31   : > { %v940_v47 = vrot.slane %v939_v31, 4  ;;  %v986_v50 = vrot.slane %v984_v34, 5  ;;  %v1049_v10 = vunpack.c.l.b16 %v907_v43  ;;  %v994_v60 = vshrl.u32 %v3500_v25, 16  ;;  %408 = vst [vmem:[#allocation2 + $0x24] sm:$0x1] %v407_v26  ;;  %v3029_v27 = vld [vmem:[%s4231_s3 + $0xa0] sm:$0xff] }
  0x32   : > { %v950_v19 = vrot.slane %v949_v36, 4  ;;  %v992_v57 = vrot.slane %v990_v38, 5  ;;  %v1000_v3 = vshll.u32 %v3506_v37, 16  ;;  %v487_v6 = vor.u32 %v485_v48, %v3481_v0  ;;  %v3047_v48 = vld [vmem:[%s4231_s3 + $0x130] sm:$0xff]  ;;  %440 = vst [vmem:[#allocation2 + $0x2c] sm:$0x1] %v439_v30 }
  0x33   : > { %v945_v62 = vsel %vm3493_vm12, %v940_v47, %v944_v23  ;;  %v987_v1 = vor.u32 %v986_v50, %v983_v32  ;;  %1482 = vmatpush.bf16.msrb.mxu2 %v3031_v51  ;;  %1270 = vmatpush.bf16.msrb.mxu1 %v3015_v52  ;;  %v3540_v13 = vpack.c.b16 %v1049_v10, %v1048_v46  ;;  %v996_v17 = vrot.slane %v994_v60, 4  ;;  %v412_v26 = vld [vmem:[#allocation2 + $0x3c] sm:$0x1]  ;;  %v444_v31 = vld [vmem:[#allocation2 + $0x44] sm:$0x1]  ;;  %v3046_v43 = vld [vmem:[%s4231_s3 + $0x128] sm:$0xff] }
  0x34   : > { %v955_v14 = vsel %vm3493_vm12, %v950_v19, %v954_v33  ;;  %v1052_v16 = vunpack.c.l.b16 %v945_v62  ;;  %1617 = vmatpush.bf16.msrb.mxu3 %v3039_v56  ;;  %v1002_v22 = vrot.slane %v1000_v3, 5  ;;  %v488_v23 = vrot.slane %v3481_v0, 4  ;;  %v3013_v30 = vld [vmem:[%s4231_s3 + $0x20] sm:$0xff]  ;;  %1774 = vmatpush.bf16.msrb.mxu0 %v3047_v48  ;;  %v551_v10 = vld [vmem:[%s3341_s17 + $0x68] sm:$0xff]  ;;  %v418_v61 = vld [vmem:[#allocation2 + $0x54] sm:$0x1] }
  0x35   : > { %v1053_v18 = vunpack.c.l.b16 %v955_v14  ;;  %v988_v20 = vrot.slane %v987_v1, 4  ;;  %1142 = vmatmul.bf16.vlgmr.msra.gmra.mxu1 %v3540_v13  ;;  %v997_v24 = vor.u32 %v996_v17, %v992_v57  ;;  %v490_v28 = vshrl.u32 %v3447_v41, 16  ;;  %v3037_v38 = vld [vmem:[%s4231_s3 + $0xe0] sm:$0xff]  ;;  %s4264_s9 = smov (!%p4062_p10, %s4262_s9), 15  ;;  %s2656_s19 = sshll.u32 %s3329_s11, 2 }
  0x36   : > { %v493_v29 = vshll.u32 %v3447_v41, 16  ;;  %v504_v11 = vsel %vm3368_vm7, %v487_v6, %v503_v7  ;;  %v611_v41 = vrot.slane %v3449_v42, 4  ;;  %v613_v34 = vshrl.u32 %v3465_v53, 16  ;;  %v507_v42 = vld [vmem:[#allocation2 + $0x8] sm:$0x1]  ;;  %v550_v56 = vld [vmem:[%s3341_s17 + $0x60] sm:$0xff]  ;;  %s4176_s28 = scalar_lea.vmem %s4233_s5, %s2656_s19 }
  0x37   : > { %v3564_v33 = vpack.c.b16 %v1053_v18, %v1052_v16  ;;  %v993_v0 = vsel %vm3493_vm12, %v988_v20, %v992_v57  ;;  %505 = vst [vmem:[#allocation2] sm:$0xf] %v504_v11  ;;  %1483 = vmatpush.bf16.msrb.mxu2 %v3030_v8  ;;  %1271 = vmatpush.bf16.msrb.mxu1 %v3014_v9  ;;  %v998_v35 = vrot.slane %v997_v24, 4  ;;  %v492_v32 = vrot.slane %v490_v28, 7  ;;  %v3608_v20 = vld [vmem:[#allocation2 + $0x5c] sm:$0x1] }
  0x38   : > { %v1056_v36 = vunpack.c.l.b16 %v993_v0  ;;  %1618 = vmatpush.bf16.msrb.mxu3 %v3038_v39  ;;  %v616_v46 = vshll.u32 %v3465_v53, 16  ;;  %v615_v47 = vrot.slane %v613_v34, 7  ;;  %v413_v50 = vsel %vm3306_vm2, 0, %v412_v26  ;;  %v745_v6 = vld [vmem:[#allocation2 + $0x24] sm:$0xf]  ;;  %1775 = vmatpush.bf16.msrb.mxu0 %v3046_v43  ;;  %s2650_s27 = sshll.u32 %s4264_s9, 1 }
  0x39   : > { %1152 = vmatmul.bf16.vlgmr.msra.gmra.mxu2 %v3564_v33  ;;  %v445_v51 = vsel %vm3312_vm4, 0, %v444_v31  ;;  %v639_v52 = vshrl.u32 %v3467_v54, 16  ;;  %v1003_v19 = vsel %vm3493_vm12, %v998_v35, %v1002_v22  ;;  %v495_v57 = vor.u32 %v493_v29, %v492_v32  ;;  %414 = vst [vmem:[#allocation2 + $0x3c] sm:$0x1] %v413_v50  ;;  %v749_v14 = vld [vmem:[#allocation2 + $0x2c] sm:$0x1]  ;;  %s375_s12 = sadd.s32 %s2650_s27, %s3316_s6 }
  0x3a   : > { %v497_v60 = vrot.slane %v492_v32, 4  ;;  %v642_v53 = vshll.u32 %v3467_v54, 16  ;;  %v1057_v62 = vunpack.c.l.b16 %v1003_v19  ;;  %v618_v1 = vor.u32 %v616_v46, %v615_v47  ;;  %446 = vst [vmem:[#allocation2 + $0x44] sm:$0x1] %v445_v51  ;;  %v538_v0 = vld [vmem:[%s3341_s17] sm:$0xff]  ;;  %v539_v35 = vld [vmem:[%s3341_s17 + $0x8] sm:$0xff] }
  0x3b   : > { %1484 = vmatpush.bf16.msrb.mxu2 %v3029_v27  ;;  %1272 = vmatpush.bf16.msrb.mxu1 %v3013_v30  ;;  %v620_v3 = vrot.slane %v615_v47, 4  ;;  %v641_v7 = vrot.slane %v639_v52, 7  ;;  %v496_v8 = vsel %vm3378_vm8, %v488_v23, %v495_v57  ;;  %v746_v54 = vsel %vm3368_vm7, %v3474_v58, %v745_v6  ;;  %s474_s6 = scalar_select %p473_p11, 1, 0 }
  0x3c   : > { %v508_v9 = vsel %vm3306_vm2, %v497_v60, %v507_v42  ;;  %1619 = vmatpush.bf16.msrb.mxu3 %v3037_v38  ;;  %v647_v16 = vshrl.u32 %v3476_v59, 16  ;;  %v3602_v17 = vpack.c.b16 %v1057_v62, %v1056_v36  ;;  %506 = vst [vmem:[#allocation2 + $0x4] sm:$0xf] %v496_v8  ;;  %v619_v39 = vsel %vm3378_vm8, %v611_v41, %v618_v1 }
  0x3d   : > { %v750_v48 = vsel %vm3306_vm2, %v620_v3, %v749_v14  ;;  %v644_v18 = vor.u32 %v642_v53, %v641_v7  ;;  %509 = vst [vmem:[#allocation2 + $0x8] sm:$0x1] %v508_v9  ;;  %v645_v58 = vrot.slane %v641_v7, 4  ;;  %v566_v24 = vpack.c.bf16 %v550_v56, %v550_v56  ;;  %v3028_v3 = vld [vmem:[%s4231_s3 + $0x98] sm:$0xff] }
  0x3e   : > { %v3610_v22 = vld [vmem:[#allocation2] sm:$0xf]  ;;  %v649_v23 = vrot.slane %v647_v16, 7  ;;  %v567_v28 = vpack.c.bf16 %v551_v10, %v551_v10  ;;  %1162 = vmatmul.bf16.vlgmr.msra.gmra.mxu3 %v3602_v17  ;;  %747 = vst [vmem:[#allocation2 + $0x24] sm:$0xf] %v746_v54  ;;  %v650_v26 = vshll.u32 %v3476_v59, 16  ;;  %v3633_v60 = vpack.c.bf16 %v538_v0, %v538_v0 }
  0x3f   : > { %v837_v29 = vshrl.u32 %v3610_v22, 16  ;;  %v840_v11 = vshll.u32 %v3610_v22, 16  ;;  %v419_v31 = vsel %vm3306_vm2, 0, %v418_v61  ;;  %748 = vst [vmem:[#allocation2 + $0x28] sm:$0xf] %v619_v39  ;;  %v451_v30 = vsel %vm3312_vm4, 0, %v3608_v20  ;;  %1485 = vmatpush.bf16.msrb.mxu2 %v3028_v3 }
  0x40   : > { %v654_v27 = vrot.slane %v649_v23, 4  ;;  %v673_v41 = vshrl.u32 %v566_v24, 16  ;;  %v676_v34 = vshll.u32 %v566_v24, 16  ;;  %751 = vst [vmem:[#allocation2 + $0x2c] sm:$0x1] %v750_v48  ;;  %v652_v38 = vor.u32 %v650_v26, %v649_v23 }
  0x41   : > { %v839_v36 = vrot.slane %v837_v29, 4  ;;  %v842_v32 = vrot.slane %v840_v11, 5  ;;  %v759_v43 = vld [vmem:[#allocation2 + $0x3c] sm:$0xf]  ;;  %v763_v46 = vld [vmem:[#allocation2 + $0x44] sm:$0x1]  ;;  %v3642_v6 = vpack.c.bf16 %v539_v35, %v539_v35 }
  0x42   : > { %v760_v59 = vsel %vm3368_vm7, %v644_v18, %v759_v43  ;;  %420 = vst [vmem:[#allocation2 + $0x54] sm:$0x1] %v419_v31  ;;  %v675_v42 = vrot.slane %v673_v41, 7  ;;  %v681_v47 = vshrl.u32 %v567_v28, 16  ;;  %v653_v51 = vsel %vm3378_vm8, %v645_v58, %v652_v38  ;;  %v3012_v11 = vld [vmem:[%s4231_s3 + $0x18] sm:$0xff] }
  0x43   : > { %v843_v50 = vor.u32 %v842_v32, %v839_v36  ;;  %761 = vst [vmem:[#allocation2 + $0x3c] sm:$0xf] %v760_v59  ;;  %v764_v52 = vsel %vm3306_vm2, %v654_v27, %v763_v46  ;;  %v684_v56 = vshll.u32 %v567_v28, 16  ;;  %v3629_v10 = vld [vmem:[#allocation2 + $0x4] sm:$0xf]  ;;  %1273 = vmatpush.bf16.msrb.mxu1 %v3012_v11  ;;  %v3036_v43 = vld [vmem:[%s4231_s3 + $0xd8] sm:$0xff] }
  0x44   : > { %762 = vst [vmem:[#allocation2 + $0x40] sm:$0xf] %v653_v51  ;;  %v679_v19 = vrot.slane %v675_v42, 4  ;;  %v3631_v57 = vrot.slane %v681_v47, 7  ;;  %v3635_v53 = vld [vmem:[#allocation2 + $0x8] sm:$0x1]  ;;  %v678_v9 = vor.u32 %v676_v34, %v675_v42  ;;  %1620 = vmatpush.bf16.msrb.mxu3 %v3036_v43 }
  0x45   : > { %v844_v61 = vrot.slane %v843_v50, 4  ;;  %v846_v62 = vshll.u32 %v3629_v10, 16  ;;  %v850_v1 = vshrl.u32 %v3629_v10, 16  ;;  %v856_v7 = vshll.u32 %v3635_v53, 16  ;;  %v3645_v8 = vld [vmem:[#allocation2 + $0x24] sm:$0xf] }
  0x46   : > { %765 = vst [vmem:[#allocation2 + $0x44] sm:$0x1] %v764_v52  ;;  %v686_v54 = vor.u32 %v684_v56, %v3631_v57  ;;  %v688_v14 = vrot.slane %v3631_v57, 4  ;;  %v3649_v48 = vld [vmem:[#allocation2 + $0x28] sm:$0xf]  ;;  %v909_v18 = vshrl.u32 %v3645_v8, 16 }
  0x47   : > { %v848_v16 = vrot.slane %v846_v62, 5  ;;  %v852_v39 = vrot.slane %v850_v1, 4  ;;  %v912_v20 = vshll.u32 %v3645_v8, 16  ;;  %v858_v58 = vrot.slane %v856_v7, 5  ;;  %v3653_v23 = vld [vmem:[#allocation2 + $0x2c] sm:$0x1] }
  0x48   : > { %v918_v24 = vshll.u32 %v3649_v48, 16  ;;  %v922_v28 = vshrl.u32 %v3649_v48, 16  ;;  %v687_v29 = vsel %vm3378_vm8, %v679_v19, %v686_v54  ;;  %v911_v0 = vrot.slane %v909_v18, 4  ;;  %452 = vst [vmem:[#allocation2 + $0x5c] sm:$0x1] %v451_v30  ;;  %v3045_v50 = vld [vmem:[%s4231_s3 + $0x120] sm:$0xff] }
  0x49   : > { %v849_v26 = vsel %vm3493_vm12, %v844_v61, %v848_v16  ;;  %v853_v31 = vor.u32 %v852_v39, %v848_v16  ;;  %v914_v27 = vrot.slane %v912_v20, 5  ;;  %v928_v36 = vshll.u32 %v3653_v23, 16  ;;  %v773_v38 = vld [vmem:[#allocation2 + $0x54] sm:$0xf]  ;;  %776 = vst [vmem:[#allocation2 + $0x58] sm:$0xf] %v687_v29  ;;  %1776 = vmatpush.bf16.msrb.mxu0 %v3045_v50 }
  0x4a   : > { %v1044_v41 = vunpack.c.l.b16 %v849_v26  ;;  %v920_v34 = vrot.slane %v918_v24, 5  ;;  %v924_v35 = vrot.slane %v922_v28, 4  ;;  %v3665_v32 = vld [vmem:[#allocation2 + $0x3c] sm:$0xf]  ;;  %v774_v29 = vsel %vm3368_vm7, %v678_v9, %v773_v38  ;;  %v432_v11 = vld [vmem:[#allocation2 + $0x14] sm:$0x1] }
  0x4b   : > { %v854_v59 = vrot.slane %v853_v31, 4  ;;  %v915_v46 = vor.u32 %v914_v27, %v911_v0  ;;  %v3670_v42 = vld [vmem:[#allocation2 + $0x40] sm:$0xf]  ;;  %v957_v47 = vshrl.u32 %v3665_v32, 16  ;;  %v960_v30 = vshll.u32 %v3665_v32, 16 }
  0x4c   : > { %v925_v51 = vor.u32 %v924_v35, %v920_v34  ;;  %v930_v52 = vrot.slane %v928_v36, 5  ;;  %v966_v56 = vshll.u32 %v3670_v42, 16  ;;  %v970_v19 = vshrl.u32 %v3670_v42, 16  ;;  %775 = vst [vmem:[#allocation2 + $0x54] sm:$0xf] %v774_v29  ;;  %v3011_v36 = vld [vmem:[%s4231_s3 + $0x10] sm:$0xff] }
  0x4d   : > { %v859_v61 = vsel %vm3493_vm12, %v854_v59, %v858_v58  ;;  %v916_v62 = vrot.slane %v915_v46, 4  ;;  %v3681_v1 = vld [vmem:[#allocation2 + $0x44] sm:$0x1]  ;;  %v959_v3 = vrot.slane %v957_v47, 4  ;;  %v962_v7 = vrot.slane %v960_v30, 5  ;;  %v3035_v59 = vld [vmem:[%s4231_s3 + $0xd0] sm:$0xff]  ;;  %1274 = vmatpush.bf16.msrb.mxu1 %v3011_v36 }
  0x4e   : > { %v1045_v54 = vunpack.c.l.b16 %v859_v61  ;;  %v926_v16 = vrot.slane %v925_v51, 4  ;;  %v968_v39 = vrot.slane %v966_v56, 5  ;;  %v972_v18 = vrot.slane %v970_v19, 4  ;;  %v400_v58 = vld [vmem:[#allocation2 + $0xc] sm:$0x1]  ;;  %v3044_v46 = vld [vmem:[%s4231_s3 + $0x118] sm:$0xff]  ;;  %1621 = vmatpush.bf16.msrb.mxu3 %v3035_v59 }
  0x4f   : > { %v921_v20 = vsel %vm3493_vm12, %v916_v62, %v920_v34  ;;  %v963_v24 = vor.u32 %v962_v7, %v959_v3  ;;  %v976_v28 = vshll.u32 %v3681_v1, 16  ;;  %v777_v35 = vld [vmem:[#allocation2 + $0x5c] sm:$0x1]  ;;  %v3027_v34 = vld [vmem:[%s4231_s3 + $0x90] sm:$0xff]  ;;  %v3026_v47 = vld [vmem:[%s4231_s3 + $0x88] sm:$0xff]  ;;  %v401_v57 = vsel %vm3306_vm2, 0, %v400_v58  ;;  %1777 = vmatpush.bf16.msrb.mxu0 %v3044_v46 }
  0x50   : > { %v1060_v26 = vpack.c.b16 %v1045_v54, %v1044_v41  ;;  %v931_v31 = vsel %vm3493_vm12, %v926_v16, %v930_v52  ;;  %v1050_v0 = vunpack.c.l.b16 %v921_v20  ;;  %v973_v27 = vor.u32 %v972_v18, %v968_v39  ;;  %1486 = vmatpush.bf16.msrb.mxu2 %v3027_v34  ;;  %v3718_v56 = vld [vmem:[#allocation2 + $0x58] sm:$0xf]  ;;  %402 = vst [vmem:[#allocation2 + $0xc] sm:$0x1] %v401_v57  ;;  %v3010_v16 = vld [vmem:[%s4231_s3 + $0x8] sm:$0xff]  ;;  %v3033_v34 = vld [vmem:[%s4231_s3 + $0xc0] sm:$0xff] }
  0x51   : > { %v1051_v43 = vunpack.c.l.b16 %v931_v31  ;;  %v964_v9 = vrot.slane %v963_v24, 4  ;;  %v978_v38 = vrot.slane %v976_v28, 5  ;;  %v778_v41 = vsel %vm3306_vm2, %v688_v14, %v777_v35  ;;  %v3043_v28 = vld [vmem:[%s4231_s3 + $0x110] sm:$0xff]  ;;  %1275 = vmatpush.bf16.msrb.mxu1 %v3010_v16  ;;  %v3064_v59 = vld [vmem:[%s4231_s3 + $0x1b8] sm:$0xff] }
  0x52   : > { %1132 = vmatmul.bf16.vlgmr.msra.gmra.mxu0 %v1060_v26  ;;  %v974_v30 = vrot.slane %v973_v27, 4  ;;  %779 = vst [vmem:[#allocation2 + $0x5c] sm:$0x1] %v778_v41  ;;  %v433_v14 = vsel %vm3312_vm4, 0, %v432_v11  ;;  %v571_v50 = vshrl.u32 %v3633_v60, 16  ;;  %v574_v19 = vshll.u32 %v3633_v60, 16 }
  0x53   : > { %v3714_v51 = vpack.c.b16 %v1051_v43, %v1050_v0  ;;  %v969_v52 = vsel %vm3493_vm12, %v964_v9, %v968_v39  ;;  %v579_v61 = vshrl.u32 %v3642_v6, 16  ;;  %v1014_v7 = vshll.u32 %v3718_v56, 16  ;;  %434 = vst [vmem:[#allocation2 + $0x14] sm:$0x1] %v433_v14  ;;  %v3034_v60 = vld [vmem:[%s4231_s3 + $0xc8] sm:$0xff]  ;;  %v3025_v11 = vld [vmem:[%s4231_s3 + $0x80] sm:$0xff]  ;;  %1778 = vmatpush.bf16.msrb.mxu0 %v3043_v28 }
  0x54   : > { %v979_v62 = vsel %vm3493_vm12, %v974_v30, %v978_v38  ;;  %v1054_v3 = vunpack.c.l.b16 %v969_v52  ;;  %v1018_v54 = vshrl.u32 %v3718_v56, 16  ;;  %v573_v18 = vrot.slane %v571_v50, 7  ;;  %1487 = vmatpush.bf16.msrb.mxu2 %v3026_v47  ;;  %v3742_v31 = vld [vmem:[#allocation2 + $0x54] sm:$0xf]  ;;  %1622 = vmatpush.bf16.msrb.mxu3 %v3034_v60  ;;  %v3042_v41 = vld [vmem:[%s4231_s3 + $0x108] sm:$0xff]  ;;  %v3072_v14 = vld [vmem:[%s4231_s3 + $0x1f8] sm:$0xff] }
  0x55   : > { %1147 = vmatmul.bf16.gmra.mxu1 %v3714_v51  ;;  %v1055_v39 = vunpack.c.l.b16 %v979_v62  ;;  %v581_v20 = vrot.slane %v579_v61, 7  ;;  %v582_v24 = vshll.u32 %v3642_v6, 16  ;;  %v1016_v29 = vrot.slane %v1014_v7, 5  ;;  %v3009_v6 = vld [vmem:[%s4231_s3] sm:$0xff] }
  0x56   : > { %v1020_v58 = vrot.slane %v1018_v54, 4  ;;  %v576_v0 = vor.u32 %v574_v19, %v573_v18  ;;  %v577_v27 = vrot.slane %v573_v18, 4  ;;  %v1005_v36 = vshrl.u32 %v3742_v31, 16  ;;  %1276 = vmatpush.bf16.msrb.mxu1 %v3009_v6  ;;  %v3041_v18 = vld [vmem:[%s4231_s3 + $0x100] sm:$0xff] }
  0x57   : > { %v3740_v26 = vpack.c.b16 %v1055_v39, %v1054_v3  ;;  %v584_v35 = vor.u32 %v582_v24, %v581_v20  ;;  %v1008_v43 = vshll.u32 %v3742_v31, 16  ;;  %v586_v38 = vrot.slane %v581_v20, 4  ;;  %v731_v62 = vld [vmem:[#allocation2 + $0xc] sm:$0xf]  ;;  %1779 = vmatpush.bf16.msrb.mxu0 %v3042_v41 }
  0x58   : > { %v1021_v9 = vor.u32 %v1020_v58, %v1016_v29  ;;  %vm1327_vm14 = vcmask 1046532   ;;  %v2753_v30 = vrot.slane %v3610_v22, 9  ;;  %v1331_v57 = vrot.slane %v3629_v10, 5  ;;  %1488 = vmatpush.bf16.msrb.mxu2 %v3025_v11  ;;  %1623 = vmatpush.bf16.msrb.mxu3 %v3033_v34  ;;  %v3056_v34 = vld [vmem:[%s4231_s3 + $0x178] sm:$0xff] }
  0x59   : > { %1157 = vmatmul.bf16.gmra.mxu2 %v3740_v26  ;;  %v3759_v46 = vld [vmem:[#allocation2 + $0x5c] sm:$0x1]  ;;  %v585_v47 = vsel %vm3378_vm8, %v577_v27, %v584_v35  ;;  %v1007_v50 = vrot.slane %v1005_v36, 4  ;;  %v1010_v52 = vrot.slane %v1008_v43, 5  ;;  %v732_v3 = vsel %vm3368_vm7, %v576_v0, %v731_v62  ;;  %vm3773_vm15 = vmor %vm1326_vm13, %vm1327_vm14  ;;  %v2999_v27 = vld [vmem:[#allocation2] sm:$0xff] }
  0x5a   : > { %v1022_v19 = vrot.slane %v1021_v9, 4  ;;  %v1024_v61 = vshll.u32 %v3759_v46, 16  ;;  %734 = vst [vmem:[#allocation2 + $0x10] sm:$0xf] %v585_v47  ;;  %v735_v7 = vld [vmem:[#allocation2 + $0x14] sm:$0x1]  ;;  %1914 = vmatpush.bf16.msra.mxu1 %v3056_v34 }
  0x5b   : > { %v1333_v10 = vrot.slane %v1331_v57, 4  ;;  %v1334_v54 = vrot.slane %v3635_v53, 5  ;;  %v1011_v16 = vor.u32 %v1010_v52, %v1007_v50  ;;  %733 = vst [vmem:[#allocation2 + $0xc] sm:$0xf] %v732_v3  ;;  %v736_v39 = vsel %vm3306_vm2, %v586_v38, %v735_v7  ;;  %1780 = vmatpush.bf16.msrb.mxu0 %v3041_v18  ;;  %v3080_v36 = vld [vmem:[%s4231_s3 + $0x238] sm:$0xff] }
  0x5c   : > { %v1026_v60 = vrot.slane %v1024_v61, 5  ;;  %2049 = vmatpush.bf16.msra.mxu2 %v3064_v59  ;;  %737 = vst [vmem:[#allocation2 + $0x14] sm:$0x1] %v736_v39  ;;  %2206 = vmatpush.bf16.msra.mxu3 %v3072_v14  ;;  %v1332_v53 = vsel %vm3773_vm15, %v2753_v30, %v1331_v57  ;;  %v3071_v61 = vld [vmem:[%s4231_s3 + $0x1f0] sm:$0xff] }
  0x5d   : > { %v1012_v20 = vrot.slane %v1011_v16, 4  ;;  %v1335_v28 = vsel %vm3773_vm15, %v1333_v10, %v1334_v54  ;;  %v1401_v35 = vunpack.c.l.b16 %v1332_v53 }
  0x5e   : > { %v1027_v24 = vsel %vm3493_vm12, %v1022_v19, %v1026_v60  ;;  %v1402_v6 = vunpack.c.l.b16 %v1335_v28  ;;  %v3063_v19 = vld [vmem:[%s4231_s3 + $0x1b0] sm:$0xff] }
  0x5f   : > { %v1059_v58 = vunpack.c.l.b16 %v1027_v24  ;;  %v1017_v11 = vsel %vm3493_vm12, %v1012_v20, %v1016_v29  ;;  %2347 = vmatpush.bf16.msra.mxu0 %v3080_v36 }
  0x60   : > { %v1058_v0 = vunpack.c.l.b16 %v1017_v11  ;;  %v1417_v52 = vpack.c.b16 %v1402_v6, %v1401_v35  ;;  %2050 = vmatpush.bf16.msra.mxu2 %v3063_v19  ;;  %2207 = vmatpush.bf16.msra.mxu3 %v3071_v61  ;;  %v3836_v61 = vld [vmem:[#allocation2 + $0x18] sm:$0xff] }
  0x61   : > { %v791_v43 = vld [vmem:[#allocation2 + $0x10] sm:$0xf] }
  0x62   : > { %v3797_v9 = vpack.c.b16 %v1059_v58, %v1058_v0  ;;  %v790_v38 = vld [vmem:[#allocation2 + $0xc] sm:$0xf]  ;;  %v870_v41 = vshll.u32 %v791_v43, 16  ;;  %v874_v59 = vshrl.u32 %v791_v43, 16  ;;  %v1338_v7 = vrot.slane %v791_v43, 5  ;;  %v3055_v43 = vld [vmem:[%s4231_s3 + $0x170] sm:$0xff] }
  0x63   : > { %v792_v29 = vld [vmem:[#allocation2 + $0x14] sm:$0x1]  ;;  %v861_v47 = vshrl.u32 %v790_v38, 16  ;;  %v864_v30 = vshll.u32 %v790_v38, 16  ;;  %v2754_v18 = vrot.slane %v790_v38, 9  ;;  %v3000_v6 = vld [vmem:[#allocation2 + $0xc] sm:$0xff]  ;;  %1915 = vmatpush.bf16.msra.mxu1 %v3055_v43 }
  0x64   : > { %1167 = vmatmul.bf16.gmra.mxu3 %v3797_v9  ;;  %v872_v57 = vrot.slane %v870_v41, 5  ;;  %v876_v14 = vrot.slane %v874_v59, 4  ;;  %v880_v50 = vshll.u32 %v792_v29, 16  ;;  %v1340_v20 = vrot.slane %v1338_v7, 4  ;;  %v3079_v38 = vld [vmem:[%s4231_s3 + $0x230] sm:$0xff]  ;;  %v3062_v59 = vld [vmem:[%s4231_s3 + $0x1a8] sm:$0xff] }
  0x65   : > { %1277 = vmatmul.bf16.vlgmr.msrb.gmra.mxu1 %v2999_v27  ;;  %v863_v62 = vrot.slane %v861_v47, 4  ;;  %v866_v3 = vrot.slane %v864_v30, 5  ;;  %v1341_v24 = vrot.slane %v792_v29, 5  ;;  %v1339_v0 = vsel %vm3773_vm15, %v2754_v18, %v1338_v7  ;;  %2348 = vmatpush.bf16.msra.mxu0 %v3079_v38  ;;  %v3070_v29 = vld [vmem:[%s4231_s3 + $0x1e8] sm:$0xff]  ;;  %v3052_v38 = vld [vmem:[%s4231_s3 + $0x158] sm:$0xff] }
  0x66   : > { %v877_v10 = vor.u32 %v876_v14, %v872_v57  ;;  %v882_v54 = vrot.slane %v880_v50, 5  ;;  %v1403_v34 = vunpack.c.l.b16 %v1339_v0  ;;  %v1345_v47 = vrot.slane %v3458_v49, 5  ;;  %2051 = vmatpush.bf16.msra.mxu2 %v3062_v59  ;;  %2208 = vmatpush.bf16.msra.mxu3 %v3070_v29  ;;  %v3059_v59 = vld [vmem:[%s4231_s3 + $0x190] sm:$0xff] }
  0x67   : > { %v867_v16 = vor.u32 %v866_v3, %v863_v62  ;;  %v1342_v27 = vsel %vm3773_vm15, %v1340_v20, %v1341_v24  ;;  %v2755_v30 = vrot.slane %v3451_v44, 9  ;;  %v1348_v14 = vrot.slane %v3469_v55, 5  ;;  %v3054_v62 = vld [vmem:[%s4231_s3 + $0x168] sm:$0xff]  ;;  %v3053_v24 = vld [vmem:[%s4231_s3 + $0x160] sm:$0xff]  ;;  %v3067_v29 = vld [vmem:[%s4231_s3 + $0x1d0] sm:$0xff] }
  0x68   : > { %v878_v60 = vrot.slane %v877_v10, 4  ;;  %v1404_v36 = vunpack.c.l.b16 %v1342_v27  ;;  %v3078_v44 = vld [vmem:[%s4231_s3 + $0x228] sm:$0xff]  ;;  %v2756_v55 = vrot.slane %v3645_v8, 9  ;;  %v1352_v3 = vrot.slane %v3649_v48, 5  ;;  %1916 = vmatpush.bf16.msra.mxu1 %v3054_v62  ;;  %v3061_v48 = vld [vmem:[%s4231_s3 + $0x1a0] sm:$0xff]  ;;  %v3051_v62 = vld [vmem:[%s4231_s3 + $0x150] sm:$0xff] }
  0x69   : > { %1489 = vmatmul.bf16.vlgmr.msrb.gmra.mxu2 %v1417_v52  ;;  %v868_v39 = vrot.slane %v867_v16, 4  ;;  %v1346_v50 = vsel %vm3773_vm15, %v2755_v30, %v1345_v47  ;;  %v1355_v7 = vrot.slane %v3653_v23, 5  ;;  %2349 = vmatpush.bf16.msra.mxu0 %v3078_v44  ;;  %v3069_v23 = vld [vmem:[%s4231_s3 + $0x1e0] sm:$0xff]  ;;  %v2757_v0 = vrot.slane %v3479_v63, 9  ;;  %v3076_v63 = vld [vmem:[%s4231_s3 + $0x218] sm:$0xff]  ;;  %v552_v44 = vld [vmem:[%s3341_s17 + $0x70] sm:$0xff] }
  0x6a   : > { %v883_v53 = vsel %vm3493_vm12, %v878_v60, %v882_v54  ;;  %v3820_v41 = vpack.c.b16 %v1404_v36, %v1403_v34  ;;  %v1405_v19 = vunpack.c.l.b16 %v1346_v50  ;;  %v1353_v10 = vsel %vm3773_vm15, %v2756_v55, %v1352_v3  ;;  %2052 = vmatpush.bf16.msra.mxu2 %v3061_v48  ;;  %2209 = vmatpush.bf16.msra.mxu3 %v3069_v23  ;;  %v3865_v20 = vld [vmem:[#allocation2 + $0x24] sm:$0xff]  ;;  %v3890_v36 = vld [vmem:[#allocation2 + $0x30] sm:$0xff]  ;;  %v553_v55 = vld [vmem:[%s3341_s17 + $0x78] sm:$0xff]  ;;  %s2652_s17 = sshll.u32 %s375_s12, 3 }
  0x6b   : > { %v873_v28 = vsel %vm3493_vm12, %v868_v39, %v872_v57  ;;  %v1047_v58 = vunpack.c.l.b16 %v883_v53  ;;  %v1347_v57 = vrot.slane %v1345_v47, 4  ;;  %v1354_v54 = vrot.slane %v1352_v3, 4  ;;  %v3077_v53 = vld [vmem:[%s4231_s3 + $0x220] sm:$0xff]  ;;  %v453_v23 = vld [vmem:[#allocation2 + $0x68] sm:$0x1]  ;;  %s377_s15 = scalar_lea.vmem %s4230_s2, %s2652_s17 }
  0x6c   : > { %v1046_v11 = vunpack.c.l.b16 %v873_v28  ;;  %v1407_v16 = vunpack.c.l.b16 %v1353_v10  ;;  %1917 = vmatpush.bf16.msra.mxu1 %v3053_v24  ;;  %v3060_v28 = vld [vmem:[%s4231_s3 + $0x198] sm:$0xff]  ;;  %v1366_v47 = vrot.slane %v3670_v42, 5  ;;  %v2758_v30 = vrot.slane %v3665_v32, 9  ;;  %v3075_v32 = vld [vmem:[%s4231_s3 + $0x210] sm:$0xff] }
  0x6d   : > { %v1349_v52 = vsel %vm3773_vm15, %v1347_v57, %v1348_v14  ;;  %v1356_v8 = vsel %vm3773_vm15, %v1354_v54, %v1355_v7  ;;  %2350 = vmatpush.bf16.msra.mxu0 %v3077_v53  ;;  %v1369_v14 = vrot.slane %v3681_v1, 5  ;;  %v3917_v42 = vld [vmem:[#allocation2 + $0x3c] sm:$0xff]  ;;  %v568_v7 = vpack.c.bf16 %v552_v44, %v552_v44 }
  0x6e   : > { %v1061_v35 = vpack.c.b16 %v1047_v58, %v1046_v11  ;;  %v1406_v49 = vunpack.c.l.b16 %v1349_v52  ;;  %v1408_v39 = vunpack.c.l.b16 %v1356_v8  ;;  %v3068_v58 = vld [vmem:[%s4231_s3 + $0x1d8] sm:$0xff]  ;;  %v1359_v11 = vrot.slane %v3483_v5, 5  ;;  %2053 = vmatpush.bf16.msra.mxu2 %v3060_v28  ;;  %v421_v1 = vld [vmem:[#allocation2 + $0x60] sm:$0x1]  ;;  %v3066_v8 = vld [vmem:[%s4231_s3 + $0x1c8] sm:$0xff] }
  0x6f   : > { %2210 = vmatpush.bf16.msra.mxu3 %v3068_v58  ;;  %v1368_v57 = vrot.slane %v1366_v47, 4  ;;  %v1367_v50 = vsel %vm3773_vm15, %v2758_v30, %v1366_v47  ;;  %v422_v3 = vsel %vm3306_vm2, 0, %v421_v1  ;;  %v569_v10 = vpack.c.bf16 %v553_v55, %v553_v55 }
  0x70   : > { %1137 = vmatmul.bf16.gmra.mxu0 %v1061_v35  ;;  %v3851_v60 = vpack.c.b16 %v1406_v49, %v1405_v19  ;;  %v3861_v18 = vpack.c.b16 %v1408_v39, %v1407_v16  ;;  %v1361_v27 = vrot.slane %v1359_v11, 4  ;;  %1918 = vmatpush.bf16.msra.mxu1 %v3052_v38  ;;  %v1411_v19 = vunpack.c.l.b16 %v1367_v50  ;;  %423 = vst [vmem:[#allocation2 + $0x60] sm:$0x1] %v422_v3  ;;  %v3058_v16 = vld [vmem:[%s4231_s3 + $0x188] sm:$0xff] }
  0x71   : > { %2351 = vmatpush.bf16.msra.mxu0 %v3076_v63  ;;  %v1370_v52 = vsel %vm3773_vm15, %v1368_v57, %v1369_v14  ;;  %v690_v48 = vshrl.u32 %v568_v7, 16  ;;  %v1373_v39 = vrot.slane %v3500_v25, 5  ;;  %v698_v24 = vshrl.u32 %v569_v10, 16  ;;  %v3958_v57 = vld [vmem:[#allocation2 + $0x48] sm:$0xff] }
  0x72   : > { %2054 = vmatpush.bf16.msra.mxu2 %v3059_v59  ;;  %v1412_v49 = vunpack.c.l.b16 %v1370_v52  ;;  %v454_v53 = vsel %vm3312_vm4, 0, %v453_v23  ;;  %v693_v58 = vshll.u32 %v568_v7, 16  ;;  %v1376_v25 = vrot.slane %v3506_v37, 5  ;;  %v3050_v52 = vld [vmem:[%s4231_s3 + $0x148] sm:$0xff] }
  0x73   : > { %2211 = vmatpush.bf16.msra.mxu3 %v3067_v29  ;;  %v692_v28 = vrot.slane %v690_v48, 7  ;;  %455 = vst [vmem:[#allocation2 + $0x68] sm:$0x1] %v454_v53  ;;  %v2760_v55 = vrot.slane %v3742_v31, 9  ;;  %v1383_v7 = vrot.slane %v3759_v46, 5  ;;  %v3049_v46 = vld [vmem:[%s4231_s3 + $0x140] sm:$0xff] }
  0x74   : > { %1624 = vmatmul.bf16.vlgmr.msrb.gmra.mxu3 %v3000_v6  ;;  %1919 = vmatpush.bf16.msra.mxu1 %v3051_v62  ;;  %v3931_v54 = vpack.c.b16 %v1412_v49, %v1411_v19  ;;  %v3074_v19 = vld [vmem:[%s4231_s3 + $0x208] sm:$0xff]  ;;  %v3057_v62 = vld [vmem:[%s4231_s3 + $0x180] sm:$0xff] }
  0x75   : > { %1282 = vmatmul.bf16.gmra.mxu1 %v3000_v6  ;;  %v1360_v6 = vsel %vm3773_vm15, %v2757_v0, %v1359_v11  ;;  %2352 = vmatpush.bf16.msra.mxu0 %v3075_v32  ;;  %v701_v11 = vshll.u32 %v569_v10, 16  ;;  %v700_v0 = vrot.slane %v698_v24, 7  ;;  %v1380_v32 = vrot.slane %v3718_v56, 5  ;;  %v3065_v56 = vld [vmem:[%s4231_s3 + $0x1c0] sm:$0xff] }
  0x76   : > { %v1409_v5 = vunpack.c.l.b16 %v1360_v6  ;;  %2055 = vmatpush.bf16.msra.mxu2 %v3058_v16  ;;  %v2759_v6 = vrot.slane %v3498_v21, 9 }
  0x77   : > { %2212 = vmatpush.bf16.msra.mxu3 %v3066_v8  ;;  %v705_v59 = vrot.slane %v700_v0, 4  ;;  %v1382_v3 = vrot.slane %v1380_v32, 4  ;;  %v1381_v10 = vsel %vm3773_vm15, %v2760_v55, %v1380_v32  ;;  %v3989_v8 = vld [vmem:[#allocation2 + $0x54] sm:$0xff] }
  0x78   : > { %v1374_v47 = vsel %vm3773_vm15, %v2759_v6, %v1373_v39  ;;  %1920 = vmatpush.bf16.msra.mxu1 %v3050_v52  ;;  %v1415_v48 = vunpack.c.l.b16 %v1381_v10  ;;  %v3073_v6 = vld [vmem:[%s4231_s3 + $0x200] sm:$0xff] }
  0x79   : > { %1494 = vmatmul.bf16.gmra.mxu2 %v3820_v41  ;;  %v1413_v14 = vunpack.c.l.b16 %v1374_v47  ;;  %2353 = vmatpush.bf16.msra.mxu0 %v3074_v19  ;;  %v1384_v16 = vsel %vm3773_vm15, %v1382_v3, %v1383_v7 }
  0x7a   : > { %v784_v37 = vld [vmem:[#allocation2 + $0x68] sm:$0x1]  ;;  %2056 = vmatpush.bf16.msra.mxu2 %v3057_v62  ;;  %v1416_v31 = vunpack.c.l.b16 %v1384_v16 }
  0x7b   : > { %v785_v30 = vsel %vm3306_vm2, %v705_v59, %v784_v37  ;;  %2213 = vmatpush.bf16.msra.mxu3 %v3065_v56 }
  0x7c   : > { %786 = vst [vmem:[#allocation2 + $0x68] sm:$0x1] %v785_v30  ;;  %1921 = vmatpush.bf16.msra.mxu1 %v3049_v46 }
  0x7d   : > { %2354 = vmatpush.bf16.msra.mxu0 %v3073_v6 }
  0x80   : > { %1781 = vmatmul.bf16.vlgmr.msrb.gmra.mxu0 %v1061_v35  ;;  %v1362_v35 = vrot.slane %v3487_v12, 5 }
  0x82   : > { %v1363_v34 = vsel %vm3773_vm15, %v1361_v27, %v1362_v35  ;;  %v695_v27 = vor.u32 %v693_v58, %v692_v28  ;;  %v696_v35 = vrot.slane %v692_v28, 4  ;;  %v4006_v58 = vpack.c.b16 %v1416_v31, %v1415_v48 }
  0x83   : > { %v1410_v43 = vunpack.c.l.b16 %v1363_v34  ;;  %v1375_v34 = vrot.slane %v1373_v39, 4  ;;  %v4018_v59 = vld [vmem:[#allocation2 + $0x68] sm:$0x1] }
  0x84   : > { %1629 = vmatmul.bf16.gmra.mxu3 %v3836_v61 }
  0x85   : > { %1287 = vmatmul.bf16.gmra.mxu1 %v3836_v61  ;;  %v3900_v12 = vpack.c.b16 %v1410_v43, %v1409_v5  ;;  %v703_v5 = vor.u32 %v701_v11, %v700_v0  ;;  %v780_v43 = vld [vmem:[#allocation2 + $0x60] sm:$0xf]  ;;  %v1377_v21 = vsel %vm3773_vm15, %v1375_v34, %v1376_v25 }
  0x86   : > { %v781_v63 = vsel %vm3368_vm7, %v695_v27, %v780_v43  ;;  %v1414_v50 = vunpack.c.l.b16 %v1377_v21 }
  0x87   : > { %v704_v38 = vsel %vm3378_vm8, %v696_v35, %v703_v5  ;;  %782 = vst [vmem:[#allocation2 + $0x60] sm:$0xf] %v781_v63 }
  0x88   : > { %783 = vst [vmem:[#allocation2 + $0x64] sm:$0xf] %v704_v38  ;;  %v3968_v49 = vpack.c.b16 %v1414_v50, %v1413_v14  ;;  %v1701_v14 = vshll.u32 %v4018_v59, 16 }
  0x89   : > { %1499 = vmatmul.bf16.gmra.mxu2 %v3851_v60 }
  0x8a   : > { %v1703_v62 = vrot.slane %v1701_v14, 5 }
  0x8e   : > { %v3998_v24 = vld [vmem:[#allocation2 + $0x60] sm:$0xf] }
  0x8f   : > { %v4000_v53 = vld [vmem:[#allocation2 + $0x64] sm:$0xf]  ;;  %v1682_v11 = vshrl.u32 %v3998_v24, 16  ;;  %v1685_v0 = vshll.u32 %v3998_v24, 16 }
  0x90   : > { %1786 = vmatmul.bf16.gmra.mxu0 %v3540_v13  ;;  %v1691_v27 = vshll.u32 %v4000_v53, 16  ;;  %v1695_v35 = vshrl.u32 %v4000_v53, 16  ;;  %v4026_v50 = vld [vmem:[#allocation2 + $0x60] sm:$0xff] }
  0x91   : > { %v1684_v25 = vrot.slane %v1682_v11, 4  ;;  %v1687_v5 = vrot.slane %v1685_v0, 5 }
  0x92   : > { %v1693_v43 = vrot.slane %v1691_v27, 5  ;;  %v1697_v38 = vrot.slane %v1695_v35, 4 }
  0x93   : > { %v1688_v37 = vor.u32 %v1687_v5, %v1684_v25 }
  0x94   : > { %1634 = vmatmul.bf16.gmra.mxu3 %v3865_v20  ;;  %v1698_v30 = vor.u32 %v1697_v38, %v1693_v43 }
  0x95   : > { %1292 = vmatmul.bf16.gmra.mxu1 %v3865_v20  ;;  %v1689_v52 = vrot.slane %v1688_v37, 4 }
  0x96   : > { %v1699_v19 = vrot.slane %v1698_v30, 4 }
  0x97   : > { %v1694_v10 = vsel %vm3493_vm12, %v1689_v52, %v1693_v43 }
  0x98   : > { %v1704_v16 = vsel %vm3493_vm12, %v1699_v19, %v1703_v62  ;;  %v1721_v48 = vunpack.c.l.b16 %v1694_v10 }
  0x99   : > { %1504 = vmatmul.bf16.gmra.mxu2 %v3861_v18  ;;  %v1722_v31 = vunpack.c.l.b16 %v1704_v16 }
  0x9b   : > { %v4039_v27 = vpack.c.b16 %v1722_v31, %v1721_v48 }
  0xa0   : > { %1791 = vmatmul.bf16.gmra.mxu0 %v3714_v51 }
  0xa4   : > { %1639 = vmatmul.bf16.gmra.mxu3 %v3890_v36 }
  0xa5   : > { %1297 = vmatmul.bf16.gmra.mxu1 %v3890_v36 }
  0xa9   : > { %1509 = vmatmul.bf16.gmra.mxu2 %v3900_v12 }
  0xb0   : > { %1796 = vmatmul.bf16.gmra.mxu0 %v3564_v33 }
  0xb2   : > { %v3949_v29 = vpop.f32.mrf.mxu1 }
  0xb4   : > { %1644 = vmatmul.bf16.gmra.mxu3 %v3917_v42 }
  0xb5   : > { %1302 = vmatmul.bf16.gmra.mxu1 %v3917_v42 }
  0xb9   : > { %1514 = vmatmul.bf16.gmra.mxu2 %v3931_v54 }
  0xba   : > { %v3976_v44 = vpop.f32.mrf.mxu1 }
  0xbc   : > { %v3974_v1 = vpop.f32.mrf.mxu2 }
  0xc0   : > { %1801 = vmatmul.bf16.gmra.mxu0 %v3740_v26 }
  0xc1   : > { %v4002_v28 = vpop.f32.mrf.mxu3 }
  0xc4   : > { %1649 = vmatmul.bf16.gmra.mxu3 %v3958_v57  ;;  %v3994_v23 = vpop.f32.mrf.mxu2 }
  0xc5   : > { %1307 = vmatmul.bf16.gmra.mxu1 %v3958_v57 }
  0xc9   : > { %1519 = vmatmul.bf16.gmra.mxu2 %v3968_v49  ;;  %v4022_v21 = vpop.f32.mrf.mxu3 }
  0xcf   : > { %v1133_v34 = vpop.f32.mrf.mxu0 }
  0xd0   : > { %1806 = vmatmul.bf16.gmra.mxu0 %v3602_v17 }
  0xd2   : > { %v3996_v39 = vpop.f32.mrf.mxu1 }
  0xd4   : > { %1654 = vmatmul.bf16.gmra.mxu3 %v3989_v8 }
  0xd5   : > { %1312 = vmatmul.bf16.gmra.mxu1 %v3989_v8 }
  0xd7   : > { %v1135_v3 = vpop.f32.mrf.mxu0 }
  0xd9   : > { %1524 = vmatmul.bf16.gmra.mxu2 %v4006_v58 }
  0xda   : > { %v4016_v63 = vpop.f32.mrf.mxu1 }
  0xdc   : > { %v4020_v47 = vpop.f32.mrf.mxu2 }
  0xe0   : > { %1811 = vmatmul.bf16.gmra.mxu0 %v3797_v9 }
  0xe2   : > { %v1278_v32 = vpop.f32.mrf.mxu1 }
  0xe3   : > { %v1279_v55 = vadd.f32 %v1278_v32, %v1133_v34 }
  0xe4   : > { %v4028_v7 = vpop.f32.mrf.mxu2  ;;  %1659 = vmatmul.bf16.gmra.mxu3 %v4026_v50 }
  0xe5   : > { %1922 = vmatmul.bf16.vlgmr.msra.gmra.mxu1 %v3820_v41 }
  0xe7   : > { %v4036_v56 = vpop.f32.mrf.mxu3 }
  0xe9   : > { %2057 = vmatmul.bf16.vlgmr.msra.gmra.mxu2 %v3836_v61 }
  0xea   : > { %v1280_v46 = vpop.f32.mrf.mxu1 }
  0xeb   : > { %v1281_v11 = vadd.f32 %v1280_v46, %v1135_v3 }
  0xec   : > { %v1490_v0 = vpop.f32.mrf.mxu2 }
  0xed   : > { %v1530_v35 = vadd.f32 %v1490_v0, %v1279_v55  ;;  %v1138_v6 = vpop.f32.mrf.mxu0 }
  0xef   : > { %v4041_v41 = vpop.f32.mrf.mxu3 }
  0xf0   : > { %1816 = vmatmul.bf16.gmra.mxu0 %v4039_v27 }
  0xf2   : > { %v1283_v34 = vpop.f32.mrf.mxu1 }
  0xf3   : > { %v1284_v25 = vadd.f32 %v1283_v34, %v1138_v6 }
  0xf4   : > { %v1492_v5 = vpop.f32.mrf.mxu2  ;;  %2214 = vmatmul.bf16.vlgmr.msra.gmra.mxu3 %v3540_v13 }
  0xf5   : > { %v1531_v43 = vadd.f32 %v1492_v5, %v1281_v11  ;;  %1927 = vmatmul.bf16.gmra.mxu1 %v3851_v60  ;;  %v1140_v61 = vpop.f32.mrf.mxu0 }
  0xf7   : > { %v1625_v38 = vpop.f32.mrf.mxu3 }
  0xf8   : > { %v1665_v37 = vadd.f32 %v1625_v38, %v1530_v35 }
  0xf9   : > { %2062 = vmatmul.bf16.gmra.mxu2 %v3865_v20 }
  0xfa   : > { %v1285_v30 = vpop.f32.mrf.mxu1 }
  0xfb   : > { %v1286_v14 = vadd.f32 %v1285_v30, %v1140_v61 }
  0xfc   : > { %v1495_v52 = vpop.f32.mrf.mxu2 }
  0xfd   : > { %v1532_v19 = vadd.f32 %v1495_v52, %v1284_v25  ;;  %v1782_v62 = vpop.f32.mrf.mxu0 }
  0xfe   : > { %v4047_v32 = vadd.f32 %v1782_v62, %v1665_v37 }
  0xff   : > { %v1627_v55 = vpop.f32.mrf.mxu3 }
 0x100   : > { %2355 = vmatmul.bf16.vlgmr.msra.gmra.mxu0 %v3851_v60  ;;  %v1666_v3 = vadd.f32 %v1627_v55, %v1531_v43 }
 0x102   : > { %v1288_v13 = vpop.f32.mrf.mxu1 }
 0x103   : > { %v1289_v0 = vadd.f32 %v1288_v13, %v3949_v29 }
 0x104   : > { %v1497_v10 = vpop.f32.mrf.mxu2  ;;  %2219 = vmatmul.bf16.gmra.mxu3 %v3714_v51 }
 0x105   : > { %v1533_v16 = vadd.f32 %v1497_v10, %v1286_v14  ;;  %1932 = vmatmul.bf16.gmra.mxu1 %v3861_v18  ;;  %v1784_v20 = vpop.f32.mrf.mxu0 }
 0x106   : > { %v4052_v48 = vadd.f32 %v1784_v20, %v1666_v3 }
 0x107   : > { %v1630_v31 = vpop.f32.mrf.mxu3 }
 0x108   : > { %v1667_v46 = vadd.f32 %v1630_v31, %v1532_v19 }
 0x109   : > { %2067 = vmatmul.bf16.gmra.mxu2 %v3890_v36 }
 0x10a   : > { %v1290_v11 = vpop.f32.mrf.mxu1 }
 0x10b   : > { %v1291_v60 = vadd.f32 %v1290_v11, %v3976_v44  ;;  %v424_v11 = vld [vmem:[#allocation2 + $0x6c] sm:$0x1] }
 0x10c   : > { %v1500_v35 = vpop.f32.mrf.mxu2 }
 0x10d   : > { %v1534_v6 = vadd.f32 %v1500_v35, %v1289_v0  ;;  %v1787_v34 = vpop.f32.mrf.mxu0  ;;  %v463_v0 = vld [vmem:[%s377_s15] sm:$0xff] }
 0x10e   : > { %v4057_v51 = vadd.f32 %v1787_v34, %v1667_v46  ;;  %v465_v34 = vpack.c.bf16 %v463_v0, %v463_v0 }
 0x10f   : > { %v1632_v25 = vpop.f32.mrf.mxu3 }
 0x110   : > { %2360 = vmatmul.bf16.gmra.mxu0 %v3861_v18  ;;  %v1668_v5 = vadd.f32 %v1632_v25, %v1533_v16 }
 0x112   : > { %v1293_v43 = vpop.f32.mrf.mxu1 }
 0x113   : > { %v1294_v61 = vadd.f32 %v1293_v43, %v3996_v39 }
 0x114   : > { %v1502_v38 = vpop.f32.mrf.mxu2  ;;  %2224 = vmatmul.bf16.gmra.mxu3 %v3564_v33 }
 0x115   : > { %v1535_v36 = vadd.f32 %v1502_v38, %v1291_v60  ;;  %1937 = vmatmul.bf16.gmra.mxu1 %v3900_v12  ;;  %v1789_v29 = vpop.f32.mrf.mxu0  ;;  %v464_v60 = vld [vmem:[%s377_s15 + $0x8] sm:$0xff] }
 0x116   : > { %v4068_v44 = vadd.f32 %v1789_v29, %v1668_v5  ;;  %v466_v25 = vpack.c.bf16 %v464_v60, %v464_v60 }
 0x117   : > { %v1635_v18 = vpop.f32.mrf.mxu3 }
 0x118   : > { %v1669_v39 = vadd.f32 %v1635_v18, %v1534_v6  ;;  %v425_v6 = vsel %vm3306_vm2, 0, %v424_v11  ;;  %v456_v18 = vld [vmem:[#allocation2 + $0x74] sm:$0x1] }
 0x119   : > { %2072 = vmatmul.bf16.gmra.mxu2 %v3917_v42  ;;  %426 = vst [vmem:[#allocation2 + $0x6c] sm:$0x1] %v425_v6 }
 0x11a   : > { %v1295_v37 = vpop.f32.mrf.mxu1 }
 0x11b   : > { %v1296_v30 = vadd.f32 %v1295_v37, %v4016_v63  ;;  %v457_v37 = vsel %vm3312_vm4, 0, %v456_v18 }
 0x11c   : > { %v1505_v14 = vpop.f32.mrf.mxu2  ;;  %458 = vst [vmem:[#allocation2 + $0x74] sm:$0x1] %v457_v37 }
 0x11d   : > { %v1536_v33 = vadd.f32 %v1505_v14, %v1294_v61  ;;  %v1792_v52 = vpop.f32.mrf.mxu0 }
 0x11e   : > { %v4076_v19 = vadd.f32 %v1792_v52, %v1669_v39 }
 0x11f   : > { %v1637_v62 = vpop.f32.mrf.mxu3 }
 0x120   : > { %2365 = vmatmul.bf16.gmra.mxu0 %v3900_v12  ;;  %v1670_v55 = vadd.f32 %v1637_v62, %v1535_v36 }
 0x122   : > { %v1298_v3 = vpop.f32.mrf.mxu1 }
 0x123   : > { %v535_v11 = vld [vmem:[#allocation2 + $0x74] sm:$0x1] }
 0x124   : > { %v1507_v13 = vpop.f32.mrf.mxu2  ;;  %2229 = vmatmul.bf16.gmra.mxu3 %v3740_v26  ;;  %v1299_v26 = vadd.f32 %v1298_v3, %v3974_v1 }
 0x125   : > { %v1537_v42 = vadd.f32 %v1507_v13, %v1296_v30  ;;  %1942 = vmatmul.bf16.gmra.mxu1 %v3931_v54  ;;  %v1794_v63 = vpop.f32.mrf.mxu0 }
 0x126   : > { %v4083_v10 = vadd.f32 %v1794_v63, %v1670_v55 }
 0x127   : > { %v1640_v16 = vpop.f32.mrf.mxu3 }
 0x128   : > { %v1671_v20 = vadd.f32 %v1640_v16, %v1536_v33  ;;  %v531_v16 = vld [vmem:[#allocation2 + $0x6c] sm:$0xf] }
 0x129   : > { %2077 = vmatmul.bf16.gmra.mxu2 %v3958_v57  ;;  %v475_v57 = vstv %s474_s6 }
 0x12a   : > { %v1300_v12 = vpop.f32.mrf.mxu1  ;;  %vm476_vm0 = vcmp.eq.s32.totalorder %v475_v57, 1 }
 0x12b   : > { %v477_v61 = vsel %vm476_vm0, %v465_v34, 0  ;;  %v478_v38 = vsel %vm476_vm0, %v466_v25, 0  ;;  %v1301_v30 = vadd.f32 %v1300_v12, %v3994_v23 }
 0x12c   : > { %v1510_v31 = vpop.f32.mrf.mxu2  ;;  %v511_v36 = vshrl.u32 %v477_v61, 16  ;;  %v519_v29 = vshrl.u32 %v478_v38, 16  ;;  %v514_v33 = vshll.u32 %v477_v61, 16  ;;  %v522_v55 = vshll.u32 %v478_v38, 16 }
 0x12d   : > { %v1538_v46 = vadd.f32 %v1510_v31, %v1299_v26  ;;  %v1797_v35 = vpop.f32.mrf.mxu0 }
 0x12e   : > { %v4092_v5 = vadd.f32 %v1797_v35, %v1671_v20  ;;  %v513_v14 = vrot.slane %v511_v36, 7  ;;  %v521_v52 = vrot.slane %v519_v29, 7  ;;  %v2861_v36 = vrot.slane %v3998_v24, 9 }
 0x12f   : > { %v1642_v43 = vpop.f32.mrf.mxu3 }
 0x130   : > { %2370 = vmatmul.bf16.gmra.mxu0 %v3931_v54  ;;  %v1672_v1 = vadd.f32 %v1642_v43, %v1537_v42  ;;  %v516_v54 = vor.u32 %v514_v33, %v513_v14  ;;  %v517_v13 = vrot.slane %v513_v14, 4  ;;  %v524_v63 = vor.u32 %v522_v55, %v521_v52 }
 0x131   : > { %v1841_v43 = vrot.slane %v4000_v53, 5 }
 0x132   : > { %v1303_v39 = vpop.f32.mrf.mxu1  ;;  %v532_v4 = vsel %vm3368_vm7, %v516_v54, %v531_v16  ;;  %v525_v12 = vsel %vm3378_vm8, %v517_v13, %v524_v63 }
 0x133   : > { %533 = vst [vmem:[#allocation2 + $0x6c] sm:$0xf] %v532_v4  ;;  %v1304_v0 = vadd.f32 %v1303_v39, %v4020_v47  ;;  %v1843_v29 = vrot.slane %v1841_v43, 4  ;;  %v1842_v24 = vsel %vm3773_vm15, %v2861_v36, %v1841_v43 }
 0x134   : > { %v1512_v62 = vpop.f32.mrf.mxu2  ;;  %2234 = vmatmul.bf16.gmra.mxu3 %v3602_v17  ;;  %v526_v17 = vrot.slane %v521_v52, 4  ;;  %534 = vst [vmem:[#allocation2 + $0x70] sm:$0xf] %v525_v12  ;;  %v1862_v13 = vunpack.c.l.b16 %v1842_v24 }
 0x135   : > { %v1539_v3 = vadd.f32 %v1512_v62, %v1301_v30  ;;  %1947 = vmatmul.bf16.gmra.mxu1 %v3968_v49  ;;  %v1799_v42 = vpop.f32.mrf.mxu0 }
 0x136   : > { %v4102_v23 = vadd.f32 %v1799_v42, %v1672_v1  ;;  %v536_v40 = vsel %vm3306_vm2, %v526_v17, %v535_v11 }
 0x137   : > { %v1645_v20 = vpop.f32.mrf.mxu3  ;;  %537 = vst [vmem:[#allocation2 + $0x74] sm:$0x1] %v536_v40 }
 0x138   : > { %v1673_v26 = vadd.f32 %v1645_v20, %v1538_v46 }
 0x139   : > { %2082 = vmatmul.bf16.gmra.mxu2 %v3989_v8 }
 0x13a   : > { %v1305_v31 = vpop.f32.mrf.mxu1  ;;  %v4117_v61 = vld [vmem:[#allocation2 + $0x6c] sm:$0xf] }
 0x13b   : > { %v1306_v25 = vadd.f32 %v1305_v31, %v4028_v7  ;;  %v4119_v38 = vld [vmem:[#allocation2 + $0x70] sm:$0xf]  ;;  %v1844_v7 = vrot.slane %v4018_v59, 5  ;;  %v2115_v53 = vshrl.u32 %v4117_v61, 16  ;;  %v2118_v39 = vshll.u32 %v4117_v61, 16 }
 0x13c   : > { %v1515_v60 = vpop.f32.mrf.mxu2  ;;  %v2124_v37 = vshll.u32 %v4119_v38, 16  ;;  %v2128_v30 = vshrl.u32 %v4119_v38, 16 }
 0x13d   : > { %v1540_v35 = vadd.f32 %v1515_v60, %v1304_v0  ;;  %v1802_v6 = vpop.f32.mrf.mxu0  ;;  %v1845_v59 = vsel %vm3773_vm15, %v1843_v29, %v1844_v7  ;;  %v2117_v62 = vrot.slane %v2115_v53, 4  ;;  %v2120_v55 = vrot.slane %v2118_v39, 5  ;;  %v3008_v60 = vld [vmem:[#allocation2 + $0x6c] sm:$0xff] }
 0x13e   : > { %v4110_v34 = vadd.f32 %v1802_v6, %v1673_v26  ;;  %v2130_v54 = vrot.slane %v2128_v30, 4  ;;  %v1863_v42 = vunpack.c.l.b16 %v1845_v59  ;;  %v816_v63 = vld [vmem:[#allocation2 + $0x74] sm:$0x1]  ;;  %v2274_v7 = vrot.slane %v4119_v38, 5 }
 0x13f   : > { %v1647_v45 = vpop.f32.mrf.mxu3  ;;  %v2121_v12 = vor.u32 %v2120_v55, %v2117_v62  ;;  %v2134_v17 = vshll.u32 %v816_v63, 16  ;;  %v2277_v30 = vrot.slane %v816_v63, 5 }
 0x140   : > { %2375 = vmatmul.bf16.gmra.mxu0 %v3968_v49  ;;  %v1674_v46 = vadd.f32 %v1647_v45, %v1539_v3  ;;  %v2126_v3 = vrot.slane %v2124_v37, 5  ;;  %v1864_v31 = vpack.c.b16 %v1863_v42, %v1862_v13  ;;  %v2962_v37 = vrot.slane %v4117_v61, 9 }
 0x141   : > { %v2122_v6 = vrot.slane %v2121_v12, 4  ;;  %v2276_v15 = vrot.slane %v2274_v7, 4 }
 0x142   : > { %v1308_v8 = vpop.f32.mrf.mxu1  ;;  %v2131_v26 = vor.u32 %v2130_v54, %v2126_v3  ;;  %v2275_v38 = vsel %vm3773_vm15, %v2962_v37, %v2274_v7 }
 0x143   : > { %v1309_v14 = vadd.f32 %v1308_v8, %v4002_v28  ;;  %v2295_v61 = vunpack.c.l.b16 %v2275_v38 }
 0x144   : > { %v1517_v57 = vpop.f32.mrf.mxu2  ;;  %2239 = vmatmul.bf16.gmra.mxu3 %v3797_v9  ;;  %v2132_v45 = vrot.slane %v2131_v26, 4 }
 0x145   : > { %v1541_v2 = vadd.f32 %v1517_v57, %v1306_v25  ;;  %1952 = vmatmul.bf16.gmra.mxu1 %v4006_v58  ;;  %v1804_v47 = vpop.f32.mrf.mxu0  ;;  %v2127_v57 = vsel %vm3493_vm12, %v2122_v6, %v2126_v3 }
 0x146   : > { %v4121_v1 = vadd.f32 %v1804_v47, %v1674_v46  ;;  %v2136_v46 = vrot.slane %v2134_v17, 5  ;;  %v2154_v47 = vunpack.c.l.b16 %v2127_v57  ;;  %v4167_v57 = vld [vmem:[%s4232_s4] ss:$0 sm:$0xff] }
 0x147   : > { %v1650_v49 = vpop.f32.mrf.mxu3 }
 0x148   : > { %v1675_v18 = vadd.f32 %v1650_v49, %v1540_v35 }
 0x149   : > { %2087 = vmatmul.bf16.gmra.mxu2 %v4026_v50 }
 0x14a   : > { %v1310_v9 = vpop.f32.mrf.mxu1 }
 0x14b   : > { %v1311_v11 = vadd.f32 %v1310_v9, %v4022_v21  ;;  %v2137_v21 = vsel %vm3493_vm12, %v2132_v45, %v2136_v46 }
 0x14c   : > { %v1520_v33 = vpop.f32.mrf.mxu2  ;;  %v2155_v49 = vunpack.c.l.b16 %v2137_v21 }
 0x14d   : > { %v1542_v52 = vadd.f32 %v1520_v33, %v1309_v14  ;;  %v1807_v50 = vpop.f32.mrf.mxu0 }
 0x14e   : > { %v4135_v16 = vadd.f32 %v1807_v50, %v1675_v18  ;;  %v2156_v39 = vpack.c.b16 %v2155_v49, %v2154_v47 }
 0x14f   : > { %v1652_v4 = vpop.f32.mrf.mxu3 }
 0x150   : > { %2380 = vmatmul.bf16.gmra.mxu0 %v4006_v58  ;;  %v1676_v28 = vadd.f32 %v1652_v4, %v1541_v2 }
 0x152   : > { %v1313_v20 = vpop.f32.mrf.mxu1 }
 0x154   : > { %v1522_v0 = vpop.f32.mrf.mxu2  ;;  %2244 = vmatmul.bf16.gmra.mxu3 %v4039_v27  ;;  %v1314_v27 = vadd.f32 %v1313_v20, %v4036_v56 }
 0x155   : > { %v1543_v40 = vadd.f32 %v1522_v0, %v1311_v11  ;;  %1957 = vmatmul.bf16.gmra.mxu1 %v1864_v31  ;;  %v1809_v35 = vpop.f32.mrf.mxu0 }
 0x156   : > { %v4140_v8 = vadd.f32 %v1809_v35, %v1676_v28 }
 0x157   : > { %v1655_v58 = vpop.f32.mrf.mxu3 }
 0x158   : > { %v1677_v25 = vadd.f32 %v1655_v58, %v1542_v52  ;;  %v2278_v52 = vsel %vm3773_vm15, %v2276_v15, %v2277_v30 }
 0x159   : > { %2092 = vmatmul.bf16.gmra.mxu2 %v3008_v60  ;;  %v2296_v3 = vunpack.c.l.b16 %v2278_v52 }
 0x15a   : > { %v1315_v43 = vpop.f32.mrf.mxu1 }
 0x15b   : > { %v1316_v56 = vadd.f32 %v1315_v43, %v4041_v41  ;;  %v2297_v42 = vpack.c.b16 %v2296_v3, %v2295_v61 }
 0x15c   : > { %v1525_v2 = vpop.f32.mrf.mxu2 }
 0x15d   : > { %v1544_v36 = vadd.f32 %v1525_v2, %v1314_v27  ;;  %v1812_v29 = vpop.f32.mrf.mxu0 }
 0x15e   : > { %v4148_v18 = vadd.f32 %v1812_v29, %v1677_v25 }
 0x15f   : > { %v1657_v9 = vpop.f32.mrf.mxu3 }
 0x160   : > { %2385 = vmatmul.bf16.gmra.mxu0 %v1864_v31  ;;  %v1678_v53 = vadd.f32 %v1657_v9, %v1543_v40 }
 0x162   : > { %v1923_v14 = vpop.f32.mrf.mxu1 }
 0x163   : > { %v1963_v31 = vadd.f32 %v1923_v14, %v4047_v32 }
 0x164   : > { %v1527_v33 = vpop.f32.mrf.mxu2  ;;  %2249 = vmatmul.bf16.gmra.mxu3 %v2156_v39 }
 0x165   : > { %v1545_v24 = vadd.f32 %v1527_v33, %v1316_v56  ;;  %v1814_v59 = vpop.f32.mrf.mxu0 }
 0x166   : > { %v4156_v50 = vadd.f32 %v1814_v59, %v1678_v53 }
 0x167   : > { %v1660_v62 = vpop.f32.mrf.mxu3 }
 0x168   : > { %v1679_v55 = vadd.f32 %v1660_v62, %v1544_v36 }
 0x16a   : > { %v1925_v54 = vpop.f32.mrf.mxu1 }
 0x16b   : > { %v1964_v60 = vadd.f32 %v1925_v54, %v4052_v48 }
 0x16c   : > { %v2058_v13 = vpop.f32.mrf.mxu2 }
 0x16d   : > { %v1817_v41 = vpop.f32.mrf.mxu0  ;;  %v2098_v0 = vadd.f32 %v2058_v13, %v1963_v31 }
 0x16e   : > { %v4158_v63 = vadd.f32 %v1817_v41, %v1679_v55 }
 0x16f   : > { %v1662_v4 = vpop.f32.mrf.mxu3 }
 0x170   : > { %2390 = vmatmul.bf16.gmra.mxu0 %v2297_v42  ;;  %v1680_v28 = vadd.f32 %v1662_v4, %v1545_v24 }
 0x172   : > { %v1928_v20 = vpop.f32.mrf.mxu1 }
 0x173   : > { %v1965_v49 = vadd.f32 %v1928_v20, %v4057_v51 }
 0x174   : > { %v2060_v12 = vpop.f32.mrf.mxu2 }
 0x175   : > { %v1819_v26 = vpop.f32.mrf.mxu0  ;;  %v2099_v45 = vadd.f32 %v2060_v12, %v1964_v60 }
 0x176   : > { %v4160_v22 = vadd.f32 %v1819_v26, %v1680_v28 }
 0x177   : > { %v2215_v17 = vpop.f32.mrf.mxu3 }
 0x178   : > { %v2255_v6 = vadd.f32 %v2215_v17, %v2098_v0 }
 0x17a   : > { %v1930_v11 = vpop.f32.mrf.mxu1 }
 0x17b   : > { %v1966_v37 = vadd.f32 %v1930_v11, %v4068_v44 }
 0x17c   : > { %v2063_v40 = vpop.f32.mrf.mxu2 }
 0x17d   : > { %v2356_v35 = vpop.f32.mrf.mxu0  ;;  %v2100_v9 = vadd.f32 %v2063_v40, %v1965_v49 }
 0x17e   : > { %v2396_v25 = vadd.f32 %v2356_v35, %v2255_v6 }
 0x17f   : > { %v2217_v46 = vpop.f32.mrf.mxu3 }
 0x180   : > { %v2256_v21 = vadd.f32 %v2217_v46, %v2099_v45  ;;  %v2416_v27 = vadd.f32 %v4167_v57, %v2396_v25 }
 0x182   : > { %v1933_v58 = vpop.f32.mrf.mxu1  ;;  %v2432_v29 = vmax.f32 %v2416_v27, 0.0 }
 0x183   : > { %v1967_v3 = vadd.f32 %v1933_v58, %v4076_v19 }
 0x184   : > { %v2065_v43 = vpop.f32.mrf.mxu2 }
 0x185   : > { %v2358_v32 = vpop.f32.mrf.mxu0  ;;  %v2101_v14 = vadd.f32 %v2065_v43, %v1966_v37 }
 0x186   : > { %v2397_v2 = vadd.f32 %v2358_v32, %v2256_v21 }
 0x187   : > { %v2220_v47 = vpop.f32.mrf.mxu3 }
 0x188   : > { %v2417_v48 = vadd.f32 %v4167_v57, %v2397_v2  ;;  %v2257_v30 = vadd.f32 %v2220_v47, %v2100_v9 }
 0x18a   : > { %v1935_v36 = vpop.f32.mrf.mxu1  ;;  %v2433_v7 = vmax.f32 %v2417_v48, 0.0 }
 0x18b   : > { %v1968_v28 = vadd.f32 %v1935_v36, %v4083_v10 }
 0x18c   : > { %v2068_v53 = vpop.f32.mrf.mxu2  ;;  %v3084_v39 = vpack.c.bf16 %v2433_v7, %v2432_v29 }
 0x18d   : > { %v2361_v15 = vpop.f32.mrf.mxu0  ;;  %v2102_v42 = vadd.f32 %v2068_v53, %v1967_v3 }
 0x18e   : > { %3085 = vst [vmem:[%s4176_s28] sm:$0xff] %v3084_v39   ;;  %v2398_v33 = vadd.f32 %v2361_v15, %v2257_v30 }
 0x18f   : > { %v2222_v56 = vpop.f32.mrf.mxu3 }
 0x190   : > { %v2258_v24 = vadd.f32 %v2222_v56, %v2101_v14  ;;  %v2418_v52 = vadd.f32 %v4167_v57, %v2398_v33 }
 0x192   : > { %v1938_v51 = vpop.f32.mrf.mxu1  ;;  %v2434_v54 = vmax.f32 %v2418_v52, 0.0 }
 0x193   : > { %v1969_v46 = vadd.f32 %v1938_v51, %v4092_v5 }
 0x194   : > { %v2070_v59 = vpop.f32.mrf.mxu2 }
 0x195   : > { %v2363_v38 = vpop.f32.mrf.mxu0  ;;  %v2103_v26 = vadd.f32 %v2070_v59, %v1968_v28 }
 0x196   : > { %v2399_v62 = vadd.f32 %v2363_v38, %v2258_v24 }
 0x197   : > { %v2225_v55 = vpop.f32.mrf.mxu3 }
 0x198   : > { %v2419_v61 = vadd.f32 %v4167_v57, %v2399_v62  ;;  %v2259_v12 = vadd.f32 %v2225_v55, %v2102_v42 }
 0x19a   : > { %v1940_v44 = vpop.f32.mrf.mxu1  ;;  %v2435_v13 = vmax.f32 %v2419_v61, 0.0 }
 0x19b   : > { %v1970_v32 = vadd.f32 %v1940_v44, %v4102_v23 }
 0x19c   : > { %v2073_v41 = vpop.f32.mrf.mxu2  ;;  %v3089_v4 = vpack.c.bf16 %v2435_v13, %v2434_v54 }
 0x19d   : > { %v2366_v20 = vpop.f32.mrf.mxu0  ;;  %v2104_v25 = vadd.f32 %v2073_v41, %v1969_v46 }
 0x19e   : > { %3121 = vst [vmem:[%s4176_s28 + $0x8] sm:$0xff] %v3089_v4   ;;  %v2400_v31 = vadd.f32 %v2366_v20, %v2259_v12 }
 0x19f   : > { %v2227_v17 = vpop.f32.mrf.mxu3 }
 0x1a0   : > { %v2260_v11 = vadd.f32 %v2227_v17, %v2103_v26  ;;  %v2420_v19 = vadd.f32 %v4167_v57, %v2400_v31 }
 0x1a2   : > { %v1943_v40 = vpop.f32.mrf.mxu1  ;;  %v2436_v10 = vmax.f32 %v2420_v19, 0.0 }
 0x1a3   : > { %v1971_v23 = vadd.f32 %v1943_v40, %v4110_v34 }
 0x1a4   : > { %v2075_v0 = vpop.f32.mrf.mxu2 }
 0x1a5   : > { %v2368_v60 = vpop.f32.mrf.mxu0  ;;  %v2105_v48 = vadd.f32 %v2075_v0, %v1970_v32 }
 0x1a6   : > { %v2401_v35 = vadd.f32 %v2368_v60, %v2260_v11 }
 0x1a7   : > { %v2230_v6 = vpop.f32.mrf.mxu3 }
 0x1a8   : > { %v2421_v45 = vadd.f32 %v4167_v57, %v2401_v35  ;;  %v2261_v47 = vadd.f32 %v2230_v6, %v2104_v25 }
 0x1aa   : > { %v2437_v58 = vmax.f32 %v2421_v45, 0.0  ;;  %v1945_v2 = vpop.f32.mrf.mxu1 }
 0x1ab   : > { %v1972_v24 = vadd.f32 %v1945_v2, %v4121_v1 }
 0x1ac   : > { %v2078_v21 = vpop.f32.mrf.mxu2  ;;  %v3094_v43 = vpack.c.bf16 %v2437_v58, %v2436_v10 }
 0x1ad   : > { %v2371_v27 = vpop.f32.mrf.mxu0  ;;  %v2106_v56 = vadd.f32 %v2078_v21, %v1971_v23 }
 0x1ae   : > { %3122 = vst [vmem:[%s4176_s28 + $0x10] sm:$0xff] %v3094_v43   ;;  %v2402_v36 = vadd.f32 %v2371_v27, %v2261_v47 }
 0x1af   : > { %v2232_v49 = vpop.f32.mrf.mxu3 }
 0x1b0   : > { %v2262_v29 = vadd.f32 %v2232_v49, %v2105_v48  ;;  %v2422_v5 = vadd.f32 %v4167_v57, %v2402_v36 }
 0x1b2   : > { %v1948_v37 = vpop.f32.mrf.mxu1  ;;  %v2438_v30 = vmax.f32 %v2422_v5, 0.0 }
 0x1b3   : > { %v1973_v4 = vadd.f32 %v1948_v37, %v4135_v16 }
 0x1b4   : > { %v2080_v7 = vpop.f32.mrf.mxu2 }
 0x1b5   : > { %v2373_v9 = vpop.f32.mrf.mxu0  ;;  %v2107_v52 = vadd.f32 %v2080_v7, %v1972_v24 }
 0x1b6   : > { %v2403_v53 = vadd.f32 %v2373_v9, %v2262_v29 }
 0x1b7   : > { %v2235_v39 = vpop.f32.mrf.mxu3 }
 0x1b8   : > { %v2423_v15 = vadd.f32 %v4167_v57, %v2403_v53  ;;  %v2263_v38 = vadd.f32 %v2235_v39, %v2106_v56 }
 0x1ba   : > { %v2439_v14 = vmax.f32 %v2423_v15, 0.0  ;;  %v1950_v55 = vpop.f32.mrf.mxu1 }
 0x1bb   : > { %v1974_v17 = vadd.f32 %v1950_v55, %v4140_v8 }
 0x1bc   : > { %v2083_v51 = vpop.f32.mrf.mxu2  ;;  %v3099_v33 = vpack.c.bf16 %v2439_v14, %v2438_v30 }
 0x1bd   : > { %v2376_v59 = vpop.f32.mrf.mxu0  ;;  %v2108_v20 = vadd.f32 %v2083_v51, %v1973_v4 }
 0x1be   : > { %3123 = vst [vmem:[%s4176_s28 + $0x18] sm:$0xff] %v3099_v33   ;;  %v2404_v61 = vadd.f32 %v2376_v59, %v2263_v38 }
 0x1bf   : > { %v2237_v62 = vpop.f32.mrf.mxu3 }
 0x1c0   : > { %v2264_v3 = vadd.f32 %v2237_v62, %v2107_v52  ;;  %v2424_v34 = vadd.f32 %v4167_v57, %v2404_v61 }
 0x1c2   : > { %v2440_v1 = vmax.f32 %v2424_v34, 0.0  ;;  %v1953_v12 = vpop.f32.mrf.mxu1 }
 0x1c3   : > { %v1975_v8 = vadd.f32 %v1953_v12, %v4148_v18 }
 0x1c4   : > { %v2085_v44 = vpop.f32.mrf.mxu2 }
 0x1c5   : > { %v2378_v54 = vpop.f32.mrf.mxu0  ;;  %v2109_v40 = vadd.f32 %v2085_v44, %v1974_v17 }
 0x1c6   : > { %v2405_v13 = vadd.f32 %v2378_v54, %v2264_v3 }
 0x1c7   : > { %v2240_v42 = vpop.f32.mrf.mxu3 }
 0x1c8   : > { %v2425_v41 = vadd.f32 %v4167_v57, %v2405_v13  ;;  %v2265_v0 = vadd.f32 %v2240_v42, %v2108_v20 }
 0x1ca   : > { %v2441_v28 = vmax.f32 %v2425_v41, 0.0  ;;  %v1955_v45 = vpop.f32.mrf.mxu1 }
 0x1cb   : > { %v1976_v2 = vadd.f32 %v1955_v45, %v4156_v50 }
 0x1cc   : > { %v3104_v26 = vpack.c.bf16 %v2441_v28, %v2440_v1  ;;  %v2088_v11 = vpop.f32.mrf.mxu2 }
 0x1cd   : > { %v2381_v31 = vpop.f32.mrf.mxu0  ;;  %v2110_v32 = vadd.f32 %v2088_v11, %v1975_v8 }
 0x1ce   : > { %3124 = vst [vmem:[%s4176_s28 + $0x20] sm:$0xff] %v3104_v26   ;;  %v2406_v19 = vadd.f32 %v2381_v31, %v2265_v0 }
 0x1cf   : > { %v2242_v60 = vpop.f32.mrf.mxu3 }
 0x1d0   : > { %v2266_v35 = vadd.f32 %v2242_v60, %v2109_v40  ;;  %v2426_v16 = vadd.f32 %v4167_v57, %v2406_v19 }
 0x1d2   : > { %v2442_v21 = vmax.f32 %v2426_v16, 0.0  ;;  %v1958_v29 = vpop.f32.mrf.mxu1 }
 0x1d3   : > { %v1977_v23 = vadd.f32 %v1958_v29, %v4158_v63 }
 0x1d4   : > { %v2090_v58 = vpop.f32.mrf.mxu2 }
 0x1d5   : > { %v2383_v6 = vpop.f32.mrf.mxu0  ;;  %v2111_v49 = vadd.f32 %v2090_v58, %v1976_v2 }
 0x1d6   : > { %v2407_v46 = vadd.f32 %v2383_v6, %v2266_v35 }
 0x1d7   : > { %v2245_v10 = vpop.f32.mrf.mxu3 }
 0x1d8   : > { %v2427_v25 = vadd.f32 %v4167_v57, %v2407_v46  ;;  %v2267_v48 = vadd.f32 %v2245_v10, %v2110_v32 }
 0x1da   : > { %v2443_v43 = vmax.f32 %v2427_v25, 0.0  ;;  %v1960_v50 = vpop.f32.mrf.mxu1 }
 0x1db   : > { %v1978_v24 = vadd.f32 %v1960_v50, %v4160_v22 }
 0x1dc   : > { %v3109_v27 = vpack.c.bf16 %v2443_v43, %v2442_v21  ;;  %v2093_v7 = vpop.f32.mrf.mxu2 }
 0x1dd   : > { %v2386_v47 = vpop.f32.mrf.mxu0  ;;  %v2112_v56 = vadd.f32 %v2093_v7, %v1977_v23 }
 0x1de   : > { %3125 = vst [vmem:[%s4176_s28 + $0x28] sm:$0xff] %v3109_v27   ;;  %v2408_v9 = vadd.f32 %v2386_v47, %v2267_v48 }
 0x1df   : > { %v2247_v36 = vpop.f32.mrf.mxu3 }
 0x1e0   : > { %v2268_v5 = vadd.f32 %v2247_v36, %v2111_v49  ;;  %v2428_v39 = vadd.f32 %v4167_v57, %v2408_v9 }
 0x1e2   : > { %v2444_v30 = vmax.f32 %v2428_v39, 0.0 }
 0x1e4   : > { %v2095_v51 = vpop.f32.mrf.mxu2 }
 0x1e5   : > { %v2388_v53 = vpop.f32.mrf.mxu0  ;;  %v2113_v52 = vadd.f32 %v2095_v51, %v1978_v24 }
 0x1e6   : > { %v2409_v18 = vadd.f32 %v2388_v53, %v2268_v5 }
 0x1e7   : > { %v2250_v37 = vpop.f32.mrf.mxu3 }
 0x1e8   : > { %v2429_v15 = vadd.f32 %v4167_v57, %v2409_v18  ;;  %v2269_v38 = vadd.f32 %v2250_v37, %v2112_v56 }
 0x1ea   : > { %v2445_v14 = vmax.f32 %v2429_v15, 0.0 }
 0x1ec   : > { %v3114_v33 = vpack.c.bf16 %v2445_v14, %v2444_v30 }
 0x1ed   : > { %v2391_v59 = vpop.f32.mrf.mxu0 }
 0x1ee   : > { %3126 = vst [vmem:[%s4176_s28 + $0x30] sm:$0xff] %v3114_v33   ;;  %v2410_v55 = vadd.f32 %v2391_v59, %v2269_v38 }
 0x1ef   : > { %v2252_v62 = vpop.f32.mrf.mxu3 }
 0x1f0   : > { %v2270_v61 = vadd.f32 %v2252_v62, %v2113_v52  ;;  %v2430_v44 = vadd.f32 %v4167_v57, %v2410_v55 }
 0x1f2   : > { %v2446_v34 = vmax.f32 %v2430_v44, 0.0 }
 0x1f5   : > { %v2393_v3 = vpop.f32.mrf.mxu0 }
 0x1f6   : > { %v2411_v63 = vadd.f32 %v2393_v3, %v2270_v61 }
 0x1f8   : > { %v2431_v54 = vadd.f32 %v4167_v57, %v2411_v63 }
 0x1fa   : > { %v2447_v13 = vmax.f32 %v2431_v54, 0.0 }
 0x1fc   : > { %v3119_v42 = vpack.c.bf16 %v2447_v13, %v2446_v34 }
 0x1fe   : > { %3127 = vst [vmem:[%s4176_s28 + $0x38] sm:$0xff] %v3119_v42  }
 0x1ff PF: > { %s15_s22 = sadd.s32 1, %s3231_s22   ;;  %s4247_s18 = smov %s3223_s20 }
 0x200   : > { %p12_p12 = scmp.ge.s32.totalorder %s15_s22, 6   ;;  %s4248_s19 = smov %s3227_s21 }
 0x201   : > { %s4249_s20 = smov %s4252_s23  ;;  %s4250_s21 = smov %s4256_s24 }
 0x202   :  { %14 = sbr.rel (!%p12_p12) target bundleno = 3 (0x3), region = 78 }

// kernel: residual_spade_block.17
= control target key start
LH: loop header
LB: loop body
LE: loop exit
PB: predicated region body
PF: predicated region fallthrough
CT: control target
= control target key end

     0   :  { %s3164_s18 = smov 0   ;;  %s3166_s19 = smov 0   ;;  %s4063_s0 = inlined_call_operand.vmem [shape: bf16[2,16,16,128], index: 0, kind: input, shape index: {}, may-alias: {0,1,2}]   ;;  %s4064_s1 = inlined_call_operand.vmem [shape: bf16[2,16,16,128], index: 1, kind: input, shape index: {}, may-alias: {0,1,2}]   ;;  %s4065_s2 = inlined_call_operand.vmem [shape: bf16[2,16,16,128], index: 2, kind: input, shape index: {}, may-alias: {0,1,2}]   ;;  %s4066_s3 = inlined_call_operand.vmem [shape: bf16[1152,128], index: 3, kind: input, shape index: {}]   ;;  %s4067_s4 = inlined_call_operand.vmem [shape: f32[1,128], index: 4, kind: input, shape index: {}]   ;;  %s4068_s5 = inlined_call_operand.vmem [shape: f32[2,16,16,128], index: 5, kind: output, shape index: {}]  }
   0x1   :  { %s3168_s20 = smov 0   ;;  %s3170_s21 = smov 0  }
   0x2   :  { %s3172_s22 = smov 0  }
   0x3 LB: > { %s24_s23 = sadd.s32 1, %s3124_s20  ;;  %s27_s24 = sadd.s32 1, %s3128_s21  ;;  %s3132_s22 = sphi %s3172_s22, %s15_s22   ;;  %s3128_s21 = sphi %s3170_s21, %s4085_s21   ;;  %s3124_s20 = sphi %s3168_s20, %s4084_s20   ;;  %s3120_s19 = sphi %s3166_s19, %s4083_s19   ;;  %s3116_s18 = sphi %s3164_s18, %s4082_s18  }
   0x4   : > { %p25_p0 = scmp.ge.s32.totalorder %s24_s23, 2  ;;  %p2579_p1 = scmp.ge.s32.totalorder %s3132_s22, 1 }
   0x5   : > { %p273_p2 = scmp.lt.s32.totalorder %s3132_s22, 5 }
   0x6   : > { %s4087_s23 = smov (%p25_p0, %s24_s23), 0  ;;  %s4089_s24 = smov (!%p25_p0, %s27_s24), %s3128_s21 }
   0x7   : > { %p274_p3 = pnand %p2579_p1, %p273_p2  ;;  %p29_p4 = scmp.ge.s32.totalorder %s4089_s24, 2 }
   0x8   : > { %s3200_s27 = sshll.u32 (!%p274_p3), %s3116_s18, 3  ;;  %p338_p5 = scmp.lt.s32.totalorder (!%p274_p3), %s3120_s19, 1 }
   0x9   : > { %s4091_s24 = smov (%p29_p4, %s4089_s24), 0  ;;  %277 = sbr.rel (%p274_p3) target bundleno = 512 (0x200), region = 40 }
   0xa   : > { %p340_p6 = scmp.lt.s32.totalorder (!%p274_p3), %s3200_s27, 15  ;;  %s3224_s7 = sadd.s32 (!%p274_p3), 4294967295, %s3200_s27 }
   0xb   : > { %p350_p7 = scmp.gt.s32.totalorder (!%p274_p3), %s3224_s7, 0  ;;  %p2586_p8 = scmp.lt.s32.totalorder (!%p274_p3), %s3224_s7, 15 }
   0xc   : > { %p463_p9 = scmp.gt.s32.totalorder (!%p274_p3), %s3116_s18, 0  ;;  %p469_p11 = scmp.lt.s32.totalorder (!%p274_p3), %s3116_s18, 1 }
   0xe   : > { %v2972_v0 = vld [vmem:[%s4066_s3 + $0x78] sm:$0xff]  ;;  %vm394_vm0 = vcmask 1040384   ;;  %vm395_vm1 = vsmask.f32 256  ;;  %v2971_v1 = vld [vmem:[%s4066_s3 + $0x70] sm:$0xff]  ;;  %s4093_s19 = smov (!%p338_p5, %s3120_s19), 1 }
   0xf   : > { %3029 = vmatpush.bf16.msra.mxu1 %v2972_v0  ;;  %3030 = vmatpush.bf16.msra.mxu2 %v2972_v0  ;;  %vm3207_vm2 = vmand %vm394_vm0, %vm395_vm1  ;;  %vm427_vm3 = vsmask.f32 7938  ;;  %s341_s30 = scalar_select %p340_p6, %s3200_s27, 15  ;;  %v403_v3 = vld [vmem:[#allocation2 + $0x18] sm:$0x1]  ;;  %v2970_v8 = vld [vmem:[%s4066_s3 + $0x68] sm:$0xff] }
  0x10   : > { %3031 = vmatpush.bf16.msra.mxu3 %v2972_v0  ;;  %1104 = vmatpush.bf16.msra.mxu0 %v2972_v0  ;;  %vm3213_vm4 = vmand %vm394_vm0, %vm427_vm3  ;;  %v435_v5 = vld [vmem:[#allocation2 + $0x20] sm:$0x1]  ;;  %s3217_s6 = sshll.u32 %s4093_s19, 5  ;;  %v404_v6 = vsel %vm3207_vm2, 0, %v403_v3  ;;  %vm475_vm5 = vsmask.f32 4368 }
  0x11   : > { %v436_v7 = vsel %vm3213_vm4, 0, %v435_v5  ;;  %s2581_s10 = sshll.u32 %s341_s30, 1  ;;  %405 = vst [vmem:[#allocation2 + $0x18] sm:$0x1] %v404_v6  ;;  %vm497_vm6 = vcmask 1043456   ;;  %v2969_v13 = vld [vmem:[%s4066_s3 + $0x60] sm:$0xff]  ;;  %vm3263_vm8 = vmor %vm395_vm1, %vm475_vm5 }
  0x12   : > { %s3230_s11 = sadd.s32 %s3217_s6, %s2581_s10  ;;  %437 = vst [vmem:[#allocation2 + $0x20] sm:$0x1] %v436_v7  ;;  %v409_v9 = vld [vmem:[#allocation2 + $0x30] sm:$0x1]  ;;  %v441_v11 = vld [vmem:[#allocation2 + $0x38] sm:$0x1]  ;;  %vm3257_vm7 = vmand %vm497_vm6, %vm427_vm3 }
  0x13   : > { %3032 = vmatpush.bf16.msra.mxu1 %v2971_v1  ;;  %3033 = vmatpush.bf16.msra.mxu2 %v2971_v1  ;;  %s2583_s12 = sshll.u32 %s3230_s11, 2  ;;  %v410_v10 = vsel %vm3207_vm2, 0, %v409_v9  ;;  %v415_v12 = vld [vmem:[#allocation2 + $0x48] sm:$0x1]  ;;  %v442_v14 = vsel %vm3213_vm4, 0, %v441_v11  ;;  %v2968_v27 = vld [vmem:[%s4066_s3 + $0x58] sm:$0xff] }
  0x14   : > { %3034 = vmatpush.bf16.msra.mxu3 %v2971_v1  ;;  %1105 = vmatpush.bf16.msra.mxu0 %v2971_v1  ;;  %s3242_s17 = scalar_lea.vmem %s4063_s0, %s2583_s12  ;;  %411 = vst [vmem:[#allocation2 + $0x30] sm:$0x1] %v410_v10  ;;  %v416_v15 = vsel %vm3207_vm2, 0, %v415_v12  ;;  %v447_v16 = vld [vmem:[#allocation2 + $0x50] sm:$0x1]  ;;  %v2966_v9 = vld [vmem:[%s4066_s3 + $0x48] sm:$0xff] }
  0x15   : > { %v536_v17 = vld [vmem:[%s3242_s17 + $0x8] sm:$0xf]  ;;  %v537_v18 = vld [vmem:[%s3242_s17 + $0xc] sm:$0xf]  ;;  %443 = vst [vmem:[#allocation2 + $0x38] sm:$0x1] %v442_v14 }
  0x16   : > { %v568_v19 = vshrl.u32 %v536_v17, 16  ;;  %v571_v20 = vshll.u32 %v536_v17, 16  ;;  %v576_v21 = vshrl.u32 %v537_v18, 16  ;;  %v579_v22 = vshll.u32 %v537_v18, 16  ;;  %v540_v23 = vld [vmem:[%s3242_s17 + $0x18] sm:$0xf] }
  0x17   : > { %3035 = vmatpush.bf16.msra.mxu1 %v2970_v8  ;;  %3036 = vmatpush.bf16.msra.mxu2 %v2970_v8  ;;  %v541_v24 = vld [vmem:[%s3242_s17 + $0x1c] sm:$0xf]  ;;  %v602_v25 = vshrl.u32 %v540_v23, 16  ;;  %v605_v26 = vshll.u32 %v540_v23, 16  ;;  %417 = vst [vmem:[#allocation2 + $0x48] sm:$0x1] %v416_v15 }
  0x18   : > { %3037 = vmatpush.bf16.msra.mxu3 %v2970_v8  ;;  %1106 = vmatpush.bf16.msra.mxu0 %v2970_v8  ;;  %v570_v29 = vrot.slane %v568_v19, 7  ;;  %v578_v30 = vrot.slane %v576_v21, 7  ;;  %v718_v31 = vld [vmem:[#allocation2 + $0x18] sm:$0xf]  ;;  %v610_v32 = vshrl.u32 %v541_v24, 16  ;;  %v613_v33 = vshll.u32 %v541_v24, 16 }
  0x19   : > { %v722_v35 = vld [vmem:[#allocation2 + $0x20] sm:$0x1]  ;;  %v604_v36 = vrot.slane %v602_v25, 7  ;;  %v448_v37 = vsel %vm3213_vm4, 0, %v447_v16  ;;  %v544_v38 = vld [vmem:[%s3242_s17 + $0x28] sm:$0xf] }
  0x1a   : > { %v573_v39 = vor.u32 %v571_v20, %v570_v29  ;;  %v574_v40 = vrot.slane %v570_v29, 4  ;;  %v581_v41 = vor.u32 %v579_v22, %v578_v30  ;;  %v583_v42 = vrot.slane %v578_v30, 4  ;;  %449 = vst [vmem:[#allocation2 + $0x50] sm:$0x1] %v448_v37  ;;  %v545_v43 = vld [vmem:[%s3242_s17 + $0x2c] sm:$0xf] }
  0x1b   : > { %3038 = vmatpush.bf16.msra.mxu1 %v2969_v13  ;;  %3039 = vmatpush.bf16.msra.mxu2 %v2969_v13  ;;  %v607_v44 = vor.u32 %v605_v26, %v604_v36  ;;  %v608_v45 = vrot.slane %v604_v36, 4  ;;  %v612_v46 = vrot.slane %v610_v32, 7  ;;  %v732_v47 = vld [vmem:[#allocation2 + $0x30] sm:$0xf]  ;;  %v636_v48 = vshrl.u32 %v544_v38, 16  ;;  %s351_s26 = scalar_select %p350_p7, %s3224_s7, 0 }
  0x1c   : > { %3040 = vmatpush.bf16.msra.mxu3 %v2969_v13  ;;  %1107 = vmatpush.bf16.msra.mxu0 %v2969_v13  ;;  %v582_v49 = vsel %vm3263_vm8, %v574_v40, %v581_v41  ;;  %v719_v50 = vsel %vm3257_vm7, %v573_v39, %v718_v31  ;;  %v723_v51 = vsel %vm3207_vm2, %v583_v42, %v722_v35  ;;  %v736_v52 = vld [vmem:[#allocation2 + $0x38] sm:$0x1]  ;;  %v639_v53 = vshll.u32 %v544_v38, 16  ;;  %v2967_v54 = vld [vmem:[%s4066_s3 + $0x50] sm:$0xff]  ;;  %v397_v1 = vld [vmem:[#allocation2] sm:$0x1] }
  0x1d   : > { %720 = vst [vmem:[#allocation2 + $0x18] sm:$0xf] %v719_v50  ;;  %v615_v55 = vor.u32 %v613_v33, %v612_v46  ;;  %v617_v56 = vrot.slane %v612_v46, 4  ;;  %v733_v57 = vsel %vm3257_vm7, %v607_v44, %v732_v47  ;;  %v638_v58 = vrot.slane %v636_v48, 7  ;;  %s4095_s26 = smov (!%p2586_p8, %s351_s26), 15  ;;  %v2965_v14 = vld [vmem:[%s4066_s3 + $0x40] sm:$0xff] }
  0x1e   : > { %721 = vst [vmem:[#allocation2 + $0x1c] sm:$0xf] %v582_v49  ;;  %v644_v59 = vshrl.u32 %v545_v43, 16  ;;  %v647_v60 = vshll.u32 %v545_v43, 16  ;;  %v746_v61 = vld [vmem:[#allocation2 + $0x48] sm:$0xf] }
  0x1f   : > { %3041 = vmatpush.bf16.msra.mxu1 %v2968_v27  ;;  %3042 = vmatpush.bf16.msra.mxu2 %v2968_v27  ;;  %724 = vst [vmem:[#allocation2 + $0x20] sm:$0x1] %v723_v51  ;;  %v616_v62 = vsel %vm3263_vm8, %v608_v45, %v615_v55  ;;  %v737_v63 = vsel %vm3207_vm2, %v617_v56, %v736_v52  ;;  %vm813_vm9 = vsmask.f32 3328  ;;  %v642_v3 = vrot.slane %v638_v58, 4  ;;  %s2591_s30 = sshll.u32 %s4095_s26, 1 }
  0x20   : > { %3043 = vmatpush.bf16.msra.mxu3 %v2968_v27  ;;  %1108 = vmatpush.bf16.msra.mxu0 %v2968_v27  ;;  %v641_v0 = vor.u32 %v639_v53, %v638_v58  ;;  %734 = vst [vmem:[#allocation2 + $0x30] sm:$0xf] %v733_v57  ;;  %v646_v5 = vrot.slane %v644_v59, 7  ;;  %v398_v8 = vsel %vm3207_vm2, 0, %v397_v1  ;;  %s3298_s9 = sadd.s32 %s2591_s30, %s3217_s6  ;;  %v429_v12 = vld [vmem:[#allocation2 + $0x8] sm:$0x1] }
  0x21   : > { %735 = vst [vmem:[#allocation2 + $0x34] sm:$0xf] %v616_v62  ;;  %v750_v7 = vld [vmem:[#allocation2 + $0x50] sm:$0x1]  ;;  %vm814_vm10 = vsmask.f32 7440 }
  0x22   : > { %v747_v6 = vsel %vm3257_vm7, %v641_v0, %v746_v61  ;;  %738 = vst [vmem:[#allocation2 + $0x38] sm:$0x1] %v737_v63  ;;  %v649_v10 = vor.u32 %v647_v60, %v646_v5  ;;  %v651_v11 = vrot.slane %v646_v5, 4  ;;  %s2593_s10 = sshll.u32 %s3298_s9, 2  ;;  %v430_v13 = vsel %vm3213_vm4, 0, %v429_v12  ;;  %v2980_v22 = vld [vmem:[%s4066_s3 + $0xb8] sm:$0xff]  ;;  %vm3347_vm11 = vmor %vm813_vm9, %vm814_vm10 }
  0x23   : > { %3044 = vmatpush.bf16.msra.mxu1 %v2967_v54  ;;  %3045 = vmatpush.bf16.msra.mxu2 %v2967_v54  ;;  %748 = vst [vmem:[#allocation2 + $0x48] sm:$0xf] %v747_v6  ;;  %v3312_v18 = vld [vmem:[#allocation2 + $0x24] sm:$0x1]  ;;  %v2964_v26 = vld [vmem:[%s4066_s3 + $0x38] sm:$0xff]  ;;  %s360_s30 = scalar_lea.vmem %s4064_s1, %s2593_s10  ;;  %vm1306_vm13 = vcmask 1042432  }
  0x24   : > { %3046 = vmatpush.bf16.msra.mxu3 %v2967_v54  ;;  %1109 = vmatpush.bf16.msra.mxu0 %v2967_v54  ;;  %v3306_v15 = vld [vmem:[#allocation2 + $0x18] sm:$0xf]  ;;  %v650_v16 = vsel %vm3263_vm8, %v642_v3, %v649_v10  ;;  %v751_v17 = vsel %vm3207_vm2, %v651_v11, %v750_v7  ;;  %399 = vst [vmem:[#allocation2] sm:$0x1] %v398_v8  ;;  %v407_v32 = vsel %vm3207_vm2, 0, %v3312_v18  ;;  %v2979_v18 = vld [vmem:[%s4066_s3 + $0xb0] sm:$0xff] }
  0x25   : > { %v3314_v19 = vld [vmem:[#allocation2 + $0x1c] sm:$0xf]  ;;  %v865_v20 = vshrl.u32 %v3306_v15, 16  ;;  %v868_v21 = vshll.u32 %v3306_v15, 16  ;;  %749 = vst [vmem:[#allocation2 + $0x4c] sm:$0xf] %v650_v16 }
  0x26   : > { %v3321_v23 = vld [vmem:[#allocation2 + $0x20] sm:$0x1]  ;;  %v874_v24 = vshll.u32 %v3314_v19, 16  ;;  %v878_v25 = vshrl.u32 %v3314_v19, 16  ;;  %752 = vst [vmem:[#allocation2 + $0x50] sm:$0x1] %v751_v17 }
  0x27   : > { %3047 = vmatpush.bf16.msra.mxu1 %v2966_v9  ;;  %3048 = vmatpush.bf16.msra.mxu2 %v2966_v9  ;;  %v867_v27 = vrot.slane %v865_v20, 4  ;;  %v870_v29 = vrot.slane %v868_v21, 5  ;;  %v884_v30 = vshll.u32 %v3321_v23, 16  ;;  %v3329_v31 = vld [vmem:[#allocation2 + $0x30] sm:$0xf]  ;;  %v2988_v44 = vld [vmem:[%s4066_s3 + $0xf8] sm:$0xff] }
  0x28   : > { %3049 = vmatpush.bf16.msra.mxu3 %v2966_v9  ;;  %1110 = vmatpush.bf16.msra.mxu0 %v2966_v9  ;;  %v876_v33 = vrot.slane %v874_v24, 5  ;;  %v880_v35 = vrot.slane %v878_v25, 4  ;;  %v3334_v36 = vld [vmem:[#allocation2 + $0x34] sm:$0xf]  ;;  %v913_v37 = vshrl.u32 %v3329_v31, 16  ;;  %v916_v38 = vshll.u32 %v3329_v31, 16 }
  0x29   : > { %v871_v39 = vor.u32 %v870_v29, %v867_v27  ;;  %v886_v40 = vrot.slane %v884_v30, 5  ;;  %v3338_v41 = vld [vmem:[#allocation2 + $0x38] sm:$0x1]  ;;  %v922_v42 = vshll.u32 %v3334_v36, 16  ;;  %v926_v43 = vshrl.u32 %v3334_v36, 16  ;;  %v2963_v20 = vld [vmem:[%s4066_s3 + $0x30] sm:$0xff] }
  0x2a   : > { %v881_v46 = vor.u32 %v880_v35, %v876_v33  ;;  %v915_v47 = vrot.slane %v913_v37, 4  ;;  %v918_v48 = vrot.slane %v916_v38, 5  ;;  %v932_v49 = vshll.u32 %v3338_v41, 16  ;;  %v3352_v50 = vld [vmem:[#allocation2 + $0x48] sm:$0xf]  ;;  %v2987_v21 = vld [vmem:[%s4066_s3 + $0xf0] sm:$0xff] }
  0x2b   : > { %3050 = vmatpush.bf16.msra.mxu1 %v2965_v14  ;;  %3051 = vmatpush.bf16.msra.mxu2 %v2965_v14  ;;  %v872_v51 = vrot.slane %v871_v39, 4  ;;  %v924_v52 = vrot.slane %v922_v42, 5  ;;  %v928_v53 = vrot.slane %v926_v43, 4  ;;  %v961_v54 = vshrl.u32 %v3352_v50, 16  ;;  %431 = vst [vmem:[#allocation2 + $0x8] sm:$0x1] %v430_v13 }
  0x2c   : > { %3052 = vmatpush.bf16.msra.mxu3 %v2965_v14  ;;  %v882_v55 = vrot.slane %v881_v46, 4  ;;  %v919_v56 = vor.u32 %v918_v48, %v915_v47  ;;  %v934_v57 = vrot.slane %v932_v49, 5  ;;  %v3361_v58 = vld [vmem:[#allocation2 + $0x4c] sm:$0xf]  ;;  %v964_v59 = vshll.u32 %v3352_v50, 16  ;;  %1111 = vmatpush.bf16.msra.mxu0 %v2965_v14  ;;  %v2996_v27 = vld [vmem:[%s4066_s3 + $0x138] sm:$0xff] }
  0x2d   : > { %v877_v60 = vsel %vm3347_vm11, %v872_v51, %v876_v33  ;;  %v929_v61 = vor.u32 %v928_v53, %v924_v52  ;;  %v3366_v62 = vld [vmem:[#allocation2 + $0x50] sm:$0x1]  ;;  %v963_v63 = vrot.slane %v961_v54, 4  ;;  %v970_v0 = vshll.u32 %v3361_v58, 16  ;;  %v459_v7 = vld [vmem:[%s360_s30] sm:$0xf] }
  0x2e   : > { %v887_v1 = vsel %vm3347_vm11, %v882_v55, %v886_v40  ;;  %v1028_v3 = vunpack.c.l.b16 %v877_v60  ;;  %v920_v5 = vrot.slane %v919_v56, 4  ;;  %v966_v6 = vrot.slane %v964_v59, 5  ;;  %s464_s7 = scalar_select %p463_p9, 1, 0  ;;  %v460_v12 = vld [vmem:[%s360_s30 + $0x4] sm:$0xf] }
  0x2f   : > { %1461 = vmatpush.bf16.msrb.mxu2 %v2980_v22  ;;  %1249 = vmatpush.bf16.msrb.mxu1 %v2964_v26  ;;  %v1029_v8 = vunpack.c.l.b16 %v887_v1  ;;  %v930_v9 = vrot.slane %v929_v61, 4  ;;  %v972_v10 = vrot.slane %v970_v0, 5  ;;  %v974_v11 = vshrl.u32 %v3361_v58, 16  ;;  %408 = vst [vmem:[#allocation2 + $0x24] sm:$0x1] %v407_v32  ;;  %v2962_v32 = vld [vmem:[%s4066_s3 + $0x28] sm:$0xff] }
  0x30   : > { %1596 = vmatpush.bf16.msrb.mxu3 %v2988_v44  ;;  %v925_v13 = vsel %vm3347_vm11, %v920_v5, %v924_v52  ;;  %v967_v14 = vor.u32 %v966_v6, %v963_v63  ;;  %v980_v16 = vshll.u32 %v3366_v62, 16  ;;  %v465_v17 = vstv %s464_s7  ;;  %v2978_v39 = vld [vmem:[%s4066_s3 + $0xa8] sm:$0xff]  ;;  %1753 = vmatpush.bf16.msrb.mxu0 %v2996_v27  ;;  %v2995_v47 = vld [vmem:[%s4066_s3 + $0x130] sm:$0xff]  ;;  %v499_v54 = vld [vmem:[#allocation2] sm:$0xf]  ;;  %s2604_s18 = sshll.u32 %s3230_s11, 3 }
  0x31   : > { %v3386_v22 = vpack.c.b16 %v1029_v8, %v1028_v3  ;;  %v935_v24 = vsel %vm3347_vm11, %v930_v9, %v934_v57  ;;  %v1032_v25 = vunpack.c.l.b16 %v925_v13  ;;  %v976_v26 = vrot.slane %v974_v11, 4  ;;  %v2986_v40 = vld [vmem:[%s4066_s3 + $0xe8] sm:$0xff]  ;;  %v2977_v55 = vld [vmem:[%s4066_s3 + $0xa0] sm:$0xff]  ;;  %v538_v57 = vld [vmem:[%s3242_s17 + $0x10] sm:$0xf]  ;;  %s4000_s28 = scalar_lea.vmem %s4068_s5, %s2604_s18 }
  0x32   : > { %v1033_v29 = vunpack.c.l.b16 %v935_v24  ;;  %v968_v30 = vrot.slane %v967_v14, 4  ;;  %vm466_vm12 = vcmp.eq.s32.totalorder %v465_v17, 1  ;;  %v982_v35 = vrot.slane %v980_v16, 5  ;;  %v438_v48 = vld [vmem:[#allocation2 + $0x2c] sm:$0x1]  ;;  %v2961_v56 = vld [vmem:[%s4066_s3 + $0x20] sm:$0xff] }
  0x33   : > { %1462 = vmatpush.bf16.msrb.mxu2 %v2979_v18  ;;  %1250 = vmatpush.bf16.msrb.mxu1 %v2963_v20  ;;  %v977_v33 = vor.u32 %v976_v26, %v972_v10  ;;  %v467_v37 = vsel %vm466_vm12, %v459_v7, 0  ;;  %v468_v38 = vsel %vm466_vm12, %v460_v12, 0  ;;  %v503_v60 = vld [vmem:[#allocation2 + $0x8] sm:$0x1]  ;;  %v439_v61 = vsel %vm3213_vm4, 0, %v438_v48  ;;  %v2985_v6 = vld [vmem:[%s4066_s3 + $0xe0] sm:$0xff] }
  0x34   : > { %1122 = vmatmul.bf16.vlgmr.msra.gmra.mxu1 %v3386_v22  ;;  %1597 = vmatpush.bf16.msrb.mxu3 %v2987_v21  ;;  %v3403_v42 = vpack.c.b16 %v1033_v29, %v1032_v25  ;;  %v973_v43 = vsel %vm3347_vm11, %v968_v30, %v972_v10  ;;  %v478_v44 = vshrl.u32 %v467_v37, 16  ;;  %v481_v46 = vshll.u32 %v467_v37, 16  ;;  %v539_v63 = vld [vmem:[%s3242_s17 + $0x14] sm:$0xf]  ;;  %440 = vst [vmem:[#allocation2 + $0x2c] sm:$0x1] %v439_v61 }
  0x35   : > { %v978_v49 = vrot.slane %v977_v33, 4  ;;  %v1036_v51 = vunpack.c.l.b16 %v973_v43  ;;  %v486_v52 = vshrl.u32 %v468_v38, 16  ;;  %v489_v53 = vshll.u32 %v468_v38, 16  ;;  %1754 = vmatpush.bf16.msrb.mxu0 %v2995_v47  ;;  %v2994_v12 = vld [vmem:[%s4066_s3 + $0x128] sm:$0xff]  ;;  %v412_v14 = vld [vmem:[#allocation2 + $0x3c] sm:$0x1] }
  0x36   : > { %1132 = vmatmul.bf16.vlgmr.msra.gmra.mxu2 %v3403_v42  ;;  %v480_v59 = vrot.slane %v478_v44, 7  ;;  %v585_v0 = vshrl.u32 %v538_v57, 16  ;;  %v588_v1 = vshll.u32 %v538_v57, 16  ;;  %v593_v7 = vshrl.u32 %v539_v63, 16  ;;  %v725_v20 = vld [vmem:[#allocation2 + $0x24] sm:$0xf] }
  0x37   : > { %1251 = vmatpush.bf16.msrb.mxu1 %v2962_v32  ;;  %v983_v3 = vsel %vm3347_vm11, %v978_v49, %v982_v35  ;;  %v488_v5 = vrot.slane %v486_v52, 7  ;;  %1463 = vmatpush.bf16.msrb.mxu2 %v2978_v39  ;;  %v596_v8 = vshll.u32 %v539_v63, 16  ;;  %v413_v21 = vsel %vm3207_vm2, 0, %v412_v14  ;;  %v542_v29 = vld [vmem:[%s3242_s17 + $0x20] sm:$0xf] }
  0x38   : > { %1598 = vmatpush.bf16.msrb.mxu3 %v2986_v40  ;;  %v1037_v9 = vunpack.c.l.b16 %v983_v3  ;;  %v483_v10 = vor.u32 %v481_v46, %v480_v59  ;;  %v484_v11 = vrot.slane %v480_v59, 4  ;;  %v587_v13 = vrot.slane %v585_v0, 7  ;;  %414 = vst [vmem:[#allocation2 + $0x3c] sm:$0x1] %v413_v21  ;;  %v444_v35 = vld [vmem:[#allocation2 + $0x44] sm:$0x1] }
  0x39   : > { %v491_v16 = vor.u32 %v489_v53, %v488_v5  ;;  %v493_v17 = vrot.slane %v488_v5, 4  ;;  %v595_v18 = vrot.slane %v593_v7, 7  ;;  %v543_v37 = vld [vmem:[%s3242_s17 + $0x24] sm:$0xf]  ;;  %1755 = vmatpush.bf16.msrb.mxu0 %v2994_v12  ;;  %v619_v40 = vshrl.u32 %v542_v29, 16 }
  0x3a   : > { %v3431_v24 = vpack.c.b16 %v1037_v9, %v1036_v51  ;;  %v500_v25 = vsel %vm3257_vm7, %v483_v10, %v499_v54  ;;  %v590_v26 = vor.u32 %v588_v1, %v587_v13  ;;  %v591_v27 = vrot.slane %v587_v13, 4  ;;  %v418_v43 = vld [vmem:[#allocation2 + $0x54] sm:$0x1]  ;;  %s470_s13 = scalar_select %p469_p11, 1, 0 }
  0x3b   : > { %1252 = vmatpush.bf16.msrb.mxu1 %v2961_v56  ;;  %v492_v30 = vsel %vm3263_vm8, %v484_v11, %v491_v16  ;;  %501 = vst [vmem:[#allocation2] sm:$0xf] %v500_v25  ;;  %v504_v32 = vsel %vm3207_vm2, %v493_v17, %v503_v60  ;;  %1464 = vmatpush.bf16.msrb.mxu2 %v2977_v55  ;;  %v600_v38 = vrot.slane %v595_v18, 4  ;;  %v622_v46 = vshll.u32 %v542_v29, 16  ;;  %v729_v49 = vld [vmem:[#allocation2 + $0x2c] sm:$0x1] }
  0x3c   : > { %1599 = vmatpush.bf16.msrb.mxu3 %v2985_v6  ;;  %v598_v33 = vor.u32 %v596_v8, %v595_v18  ;;  %502 = vst [vmem:[#allocation2 + $0x4] sm:$0xf] %v492_v30  ;;  %v726_v39 = vsel %vm3257_vm7, %v590_v26, %v725_v20  ;;  %v627_v47 = vshrl.u32 %v543_v37, 16  ;;  %v630_v48 = vshll.u32 %v543_v37, 16  ;;  %v450_v56 = vld [vmem:[#allocation2 + $0x5c] sm:$0x1] }
  0x3d   : > { %1142 = vmatmul.bf16.vlgmr.msra.gmra.mxu3 %v3431_v24  ;;  %505 = vst [vmem:[#allocation2 + $0x8] sm:$0x1] %v504_v32  ;;  %v445_v51 = vsel %vm3213_vm4, 0, %v444_v35  ;;  %v621_v52 = vrot.slane %v619_v40, 7  ;;  %v730_v53 = vsel %vm3207_vm2, %v600_v38, %v729_v49  ;;  %v419_v55 = vsel %vm3207_vm2, 0, %v418_v43 }
  0x3e   : > { %v599_v44 = vsel %vm3263_vm8, %v591_v27, %v598_v33  ;;  %727 = vst [vmem:[#allocation2 + $0x24] sm:$0xf] %v726_v39  ;;  %v629_v54 = vrot.slane %v627_v47, 7  ;;  %v3453_v60 = vld [vmem:[%s3242_s17 + $0x30] sm:$0xf]  ;;  %v451_v6 = vsel %vm3213_vm4, 0, %v450_v56 }
  0x3f   : > { %728 = vst [vmem:[#allocation2 + $0x28] sm:$0xf] %v599_v44  ;;  %v624_v57 = vor.u32 %v622_v46, %v621_v52  ;;  %v625_v59 = vrot.slane %v621_v52, 4  ;;  %v739_v63 = vld [vmem:[#allocation2 + $0x3c] sm:$0xf]  ;;  %v653_v0 = vshrl.u32 %v3453_v60, 16 }
  0x40   : > { %731 = vst [vmem:[#allocation2 + $0x2c] sm:$0x1] %v730_v53  ;;  %v632_v61 = vor.u32 %v630_v48, %v629_v54  ;;  %v634_v3 = vrot.slane %v629_v54, 4  ;;  %vm1307_vm14 = vcmask 1046532  }
  0x41   : > { %446 = vst [vmem:[#allocation2 + $0x44] sm:$0x1] %v445_v51  ;;  %v740_v5 = vsel %vm3257_vm7, %v624_v57, %v739_v63  ;;  %v3475_v20 = vrot.slane %v653_v0, 7  ;;  %vm3600_vm15 = vmor %vm1306_vm13, %vm1307_vm14 }
  0x42   : > { %v3456_v1 = vld [vmem:[#allocation2] sm:$0xf]  ;;  %420 = vst [vmem:[#allocation2 + $0x54] sm:$0x1] %v419_v55  ;;  %v633_v10 = vsel %vm3263_vm8, %v625_v59, %v632_v61 }
  0x43   : > { %v3462_v7 = vld [vmem:[#allocation2 + $0x4] sm:$0xf]  ;;  %v817_v8 = vshrl.u32 %v3456_v1, 16  ;;  %v820_v9 = vshll.u32 %v3456_v1, 16  ;;  %741 = vst [vmem:[#allocation2 + $0x3c] sm:$0xf] %v740_v5 }
  0x44   : > { %v3468_v11 = vld [vmem:[#allocation2 + $0x8] sm:$0x1]  ;;  %v826_v12 = vshll.u32 %v3462_v7, 16  ;;  %v830_v13 = vshrl.u32 %v3462_v7, 16  ;;  %742 = vst [vmem:[#allocation2 + $0x40] sm:$0xf] %v633_v10 }
  0x45   : > { %v819_v14 = vrot.slane %v817_v8, 4  ;;  %v822_v16 = vrot.slane %v820_v9, 5  ;;  %v836_v17 = vshll.u32 %v3468_v11, 16  ;;  %v3473_v18 = vld [vmem:[#allocation2 + $0x24] sm:$0xf]  ;;  %v2960_v8 = vld [vmem:[%s4066_s3 + $0x18] sm:$0xff] }
  0x46   : > { %v828_v21 = vrot.slane %v826_v12, 5  ;;  %v832_v25 = vrot.slane %v830_v13, 4  ;;  %v3477_v26 = vld [vmem:[#allocation2 + $0x28] sm:$0xf]  ;;  %v889_v27 = vshrl.u32 %v3473_v18, 16  ;;  %v892_v29 = vshll.u32 %v3473_v18, 16  ;;  %1253 = vmatpush.bf16.msrb.mxu1 %v2960_v8 }
  0x47   : > { %v823_v30 = vor.u32 %v822_v16, %v819_v14  ;;  %v838_v32 = vrot.slane %v836_v17, 5  ;;  %v3481_v33 = vld [vmem:[#allocation2 + $0x2c] sm:$0x1]  ;;  %v898_v35 = vshll.u32 %v3477_v26, 16  ;;  %v902_v37 = vshrl.u32 %v3477_v26, 16  ;;  %v2984_v9 = vld [vmem:[%s4066_s3 + $0xd8] sm:$0xff] }
  0x48   : > { %v833_v38 = vor.u32 %v832_v25, %v828_v21  ;;  %v891_v39 = vrot.slane %v889_v27, 4  ;;  %v894_v40 = vrot.slane %v892_v29, 5  ;;  %v908_v43 = vshll.u32 %v3481_v33, 16  ;;  %v743_v44 = vld [vmem:[#allocation2 + $0x44] sm:$0x1]  ;;  %1600 = vmatpush.bf16.msrb.mxu3 %v2984_v9 }
  0x49   : > { %v824_v46 = vrot.slane %v823_v30, 4  ;;  %v900_v47 = vrot.slane %v898_v35, 5  ;;  %v904_v48 = vrot.slane %v902_v37, 4  ;;  %v744_v49 = vsel %vm3207_vm2, %v634_v3, %v743_v44  ;;  %452 = vst [vmem:[#allocation2 + $0x5c] sm:$0x1] %v451_v6  ;;  %v2976_v6 = vld [vmem:[%s4066_s3 + $0x98] sm:$0xff] }
  0x4a   : > { %v834_v51 = vrot.slane %v833_v38, 4  ;;  %v895_v52 = vor.u32 %v894_v40, %v891_v39  ;;  %v910_v53 = vrot.slane %v908_v43, 5  ;;  %745 = vst [vmem:[#allocation2 + $0x44] sm:$0x1] %v744_v49  ;;  %v3488_v54 = vld [vmem:[#allocation2 + $0x3c] sm:$0xf]  ;;  %1465 = vmatpush.bf16.msrb.mxu2 %v2976_v6 }
  0x4b   : > { %v829_v55 = vsel %vm3347_vm11, %v824_v46, %v828_v21  ;;  %v905_v56 = vor.u32 %v904_v48, %v900_v47  ;;  %v3492_v57 = vld [vmem:[#allocation2 + $0x40] sm:$0xf]  ;;  %v937_v59 = vshrl.u32 %v3488_v54, 16  ;;  %v940_v61 = vshll.u32 %v3488_v54, 16  ;;  %v547_v16 = vld [vmem:[%s3242_s17 + $0x34] sm:$0xf] }
  0x4c   : > { %v839_v63 = vsel %vm3347_vm11, %v834_v51, %v838_v32  ;;  %v1024_v0 = vunpack.c.l.b16 %v829_v55  ;;  %v896_v3 = vrot.slane %v895_v52, 4  ;;  %v946_v5 = vshll.u32 %v3492_v57, 16  ;;  %v2993_v17 = vld [vmem:[%s4066_s3 + $0x120] sm:$0xff]  ;;  %v400_v30 = vld [vmem:[#allocation2 + $0xc] sm:$0x1] }
  0x4d   : > { %v1025_v10 = vunpack.c.l.b16 %v839_v63  ;;  %v906_v12 = vrot.slane %v905_v56, 4  ;;  %v939_v13 = vrot.slane %v937_v59, 4  ;;  %v942_v14 = vrot.slane %v940_v61, 5  ;;  %v753_v39 = vld [vmem:[#allocation2 + $0x54] sm:$0xf]  ;;  %1756 = vmatpush.bf16.msrb.mxu0 %v2993_v17 }
  0x4e   : > { %v901_v21 = vsel %vm3347_vm11, %v896_v3, %v900_v47  ;;  %v948_v25 = vrot.slane %v946_v5, 5  ;;  %v950_v27 = vshrl.u32 %v3492_v57, 16  ;;  %v656_v29 = vshll.u32 %v3453_v60, 16  ;;  %v432_v40 = vld [vmem:[#allocation2 + $0x14] sm:$0x1] }
  0x4f   : > { %v1040_v32 = vpack.c.b16 %v1025_v10, %v1024_v0  ;;  %v911_v35 = vsel %vm3347_vm11, %v906_v12, %v910_v53  ;;  %v1030_v37 = vunpack.c.l.b16 %v901_v21  ;;  %v943_v38 = vor.u32 %v942_v14, %v939_v13  ;;  %v534_v47 = vld [vmem:[%s3242_s17] sm:$0xf]  ;;  %v3522_v48 = vld [vmem:[%s3242_s17 + $0x4] sm:$0xf]  ;;  %v2975_v0 = vld [vmem:[%s4066_s3 + $0x90] sm:$0xff] }
  0x50   : > { %v1031_v43 = vunpack.c.l.b16 %v911_v35  ;;  %v952_v44 = vrot.slane %v950_v27, 4  ;;  %v658_v46 = vor.u32 %v656_v29, %v3475_v20  ;;  %v659_v60 = vrot.slane %v3475_v20, 4  ;;  %v757_v63 = vld [vmem:[#allocation2 + $0x5c] sm:$0x1]  ;;  %v2959_v3 = vld [vmem:[%s4066_s3 + $0x10] sm:$0xff]  ;;  %1466 = vmatpush.bf16.msrb.mxu2 %v2975_v0  ;;  %v2974_v21 = vld [vmem:[%s4066_s3 + $0x88] sm:$0xff] }
  0x51   : > { %1112 = vmatmul.bf16.vlgmr.msra.gmra.mxu0 %v1040_v32  ;;  %v3524_v49 = vld [vmem:[#allocation2 + $0x44] sm:$0x1]  ;;  %v944_v51 = vrot.slane %v943_v38, 4  ;;  %v661_v52 = vshrl.u32 %v547_v16, 16  ;;  %v664_v53 = vshll.u32 %v547_v16, 16  ;;  %v401_v55 = vsel %vm3207_vm2, 0, %v400_v30  ;;  %1254 = vmatpush.bf16.msrb.mxu1 %v2959_v3 }
  0x52   : > { %v3528_v56 = vpack.c.b16 %v1031_v43, %v1030_v37  ;;  %v953_v59 = vor.u32 %v952_v44, %v948_v25  ;;  %v956_v61 = vshll.u32 %v3524_v49, 16  ;;  %v754_v20 = vsel %vm3257_vm7, %v658_v46, %v753_v39  ;;  %402 = vst [vmem:[#allocation2 + $0xc] sm:$0x1] %v401_v55  ;;  %v2983_v5 = vld [vmem:[%s4066_s3 + $0xd0] sm:$0xff]  ;;  %v2992_v12 = vld [vmem:[%s4066_s3 + $0x118] sm:$0xff]  ;;  %v2958_v32 = vld [vmem:[%s4066_s3 + $0x8] sm:$0xff] }
  0x53   : > { %v949_v6 = vsel %vm3347_vm11, %v944_v51, %v948_v25  ;;  %v663_v8 = vrot.slane %v661_v52, 7  ;;  %755 = vst [vmem:[#allocation2 + $0x54] sm:$0xf] %v754_v20  ;;  %v433_v9 = vsel %vm3213_vm4, 0, %v432_v40  ;;  %v551_v10 = vshrl.u32 %v534_v47, 16  ;;  %1601 = vmatpush.bf16.msrb.mxu3 %v2983_v5  ;;  %v2982_v35 = vld [vmem:[%s4066_s3 + $0xc8] sm:$0xff]  ;;  %1757 = vmatpush.bf16.msrb.mxu0 %v2992_v12 }
  0x54   : > { %1127 = vmatmul.bf16.gmra.mxu1 %v3528_v56  ;;  %v954_v13 = vrot.slane %v953_v59, 4  ;;  %v958_v14 = vrot.slane %v956_v61, 5  ;;  %v1034_v16 = vunpack.c.l.b16 %v949_v6  ;;  %434 = vst [vmem:[#allocation2 + $0x14] sm:$0x1] %v433_v9  ;;  %v554_v17 = vshll.u32 %v534_v47, 16  ;;  %v2991_v39 = vld [vmem:[%s4066_s3 + $0x110] sm:$0xff]  ;;  %1467 = vmatpush.bf16.msrb.mxu2 %v2974_v21 }
  0x55   : > { %v666_v25 = vor.u32 %v664_v53, %v663_v8  ;;  %v668_v27 = vrot.slane %v663_v8, 4  ;;  %v553_v29 = vrot.slane %v551_v10, 7  ;;  %v559_v30 = vshrl.u32 %v3522_v48, 16  ;;  %v2973_v47 = vld [vmem:[%s4066_s3 + $0x80] sm:$0xff]  ;;  %1255 = vmatpush.bf16.msrb.mxu1 %v2958_v32  ;;  %v3020_v21 = vld [vmem:[%s4066_s3 + $0x1f8] sm:$0xff] }
  0x56   : > { %v959_v37 = vsel %vm3347_vm11, %v954_v13, %v958_v14  ;;  %v562_v38 = vshll.u32 %v3522_v48, 16  ;;  %v2957_v48 = vld [vmem:[%s4066_s3] sm:$0xff]  ;;  %v1311_v53 = vrot.slane %v3462_v7, 5  ;;  %v2990_v7 = vld [vmem:[%s4066_s3 + $0x108] sm:$0xff]  ;;  %v2701_v3 = vrot.slane %v3456_v1, 9 }
  0x57   : > { %v1035_v40 = vunpack.c.l.b16 %v959_v37  ;;  %v667_v43 = vsel %vm3263_vm8, %v659_v60, %v666_v25  ;;  %v758_v44 = vsel %vm3207_vm2, %v668_v27, %v757_v63  ;;  %v556_v46 = vor.u32 %v554_v17, %v553_v29  ;;  %v2981_v60 = vld [vmem:[%s4066_s3 + $0xc0] sm:$0xff]  ;;  %1602 = vmatpush.bf16.msrb.mxu3 %v2982_v35  ;;  %1758 = vmatpush.bf16.msrb.mxu0 %v2991_v39  ;;  %v3012_v17 = vld [vmem:[%s4066_s3 + $0x1b8] sm:$0xff] }
  0x58   : > { %756 = vst [vmem:[#allocation2 + $0x58] sm:$0xf] %v667_v43  ;;  %v557_v51 = vrot.slane %v553_v29, 4  ;;  %v561_v52 = vrot.slane %v559_v30, 7  ;;  %1468 = vmatpush.bf16.msrb.mxu2 %v2973_v47  ;;  %v1313_v12 = vrot.slane %v1311_v53, 4  ;;  %v1314_v13 = vrot.slane %v3468_v11, 5 }
  0x59   : > { %v3580_v55 = vpack.c.b16 %v1035_v40, %v1034_v16  ;;  %759 = vst [vmem:[#allocation2 + $0x5c] sm:$0x1] %v758_v44  ;;  %v711_v59 = vld [vmem:[#allocation2 + $0xc] sm:$0xf]  ;;  %1256 = vmatpush.bf16.msrb.mxu1 %v2957_v48  ;;  %v2989_v11 = vld [vmem:[%s4066_s3 + $0x100] sm:$0xff]  ;;  %v1312_v37 = vsel %vm3600_vm15, %v2701_v3, %v1311_v53  ;;  %v3028_v53 = vld [vmem:[%s4066_s3 + $0x238] sm:$0xff] }
  0x5a   : > { %v3582_v61 = vld [vmem:[#allocation2 + $0x54] sm:$0xf]  ;;  %v564_v20 = vor.u32 %v562_v38, %v561_v52  ;;  %v566_v63 = vrot.slane %v561_v52, 4  ;;  %v712_v0 = vsel %vm3257_vm7, %v556_v46, %v711_v59  ;;  %v2947_v35 = vld [vmem:[#allocation2] sm:$0xff]  ;;  %v1315_v38 = vsel %vm3600_vm15, %v1313_v12, %v1314_v13 }
  0x5b   : > { %1137 = vmatmul.bf16.gmra.mxu2 %v3580_v55  ;;  %v985_v5 = vshrl.u32 %v3582_v61, 16  ;;  %v988_v6 = vshll.u32 %v3582_v61, 16  ;;  %713 = vst [vmem:[#allocation2 + $0xc] sm:$0xf] %v712_v0  ;;  %v715_v8 = vld [vmem:[#allocation2 + $0x14] sm:$0x1]  ;;  %1603 = vmatpush.bf16.msrb.mxu3 %v2981_v60  ;;  %v1382_v52 = vunpack.c.l.b16 %v1315_v38 }
  0x5c   : > { %v565_v9 = vsel %vm3263_vm8, %v557_v51, %v564_v20  ;;  %v716_v10 = vsel %vm3207_vm2, %v566_v63, %v715_v8  ;;  %1759 = vmatpush.bf16.msrb.mxu0 %v2990_v7  ;;  %2029 = vmatpush.bf16.msra.mxu2 %v3012_v17  ;;  %v1381_v51 = vunpack.c.l.b16 %v1312_v37  ;;  %v3004_v60 = vld [vmem:[%s4066_s3 + $0x178] sm:$0xff] }
  0x5d   : > { %v987_v14 = vrot.slane %v985_v5, 4  ;;  %v990_v1 = vrot.slane %v988_v6, 5  ;;  %714 = vst [vmem:[#allocation2 + $0x10] sm:$0xf] %v565_v9  ;;  %1894 = vmatpush.bf16.msra.mxu1 %v3004_v60 }
  0x5e   : > { %717 = vst [vmem:[#allocation2 + $0x14] sm:$0x1] %v716_v10 }
  0x5f   : > { %v3613_v25 = vld [vmem:[#allocation2 + $0x58] sm:$0xf]  ;;  %v991_v27 = vor.u32 %v990_v1, %v987_v14  ;;  %2186 = vmatpush.bf16.msra.mxu3 %v3020_v21  ;;  %v1397_v1 = vpack.c.b16 %v1382_v52, %v1381_v51  ;;  %v3019_v51 = vld [vmem:[%s4066_s3 + $0x1f0] sm:$0xff] }
  0x60   : > { %v3615_v29 = vld [vmem:[#allocation2 + $0x5c] sm:$0x1]  ;;  %v994_v30 = vshll.u32 %v3613_v25, 16  ;;  %v998_v32 = vshrl.u32 %v3613_v25, 16  ;;  %1760 = vmatpush.bf16.msrb.mxu0 %v2989_v11 }
  0x61   : > { %v992_v39 = vrot.slane %v991_v27, 4  ;;  %v1004_v40 = vshll.u32 %v3615_v29, 16 }
  0x62   : > { %v996_v43 = vrot.slane %v994_v30, 5  ;;  %v1000_v44 = vrot.slane %v998_v32, 4  ;;  %v770_v46 = vld [vmem:[#allocation2 + $0xc] sm:$0xf] }
  0x63   : > { %v841_v47 = vshrl.u32 %v770_v46, 16  ;;  %v844_v48 = vshll.u32 %v770_v46, 16  ;;  %v1006_v63 = vrot.slane %v1004_v40, 5  ;;  %v2702_v40 = vrot.slane %v770_v46, 9  ;;  %2187 = vmatpush.bf16.msra.mxu3 %v3019_v51 }
  0x64   : > { %v997_v59 = vsel %vm3347_vm11, %v992_v39, %v996_v43  ;;  %v1001_v20 = vor.u32 %v1000_v44, %v996_v43  ;;  %v771_v0 = vld [vmem:[#allocation2 + $0x10] sm:$0xf]  ;;  %1257 = vmatmul.bf16.vlgmr.msrb.gmra.mxu1 %v2947_v35  ;;  %2327 = vmatpush.bf16.msra.mxu0 %v3028_v53  ;;  %v1339_v51 = vrot.slane %v3334_v36, 5 }
  0x65   : > { %v772_v7 = vld [vmem:[#allocation2 + $0x14] sm:$0x1]  ;;  %v843_v3 = vrot.slane %v841_v47, 4  ;;  %v846_v5 = vrot.slane %v844_v48, 5  ;;  %v850_v6 = vshll.u32 %v771_v0, 16  ;;  %v854_v9 = vshrl.u32 %v771_v0, 16 }
  0x66   : > { %v1002_v8 = vrot.slane %v1001_v20, 4  ;;  %v860_v10 = vshll.u32 %v772_v7, 16  ;;  %v1038_v12 = vunpack.c.l.b16 %v997_v59  ;;  %v1318_v21 = vrot.slane %v771_v0, 5  ;;  %v3011_v48 = vld [vmem:[%s4066_s3 + $0x1b0] sm:$0xff] }
  0x67   : > { %v847_v13 = vor.u32 %v846_v5, %v843_v3  ;;  %v852_v14 = vrot.slane %v850_v6, 5  ;;  %v856_v11 = vrot.slane %v854_v9, 4  ;;  %v1321_v44 = vrot.slane %v772_v7, 5  ;;  %2030 = vmatpush.bf16.msra.mxu2 %v3011_v48  ;;  %v2948_v20 = vld [vmem:[#allocation2 + $0xc] sm:$0xff]  ;;  %v3025_v48 = vld [vmem:[%s4066_s3 + $0x220] sm:$0xff] }
  0x68   : > { %v1007_v17 = vsel %vm3347_vm11, %v1002_v8, %v1006_v63  ;;  %v862_v35 = vrot.slane %v860_v10, 5  ;;  %v1320_v43 = vrot.slane %v1318_v21, 4  ;;  %v1319_v46 = vsel %vm3600_vm15, %v2702_v40, %v1318_v21  ;;  %v3003_v7 = vld [vmem:[%s4066_s3 + $0x170] sm:$0xff] }
  0x69   : > { %v1039_v27 = vunpack.c.l.b16 %v1007_v17  ;;  %v848_v30 = vrot.slane %v847_v13, 4  ;;  %v857_v32 = vor.u32 %v856_v11, %v852_v14  ;;  %v1383_v63 = vunpack.c.l.b16 %v1319_v46  ;;  %v3027_v3 = vld [vmem:[%s4066_s3 + $0x230] sm:$0xff]  ;;  %1895 = vmatpush.bf16.msra.mxu1 %v3003_v7  ;;  %v3018_v13 = vld [vmem:[%s4066_s3 + $0x1e8] sm:$0xff]  ;;  %v3024_v7 = vld [vmem:[%s4066_s3 + $0x218] sm:$0xff] }
  0x6a   : > { %v1322_v53 = vsel %vm3600_vm15, %v1320_v43, %v1321_v44  ;;  %2328 = vmatpush.bf16.msra.mxu0 %v3027_v3  ;;  %v1325_v6 = vrot.slane %v3314_v19, 5  ;;  %v2703_v8 = vrot.slane %v3306_v15, 9  ;;  %v1328_v10 = vrot.slane %v3321_v23, 5  ;;  %2188 = vmatpush.bf16.msra.mxu3 %v3018_v13  ;;  %v3673_v19 = vld [vmem:[#allocation2 + $0x18] sm:$0xff]  ;;  %v3002_v17 = vld [vmem:[%s4066_s3 + $0x168] sm:$0xff]  ;;  %v3015_v13 = vld [vmem:[%s4066_s3 + $0x1d0] sm:$0xff] }
  0x6b   : > { %v3634_v37 = vpack.c.b16 %v1039_v27, %v1038_v12  ;;  %v853_v38 = vsel %vm3347_vm11, %v848_v30, %v852_v14  ;;  %1469 = vmatmul.bf16.vlgmr.msrb.gmra.mxu2 %v1397_v1  ;;  %v858_v39 = vrot.slane %v857_v32, 4  ;;  %v1384_v0 = vunpack.c.l.b16 %v1322_v53  ;;  %v3010_v12 = vld [vmem:[%s4066_s3 + $0x1a8] sm:$0xff]  ;;  %v3008_v53 = vld [vmem:[%s4066_s3 + $0x198] sm:$0xff] }
  0x6c   : > { %v1026_v47 = vunpack.c.l.b16 %v853_v38  ;;  %v1327_v9 = vrot.slane %v1325_v6, 4  ;;  %v1326_v14 = vsel %vm3600_vm15, %v2703_v8, %v1325_v6  ;;  %2031 = vmatpush.bf16.msra.mxu2 %v3010_v12  ;;  %v3026_v11 = vld [vmem:[%s4066_s3 + $0x228] sm:$0xff]  ;;  %v2704_v21 = vrot.slane %v3473_v18, 9  ;;  %v3007_v12 = vld [vmem:[%s4066_s3 + $0x190] sm:$0xff] }
  0x6d   : > { %1147 = vmatmul.bf16.gmra.mxu3 %v3634_v37  ;;  %v863_v52 = vsel %vm3347_vm11, %v858_v39, %v862_v35  ;;  %v3657_v5 = vpack.c.b16 %v1384_v0, %v1383_v63  ;;  %v1385_v23 = vunpack.c.l.b16 %v1326_v14  ;;  %v1332_v27 = vrot.slane %v3477_v26, 5  ;;  %1896 = vmatpush.bf16.msra.mxu1 %v3002_v17  ;;  %v3009_v26 = vld [vmem:[%s4066_s3 + $0x1a0] sm:$0xff]  ;;  %v3000_v0 = vld [vmem:[%s4066_s3 + $0x158] sm:$0xff] }
  0x6e   : > { %v1027_v60 = vunpack.c.l.b16 %v863_v52  ;;  %v1329_v15 = vsel %vm3600_vm15, %v1327_v9, %v1328_v10  ;;  %v1335_v30 = vrot.slane %v3481_v33, 5  ;;  %2329 = vmatpush.bf16.msra.mxu0 %v3026_v11  ;;  %v3017_v33 = vld [vmem:[%s4066_s3 + $0x1e0] sm:$0xff]  ;;  %v2705_v52 = vrot.slane %v3329_v31, 9 }
  0x6f   : > { %v1386_v1 = vunpack.c.l.b16 %v1329_v15  ;;  %v1333_v32 = vsel %vm3600_vm15, %v2704_v21, %v1332_v27  ;;  %v1334_v35 = vrot.slane %v1332_v27, 4  ;;  %2189 = vmatpush.bf16.msra.mxu3 %v3017_v33  ;;  %v3701_v44 = vld [vmem:[#allocation2 + $0x24] sm:$0xff]  ;;  %v1342_v46 = vrot.slane %v3338_v41, 5  ;;  %v421_v17 = vld [vmem:[#allocation2 + $0x60] sm:$0x1] }
  0x70   : > { %v1041_v59 = vpack.c.b16 %v1027_v60, %v1026_v47  ;;  %v1387_v38 = vunpack.c.l.b16 %v1333_v32  ;;  %2032 = vmatpush.bf16.msra.mxu2 %v3009_v26  ;;  %v3001_v47 = vld [vmem:[%s4066_s3 + $0x160] sm:$0xff]  ;;  %v1341_v60 = vrot.slane %v1339_v51, 4  ;;  %v1340_v36 = vsel %vm3600_vm15, %v2705_v52, %v1339_v51  ;;  %v548_v21 = vld [vmem:[%s3242_s17 + $0x38] sm:$0xf]  ;;  %v549_v27 = vld [vmem:[%s3242_s17 + $0x3c] sm:$0xf] }
  0x71   : > { %v3687_v39 = vpack.c.b16 %v1386_v1, %v1385_v23  ;;  %v1336_v40 = vsel %vm3600_vm15, %v1334_v35, %v1335_v30  ;;  %1897 = vmatpush.bf16.msra.mxu1 %v3001_v47  ;;  %v1389_v41 = vunpack.c.l.b16 %v1340_v36  ;;  %v1346_v6 = vrot.slane %v3492_v57, 5  ;;  %v2999_v23 = vld [vmem:[%s4066_s3 + $0x150] sm:$0xff]  ;;  %v3006_v36 = vld [vmem:[%s4066_s3 + $0x188] sm:$0xff]  ;;  %s366_s17 = sadd.s32 8, %s3200_s27 }
  0x72   : > { %1117 = vmatmul.bf16.gmra.mxu0 %v1041_v59  ;;  %v1388_v43 = vunpack.c.l.b16 %v1336_v40  ;;  %v1343_v31 = vsel %vm3600_vm15, %v1341_v60, %v1342_v46  ;;  %v2706_v8 = vrot.slane %v3488_v54, 9  ;;  %v1349_v10 = vrot.slane %v3524_v49, 5  ;;  %v3753_v49 = vld [vmem:[#allocation2 + $0x3c] sm:$0xff]  ;;  %v3023_v1 = vld [vmem:[%s4066_s3 + $0x210] sm:$0xff]  ;;  %p3900_p10 = scmp.lt.s32.totalorder %s366_s17, 15 }
  0x73   : > { %2330 = vmatpush.bf16.msra.mxu0 %v3025_v48  ;;  %v1390_v63 = vunpack.c.l.b16 %v1343_v31  ;;  %v1348_v9 = vrot.slane %v1346_v6, 4  ;;  %v422_v11 = vsel %vm3207_vm2, 0, %v421_v17  ;;  %v670_v32 = vshrl.u32 %v548_v21, 16  ;;  %v3014_v31 = vld [vmem:[%s4066_s3 + $0x1c8] sm:$0xff] }
  0x74   : > { %1262 = vmatmul.bf16.gmra.mxu1 %v2948_v20  ;;  %v3691_v18 = vpack.c.b16 %v1388_v43, %v1387_v38  ;;  %2033 = vmatpush.bf16.msra.mxu2 %v3008_v53  ;;  %v1347_v54 = vsel %vm3600_vm15, %v2706_v8, %v1346_v6  ;;  %423 = vst [vmem:[#allocation2 + $0x60] sm:$0x1] %v422_v11  ;;  %v678_v35 = vshrl.u32 %v549_v27, 16  ;;  %v453_v38 = vld [vmem:[#allocation2 + $0x68] sm:$0x1]  ;;  %v1353_v40 = vrot.slane %v3361_v58, 5 }
  0x75   : > { %1898 = vmatpush.bf16.msra.mxu1 %v3000_v0  ;;  %v3736_v3 = vpack.c.b16 %v1390_v63, %v1389_v41  ;;  %v1350_v57 = vsel %vm3600_vm15, %v1348_v9, %v1349_v10  ;;  %v1391_v14 = vunpack.c.l.b16 %v1347_v54  ;;  %v454_v43 = vsel %vm3213_vm4, 0, %v453_v38  ;;  %v3794_v9 = vld [vmem:[#allocation2 + $0x48] sm:$0xff]  ;;  %s4097_s17 = smov (!%p3900_p10, %s366_s17), 15 }
  0x76   : > { %v1392_v15 = vunpack.c.l.b16 %v1350_v57  ;;  %v672_v26 = vrot.slane %v670_v32, 7  ;;  %v673_v33 = vshll.u32 %v548_v21, 16  ;;  %v680_v47 = vrot.slane %v678_v35, 7  ;;  %455 = vst [vmem:[#allocation2 + $0x68] sm:$0x1] %v454_v43  ;;  %v3022_v54 = vld [vmem:[%s4066_s3 + $0x208] sm:$0xff] }
  0x77   : > { %2331 = vmatpush.bf16.msra.mxu0 %v3024_v7  ;;  %v681_v48 = vshll.u32 %v549_v27, 16  ;;  %v2707_v46 = vrot.slane %v3352_v50, 9  ;;  %v1355_v53 = vrot.slane %v1353_v40, 4  ;;  %v1363_v11 = vrot.slane %v3615_v29, 5  ;;  %v3005_v21 = vld [vmem:[%s4066_s3 + $0x180] sm:$0xff]  ;;  %v3827_v29 = vld [vmem:[#allocation2 + $0x54] sm:$0xff] }
  0x78   : > { %2034 = vmatpush.bf16.msra.mxu2 %v3007_v12  ;;  %v3767_v30 = vpack.c.b16 %v1392_v15, %v1391_v14  ;;  %v675_v51 = vor.u32 %v673_v33, %v672_v26  ;;  %v676_v52 = vrot.slane %v672_v26, 4  ;;  %v1360_v15 = vrot.slane %v3613_v25, 5  ;;  %s4099_s17 = smov (!%p3900_p10, %s4097_s17), 15 }
  0x79   : > { %1899 = vmatpush.bf16.msra.mxu1 %v2999_v23  ;;  %v683_v60 = vor.u32 %v681_v48, %v680_v47  ;;  %v1354_v0 = vsel %vm3600_vm15, %v2707_v46, %v1353_v40  ;;  %v2997_v40 = vld [vmem:[%s4066_s3 + $0x140] sm:$0xff]  ;;  %s2598_s27 = sshll.u32 %s4099_s17, 1 }
  0x7a   : > { %v1393_v10 = vunpack.c.l.b16 %v1354_v0  ;;  %v1362_v17 = vrot.slane %v1360_v15, 4  ;;  %v3021_v46 = vld [vmem:[%s4066_s3 + $0x200] sm:$0xff]  ;;  %s375_s10 = sadd.s32 %s2598_s27, %s3217_s6 }
  0x7b   : > { %1474 = vmatmul.bf16.gmra.mxu2 %v3657_v5  ;;  %2332 = vmatpush.bf16.msra.mxu0 %v3023_v1  ;;  %v684_v41 = vsel %vm3263_vm8, %v676_v52, %v683_v60  ;;  %v760_v63 = vld [vmem:[#allocation2 + $0x60] sm:$0xf]  ;;  %v2708_v1 = vrot.slane %v3582_v61, 9  ;;  %s2600_s12 = sshll.u32 %s375_s10, 2 }
  0x7c   : > { %v761_v50 = vsel %vm3257_vm7, %v675_v51, %v760_v63  ;;  %763 = vst [vmem:[#allocation2 + $0x64] sm:$0xf] %v684_v41  ;;  %2035 = vmatpush.bf16.msra.mxu2 %v3006_v36  ;;  %v1364_v25 = vsel %vm3600_vm15, %v1362_v17, %v1363_v11  ;;  %v3013_v61 = vld [vmem:[%s4066_s3 + $0x1c0] sm:$0xff]  ;;  %s377_s16 = scalar_lea.vmem %s4065_s2, %s2600_s12 }
  0x7d   : > { %1604 = vmatmul.bf16.vlgmr.msrb.gmra.mxu3 %v2948_v20  ;;  %v3726_v20 = vld [vmem:[#allocation2 + $0x30] sm:$0xff]  ;;  %762 = vst [vmem:[#allocation2 + $0x60] sm:$0xf] %v761_v50  ;;  %v764_v6 = vld [vmem:[#allocation2 + $0x68] sm:$0x1]  ;;  %v1361_v27 = vsel %vm3600_vm15, %v2708_v1, %v1360_v15  ;;  %v1396_v38 = vunpack.c.l.b16 %v1364_v25 }
  0x7e   : > { %v1395_v35 = vunpack.c.l.b16 %v1361_v27 }
  0x7f   : > { %2333 = vmatpush.bf16.msra.mxu0 %v3022_v54 }
  0x80   : > { %2036 = vmatpush.bf16.msra.mxu2 %v3005_v21 }
  0x82   : > { %1761 = vmatmul.bf16.vlgmr.msrb.gmra.mxu0 %v1041_v59  ;;  %v3016_v59 = vld [vmem:[%s4066_s3 + $0x1d8] sm:$0xff] }
  0x83   : > { %2190 = vmatpush.bf16.msra.mxu3 %v3016_v59  ;;  %v1356_v59 = vrot.slane %v3366_v62, 5  ;;  %v685_v62 = vrot.slane %v680_v47, 4  ;;  %v3838_v33 = vld [vmem:[#allocation2 + $0x64] sm:$0xf]  ;;  %v3840_v47 = vpack.c.b16 %v1396_v38, %v1395_v35  ;;  %2334 = vmatpush.bf16.msra.mxu0 %v3021_v46 }
  0x84   : > { %1267 = vmatmul.bf16.gmra.mxu1 %v3673_v19  ;;  %v3836_v26 = vld [vmem:[#allocation2 + $0x60] sm:$0xf]  ;;  %v1671_v52 = vshll.u32 %v3838_v33, 16  ;;  %v1675_v60 = vshrl.u32 %v3838_v33, 16 }
  0x85   : > { %v1357_v7 = vsel %vm3600_vm15, %v1355_v53, %v1356_v59  ;;  %v765_v8 = vsel %vm3207_vm2, %v685_v62, %v764_v6  ;;  %v1662_v48 = vshrl.u32 %v3836_v26, 16  ;;  %v1665_v51 = vshll.u32 %v3836_v26, 16  ;;  %v3870_v25 = vld [vmem:[#allocation2 + $0x60] sm:$0xff] }
  0x86   : > { %766 = vst [vmem:[#allocation2 + $0x68] sm:$0x1] %v765_v8  ;;  %v1394_v12 = vunpack.c.l.b16 %v1357_v7  ;;  %v1673_v63 = vrot.slane %v1671_v52, 5  ;;  %v1677_v50 = vrot.slane %v1675_v60, 4  ;;  %v2809_v2 = vrot.slane %v3836_v26, 9 }
  0x87   : > { %2191 = vmatpush.bf16.msra.mxu3 %v3015_v13  ;;  %v2998_v13 = vld [vmem:[%s4066_s3 + $0x148] sm:$0xff]  ;;  %v1667_v41 = vrot.slane %v1665_v51, 5 }
  0x88   : > { %1900 = vmatpush.bf16.msra.mxu1 %v2998_v13  ;;  %v3804_v57 = vpack.c.b16 %v1394_v12, %v1393_v10  ;;  %v1678_v6 = vor.u32 %v1677_v50, %v1673_v63 }
  0x8a   : > { %v1679_v54 = vrot.slane %v1678_v6, 4 }
  0x8b   : > { %1479 = vmatmul.bf16.gmra.mxu2 %v3687_v39  ;;  %2192 = vmatpush.bf16.msra.mxu3 %v3014_v31  ;;  %v1664_v31 = vrot.slane %v1662_v48, 4 }
  0x8c   : > { %1901 = vmatpush.bf16.msra.mxu1 %v2997_v40 }
  0x8d   : > { %1609 = vmatmul.bf16.gmra.mxu3 %v3673_v19  ;;  %v3855_v62 = vld [vmem:[#allocation2 + $0x68] sm:$0x1]  ;;  %v1668_v7 = vor.u32 %v1667_v41, %v1664_v31 }
  0x8e   : > { %v1681_v8 = vshll.u32 %v3855_v62, 16 }
  0x8f   : > { %2193 = vmatpush.bf16.msra.mxu3 %v3013_v61  ;;  %v1669_v13 = vrot.slane %v1668_v7, 4 }
  0x90   : > { %v1683_v15 = vrot.slane %v1681_v8, 5 }
  0x91   : > { %v1674_v21 = vsel %vm3347_vm11, %v1669_v13, %v1673_v63 }
  0x92   : > { %1766 = vmatmul.bf16.gmra.mxu0 %v3386_v22  ;;  %v1684_v27 = vsel %vm3347_vm11, %v1679_v54, %v1683_v15  ;;  %v1701_v38 = vunpack.c.l.b16 %v1674_v21 }
  0x93   : > { %v1702_v40 = vunpack.c.l.b16 %v1684_v27 }
  0x94   : > { %1272 = vmatmul.bf16.gmra.mxu1 %v3701_v44 }
  0x95   : > { %v3874_v48 = vpack.c.b16 %v1702_v40, %v1701_v38 }
  0x9b   : > { %1484 = vmatmul.bf16.gmra.mxu2 %v3691_v18 }
  0x9d   : > { %1614 = vmatmul.bf16.gmra.mxu3 %v3701_v44 }
  0xa2   : > { %1771 = vmatmul.bf16.gmra.mxu0 %v3528_v56 }
  0xa4   : > { %1277 = vmatmul.bf16.gmra.mxu1 %v3726_v20 }
  0xab   : > { %1489 = vmatmul.bf16.gmra.mxu2 %v3736_v3 }
  0xad   : > { %1619 = vmatmul.bf16.gmra.mxu3 %v3726_v20 }
  0xb1   : > { %v3776_v58 = vpop.f32.mrf.mxu1 }
  0xb2   : > { %1776 = vmatmul.bf16.gmra.mxu0 %v3403_v42 }
  0xb4   : > { %1282 = vmatmul.bf16.gmra.mxu1 %v3753_v49 }
  0xb9   : > { %v3806_v14 = vpop.f32.mrf.mxu1  ;;  %v3809_v23 = vpop.f32.mrf.mxu2 }
  0xbb   : > { %1494 = vmatmul.bf16.gmra.mxu2 %v3767_v30 }
  0xbd   : > { %1624 = vmatmul.bf16.gmra.mxu3 %v3753_v49 }
  0xc0   : > { %v3851_v59 = vpop.f32.mrf.mxu3 }
  0xc1   : > { %v3833_v43 = vpop.f32.mrf.mxu2 }
  0xc2   : > { %1781 = vmatmul.bf16.gmra.mxu0 %v3580_v55 }
  0xc4   : > { %1287 = vmatmul.bf16.gmra.mxu1 %v3794_v9 }
  0xc8   : > { %v3862_v1 = vpop.f32.mrf.mxu3 }
  0xcb   : > { %1499 = vmatmul.bf16.gmra.mxu2 %v3804_v57 }
  0xcd   : > { %1629 = vmatmul.bf16.gmra.mxu3 %v3794_v9 }
  0xce   : > { %v1113_v36 = vpop.f32.mrf.mxu0 }
  0xd1   : > { %v3825_v32 = vpop.f32.mrf.mxu1 }
  0xd2   : > { %1786 = vmatmul.bf16.gmra.mxu0 %v3431_v24 }
  0xd4   : > { %1292 = vmatmul.bf16.gmra.mxu1 %v3827_v29 }
  0xd6   : > { %v1115_v17 = vpop.f32.mrf.mxu0 }
  0xd9   : > { %v3849_v53 = vpop.f32.mrf.mxu1 }
  0xdb   : > { %1504 = vmatmul.bf16.gmra.mxu2 %v3840_v47 }
  0xdd   : > { %1634 = vmatmul.bf16.gmra.mxu3 %v3827_v29 }
  0xde   : > { %v3857_v0 = vpop.f32.mrf.mxu2 }
  0xe1   : > { %v1258_v10 = vpop.f32.mrf.mxu1 }
  0xe2   : > { %v1259_v12 = vadd.f32 %v1258_v10, %v1113_v36  ;;  %1791 = vmatmul.bf16.gmra.mxu0 %v3634_v37 }
  0xe4   : > { %1902 = vmatmul.bf16.vlgmr.msra.gmra.mxu1 %v3657_v5 }
  0xe6   : > { %v3864_v11 = vpop.f32.mrf.mxu2 }
  0xe9   : > { %v1260_v61 = vpop.f32.mrf.mxu1 }
  0xea   : > { %v1261_v35 = vadd.f32 %v1260_v61, %v1115_v17 }
  0xeb   : > { %2037 = vmatmul.bf16.vlgmr.msra.gmra.mxu2 %v3673_v19 }
  0xed   : > { %1639 = vmatmul.bf16.gmra.mxu3 %v3870_v25 }
  0xee   : > { %v1470_v5 = vpop.f32.mrf.mxu2 }
  0xef   : > { %v1510_v51 = vadd.f32 %v1470_v5, %v1259_v12  ;;  %v1118_v52 = vpop.f32.mrf.mxu0 }
  0xf0   : > { %v3876_v60 = vpop.f32.mrf.mxu3 }
  0xf1   : > { %v1263_v46 = vpop.f32.mrf.mxu1 }
  0xf2   : > { %v1264_v36 = vadd.f32 %v1263_v46, %v1118_v52  ;;  %1796 = vmatmul.bf16.gmra.mxu0 %v3874_v48 }
  0xf4   : > { %1907 = vmatmul.bf16.gmra.mxu1 %v3687_v39 }
  0xf6   : > { %v1472_v31 = vpop.f32.mrf.mxu2 }
  0xf7   : > { %v1511_v41 = vadd.f32 %v1472_v31, %v1261_v35  ;;  %v1120_v63 = vpop.f32.mrf.mxu0 }
  0xf8   : > { %v3880_v50 = vpop.f32.mrf.mxu3 }
  0xf9   : > { %v1265_v19 = vpop.f32.mrf.mxu1 }
  0xfa   : > { %v1266_v7 = vadd.f32 %v1265_v19, %v1120_v63 }
  0xfb   : > { %2042 = vmatmul.bf16.gmra.mxu2 %v3701_v44 }
  0xfd   : > { %2194 = vmatmul.bf16.vlgmr.msra.gmra.mxu3 %v3386_v22 }
  0xfe   : > { %v1475_v6 = vpop.f32.mrf.mxu2 }
  0xff   : > { %v1512_v8 = vadd.f32 %v1475_v6, %v1264_v36  ;;  %v1762_v10 = vpop.f32.mrf.mxu0 }
 0x100   : > { %v1605_v12 = vpop.f32.mrf.mxu3 }
 0x101   : > { %v1645_v13 = vadd.f32 %v1605_v12, %v1510_v51  ;;  %v1268_v54 = vpop.f32.mrf.mxu1 }
 0x102   : > { %v1269_v15 = vadd.f32 %v1268_v54, %v3776_v58  ;;  %2335 = vmatmul.bf16.vlgmr.msra.gmra.mxu0 %v3687_v39 }
 0x103   : > { %v3886_v17 = vadd.f32 %v1762_v10, %v1645_v13 }
 0x104   : > { %1912 = vmatmul.bf16.gmra.mxu1 %v3691_v18 }
 0x106   : > { %v1477_v21 = vpop.f32.mrf.mxu2 }
 0x107   : > { %v1513_v27 = vadd.f32 %v1477_v21, %v1266_v7  ;;  %v1764_v61 = vpop.f32.mrf.mxu0 }
 0x108   : > { %v1607_v44 = vpop.f32.mrf.mxu3 }
 0x109   : > { %v1646_v35 = vadd.f32 %v1607_v44, %v1511_v41  ;;  %v1270_v22 = vpop.f32.mrf.mxu1 }
 0x10a   : > { %v1271_v38 = vadd.f32 %v1270_v22, %v3806_v14  ;;  %v424_v22 = vld [vmem:[#allocation2 + $0x6c] sm:$0x1] }
 0x10b   : > { %2047 = vmatmul.bf16.gmra.mxu2 %v3726_v20  ;;  %v3891_v40 = vadd.f32 %v1764_v61, %v1646_v35 }
 0x10d   : > { %2199 = vmatmul.bf16.gmra.mxu3 %v3528_v56 }
 0x10e   : > { %v1480_v39 = vpop.f32.mrf.mxu2 }
 0x10f   : > { %v1514_v58 = vadd.f32 %v1480_v39, %v1269_v15  ;;  %v1767_v5 = vpop.f32.mrf.mxu0 }
 0x110   : > { %v1610_v51 = vpop.f32.mrf.mxu3 }
 0x111   : > { %v1647_v52 = vadd.f32 %v1610_v51, %v1512_v8  ;;  %v1273_v46 = vpop.f32.mrf.mxu1 }
 0x112   : > { %v1274_v36 = vadd.f32 %v1273_v46, %v3825_v32  ;;  %2340 = vmatmul.bf16.gmra.mxu0 %v3691_v18 }
 0x113   : > { %v3896_v31 = vadd.f32 %v1767_v5, %v1647_v52  ;;  %v461_v52 = vld [vmem:[%s377_s16] sm:$0xf] }
 0x114   : > { %1917 = vmatmul.bf16.gmra.mxu1 %v3736_v3 }
 0x116   : > { %v1482_v14 = vpop.f32.mrf.mxu2 }
 0x117   : > { %v1515_v20 = vadd.f32 %v1482_v14, %v1271_v38  ;;  %v1769_v41 = vpop.f32.mrf.mxu0 }
 0x118   : > { %v1612_v63 = vpop.f32.mrf.mxu3 }
 0x119   : > { %v1648_v56 = vadd.f32 %v1612_v63, %v1513_v27  ;;  %v1275_v19 = vpop.f32.mrf.mxu1 }
 0x11a   : > { %v1276_v32 = vadd.f32 %v1275_v19, %v3849_v53 }
 0x11b   : > { %2052 = vmatmul.bf16.gmra.mxu2 %v3753_v49  ;;  %v3906_v18 = vadd.f32 %v1769_v41, %v1648_v56 }
 0x11d   : > { %2204 = vmatmul.bf16.gmra.mxu3 %v3403_v42 }
 0x11e   : > { %v1485_v7 = vpop.f32.mrf.mxu2 }
 0x11f   : > { %v1516_v6 = vadd.f32 %v1485_v7, %v1274_v36  ;;  %v1772_v8 = vpop.f32.mrf.mxu0  ;;  %v456_v36 = vld [vmem:[#allocation2 + $0x74] sm:$0x1] }
 0x120   : > { %v1615_v10 = vpop.f32.mrf.mxu3  ;;  %v457_v63 = vsel %vm3213_vm4, 0, %v456_v36 }
 0x121   : > { %v1649_v12 = vadd.f32 %v1615_v10, %v1514_v58  ;;  %v1278_v13 = vpop.f32.mrf.mxu1  ;;  %v471_v58 = vstv %s470_s13  ;;  %458 = vst [vmem:[#allocation2 + $0x74] sm:$0x1] %v457_v63 }
 0x122   : > { %2345 = vmatmul.bf16.gmra.mxu0 %v3736_v3  ;;  %v1279_v3 = vadd.f32 %v1278_v13, %v3809_v23  ;;  %vm472_vm0 = vcmp.eq.s32.totalorder %v471_v58, 1 }
 0x123   : > { %v3914_v53 = vadd.f32 %v1772_v8, %v1649_v12  ;;  %v473_v23 = vsel %vm472_vm0, %v461_v52, 0 }
 0x124   : > { %1922 = vmatmul.bf16.gmra.mxu1 %v3767_v30  ;;  %v510_v19 = vshll.u32 %v473_v23, 16 }
 0x126   : > { %v1487_v42 = vpop.f32.mrf.mxu2 }
 0x127   : > { %v1517_v49 = vadd.f32 %v1487_v42, %v1276_v32  ;;  %v1774_v54 = vpop.f32.mrf.mxu0 }
 0x128   : > { %v1617_v15 = vpop.f32.mrf.mxu3 }
 0x129   : > { %v1650_v21 = vadd.f32 %v1617_v15, %v1515_v20  ;;  %v1280_v27 = vpop.f32.mrf.mxu1  ;;  %v507_v20 = vshrl.u32 %v473_v23, 16 }
 0x12a   : > { %v1281_v56 = vadd.f32 %v1280_v27, %v3833_v43 }
 0x12b   : > { %2057 = vmatmul.bf16.gmra.mxu2 %v3794_v9  ;;  %v3920_v61 = vadd.f32 %v1774_v54, %v1650_v21  ;;  %v425_v9 = vsel %vm3207_vm2, 0, %v424_v22 }
 0x12c   : > { %426 = vst [vmem:[#allocation2 + $0x6c] sm:$0x1] %v425_v9 }
 0x12d   : > { %2209 = vmatmul.bf16.gmra.mxu3 %v3580_v55  ;;  %v462_v55 = vld [vmem:[%s377_s16 + $0x4] sm:$0xf] }
 0x12e   : > { %v1490_v44 = vpop.f32.mrf.mxu2  ;;  %v474_v46 = vsel %vm472_vm0, %v462_v55, 0  ;;  %v1824_v55 = vrot.slane %v3855_v62, 5 }
 0x12f   : > { %v1518_v35 = vadd.f32 %v1490_v44, %v1279_v3  ;;  %v1777_v38 = vpop.f32.mrf.mxu0  ;;  %v515_v41 = vshrl.u32 %v474_v46, 16  ;;  %v518_v32 = vshll.u32 %v474_v46, 16 }
 0x130   : > { %v1620_v39 = vpop.f32.mrf.mxu3 }
 0x131   : > { %v1651_v5 = vadd.f32 %v1620_v39, %v1516_v6  ;;  %v1283_v51 = vpop.f32.mrf.mxu1  ;;  %v509_v6 = vrot.slane %v507_v20, 7 }
 0x132   : > { %2350 = vmatmul.bf16.gmra.mxu0 %v3767_v30  ;;  %v517_v30 = vrot.slane %v515_v41, 7  ;;  %v1284_v22 = vadd.f32 %v1283_v51, %v3857_v0 }
 0x133   : > { %v3930_v14 = vadd.f32 %v1777_v38, %v1651_v5  ;;  %v512_v13 = vor.u32 %v510_v19, %v509_v6  ;;  %v513_v42 = vrot.slane %v509_v6, 4  ;;  %v527_v15 = vld [vmem:[#allocation2 + $0x6c] sm:$0xf]  ;;  %v531_v38 = vld [vmem:[#allocation2 + $0x74] sm:$0x1]  ;;  %v1821_v5 = vrot.slane %v3838_v33, 5 }
 0x134   : > { %1927 = vmatmul.bf16.gmra.mxu1 %v3804_v57  ;;  %v520_v54 = vor.u32 %v518_v32, %v517_v30  ;;  %v522_v27 = vrot.slane %v517_v30, 4 }
 0x135   : > { %v528_v43 = vsel %vm3257_vm7, %v512_v13, %v527_v15  ;;  %v1823_v51 = vrot.slane %v1821_v5, 4 }
 0x136   : > { %v1492_v7 = vpop.f32.mrf.mxu2  ;;  %v521_v4 = vsel %vm3263_vm8, %v513_v42, %v520_v54  ;;  %529 = vst [vmem:[#allocation2 + $0x6c] sm:$0xf] %v528_v43  ;;  %v532_v34 = vsel %vm3207_vm2, %v522_v27, %v531_v38 }
 0x137   : > { %v1519_v8 = vadd.f32 %v1492_v7, %v1281_v56  ;;  %v1779_v10 = vpop.f32.mrf.mxu0  ;;  %530 = vst [vmem:[#allocation2 + $0x70] sm:$0xf] %v521_v4  ;;  %v1825_v33 = vsel %vm3600_vm15, %v1823_v51, %v1824_v55 }
 0x138   : > { %v1622_v12 = vpop.f32.mrf.mxu3  ;;  %533 = vst [vmem:[#allocation2 + $0x74] sm:$0x1] %v532_v34  ;;  %v1843_v41 = vunpack.c.l.b16 %v1825_v33 }
 0x139   : > { %v1652_v21 = vadd.f32 %v1622_v12, %v1517_v49  ;;  %v1285_v3 = vpop.f32.mrf.mxu1 }
 0x13b   : > { %2062 = vmatmul.bf16.gmra.mxu2 %v3827_v29  ;;  %v3941_v44 = vadd.f32 %v1779_v10, %v1652_v21 }
 0x13d   : > { %2214 = vmatmul.bf16.gmra.mxu3 %v3431_v24  ;;  %v1286_v24 = vadd.f32 %v1285_v3, %v3864_v11  ;;  %v794_v19 = vld [vmem:[#allocation2 + $0x6c] sm:$0xf] }
 0x13e   : > { %v1495_v49 = vpop.f32.mrf.mxu2  ;;  %v795_v32 = vld [vmem:[#allocation2 + $0x70] sm:$0xf]  ;;  %v2095_v12 = vshrl.u32 %v794_v19, 16  ;;  %v2098_v13 = vshll.u32 %v794_v19, 16 }
 0x13f   : > { %v1520_v39 = vadd.f32 %v1495_v49, %v1284_v22  ;;  %v1782_v28 = vpop.f32.mrf.mxu0  ;;  %v2108_v42 = vshrl.u32 %v795_v32, 16  ;;  %v2956_v27 = vld [vmem:[#allocation2 + $0x6c] sm:$0xff]  ;;  %v796_v22 = vld [vmem:[#allocation2 + $0x74] sm:$0x1] }
 0x140   : > { %v1625_v9 = vpop.f32.mrf.mxu3  ;;  %v2097_v15 = vrot.slane %v2095_v12, 4  ;;  %v2100_v21 = vrot.slane %v2098_v13, 5  ;;  %v2257_v33 = vrot.slane %v796_v22, 5 }
 0x141   : > { %v1653_v58 = vadd.f32 %v1625_v9, %v1518_v35  ;;  %v1288_v29 = vpop.f32.mrf.mxu1  ;;  %v2110_v4 = vrot.slane %v2108_v42, 4 }
 0x142   : > { %2355 = vmatmul.bf16.gmra.mxu0 %v3804_v57  ;;  %v1822_v57 = vsel %vm3600_vm15, %v2809_v2, %v1821_v5  ;;  %v1289_v26 = vadd.f32 %v1288_v29, %v3851_v59 }
 0x143   : > { %v3949_v52 = vadd.f32 %v1782_v28, %v1653_v58  ;;  %v1842_v62 = vunpack.c.l.b16 %v1822_v57  ;;  %v2101_v28 = vor.u32 %v2100_v21, %v2097_v15 }
 0x144   : > { %1932 = vmatmul.bf16.gmra.mxu1 %v3840_v47 }
 0x145   : > { %v2102_v29 = vrot.slane %v2101_v28, 4 }
 0x146   : > { %v1497_v0 = vpop.f32.mrf.mxu2 }
 0x147   : > { %v1521_v23 = vadd.f32 %v1497_v0, %v1286_v24  ;;  %v1784_v46 = vpop.f32.mrf.mxu0 }
 0x148   : > { %v1627_v35 = vpop.f32.mrf.mxu3 }
 0x149   : > { %v1654_v36 = vadd.f32 %v1627_v35, %v1519_v8  ;;  %v1290_v20 = vpop.f32.mrf.mxu1  ;;  %v1844_v8 = vpack.c.b16 %v1843_v41, %v1842_v62 }
 0x14a   : > { %v1291_v59 = vadd.f32 %v1290_v20, %v3862_v1 }
 0x14b   : > { %2067 = vmatmul.bf16.gmra.mxu2 %v3870_v25  ;;  %v3960_v11 = vadd.f32 %v1784_v46, %v1654_v36  ;;  %v2104_v25 = vshll.u32 %v795_v32, 16  ;;  %v2254_v46 = vrot.slane %v795_v32, 5 }
 0x14d   : > { %2219 = vmatmul.bf16.gmra.mxu3 %v3634_v37  ;;  %v2106_v3 = vrot.slane %v2104_v25, 5  ;;  %v2256_v57 = vrot.slane %v2254_v46, 4 }
 0x14e   : > { %v1500_v63 = vpop.f32.mrf.mxu2 }
 0x14f   : > { %v1522_v56 = vadd.f32 %v1500_v63, %v1289_v26  ;;  %v1787_v7 = vpop.f32.mrf.mxu0  ;;  %v2111_v9 = vor.u32 %v2110_v4, %v2106_v3  ;;  %v2107_v36 = vsel %vm3347_vm11, %v2102_v29, %v2106_v3  ;;  %v2258_v45 = vsel %vm3600_vm15, %v2256_v57, %v2257_v33 }
 0x150   : > { %v1630_v6 = vpop.f32.mrf.mxu3  ;;  %v2134_v26 = vunpack.c.l.b16 %v2107_v36  ;;  %v2276_v12 = vunpack.c.l.b16 %v2258_v45 }
 0x151   : > { %v1655_v30 = vadd.f32 %v1630_v6, %v1520_v39  ;;  %v1293_v10 = vpop.f32.mrf.mxu1  ;;  %v2112_v5 = vrot.slane %v2111_v9, 4 }
 0x152   : > { %2360 = vmatmul.bf16.gmra.mxu0 %v3840_v47  ;;  %v2114_v47 = vshll.u32 %v796_v22, 16  ;;  %v1294_v1 = vadd.f32 %v1293_v10, %v3876_v60  ;;  %v2910_v60 = vrot.slane %v794_v19, 9 }
 0x153   : > { %v3965_v37 = vadd.f32 %v1787_v7, %v1655_v30 }
 0x154   : > { %1937 = vmatmul.bf16.gmra.mxu1 %v1844_v8  ;;  %v2116_v24 = vrot.slane %v2114_v47, 5  ;;  %v2255_v6 = vsel %vm3600_vm15, %v2910_v60, %v2254_v46  ;;  %v3994_v47 = vld [vmem:[%s4067_s4] ss:$0 sm:$0xff] }
 0x155   : > { %v2275_v19 = vunpack.c.l.b16 %v2255_v6 }
 0x156   : > { %v1502_v54 = vpop.f32.mrf.mxu2  ;;  %v2117_v20 = vsel %vm3347_vm11, %v2112_v5, %v2116_v24 }
 0x157   : > { %v1523_v43 = vadd.f32 %v1502_v54, %v1291_v59  ;;  %v1789_v38 = vpop.f32.mrf.mxu0  ;;  %v2135_v62 = vunpack.c.l.b16 %v2117_v20 }
 0x158   : > { %v1632_v49 = vpop.f32.mrf.mxu3 }
 0x159   : > { %v1656_v34 = vadd.f32 %v1632_v49, %v1521_v23  ;;  %v1295_v39 = vpop.f32.mrf.mxu1 }
 0x15a   : > { %v1296_v41 = vadd.f32 %v1295_v39, %v3880_v50  ;;  %v2277_v50 = vpack.c.b16 %v2276_v12, %v2275_v19 }
 0x15b   : > { %2072 = vmatmul.bf16.gmra.mxu2 %v2956_v27  ;;  %v3968_v58 = vadd.f32 %v1789_v38, %v1656_v34 }
 0x15d   : > { %2224 = vmatmul.bf16.gmra.mxu3 %v3874_v48 }
 0x15e   : > { %v1505_v0 = vpop.f32.mrf.mxu2 }
 0x15f   : > { %v1524_v2 = vadd.f32 %v1505_v0, %v1294_v1  ;;  %v1792_v51 = vpop.f32.mrf.mxu0 }
 0x160   : > { %v1635_v55 = vpop.f32.mrf.mxu3 }
 0x161   : > { %v1657_v23 = vadd.f32 %v1635_v55, %v1522_v56  ;;  %v1903_v35 = vpop.f32.mrf.mxu1 }
 0x162   : > { %2365 = vmatmul.bf16.gmra.mxu0 %v1844_v8  ;;  %v2136_v8 = vpack.c.b16 %v2135_v62, %v2134_v26  ;;  %v1943_v22 = vadd.f32 %v1903_v35, %v3886_v17 }
 0x163   : > { %v3976_v48 = vadd.f32 %v1792_v51, %v1657_v23 }
 0x166   : > { %v1507_v63 = vpop.f32.mrf.mxu2 }
 0x167   : > { %v1525_v32 = vadd.f32 %v1507_v63, %v1296_v41  ;;  %v1794_v56 = vpop.f32.mrf.mxu0 }
 0x168   : > { %v1637_v7 = vpop.f32.mrf.mxu3 }
 0x169   : > { %v1658_v30 = vadd.f32 %v1637_v7, %v1523_v43  ;;  %v1905_v10 = vpop.f32.mrf.mxu1 }
 0x16a   : > { %v1944_v5 = vadd.f32 %v1905_v10, %v3891_v40 }
 0x16b   : > { %v3983_v13 = vadd.f32 %v1794_v56, %v1658_v30 }
 0x16d   : > { %2229 = vmatmul.bf16.gmra.mxu3 %v2136_v8 }
 0x16e   : > { %v2038_v25 = vpop.f32.mrf.mxu2 }
 0x16f   : > { %v1797_v42 = vpop.f32.mrf.mxu0  ;;  %v2078_v49 = vadd.f32 %v2038_v25, %v1943_v22 }
 0x170   : > { %v1640_v59 = vpop.f32.mrf.mxu3 }
 0x171   : > { %v1659_v54 = vadd.f32 %v1640_v59, %v1524_v2  ;;  %v1908_v15 = vpop.f32.mrf.mxu1 }
 0x172   : > { %2370 = vmatmul.bf16.gmra.mxu0 %v2277_v50  ;;  %v1945_v23 = vadd.f32 %v1908_v15, %v3896_v31 }
 0x173   : > { %v3985_v21 = vadd.f32 %v1797_v42, %v1659_v54 }
 0x176   : > { %v2040_v16 = vpop.f32.mrf.mxu2 }
 0x177   : > { %v1799_v3 = vpop.f32.mrf.mxu0  ;;  %v2079_v24 = vadd.f32 %v2040_v16, %v1944_v5 }
 0x178   : > { %v1642_v4 = vpop.f32.mrf.mxu3 }
 0x179   : > { %v1660_v43 = vadd.f32 %v1642_v4, %v1525_v32  ;;  %v1910_v27 = vpop.f32.mrf.mxu1 }
 0x17a   : > { %v1946_v62 = vadd.f32 %v1910_v27, %v3906_v18 }
 0x17b   : > { %v3988_v38 = vadd.f32 %v1799_v3, %v1660_v43 }
 0x17e   : > { %v2043_v34 = vpop.f32.mrf.mxu2 }
 0x17f   : > { %v2336_v39 = vpop.f32.mrf.mxu0  ;;  %v2080_v36 = vadd.f32 %v2043_v34, %v1945_v23 }
 0x180   : > { %v2195_v28 = vpop.f32.mrf.mxu3 }
 0x181   : > { %v2235_v9 = vadd.f32 %v2195_v28, %v2078_v49  ;;  %v1913_v1 = vpop.f32.mrf.mxu1 }
 0x182   : > { %v1947_v30 = vadd.f32 %v1913_v1, %v3914_v53 }
 0x183   : > { %v2376_v29 = vadd.f32 %v2336_v39, %v2235_v9 }
 0x185   : > { %v2396_v17 = vadd.f32 %v3994_v47, %v2376_v29 }
 0x186   : > { %v2045_v0 = vpop.f32.mrf.mxu2 }
 0x187   : > { %2412 = vst [vmem:[%s4000_s28] sm:$0xff] %v2396_v17  ;;  %v2338_v2 = vpop.f32.mrf.mxu0  ;;  %v2081_v63 = vadd.f32 %v2045_v0, %v1946_v62 }
 0x188   : > { %v2197_v51 = vpop.f32.mrf.mxu3 }
 0x189   : > { %v2236_v55 = vadd.f32 %v2197_v51, %v2079_v24  ;;  %v1915_v40 = vpop.f32.mrf.mxu1 }
 0x18a   : > { %v1948_v59 = vadd.f32 %v1915_v40, %v3920_v61 }
 0x18b   : > { %v2377_v46 = vadd.f32 %v2338_v2, %v2236_v55 }
 0x18d   : > { %v2397_v35 = vadd.f32 %v3994_v47, %v2377_v46 }
 0x18e   : > { %v2048_v20 = vpop.f32.mrf.mxu2 }
 0x18f   : > { %2413 = vst [vmem:[%s4000_s28 + $0x8] sm:$0xff] %v2397_v35  ;;  %v2341_v60 = vpop.f32.mrf.mxu0  ;;  %v2082_v10 = vadd.f32 %v2048_v20, %v1947_v30 }
 0x190   : > { %v2200_v57 = vpop.f32.mrf.mxu3 }
 0x191   : > { %v2237_v33 = vadd.f32 %v2200_v57, %v2080_v36  ;;  %v1918_v32 = vpop.f32.mrf.mxu1 }
 0x192   : > { %v1949_v22 = vadd.f32 %v1918_v32, %v3930_v14 }
 0x193   : > { %v2378_v26 = vadd.f32 %v2341_v60, %v2237_v33 }
 0x195   : > { %v2398_v41 = vadd.f32 %v3994_v47, %v2378_v26 }
 0x196   : > { %v2050_v56 = vpop.f32.mrf.mxu2 }
 0x197   : > { %2414 = vst [vmem:[%s4000_s28 + $0x10] sm:$0xff] %v2398_v41  ;;  %v2343_v31 = vpop.f32.mrf.mxu0  ;;  %v2083_v15 = vadd.f32 %v2050_v56, %v1948_v59 }
 0x198   : > { %v2202_v7 = vpop.f32.mrf.mxu3 }
 0x199   : > { %v2238_v6 = vadd.f32 %v2202_v7, %v2081_v63  ;;  %v1920_v12 = vpop.f32.mrf.mxu1 }
 0x19a   : > { %v1950_v29 = vadd.f32 %v1920_v12, %v3941_v44 }
 0x19b   : > { %v2379_v45 = vadd.f32 %v2343_v31, %v2238_v6 }
 0x19d   : > { %v2399_v8 = vadd.f32 %v3994_v47, %v2379_v45 }
 0x19e   : > { %v2053_v19 = vpop.f32.mrf.mxu2 }
 0x19f   : > { %2415 = vst [vmem:[%s4000_s28 + $0x18] sm:$0xff] %v2399_v8  ;;  %v2346_v18 = vpop.f32.mrf.mxu0  ;;  %v2084_v34 = vadd.f32 %v2053_v19, %v1949_v22 }
 0x1a0   : > { %v2205_v25 = vpop.f32.mrf.mxu3 }
 0x1a1   : > { %v2239_v50 = vadd.f32 %v2205_v25, %v2082_v10  ;;  %v1923_v43 = vpop.f32.mrf.mxu1 }
 0x1a2   : > { %v1951_v46 = vadd.f32 %v1923_v43, %v3949_v52 }
 0x1a3   : > { %v2380_v42 = vadd.f32 %v2346_v18, %v2239_v50 }
 0x1a5   : > { %v2400_v54 = vadd.f32 %v3994_v47, %v2380_v42 }
 0x1a6   : > { %v2055_v16 = vpop.f32.mrf.mxu2 }
 0x1a7   : > { %2416 = vst [vmem:[%s4000_s28 + $0x20] sm:$0xff] %v2400_v54  ;;  %v2348_v3 = vpop.f32.mrf.mxu0  ;;  %v2085_v24 = vadd.f32 %v2055_v16, %v1950_v29 }
 0x1a8   : > { %v2207_v53 = vpop.f32.mrf.mxu3 }
 0x1a9   : > { %v2240_v4 = vadd.f32 %v2207_v53, %v2083_v15  ;;  %v1925_v5 = vpop.f32.mrf.mxu1 }
 0x1aa   : > { %v1952_v33 = vadd.f32 %v1925_v5, %v3960_v11 }
 0x1ab   : > { %v2381_v27 = vadd.f32 %v2348_v3, %v2240_v4 }
 0x1ad   : > { %v2401_v49 = vadd.f32 %v3994_v47, %v2381_v27 }
 0x1ae   : > { %v2058_v39 = vpop.f32.mrf.mxu2 }
 0x1af   : > { %2417 = vst [vmem:[%s4000_s28 + $0x28] sm:$0xff] %v2401_v49  ;;  %v2351_v28 = vpop.f32.mrf.mxu0  ;;  %v2086_v40 = vadd.f32 %v2058_v39, %v1951_v46 }
 0x1b0   : > { %v2210_v61 = vpop.f32.mrf.mxu3 }
 0x1b1   : > { %v2241_v9 = vadd.f32 %v2210_v61, %v2084_v34  ;;  %v1928_v35 = vpop.f32.mrf.mxu1 }
 0x1b2   : > { %v1953_v7 = vadd.f32 %v1928_v35, %v3965_v37 }
 0x1b3   : > { %v2382_v1 = vadd.f32 %v2351_v28, %v2241_v9 }
 0x1b5   : > { %v2402_v17 = vadd.f32 %v3994_v47, %v2382_v1 }
 0x1b6   : > { %v2060_v0 = vpop.f32.mrf.mxu2 }
 0x1b7   : > { %2418 = vst [vmem:[%s4000_s28 + $0x30] sm:$0xff] %v2402_v17  ;;  %v2353_v2 = vpop.f32.mrf.mxu0  ;;  %v2087_v62 = vadd.f32 %v2060_v0, %v1952_v33 }
 0x1b8   : > { %v2212_v14 = vpop.f32.mrf.mxu3 }
 0x1b9   : > { %v2242_v51 = vadd.f32 %v2212_v14, %v2085_v24  ;;  %v1930_v41 = vpop.f32.mrf.mxu1 }
 0x1ba   : > { %v1954_v12 = vadd.f32 %v1930_v41, %v3968_v58 }
 0x1bb   : > { %v2383_v55 = vadd.f32 %v2353_v2, %v2242_v51 }
 0x1bd   : > { %v2403_v23 = vadd.f32 %v3994_v47, %v2383_v55 }
 0x1be   : > { %v2063_v36 = vpop.f32.mrf.mxu2 }
 0x1bf   : > { %2419 = vst [vmem:[%s4000_s28 + $0x38] sm:$0xff] %v2403_v23  ;;  %v2356_v44 = vpop.f32.mrf.mxu0  ;;  %v2088_v45 = vadd.f32 %v2063_v36, %v1953_v7 }
 0x1c0   : > { %v2215_v20 = vpop.f32.mrf.mxu3 }
 0x1c1   : > { %v2243_v60 = vadd.f32 %v2215_v20, %v2086_v40  ;;  %v1933_v10 = vpop.f32.mrf.mxu1 }
 0x1c2   : > { %v1955_v15 = vadd.f32 %v1933_v10, %v3976_v48 }
 0x1c3   : > { %v2384_v57 = vadd.f32 %v2356_v44, %v2243_v60 }
 0x1c5   : > { %v2404_v26 = vadd.f32 %v3994_v47, %v2384_v57 }
 0x1c6   : > { %v2065_v56 = vpop.f32.mrf.mxu2 }
 0x1c7   : > { %2420 = vst [vmem:[%s4000_s28 + $0x40] sm:$0xff] %v2404_v26  ;;  %v2358_v63 = vpop.f32.mrf.mxu0  ;;  %v2089_v50 = vadd.f32 %v2065_v56, %v1954_v12 }
 0x1c8   : > { %v2217_v52 = vpop.f32.mrf.mxu3 }
 0x1c9   : > { %v2244_v32 = vadd.f32 %v2217_v52, %v2087_v62  ;;  %v1935_v16 = vpop.f32.mrf.mxu1 }
 0x1ca   : > { %v1956_v49 = vadd.f32 %v1935_v16, %v3983_v13 }
 0x1cb   : > { %v2385_v31 = vadd.f32 %v2358_v63, %v2244_v32 }
 0x1cd   : > { %v2405_v6 = vadd.f32 %v3994_v47, %v2385_v31 }
 0x1ce   : > { %v2068_v18 = vpop.f32.mrf.mxu2 }
 0x1cf   : > { %2421 = vst [vmem:[%s4000_s28 + $0x48] sm:$0xff] %v2405_v6  ;;  %v2361_v30 = vpop.f32.mrf.mxu0  ;;  %v2090_v53 = vadd.f32 %v2068_v18, %v1955_v15 }
 0x1d0   : > { %v2220_v8 = vpop.f32.mrf.mxu3 }
 0x1d1   : > { %v2245_v11 = vadd.f32 %v2220_v8, %v2088_v45  ;;  %v1938_v28 = vpop.f32.mrf.mxu1 }
 0x1d2   : > { %v1957_v5 = vadd.f32 %v1938_v28, %v3985_v21 }
 0x1d3   : > { %v2386_v19 = vadd.f32 %v2361_v30, %v2245_v11 }
 0x1d5   : > { %v2406_v25 = vadd.f32 %v3994_v47, %v2386_v19 }
 0x1d6   : > { %v2070_v4 = vpop.f32.mrf.mxu2 }
 0x1d7   : > { %2422 = vst [vmem:[%s4000_s28 + $0x50] sm:$0xff] %v2406_v25  ;;  %v2363_v42 = vpop.f32.mrf.mxu0  ;;  %v2091_v39 = vadd.f32 %v2070_v4, %v1956_v49 }
 0x1d8   : > { %v2222_v59 = vpop.f32.mrf.mxu3 }
 0x1d9   : > { %v2246_v37 = vadd.f32 %v2222_v59, %v2089_v50  ;;  %v1940_v0 = vpop.f32.mrf.mxu1 }
 0x1da   : > { %v1958_v46 = vadd.f32 %v1940_v0, %v3988_v38 }
 0x1db   : > { %v2387_v54 = vadd.f32 %v2363_v42, %v2246_v37 }
 0x1dd   : > { %v2407_v3 = vadd.f32 %v3994_v47, %v2387_v54 }
 0x1de   : > { %v2073_v61 = vpop.f32.mrf.mxu2 }
 0x1df   : > { %2423 = vst [vmem:[%s4000_s28 + $0x58] sm:$0xff] %v2407_v3  ;;  %v2366_v43 = vpop.f32.mrf.mxu0  ;;  %v2092_v24 = vadd.f32 %v2073_v61, %v1957_v5 }
 0x1e0   : > { %v2225_v58 = vpop.f32.mrf.mxu3 }
 0x1e1   : > { %v2247_v27 = vadd.f32 %v2225_v58, %v2090_v53 }
 0x1e3   : > { %v2388_v22 = vadd.f32 %v2366_v43, %v2247_v27 }
 0x1e5   : > { %v2408_v34 = vadd.f32 %v3994_v47, %v2388_v22 }
 0x1e6   : > { %v2075_v51 = vpop.f32.mrf.mxu2 }
 0x1e7   : > { %2424 = vst [vmem:[%s4000_s28 + $0x60] sm:$0xff] %v2408_v34  ;;  %v2368_v48 = vpop.f32.mrf.mxu0  ;;  %v2093_v40 = vadd.f32 %v2075_v51, %v1958_v46 }
 0x1e8   : > { %v2227_v9 = vpop.f32.mrf.mxu3 }
 0x1e9   : > { %v2248_v1 = vadd.f32 %v2227_v9, %v2091_v39 }
 0x1eb   : > { %v2389_v29 = vadd.f32 %v2368_v48, %v2248_v1 }
 0x1ed   : > { %v2409_v17 = vadd.f32 %v3994_v47, %v2389_v29 }
 0x1ef   : > { %2425 = vst [vmem:[%s4000_s28 + $0x68] sm:$0xff] %v2409_v17  ;;  %v2371_v13 = vpop.f32.mrf.mxu0 }
 0x1f0   : > { %v2230_v2 = vpop.f32.mrf.mxu3 }
 0x1f1   : > { %v2249_v14 = vadd.f32 %v2230_v2, %v2092_v24 }
 0x1f3   : > { %v2390_v55 = vadd.f32 %v2371_v13, %v2249_v14 }
 0x1f5   : > { %v2410_v23 = vadd.f32 %v3994_v47, %v2390_v55 }
 0x1f7   : > { %2426 = vst [vmem:[%s4000_s28 + $0x70] sm:$0xff] %v2410_v23  ;;  %v2373_v21 = vpop.f32.mrf.mxu0 }
 0x1f8   : > { %v2232_v35 = vpop.f32.mrf.mxu3 }
 0x1f9   : > { %v2250_v36 = vadd.f32 %v2232_v35, %v2093_v40 }
 0x1fb   : > { %v2391_v44 = vadd.f32 %v2373_v21, %v2250_v36 }
 0x1fd   : > { %v2411_v20 = vadd.f32 %v3994_v47, %v2391_v44 }
 0x1ff   : > { %2427 = vst [vmem:[%s4000_s28 + $0x78] sm:$0xff] %v2411_v20 }
 0x200 PF: > { %s15_s22 = sadd.s32 1, %s3132_s22   ;;  %s4082_s18 = smov %s3124_s20 }
 0x201   : > { %p12_p12 = scmp.ge.s32.totalorder %s15_s22, 6   ;;  %s4083_s19 = smov %s3128_s21 }
 0x202   : > { %s4084_s20 = smov %s4087_s23  ;;  %s4085_s21 = smov %s4091_s24 }
 0x203   :  { %14 = sbr.rel (!%p12_p12) target bundleno = 3 (0x3), region = 78 }

// kernel: residual_spade_block.16
= control target key start
LH: loop header
LB: loop body
LE: loop exit
PB: predicated region body
PF: predicated region fallthrough
CT: control target
= control target key end

     0   :  { %s4731_s27 = smov 0   ;;  %s4733_s28 = smov 0   ;;  %s6721_s0 = inlined_call_operand.vmem [shape: f32[2,16,16,128], index: 0, kind: input, shape index: {}]   ;;  %s6722_s1 = inlined_call_operand.vmem [shape: bf16[2,16,16,128], index: 1, kind: input, shape index: {}, may-alias: {1,2,3}]   ;;  %s6723_s2 = inlined_call_operand.vmem [shape: bf16[2,16,16,128], index: 2, kind: input, shape index: {}, may-alias: {1,2,3}]   ;;  %s6724_s3 = inlined_call_operand.vmem [shape: bf16[2,16,16,128], index: 3, kind: input, shape index: {}, may-alias: {1,2,3}]   ;;  %s6725_s4 = inlined_call_operand.vmem [shape: bf16[1152,256], index: 4, kind: input, shape index: {}]   ;;  %s6726_s5 = inlined_call_operand.vmem [shape: f32[1,256], index: 5, kind: input, shape index: {}]   ;;  %s6727_s6 = inlined_call_operand.vmem [shape: f32[1,128], index: 6, kind: input, shape index: {}]   ;;  %s6728_s7 = inlined_call_operand.vmem [shape: f32[1,128], index: 7, kind: input, shape index: {}]   ;;  %s6729_s8 = inlined_call_operand.vmem [shape: bf16[2,16,16,128], index: 8, kind: output, shape index: {}]  }
   0x1   :  { %s4735_s29 = smov 0   ;;  %s4737_s30 = smov 0  }
   0x2   :  { %s4739_s9 = smov 0  }
   0x3 LB: > { %s27_s10 = sadd.s32 1, %s4676_s29  ;;  %s30_s11 = sadd.s32 1, %s4680_s30  ;;  %s4684_s9 = sphi %s4739_s9, %s18_s9   ;;  %s4680_s30 = sphi %s4737_s30, %s6799_s30   ;;  %s4676_s29 = sphi %s4735_s29, %s6798_s29   ;;  %s4672_s28 = sphi %s4733_s28, %s6797_s28   ;;  %s4668_s27 = sphi %s4731_s27, %s6796_s27  }
   0x4   : > { %p28_p0 = scmp.ge.s32.totalorder %s27_s10, 2  ;;  %p3715_p1 = scmp.ge.s32.totalorder %s4684_s9, 1 }
   0x5   : > { %p366_p2 = scmp.lt.s32.totalorder %s4684_s9, 5 }
   0x6   : > { %s6801_s10 = smov (%p28_p0, %s27_s10), 0  ;;  %s6803_s11 = smov (!%p28_p0, %s30_s11), %s4680_s30 }
   0x7   : > { %p367_p3 = pnand %p3715_p1, %p366_p2  ;;  %p32_p4 = scmp.ge.s32.totalorder %s6803_s11, 2 }
   0x9   : > { %s6805_s11 = smov (%p32_p4, %s6803_s11), 0  ;;  %370 = sbr.rel (%p367_p3) target bundleno = 799 (0x31f), region = 52 }
   0xe   : > { %v3803_v0 = vld [vmem:[%s6725_s4 + $0xf0] sm:$0xf]  ;;  %v4416_v1 = vld [vmem:[%s6725_s4 + $0xf4] sm:$0xf0]  ;;  %v4415_v2 = vld [vmem:[%s6725_s4 + $0xf4] sm:$0xf] }
   0xf   : > { %v3804_v3 = vor.u32 %v4416_v1, %v3803_v0  ;;  %v3805_v4 = vld [vmem:[%s6725_s4 + $0xf8] sm:$0xf0]  ;;  %v3795_v5 = vld [vmem:[%s6725_s4 + $0xe0] sm:$0xf]  ;;  %v4414_v6 = vld [vmem:[%s6725_s4 + $0xe4] sm:$0xf0] }
  0x10   : > { %v3808_v7 = vor.u32 %v4415_v2, %v3805_v4  ;;  %v4413_v8 = vld [vmem:[%s6725_s4 + $0xe4] sm:$0xf]  ;;  %v3797_v9 = vld [vmem:[%s6725_s4 + $0xe8] sm:$0xf0]  ;;  %v3796_v10 = vor.u32 %v4414_v6, %v3795_v5  ;;  %v3787_v12 = vld [vmem:[%s6725_s4 + $0xd0] sm:$0xf] }
  0x11   : > { %4576 = vmatpush.bf16.msra.mxu2 %v3804_v3  ;;  %1256 = vmatpush.bf16.msra.mxu0 %v3804_v3  ;;  %v3800_v11 = vor.u32 %v4413_v8, %v3797_v9  ;;  %v4412_v13 = vld [vmem:[%s6725_s4 + $0xd4] sm:$0xf0]  ;;  %v4411_v14 = vld [vmem:[%s6725_s4 + $0xd4] sm:$0xf]  ;;  %v3789_v15 = vld [vmem:[%s6725_s4 + $0xd8] sm:$0xf0] }
  0x12   : > { %4584 = vmatpush.bf16.msra.mxu3 %v3808_v7  ;;  %1305 = vmatpush.bf16.msra.mxu1 %v3808_v7  ;;  %v3788_v16 = vor.u32 %v4412_v13, %v3787_v12  ;;  %v3792_v17 = vor.u32 %v4411_v14, %v3789_v15  ;;  %v3779_v18 = vld [vmem:[%s6725_s4 + $0xc0] sm:$0xf]  ;;  %v4410_v19 = vld [vmem:[%s6725_s4 + $0xc4] sm:$0xf0]  ;;  %v4409_v20 = vld [vmem:[%s6725_s4 + $0xc4] sm:$0xf] }
  0x13   : > { %v3781_v21 = vld [vmem:[%s6725_s4 + $0xc8] sm:$0xf0]  ;;  %v3771_v22 = vld [vmem:[%s6725_s4 + $0xb0] sm:$0xf]  ;;  %v4408_v23 = vld [vmem:[%s6725_s4 + $0xb4] sm:$0xf0]  ;;  %v3780_v24 = vor.u32 %v4410_v19, %v3779_v18 }
  0x14   : > { %s4820_s18 = sshll.u32 %s4668_s27, 3  ;;  %p447_p5 = scmp.lt.s32.totalorder %s4672_s28, 1  ;;  %vm514_vm0 = vcmask 1040384   ;;  %vm515_vm1 = vsmask.f32 256  ;;  %v3784_v26 = vor.u32 %v4409_v20, %v3781_v21  ;;  %v6757_v32 = vmov 0 }
  0x15   : > { %4577 = vmatpush.bf16.msra.mxu2 %v3796_v10  ;;  %1257 = vmatpush.bf16.msra.mxu0 %v3796_v10  ;;  %p449_p6 = scmp.lt.s32.totalorder %s4820_s18, 15  ;;  %v529_v25 = vld [vmem:[#allocation2 + $0x30] sm:$0x1]  ;;  %vm4826_vm2 = vmand %vm514_vm0, %vm515_vm1  ;;  %vm547_vm3 = vsmask.f32 7938  ;;  %v3772_v38 = vor.u32 %v4408_v23, %v3771_v22  ;;  %s4861_s20 = sadd.s32 4294967295, %s4820_s18 }
  0x16   : > { %4585 = vmatpush.bf16.msra.mxu3 %v3800_v11  ;;  %1306 = vmatpush.bf16.msra.mxu1 %v3800_v11  ;;  %s6807_s28 = smov (!%p447_p5, %s4672_s28), 1  ;;  %v561_v28 = vld [vmem:[#allocation2 + $0x38] sm:$0x1]  ;;  %v4407_v29 = vld [vmem:[%s6725_s4 + $0xb4] sm:$0xf]  ;;  %v530_v31 = vsel %vm4826_vm2, 0, %v529_v25  ;;  %vm4840_vm4 = vmand %vm514_vm0, %vm547_vm3 }
  0x17   : > { %v3773_v30 = vld [vmem:[%s6725_s4 + $0xb8] sm:$0xf0]  ;;  %s450_s23 = scalar_select %p449_p6, %s4820_s18, 15  ;;  %v6758_v32 = vsel %vm4840_vm4, 4294967295, %v6757_v32  ;;  %v3763_v33 = vld [vmem:[%s6725_s4 + $0xa0] sm:$0xf] }
  0x18   : > { %6759 = vst [vmem:[#allocation3_spill] sm:$0xff] %v6758_v32  ;;  %v4406_v34 = vld [vmem:[%s6725_s4 + $0xa4] sm:$0xf0]  ;;  %v4405_v35 = vld [vmem:[%s6725_s4 + $0xa4] sm:$0xf]  ;;  %s4856_s17 = sshll.u32 %s6807_s28, 5  ;;  %v3776_v40 = vor.u32 %v4407_v29, %v3773_v30 }
  0x19   : > { %4578 = vmatpush.bf16.msra.mxu2 %v3788_v16  ;;  %1258 = vmatpush.bf16.msra.mxu0 %v3788_v16  ;;  %v3765_v36 = vld [vmem:[%s6725_s4 + $0xa8] sm:$0xf0]  ;;  %531 = vst [vmem:[#allocation2 + $0x30] sm:$0x1] %v530_v31  ;;  %v562_v37 = vsel %vm4840_vm4, 0, %v561_v28  ;;  %s3717_s19 = sshll.u32 %s450_s23, 1  ;;  %v3764_v50 = vor.u32 %v4406_v34, %v3763_v33 }
  0x1a   : > { %4586 = vmatpush.bf16.msra.mxu3 %v3792_v17  ;;  %1307 = vmatpush.bf16.msra.mxu1 %v3792_v17  ;;  %563 = vst [vmem:[#allocation2 + $0x38] sm:$0x1] %v562_v37  ;;  %v517_v39 = vld [vmem:[#allocation2] sm:$0x1]  ;;  %s4864_s28 = sadd.s32 %s4856_s17, %s3717_s19  ;;  %p470_p7 = scmp.gt.s32.totalorder %s4861_s20, 0  ;;  %v3768_v51 = vor.u32 %v4405_v35, %v3765_v36  ;;  %vm617_vm6 = vcmask 1043456  }
  0x1b   : > { %v518_v41 = vsel %vm4826_vm2, 0, %v517_v39  ;;  %v549_v42 = vld [vmem:[#allocation2 + $0x8] sm:$0x1]  ;;  %v532_v43 = vld [vmem:[#allocation2 + $0x3c] sm:$0x1]  ;;  %s3723_s21 = sshll.u32 %s4864_s28, 2  ;;  %vm4924_vm8 = vmand %vm617_vm6, %vm547_vm3 }
  0x1c   : > { %vm595_vm5 = vsmask.f32 4368  ;;  %p3726_p8 = scmp.lt.s32.totalorder %s4861_s20, 15  ;;  %v3755_v44 = vld [vmem:[%s6725_s4 + $0x90] sm:$0xf]  ;;  %s4888_s19 = scalar_lea.vmem %s6722_s1, %s3723_s21  ;;  %v550_v48 = vsel %vm4840_vm4, 0, %v549_v42 }
  0x1d   : > { %4579 = vmatpush.bf16.msra.mxu2 %v3780_v24  ;;  %1259 = vmatpush.bf16.msra.mxu0 %v3780_v24  ;;  %v4404_v45 = vld [vmem:[%s6725_s4 + $0x94] sm:$0xf0]  ;;  %v4403_v46 = vld [vmem:[%s6725_s4 + $0x94] sm:$0xf]  ;;  %v3757_v47 = vld [vmem:[%s6725_s4 + $0x98] sm:$0xf0] }
  0x1e   : > { %4587 = vmatpush.bf16.msra.mxu3 %v3784_v26  ;;  %1308 = vmatpush.bf16.msra.mxu1 %v3784_v26  ;;  %519 = vst [vmem:[#allocation2] sm:$0x1] %v518_v41  ;;  %p583_p9 = scmp.gt.s32.totalorder %s4668_s27, 0  ;;  %v533_v49 = vsel %vm4826_vm2, 0, %v532_v43  ;;  %v660_v52 = vld [vmem:[%s4888_s19 + $0x18] sm:$0xf]  ;;  %vm4916_vm7 = vmor %vm515_vm1, %vm595_vm5  ;;  %v3756_v3 = vor.u32 %v4404_v45, %v3755_v44  ;;  %v3760_v4 = vor.u32 %v4403_v46, %v3757_v47 }
  0x1f   : > { %v661_v53 = vld [vmem:[%s4888_s19 + $0x1c] sm:$0xf]  ;;  %s471_s22 = scalar_select %p470_p7, %s4861_s20, 0  ;;  %v722_v54 = vshrl.u32 %v660_v52, 16  ;;  %v725_v55 = vshll.u32 %v660_v52, 16  ;;  %vm1588_vm13 = vcmask 1042432  }
  0x20   : > { %v730_v56 = vshrl.u32 %v661_v53, 16  ;;  %v733_v57 = vshll.u32 %v661_v53, 16  ;;  %551 = vst [vmem:[#allocation2 + $0x8] sm:$0x1] %v550_v48  ;;  %v852_v58 = vld [vmem:[#allocation2 + $0x30] sm:$0xf] }
  0x21   : > { %4580 = vmatpush.bf16.msra.mxu2 %v3772_v38  ;;  %1260 = vmatpush.bf16.msra.mxu0 %v3772_v38  ;;  %s6809_s22 = smov (!%p3726_p8, %s471_s22), 15  ;;  %534 = vst [vmem:[#allocation2 + $0x3c] sm:$0x1] %v533_v49  ;;  %v3747_v59 = vld [vmem:[%s6725_s4 + $0x80] sm:$0xf]  ;;  %v724_v0 = vrot.slane %v722_v54, 7 }
  0x22   : > { %4588 = vmatpush.bf16.msra.mxu3 %v3776_v40  ;;  %1309 = vmatpush.bf16.msra.mxu1 %v3776_v40  ;;  %v4402_v60 = vld [vmem:[%s6725_s4 + $0x84] sm:$0xf0]  ;;  %v4401_v61 = vld [vmem:[%s6725_s4 + $0x84] sm:$0xf]  ;;  %v3749_v62 = vld [vmem:[%s6725_s4 + $0x88] sm:$0xf0] }
  0x23   : > { %v732_v1 = vrot.slane %v730_v56, 7  ;;  %v856_v2 = vld [vmem:[#allocation2 + $0x38] sm:$0x1]  ;;  %s584_s20 = scalar_select %p583_p9, 1, 0  ;;  %v727_v8 = vor.u32 %v725_v55, %v724_v0  ;;  %v728_v9 = vrot.slane %v724_v0, 4  ;;  %v3748_v22 = vor.u32 %v4402_v60, %v3747_v59 }
  0x24   : > { %s3731_s16 = sshll.u32 %s6809_s22, 1  ;;  %v4928_v6 = vld [vmem:[#allocation2 + $0x44] sm:$0x1]  ;;  %v4931_v7 = vld [vmem:[%s4888_s19 + $0x20] sm:$0xf]  ;;  %v3752_v23 = vor.u32 %v4401_v61, %v3749_v62  ;;  %vm1589_vm14 = vcmask 1046532  }
  0x25   : > { %4581 = vmatpush.bf16.msra.mxu2 %v3764_v50  ;;  %1261 = vmatpush.bf16.msra.mxu0 %v3764_v50  ;;  %v735_v10 = vor.u32 %v733_v57, %v732_v1  ;;  %v737_v11 = vrot.slane %v732_v1, 4  ;;  %v3899_v12 = vld [vmem:[%s6725_s4 + $0x70] sm:$0xf]  ;;  %v4400_v13 = vld [vmem:[%s6725_s4 + $0x74] sm:$0xf0]  ;;  %s478_s12 = sadd.s32 %s3731_s16, %s4856_s17  ;;  %v585_v14 = vstv %s584_s20  ;;  %v565_v15 = vsel %vm4840_vm4, 0, %v4928_v6  ;;  %vm5324_vm15 = vmor %vm1588_vm13, %vm1589_vm14 }
  0x26   : > { %4589 = vmatpush.bf16.msra.mxu3 %v3768_v51  ;;  %1310 = vmatpush.bf16.msra.mxu1 %v3768_v51  ;;  %s3733_s22 = sshll.u32 %s478_s12, 2  ;;  %v739_v16 = vshrl.u32 %v4931_v7, 16  ;;  %v853_v18 = vsel %vm4924_vm8, %v727_v8, %v852_v58  ;;  %vm586_vm9 = vcmp.eq.s32.totalorder %v585_v14, 1  ;;  %v4399_v20 = vld [vmem:[%s6725_s4 + $0x74] sm:$0xf]  ;;  %v3900_v24 = vor.u32 %v4400_v13, %v3899_v12  ;;  %p589_p11 = scmp.lt.s32.totalorder %s4668_s27, 1 }
  0x27   : > { %v736_v17 = vsel %vm4916_vm7, %v728_v9, %v735_v10  ;;  %v857_v19 = vsel %vm4826_vm2, %v737_v11, %v856_v2  ;;  %s480_s15 = scalar_lea.vmem %s6723_s2, %s3733_s22  ;;  %v3901_v21 = vld [vmem:[%s6725_s4 + $0x78] sm:$0xf0]  ;;  %854 = vst [vmem:[#allocation2 + $0x30] sm:$0xf] %v853_v18  ;;  %v742_v31 = vshll.u32 %v4931_v7, 16 }
  0x28   : > { %v579_v25 = vld [vmem:[%s480_s15] sm:$0xf]  ;;  %v580_v26 = vld [vmem:[%s480_s15 + $0x4] sm:$0xf]  ;;  %855 = vst [vmem:[#allocation2 + $0x34] sm:$0xf] %v736_v17  ;;  %v3904_v30 = vor.u32 %v4399_v20, %v3901_v21 }
  0x29   : > { %4582 = vmatpush.bf16.msra.mxu2 %v3756_v3  ;;  %1262 = vmatpush.bf16.msra.mxu0 %v3756_v3  ;;  %v587_v28 = vsel %vm586_vm9, %v579_v25, 0  ;;  %v588_v29 = vsel %vm586_vm9, %v580_v26, 0  ;;  %858 = vst [vmem:[#allocation2 + $0x38] sm:$0x1] %v857_v19  ;;  %vm933_vm10 = vsmask.f32 3328 }
  0x2a   : > { %4590 = vmatpush.bf16.msra.mxu3 %v3760_v4  ;;  %1311 = vmatpush.bf16.msra.mxu1 %v3760_v4  ;;  %vm934_vm11 = vsmask.f32 7440  ;;  %v598_v33 = vshrl.u32 %v587_v28, 16  ;;  %v601_v34 = vshll.u32 %v587_v28, 16  ;;  %v606_v35 = vshrl.u32 %v588_v29, 16  ;;  %s3719_s15 = sshll.u32 %s4864_s28, 3 }
  0x2b   : > { %v609_v36 = vshll.u32 %v588_v29, 16  ;;  %v4961_v37 = vld [vmem:[%s4888_s19 + $0x24] sm:$0xf]  ;;  %v619_v38 = vld [vmem:[#allocation2] sm:$0xf]  ;;  %v741_v59 = vrot.slane %v739_v16, 7  ;;  %vm5011_vm12 = vmor %vm933_vm10, %vm934_vm11  ;;  %s6556_s16 = scalar_lea.vmem %s6721_s0, %s3719_s15 }
  0x2c   : > { %v3891_v39 = vld [vmem:[%s6725_s4 + $0x60] sm:$0xf]  ;;  %v4398_v40 = vld [vmem:[%s6725_s4 + $0x64] sm:$0xf0]  ;;  %v3971_v41 = vld [vmem:[%s6725_s4 + $0x170] sm:$0xf] }
  0x2d   : > { %4583 = vmatpush.bf16.msra.mxu2 %v3748_v22  ;;  %1263 = vmatpush.bf16.msra.mxu0 %v3748_v22  ;;  %v600_v42 = vrot.slane %v598_v33, 7  ;;  %v608_v43 = vrot.slane %v606_v35, 7  ;;  %v4432_v44 = vld [vmem:[%s6725_s4 + $0x174] sm:$0xf0]  ;;  %v4397_v45 = vld [vmem:[%s6725_s4 + $0x64] sm:$0xf]  ;;  %v3892_v46 = vor.u32 %v4398_v40, %v3891_v39  ;;  %v744_v11 = vor.u32 %v742_v31, %v741_v59 }
  0x2e   : > { %4591 = vmatpush.bf16.msra.mxu3 %v3752_v23  ;;  %v3972_v47 = vor.u32 %v4432_v44, %v3971_v41  ;;  %v3893_v48 = vld [vmem:[%s6725_s4 + $0x68] sm:$0xf0]  ;;  %v4431_v49 = vld [vmem:[%s6725_s4 + $0x174] sm:$0xf]  ;;  %v3973_v50 = vld [vmem:[%s6725_s4 + $0x178] sm:$0xf0]  ;;  %1312 = vmatpush.bf16.msra.mxu1 %v3752_v23 }
  0x2f   : > { %v603_v51 = vor.u32 %v601_v34, %v600_v42  ;;  %v604_v52 = vrot.slane %v600_v42, 4  ;;  %v611_v53 = vor.u32 %v609_v36, %v608_v43  ;;  %v613_v54 = vrot.slane %v608_v43, 4  ;;  %v623_v55 = vld [vmem:[#allocation2 + $0x8] sm:$0x1]  ;;  %566 = vst [vmem:[#allocation2 + $0x44] sm:$0x1] %v565_v15 }
  0x30   : > { %v899_v56 = vld [vmem:[#allocation2 + $0x30] sm:$0xf]  ;;  %v3896_v57 = vor.u32 %v4397_v45, %v3893_v48  ;;  %v3976_v58 = vor.u32 %v4431_v49, %v3973_v50  ;;  %v747_v60 = vshrl.u32 %v4961_v37, 16  ;;  %v859_v61 = vld [vmem:[#allocation2 + $0x3c] sm:$0xf]  ;;  %v745_v16 = vrot.slane %v741_v59, 4 }
  0x31   : > { %1482 = vmatpush.bf16.msrb.mxu2 %v3900_v24  ;;  %1775 = vmatpush.bf16.msrb.mxu0 %v3972_v47  ;;  %v3883_v62 = vld [vmem:[%s6725_s4 + $0x50] sm:$0xf]  ;;  %v900_v0 = vld [vmem:[#allocation2 + $0x34] sm:$0xf]  ;;  %v1033_v1 = vshrl.u32 %v899_v56, 16  ;;  %v1036_v2 = vshll.u32 %v899_v56, 16  ;;  %v612_v3 = vsel %vm4916_vm7, %v604_v52, %v611_v53  ;;  %v620_v4 = vsel %vm4924_vm8, %v603_v51, %v619_v38 }
  0x32   : > { %1531 = vmatpush.bf16.msrb.mxu3 %v3904_v30  ;;  %v4396_v6 = vld [vmem:[%s6725_s4 + $0x54] sm:$0xf0]  ;;  %v1042_v8 = vshll.u32 %v900_v0, 16  ;;  %v1046_v9 = vshrl.u32 %v900_v0, 16  ;;  %621 = vst [vmem:[#allocation2] sm:$0xf] %v620_v4  ;;  %v624_v10 = vsel %vm4826_vm2, %v613_v54, %v623_v55  ;;  %1824 = vmatpush.bf16.msrb.mxu1 %v3976_v58  ;;  %v860_v23 = vsel %vm4924_vm8, %v744_v11, %v859_v61 }
  0x33   : > { %v901_v7 = vld [vmem:[#allocation2 + $0x38] sm:$0x1]  ;;  %v520_v12 = vld [vmem:[#allocation2 + $0xc] sm:$0x1]  ;;  %v1035_v13 = vrot.slane %v1033_v1, 4  ;;  %v1038_v14 = vrot.slane %v1036_v2, 5  ;;  %v3884_v24 = vor.u32 %v4396_v6, %v3883_v62 }
  0x34   : > { %v1052_v15 = vshll.u32 %v901_v7, 16  ;;  %622 = vst [vmem:[#allocation2 + $0x4] sm:$0xf] %v612_v3  ;;  %v1044_v17 = vrot.slane %v1042_v8, 5  ;;  %v1048_v18 = vrot.slane %v1046_v9, 4  ;;  %v749_v19 = vrot.slane %v747_v60, 7 }
  0x35   : > { %1483 = vmatpush.bf16.msrb.mxu2 %v3892_v46  ;;  %625 = vst [vmem:[#allocation2 + $0x8] sm:$0x1] %v624_v10  ;;  %v750_v20 = vshll.u32 %v4961_v37, 16  ;;  %v1039_v21 = vor.u32 %v1038_v14, %v1035_v13  ;;  %v3963_v25 = vld [vmem:[%s6725_s4 + $0x160] sm:$0xf]  ;;  %v6764_v28 = vmov 0 }
  0x36   : > { %1532 = vmatpush.bf16.msrb.mxu3 %v3896_v57  ;;  %v1054_v22 = vrot.slane %v1052_v15, 5  ;;  %v4430_v26 = vld [vmem:[%s6725_s4 + $0x164] sm:$0xf0]  ;;  %v6765_v28 = vsel %vm5011_vm12, 4294967295, %v6764_v28  ;;  %v1049_v29 = vor.u32 %v1048_v18, %v1044_v17  ;;  %v754_v31 = vrot.slane %v749_v19, 4 }
  0x37   : > { %6766 = vst [vmem:[#allocation4_spill] sm:$0xff] %v6765_v28  ;;  %v752_v30 = vor.u32 %v750_v20, %v749_v19  ;;  %v863_v33 = vld [vmem:[#allocation2 + $0x44] sm:$0x1]  ;;  %v3964_v34 = vor.u32 %v4430_v26, %v3963_v25  ;;  %v1040_v35 = vrot.slane %v1039_v21, 4  ;;  %v521_v36 = vsel %vm4826_vm2, 0, %v520_v12 }
  0x38   : > { %861 = vst [vmem:[#allocation2 + $0x3c] sm:$0xf] %v860_v23  ;;  %v552_v37 = vld [vmem:[#allocation2 + $0x14] sm:$0x1]  ;;  %v654_v38 = vld [vmem:[%s4888_s19] sm:$0xf]  ;;  %v864_v41 = vsel %vm4826_vm2, %v754_v31, %v863_v33 }
  0x39   : > { %1484 = vmatpush.bf16.msrb.mxu2 %v3884_v24  ;;  %v1050_v39 = vrot.slane %v1049_v29, 4  ;;  %v753_v40 = vsel %vm4916_vm7, %v745_v16, %v752_v30  ;;  %1776 = vmatpush.bf16.msrb.mxu0 %v3964_v34  ;;  %522 = vst [vmem:[#allocation2 + $0xc] sm:$0x1] %v521_v36  ;;  %v553_v42 = vsel %vm4840_vm4, 0, %v552_v37  ;;  %v655_v43 = vld [vmem:[%s4888_s19 + $0x4] sm:$0xf]  ;;  %v1045_v44 = vsel %vm5011_vm12, %v1040_v35, %v1044_v17 }
  0x3a   : > { %v5027_v45 = vld [vmem:[#allocation2] sm:$0xf]  ;;  %862 = vst [vmem:[#allocation2 + $0x40] sm:$0xf] %v753_v40  ;;  %v671_v46 = vshrl.u32 %v654_v38, 16  ;;  %v674_v47 = vshll.u32 %v654_v38, 16  ;;  %v1152_v49 = vunpack.c.l.b16 %v1045_v44 }
  0x3b   : > { %v1055_v48 = vsel %vm5011_vm12, %v1050_v39, %v1054_v22  ;;  %v5031_v50 = vld [vmem:[#allocation2 + $0x4] sm:$0xf]  ;;  %v937_v51 = vshrl.u32 %v5027_v45, 16  ;;  %v940_v52 = vshll.u32 %v5027_v45, 16  ;;  %865 = vst [vmem:[#allocation2 + $0x44] sm:$0x1] %v864_v41 }
  0x3c   : > { %v1153_v53 = vunpack.c.l.b16 %v1055_v48  ;;  %v5035_v54 = vld [vmem:[#allocation2 + $0x8] sm:$0x1]  ;;  %v946_v55 = vshll.u32 %v5031_v50, 16  ;;  %v950_v56 = vshrl.u32 %v5031_v50, 16  ;;  %554 = vst [vmem:[#allocation2 + $0x14] sm:$0x1] %v553_v42 }
  0x3d   : > { %v939_v57 = vrot.slane %v937_v51, 4  ;;  %v942_v58 = vrot.slane %v940_v52, 5  ;;  %v956_v59 = vshll.u32 %v5035_v54, 16  ;;  %v673_v60 = vrot.slane %v671_v46, 7  ;;  %v4395_v18 = vld [vmem:[%s6725_s4 + $0x54] sm:$0xf] }
  0x3e   : > { %v5040_v61 = vpack.c.b16 %v1153_v53, %v1152_v49  ;;  %v948_v62 = vrot.slane %v946_v55, 5  ;;  %v952_v0 = vrot.slane %v950_v56, 4  ;;  %v679_v2 = vshrl.u32 %v655_v43, 16  ;;  %v3885_v19 = vld [vmem:[%s6725_s4 + $0x58] sm:$0xf0] }
  0x3f   : > { %v902_v1 = vld [vmem:[#allocation2 + $0x3c] sm:$0xf]  ;;  %v943_v3 = vor.u32 %v942_v58, %v939_v57  ;;  %v958_v4 = vrot.slane %v956_v59, 5  ;;  %v676_v9 = vor.u32 %v674_v47, %v673_v60  ;;  %v677_v10 = vrot.slane %v673_v60, 4  ;;  %v4429_v25 = vld [vmem:[%s6725_s4 + $0x164] sm:$0xf] }
  0x40   : > { %6767 = vst [vmem:[#allocation5_spill] sm:$0xff] %v5040_v61  ;;  %v1057_v6 = vshrl.u32 %v902_v1, 16  ;;  %v1060_v7 = vshll.u32 %v902_v1, 16  ;;  %1284 = vmatmul.bf16.vlgmr.msra.gmra.mxu2 %v5040_v61  ;;  %1333 = vmatmul.bf16.vlgmr.msra.gmra.mxu3 %v5040_v61  ;;  %v953_v8 = vor.u32 %v952_v0, %v948_v62  ;;  %v681_v11 = vrot.slane %v679_v2, 7  ;;  %v831_v17 = vld [vmem:[#allocation2 + $0xc] sm:$0xf] }
  0x41   : > { %v944_v12 = vrot.slane %v943_v3, 4  ;;  %v903_v13 = vld [vmem:[#allocation2 + $0x40] sm:$0xf]  ;;  %v682_v16 = vshll.u32 %v655_v43, 16  ;;  %v3965_v34 = vld [vmem:[%s6725_s4 + $0x168] sm:$0xf0]  ;;  %v832_v49 = vsel %vm4924_vm8, %v676_v9, %v831_v17  ;;  %v3888_v52 = vor.u32 %v4395_v18, %v3885_v19 }
  0x42   : > { %v1059_v14 = vrot.slane %v1057_v6, 4  ;;  %v1062_v15 = vrot.slane %v1060_v7, 5  ;;  %v954_v20 = vrot.slane %v953_v8, 4  ;;  %v904_v21 = vld [vmem:[#allocation2 + $0x44] sm:$0x1]  ;;  %v1066_v22 = vshll.u32 %v903_v13, 16 }
  0x43   : > { %v1070_v23 = vshrl.u32 %v903_v13, 16  ;;  %v686_v24 = vrot.slane %v681_v11, 4  ;;  %v949_v26 = vsel %vm5011_vm12, %v944_v12, %v948_v62  ;;  %v1076_v30 = vshll.u32 %v904_v21, 16  ;;  %v835_v33 = vld [vmem:[#allocation2 + $0x14] sm:$0x1]  ;;  %1533 = vmatpush.bf16.msrb.mxu3 %v3888_v52 }
  0x44   : > { %v1063_v29 = vor.u32 %v1062_v15, %v1059_v14  ;;  %v684_v31 = vor.u32 %v682_v16, %v681_v11  ;;  %v959_v35 = vsel %vm5011_vm12, %v954_v20, %v958_v4  ;;  %v1144_v36 = vunpack.c.l.b16 %v949_v26  ;;  %v3875_v39 = vld [vmem:[%s6725_s4 + $0x40] sm:$0xf]  ;;  %v4394_v40 = vld [vmem:[%s6725_s4 + $0x44] sm:$0xf0]  ;;  %v3955_v46 = vld [vmem:[%s6725_s4 + $0x150] sm:$0xf] }
  0x45   : > { %v1068_v37 = vrot.slane %v1066_v22, 5  ;;  %v1072_v38 = vrot.slane %v1070_v23, 4  ;;  %v1145_v41 = vunpack.c.l.b16 %v959_v35  ;;  %v1078_v43 = vrot.slane %v1076_v30, 5  ;;  %v4428_v47 = vld [vmem:[%s6725_s4 + $0x154] sm:$0xf0] }
  0x46   : > { %v1064_v42 = vrot.slane %v1063_v29, 4  ;;  %v685_v44 = vsel %vm4916_vm7, %v677_v10, %v684_v31  ;;  %v836_v51 = vsel %vm4826_vm2, %v686_v24, %v835_v33  ;;  %v4393_v53 = vld [vmem:[%s6725_s4 + $0x44] sm:$0xf]  ;;  %v3877_v55 = vld [vmem:[%s6725_s4 + $0x48] sm:$0xf0]  ;;  %v3968_v58 = vor.u32 %v4429_v25, %v3965_v34 }
  0x47   : > { %v1073_v48 = vor.u32 %v1072_v38, %v1068_v37  ;;  %834 = vst [vmem:[#allocation2 + $0x10] sm:$0xf] %v685_v44  ;;  %v1160_v56 = vpack.c.b16 %v1145_v41, %v1144_v36  ;;  %v3876_v59 = vor.u32 %v4394_v40, %v3875_v39  ;;  %v4427_v60 = vld [vmem:[%s6725_s4 + $0x154] sm:$0xf]  ;;  %v3957_v62 = vld [vmem:[%s6725_s4 + $0x158] sm:$0xf0]  ;;  %v3956_v1 = vor.u32 %v4428_v47, %v3955_v46 }
  0x48   : > { %v1069_v57 = vsel %vm5011_vm12, %v1064_v42, %v1068_v37  ;;  %833 = vst [vmem:[#allocation2 + $0xc] sm:$0xf] %v832_v49  ;;  %v3880_v2 = vor.u32 %v4393_v53, %v3877_v55  ;;  %v535_v3 = vld [vmem:[#allocation2 + $0x48] sm:$0x1]  ;;  %v567_v7 = vld [vmem:[#allocation2 + $0x50] sm:$0x1]  ;;  %1825 = vmatpush.bf16.msrb.mxu1 %v3968_v58  ;;  %v3960_v10 = vor.u32 %v4427_v60, %v3957_v62 }
  0x49   : > { %v1074_v0 = vrot.slane %v1073_v48, 4  ;;  %837 = vst [vmem:[#allocation2 + $0x14] sm:$0x1] %v836_v51  ;;  %1264 = vmatmul.bf16.vlgmr.msra.gmra.mxu0 %v1160_v56  ;;  %1313 = vmatmul.bf16.vlgmr.msra.gmra.mxu1 %v1160_v56  ;;  %v1154_v4 = vunpack.c.l.b16 %v1069_v57  ;;  %v536_v6 = vsel %vm4826_vm2, 0, %v535_v3  ;;  %v664_v8 = vld [vmem:[%s4888_s19 + $0x28] sm:$0xf] }
  0x4a   : > { %1485 = vmatpush.bf16.msrb.mxu2 %v3876_v59  ;;  %537 = vst [vmem:[#allocation2 + $0x48] sm:$0x1] %v536_v6  ;;  %v568_v11 = vsel %vm4840_vm4, 0, %v567_v7  ;;  %v665_v12 = vld [vmem:[%s4888_s19 + $0x2c] sm:$0xf]  ;;  %v756_v13 = vshrl.u32 %v664_v8, 16  ;;  %1777 = vmatpush.bf16.msrb.mxu0 %v3956_v1 }
  0x4b   : > { %v1079_v9 = vsel %vm5011_vm12, %v1074_v0, %v1078_v43  ;;  %569 = vst [vmem:[#allocation2 + $0x50] sm:$0x1] %v568_v11  ;;  %v759_v15 = vshll.u32 %v664_v8, 16  ;;  %v764_v16 = vshrl.u32 %v665_v12, 16  ;;  %v767_v17 = vshll.u32 %v665_v12, 16  ;;  %1534 = vmatpush.bf16.msrb.mxu3 %v3880_v2 }
  0x4c   : > { %v1155_v14 = vunpack.c.l.b16 %v1079_v9  ;;  %v758_v18 = vrot.slane %v756_v13, 7  ;;  %v3867_v19 = vld [vmem:[%s6725_s4 + $0x30] sm:$0xf]  ;;  %v4392_v20 = vld [vmem:[%s6725_s4 + $0x34] sm:$0xf0]  ;;  %1826 = vmatpush.bf16.msrb.mxu1 %v3960_v10 }
  0x4d   : > { %v766_v23 = vrot.slane %v764_v16, 7  ;;  %v3868_v24 = vor.u32 %v4392_v20, %v3867_v19  ;;  %v3947_v25 = vld [vmem:[%s6725_s4 + $0x140] sm:$0xf]  ;;  %v4426_v42 = vld [vmem:[%s6725_s4 + $0x144] sm:$0xf0] }
  0x4e   : > { %v5106_v21 = vpack.c.b16 %v1155_v14, %v1154_v4  ;;  %v5108_v22 = vld [vmem:[#allocation2 + $0x10] sm:$0xf]  ;;  %v761_v31 = vor.u32 %v759_v15, %v758_v18  ;;  %v762_v33 = vrot.slane %v758_v18, 4  ;;  %v3948_v48 = vor.u32 %v4426_v42, %v3947_v25  ;;  %v523_v49 = vld [vmem:[#allocation2 + $0x18] sm:$0x1] }
  0x4f   : > { %v5113_v26 = vld [vmem:[#allocation2 + $0xc] sm:$0xf]  ;;  %v970_v29 = vshll.u32 %v5108_v22, 16  ;;  %v974_v30 = vshrl.u32 %v5108_v22, 16  ;;  %v769_v37 = vor.u32 %v767_v17, %v766_v23  ;;  %v771_v38 = vrot.slane %v766_v23, 4  ;;  %1486 = vmatpush.bf16.msrb.mxu2 %v3868_v24 }
  0x50   : > { %v5117_v34 = vld [vmem:[#allocation2 + $0x14] sm:$0x1]  ;;  %v961_v35 = vshrl.u32 %v5113_v26, 16  ;;  %v964_v36 = vshll.u32 %v5113_v26, 16  ;;  %1289 = vmatmul.bf16.gmra.mxu2 %v5106_v21  ;;  %1338 = vmatmul.bf16.gmra.mxu3 %v5106_v21  ;;  %v524_v56 = vsel %vm4826_vm2, 0, %v523_v49 }
  0x51   : > { %v972_v39 = vrot.slane %v970_v29, 5  ;;  %v976_v40 = vrot.slane %v974_v30, 4  ;;  %v980_v41 = vshll.u32 %v5117_v34, 16  ;;  %v770_v46 = vsel %vm4916_vm7, %v762_v33, %v769_v37  ;;  %v866_v47 = vld [vmem:[#allocation2 + $0x48] sm:$0xf]  ;;  %1778 = vmatpush.bf16.msrb.mxu0 %v3948_v48 }
  0x52   : > { %v963_v43 = vrot.slane %v961_v35, 4  ;;  %v966_v44 = vrot.slane %v964_v36, 5  ;;  %v867_v53 = vsel %vm4924_vm8, %v761_v31, %v866_v47  ;;  %869 = vst [vmem:[#allocation2 + $0x4c] sm:$0xf] %v770_v46  ;;  %v870_v55 = vld [vmem:[#allocation2 + $0x50] sm:$0x1] }
  0x53   : > { %v977_v51 = vor.u32 %v976_v40, %v972_v39  ;;  %v982_v52 = vrot.slane %v980_v41, 5  ;;  %868 = vst [vmem:[#allocation2 + $0x48] sm:$0xf] %v867_v53  ;;  %v871_v58 = vsel %vm4826_vm2, %v771_v38, %v870_v55  ;;  %v555_v59 = vld [vmem:[#allocation2 + $0x20] sm:$0x1] }
  0x54   : > { %v967_v57 = vor.u32 %v966_v44, %v963_v43  ;;  %v656_v60 = vld [vmem:[%s4888_s19 + $0x8] sm:$0xf]  ;;  %872 = vst [vmem:[#allocation2 + $0x50] sm:$0x1] %v871_v58  ;;  %v556_v0 = vsel %vm4840_vm4, 0, %v555_v59 }
  0x55   : > { %v978_v62 = vrot.slane %v977_v51, 4  ;;  %v657_v1 = vld [vmem:[%s4888_s19 + $0xc] sm:$0xf]  ;;  %525 = vst [vmem:[#allocation2 + $0x18] sm:$0x1] %v524_v56  ;;  %v688_v3 = vshrl.u32 %v656_v60, 16 }
  0x56   : > { %v968_v2 = vrot.slane %v967_v57, 4  ;;  %v691_v4 = vshll.u32 %v656_v60, 16  ;;  %v696_v6 = vshrl.u32 %v657_v1, 16  ;;  %557 = vst [vmem:[#allocation2 + $0x20] sm:$0x1] %v556_v0  ;;  %v699_v8 = vshll.u32 %v657_v1, 16 }
  0x57   : > { %v983_v7 = vsel %vm5011_vm12, %v978_v62, %v982_v52  ;;  %v4391_v9 = vld [vmem:[%s6725_s4 + $0x34] sm:$0xf]  ;;  %v690_v12 = vrot.slane %v688_v3, 7  ;;  %v3869_v14 = vld [vmem:[%s6725_s4 + $0x38] sm:$0xf0] }
  0x58   : > { %v973_v10 = vsel %vm5011_vm12, %v968_v2, %v972_v39  ;;  %v1147_v11 = vunpack.c.l.b16 %v983_v7  ;;  %v698_v13 = vrot.slane %v696_v6, 7  ;;  %v4425_v15 = vld [vmem:[%s6725_s4 + $0x144] sm:$0xf]  ;;  %v3872_v17 = vor.u32 %v4391_v9, %v3869_v14  ;;  %v3949_v18 = vld [vmem:[%s6725_s4 + $0x148] sm:$0xf0] }
  0x59   : > { %v1146_v16 = vunpack.c.l.b16 %v973_v10  ;;  %v3859_v19 = vld [vmem:[%s6725_s4 + $0x20] sm:$0xf]  ;;  %v4390_v20 = vld [vmem:[%s6725_s4 + $0x24] sm:$0xf0]  ;;  %v5161_v23 = vld [vmem:[#allocation2 + $0x4c] sm:$0xf]  ;;  %v693_v24 = vor.u32 %v691_v4, %v690_v12  ;;  %v3952_v38 = vor.u32 %v4425_v15, %v3949_v18 }
  0x5a   : > { %v694_v25 = vrot.slane %v690_v12, 4  ;;  %v701_v29 = vor.u32 %v699_v8, %v698_v13  ;;  %v703_v30 = vrot.slane %v698_v13, 4  ;;  %v3939_v31 = vld [vmem:[%s6725_s4 + $0x130] sm:$0xf]  ;;  %v5168_v35 = vld [vmem:[#allocation2 + $0x48] sm:$0xf]  ;;  %1535 = vmatpush.bf16.msrb.mxu3 %v3872_v17  ;;  %v3860_v44 = vor.u32 %v4390_v20, %v3859_v19 }
  0x5b   : > { %v5166_v33 = vpack.c.b16 %v1147_v11, %v1146_v16  ;;  %v1090_v36 = vshll.u32 %v5161_v23, 16  ;;  %v1094_v37 = vshrl.u32 %v5161_v23, 16  ;;  %v4424_v39 = vld [vmem:[%s6725_s4 + $0x134] sm:$0xf0]  ;;  %v5175_v40 = vld [vmem:[#allocation2 + $0x50] sm:$0x1]  ;;  %1827 = vmatpush.bf16.msrb.mxu1 %v3952_v38 }
  0x5c   : > { %v1081_v41 = vshrl.u32 %v5168_v35, 16  ;;  %v1084_v42 = vshll.u32 %v5168_v35, 16  ;;  %v702_v43 = vsel %vm4916_vm7, %v694_v25, %v701_v29  ;;  %v4389_v46 = vld [vmem:[%s6725_s4 + $0x24] sm:$0xf]  ;;  %v1100_v49 = vshll.u32 %v5175_v40, 16  ;;  %1487 = vmatpush.bf16.msrb.mxu2 %v3860_v44 }
  0x5d   : > { %1269 = vmatmul.bf16.gmra.mxu0 %v5166_v33  ;;  %1318 = vmatmul.bf16.gmra.mxu1 %v5166_v33  ;;  %v1092_v47 = vrot.slane %v1090_v36, 5  ;;  %v1096_v48 = vrot.slane %v1094_v37, 4  ;;  %v838_v51 = vld [vmem:[#allocation2 + $0x18] sm:$0xf]  ;;  %v3940_v52 = vor.u32 %v4424_v39, %v3939_v31  ;;  %841 = vst [vmem:[#allocation2 + $0x1c] sm:$0xf] %v702_v43 }
  0x5e   : > { %v1083_v53 = vrot.slane %v1081_v41, 4  ;;  %v1086_v55 = vrot.slane %v1084_v42, 5  ;;  %v839_v56 = vsel %vm4924_vm8, %v693_v24, %v838_v51  ;;  %v842_v57 = vld [vmem:[#allocation2 + $0x20] sm:$0x1]  ;;  %v1102_v59 = vrot.slane %v1100_v49, 5 }
  0x5f   : > { %v1097_v58 = vor.u32 %v1096_v48, %v1092_v47  ;;  %840 = vst [vmem:[#allocation2 + $0x18] sm:$0xf] %v839_v56  ;;  %v843_v60 = vsel %vm4826_vm2, %v703_v30, %v842_v57  ;;  %1779 = vmatpush.bf16.msrb.mxu0 %v3940_v52  ;;  %v3861_v62 = vld [vmem:[%s6725_s4 + $0x28] sm:$0xf0]  ;;  %v4423_v2 = vld [vmem:[%s6725_s4 + $0x134] sm:$0xf] }
  0x60   : > { %v1087_v0 = vor.u32 %v1086_v55, %v1083_v53  ;;  %844 = vst [vmem:[#allocation2 + $0x20] sm:$0x1] %v843_v60  ;;  %v3864_v1 = vor.u32 %v4389_v46, %v3861_v62  ;;  %v3941_v3 = vld [vmem:[%s6725_s4 + $0x138] sm:$0xf0]  ;;  %v538_v7 = vld [vmem:[#allocation2 + $0x54] sm:$0x1] }
  0x61   : > { %v1098_v4 = vrot.slane %v1097_v58, 4  ;;  %v3944_v6 = vor.u32 %v4423_v2, %v3941_v3  ;;  %v570_v8 = vld [vmem:[#allocation2 + $0x5c] sm:$0x1]  ;;  %v539_v10 = vsel %vm4826_vm2, 0, %v538_v7  ;;  %v666_v12 = vld [vmem:[%s4888_s19 + $0x30] sm:$0xf] }
  0x62   : > { %v1088_v9 = vrot.slane %v1087_v0, 4  ;;  %1536 = vmatpush.bf16.msrb.mxu3 %v3864_v1  ;;  %v571_v11 = vsel %vm4840_vm4, 0, %v570_v8  ;;  %540 = vst [vmem:[#allocation2 + $0x54] sm:$0x1] %v539_v10  ;;  %v667_v14 = vld [vmem:[%s4888_s19 + $0x34] sm:$0xf] }
  0x63   : > { %v1103_v13 = vsel %vm5011_vm12, %v1098_v4, %v1102_v59  ;;  %1828 = vmatpush.bf16.msrb.mxu1 %v3944_v6  ;;  %v773_v15 = vshrl.u32 %v666_v12, 16  ;;  %v776_v16 = vshll.u32 %v666_v12, 16  ;;  %572 = vst [vmem:[#allocation2 + $0x5c] sm:$0x1] %v571_v11  ;;  %v781_v19 = vshrl.u32 %v667_v14, 16 }
  0x64   : > { %v1093_v17 = vsel %vm5011_vm12, %v1088_v9, %v1092_v47  ;;  %v1157_v18 = vunpack.c.l.b16 %v1103_v13  ;;  %v3851_v20 = vld [vmem:[%s6725_s4 + $0x10] sm:$0xf]  ;;  %v5213_v25 = vld [vmem:[#allocation2 + $0x1c] sm:$0xf]  ;;  %v784_v30 = vshll.u32 %v667_v14, 16 }
  0x65   : > { %v1156_v24 = vunpack.c.l.b16 %v1093_v17  ;;  %v775_v29 = vrot.slane %v773_v15, 7  ;;  %v4388_v31 = vld [vmem:[%s6725_s4 + $0x14] sm:$0xf0]  ;;  %v994_v37 = vshll.u32 %v5213_v25, 16  ;;  %v998_v38 = vshrl.u32 %v5213_v25, 16 }
  0x66   : > { %v5218_v36 = vld [vmem:[#allocation2 + $0x18] sm:$0xf]  ;;  %v783_v39 = vrot.slane %v781_v19, 7  ;;  %v3852_v41 = vor.u32 %v4388_v31, %v3851_v20  ;;  %v3931_v48 = vld [vmem:[%s6725_s4 + $0x120] sm:$0xf] }
  0x67   : > { %v5222_v42 = vpack.c.b16 %v1157_v18, %v1156_v24  ;;  %v5224_v43 = vld [vmem:[#allocation2 + $0x20] sm:$0x1]  ;;  %v985_v44 = vshrl.u32 %v5218_v36, 16  ;;  %v988_v46 = vshll.u32 %v5218_v36, 16  ;;  %v778_v47 = vor.u32 %v776_v16, %v775_v29  ;;  %v4422_v55 = vld [vmem:[%s6725_s4 + $0x124] sm:$0xf0] }
  0x68   : > { %v996_v49 = vrot.slane %v994_v37, 5  ;;  %v1000_v51 = vrot.slane %v998_v38, 4  ;;  %v1004_v52 = vshll.u32 %v5224_v43, 16  ;;  %v779_v53 = vrot.slane %v775_v29, 4  ;;  %1488 = vmatpush.bf16.msrb.mxu2 %v3852_v41  ;;  %v526_v60 = vld [vmem:[#allocation2 + $0x24] sm:$0x1] }
  0x69   : > { %6768 = vst [vmem:[#allocation6_spill] sm:$0xff] %v5222_v42  ;;  %1294 = vmatmul.bf16.gmra.mxu2 %v5222_v42  ;;  %1343 = vmatmul.bf16.gmra.mxu3 %v5222_v42  ;;  %v987_v56 = vrot.slane %v985_v44, 4  ;;  %v990_v57 = vrot.slane %v988_v46, 5  ;;  %v786_v58 = vor.u32 %v784_v30, %v783_v39  ;;  %v788_v59 = vrot.slane %v783_v39, 4  ;;  %v873_v1 = vld [vmem:[#allocation2 + $0x54] sm:$0xf] }
  0x6a   : > { %v1001_v62 = vor.u32 %v1000_v51, %v996_v49  ;;  %v1006_v0 = vrot.slane %v1004_v52, 5  ;;  %v3932_v2 = vor.u32 %v4422_v55, %v3931_v48  ;;  %v527_v3 = vsel %vm4826_vm2, 0, %v526_v60  ;;  %v558_v4 = vld [vmem:[#allocation2 + $0x2c] sm:$0x1]  ;;  %v877_v9 = vld [vmem:[#allocation2 + $0x5c] sm:$0x1] }
  0x6b   : > { %v991_v6 = vor.u32 %v990_v57, %v987_v56  ;;  %v787_v7 = vsel %vm4916_vm7, %v779_v53, %v786_v58  ;;  %v874_v8 = vsel %vm4924_vm8, %v778_v47, %v873_v1  ;;  %528 = vst [vmem:[#allocation2 + $0x24] sm:$0x1] %v527_v3  ;;  %v878_v11 = vsel %vm4826_vm2, %v788_v59, %v877_v9  ;;  %v658_v13 = vld [vmem:[%s4888_s19 + $0x10] sm:$0xf]  ;;  %v659_v15 = vld [vmem:[%s4888_s19 + $0x14] sm:$0xf] }
  0x6c   : > { %v1002_v10 = vrot.slane %v1001_v62, 4  ;;  %875 = vst [vmem:[#allocation2 + $0x54] sm:$0xf] %v874_v8  ;;  %1780 = vmatpush.bf16.msrb.mxu0 %v3932_v2  ;;  %v559_v12 = vsel %vm4840_vm4, 0, %v558_v4  ;;  %v705_v16 = vshrl.u32 %v658_v13, 16  ;;  %v708_v18 = vshll.u32 %v658_v13, 16 }
  0x6d   : > { %v992_v14 = vrot.slane %v991_v6, 4  ;;  %876 = vst [vmem:[#allocation2 + $0x58] sm:$0xf] %v787_v7  ;;  %v713_v19 = vshrl.u32 %v659_v15, 16  ;;  %v716_v20 = vshll.u32 %v659_v15, 16  ;;  %v1593_v51 = vrot.slane %v5031_v50, 5 }
  0x6e   : > { %v1007_v17 = vsel %vm5011_vm12, %v1002_v10, %v1006_v0  ;;  %879 = vst [vmem:[#allocation2 + $0x5c] sm:$0x1] %v878_v11  ;;  %v707_v30 = vrot.slane %v705_v16, 7  ;;  %v4387_v31 = vld [vmem:[%s6725_s4 + $0x14] sm:$0xf] }
  0x6f   : > { %v997_v24 = vsel %vm5011_vm12, %v992_v14, %v996_v49  ;;  %v1149_v29 = vunpack.c.l.b16 %v1007_v17  ;;  %560 = vst [vmem:[#allocation2 + $0x2c] sm:$0x1] %v559_v12  ;;  %v715_v38 = vrot.slane %v713_v19, 7  ;;  %v3853_v39 = vld [vmem:[%s6725_s4 + $0x18] sm:$0xf0] }
  0x70   : > { %v1148_v37 = vunpack.c.l.b16 %v997_v24  ;;  %v4421_v41 = vld [vmem:[%s6725_s4 + $0x124] sm:$0xf]  ;;  %v710_v44 = vor.u32 %v708_v18, %v707_v30  ;;  %v711_v46 = vrot.slane %v707_v30, 4  ;;  %v3856_v47 = vor.u32 %v4387_v31, %v3853_v39  ;;  %v3933_v48 = vld [vmem:[%s6725_s4 + $0x128] sm:$0xf0] }
  0x71   : > { %v3843_v49 = vld [vmem:[%s6725_s4] sm:$0xf]  ;;  %v718_v53 = vor.u32 %v716_v20, %v715_v38  ;;  %v720_v55 = vrot.slane %v715_v38, 4  ;;  %v3936_v57 = vor.u32 %v4421_v41, %v3933_v48  ;;  %v4386_v58 = vld [vmem:[%s6725_s4 + $0x4] sm:$0xf0] }
  0x72   : > { %v5269_v52 = vpack.c.b16 %v1149_v29, %v1148_v37  ;;  %v845_v56 = vld [vmem:[#allocation2 + $0x24] sm:$0xf]  ;;  %1537 = vmatpush.bf16.msrb.mxu3 %v3856_v47  ;;  %v3844_v62 = vor.u32 %v4386_v58, %v3843_v49  ;;  %v3923_v0 = vld [vmem:[%s6725_s4 + $0x110] sm:$0xf]  ;;  %v4420_v1 = vld [vmem:[%s6725_s4 + $0x114] sm:$0xf0] }
  0x73   : > { %v5274_v59 = vld [vmem:[#allocation2 + $0x54] sm:$0xf]  ;;  %v846_v60 = vsel %vm4924_vm8, %v710_v44, %v845_v56  ;;  %v719_v6 = vsel %vm4916_vm7, %v711_v46, %v718_v53  ;;  %v3924_v7 = vor.u32 %v4420_v1, %v3923_v0  ;;  %1829 = vmatpush.bf16.msrb.mxu1 %v3936_v57  ;;  %v4385_v18 = vld [vmem:[%s6725_s4 + $0x4] sm:$0xf]  ;;  %v3845_v19 = vld [vmem:[%s6725_s4 + $0x8] sm:$0xf0] }
  0x74   : > { %1274 = vmatmul.bf16.gmra.mxu0 %v5269_v52  ;;  %1323 = vmatmul.bf16.gmra.mxu1 %v5269_v52  ;;  %v5286_v2 = vld [vmem:[#allocation2 + $0x58] sm:$0xf]  ;;  %v1105_v3 = vshrl.u32 %v5274_v59, 16  ;;  %v1108_v4 = vshll.u32 %v5274_v59, 16  ;;  %847 = vst [vmem:[#allocation2 + $0x24] sm:$0xf] %v846_v60  ;;  %v3848_v29 = vor.u32 %v4385_v18, %v3845_v19 }
  0x75   : > { %v5292_v8 = vld [vmem:[#allocation2 + $0x5c] sm:$0x1]  ;;  %v1114_v9 = vshll.u32 %v5286_v2, 16  ;;  %v1118_v10 = vshrl.u32 %v5286_v2, 16  ;;  %848 = vst [vmem:[#allocation2 + $0x28] sm:$0xf] %v719_v6  ;;  %1489 = vmatpush.bf16.msrb.mxu2 %v3844_v62  ;;  %1781 = vmatpush.bf16.msrb.mxu0 %v3924_v7 }
  0x76   : > { %v1107_v11 = vrot.slane %v1105_v3, 4  ;;  %v1110_v12 = vrot.slane %v1108_v4, 5  ;;  %v1124_v13 = vshll.u32 %v5292_v8, 16  ;;  %v849_v14 = vld [vmem:[#allocation2 + $0x2c] sm:$0x1]  ;;  %1538 = vmatpush.bf16.msrb.mxu3 %v3848_v29  ;;  %v6769_v49 = vmov 0 }
  0x77   : > { %v1116_v15 = vrot.slane %v1114_v9, 5  ;;  %v1120_v16 = vrot.slane %v1118_v10, 4  ;;  %v850_v17 = vsel %vm4826_vm2, %v720_v55, %v849_v14  ;;  %v4419_v30 = vld [vmem:[%s6725_s4 + $0x114] sm:$0xf]  ;;  %v3925_v37 = vld [vmem:[%s6725_s4 + $0x118] sm:$0xf0] }
  0x78   : > { %v1111_v20 = vor.u32 %v1110_v12, %v1107_v11  ;;  %v1126_v24 = vrot.slane %v1124_v13, 5  ;;  %851 = vst [vmem:[#allocation2 + $0x2c] sm:$0x1] %v850_v17  ;;  %v3915_v38 = vld [vmem:[%s6725_s4 + $0x100] sm:$0xf]  ;;  %v3928_v44 = vor.u32 %v4419_v30, %v3925_v37  ;;  %v6770_v49 = vsel %vm5324_vm15, 4294967295, %v6769_v49 }
  0x79   : > { %v1121_v31 = vor.u32 %v1120_v16, %v1116_v15  ;;  %v4418_v39 = vld [vmem:[%s6725_s4 + $0x104] sm:$0xf0]  ;;  %v4039_v47 = vld [vmem:[%s6725_s4 + $0x1f0] sm:$0xf]  ;;  %v4448_v48 = vld [vmem:[%s6725_s4 + $0x1f4] sm:$0xf0] }
  0x7a   : > { %v1112_v41 = vrot.slane %v1111_v20, 4  ;;  %v3916_v46 = vor.u32 %v4418_v39, %v3915_v38  ;;  %6771 = vst [vmem:[#allocation7_spill] sm:$0xff] %v6770_v49  ;;  %v3905_v53 = vrot.slane %v5027_v45, 9  ;;  %v4040_v57 = vor.u32 %v4448_v48, %v4039_v47  ;;  %v4417_v58 = vld [vmem:[%s6725_s4 + $0x104] sm:$0xf]  ;;  %1830 = vmatpush.bf16.msrb.mxu1 %v3928_v44 }
  0x7b   : > { %v1122_v55 = vrot.slane %v1121_v31, 4  ;;  %v5329_v56 = vld [vmem:[#allocation2 + $0x24] sm:$0xf]  ;;  %v1595_v60 = vrot.slane %v1593_v51, 4  ;;  %v3917_v3 = vld [vmem:[%s6725_s4 + $0x108] sm:$0xf0] }
  0x7c   : > { %v1117_v62 = vsel %vm5011_vm12, %v1112_v41, %v1116_v15  ;;  %v5338_v0 = vld [vmem:[#allocation2 + $0x28] sm:$0xf]  ;;  %v1009_v1 = vshrl.u32 %v5329_v56, 16  ;;  %v1012_v45 = vshll.u32 %v5329_v56, 16  ;;  %1782 = vmatpush.bf16.msrb.mxu0 %v3916_v46  ;;  %v1594_v4 = vsel %vm5324_vm15, %v3905_v53, %v1593_v51  ;;  %2007 = vmatpush.bf16.msra.mxu2 %v4040_v57  ;;  %v4447_v11 = vld [vmem:[%s6725_s4 + $0x1f4] sm:$0xf] }
  0x7d   : > { %v1127_v6 = vsel %vm5011_vm12, %v1122_v55, %v1126_v24  ;;  %v1158_v7 = vunpack.c.l.b16 %v1117_v62  ;;  %v1018_v9 = vshll.u32 %v5338_v0, 16  ;;  %v1022_v10 = vshrl.u32 %v5338_v0, 16  ;;  %v4041_v50 = vld [vmem:[%s6725_s4 + $0x1f8] sm:$0xf0]  ;;  %v4103_v15 = vld [vmem:[%s6725_s4 + $0x270] sm:$0xf] }
  0x7e   : > { %v1159_v12 = vunpack.c.l.b16 %v1127_v6  ;;  %v1011_v13 = vrot.slane %v1009_v1, 4  ;;  %v1014_v51 = vrot.slane %v1012_v45, 5  ;;  %v3920_v14 = vor.u32 %v4417_v58, %v3917_v3  ;;  %v4464_v16 = vld [vmem:[%s6725_s4 + $0x274] sm:$0xf0]  ;;  %v4463_v38 = vld [vmem:[%s6725_s4 + $0x274] sm:$0xf] }
  0x7f   : > { %v5365_v17 = vld [vmem:[#allocation2 + $0x2c] sm:$0x1]  ;;  %v1020_v18 = vrot.slane %v1018_v9, 5  ;;  %v1024_v19 = vrot.slane %v1022_v10, 4  ;;  %v1596_v20 = vrot.slane %v5035_v54, 5  ;;  %v1663_v24 = vunpack.c.l.b16 %v1594_v4 }
  0x80   : > { %v5368_v29 = vpack.c.b16 %v1159_v12, %v1158_v7  ;;  %v1015_v30 = vor.u32 %v1014_v51, %v1011_v13  ;;  %v1028_v31 = vshll.u32 %v5365_v17, 16  ;;  %1831 = vmatpush.bf16.msrb.mxu1 %v3920_v14  ;;  %v4044_v37 = vor.u32 %v4447_v11, %v4041_v50  ;;  %v4105_v39 = vld [vmem:[%s6725_s4 + $0x278] sm:$0xf0]  ;;  %v4031_v55 = vld [vmem:[%s6725_s4 + $0x1e0] sm:$0xf] }
  0x81   : > { %v1025_v41 = vor.u32 %v1024_v19, %v1020_v18  ;;  %v1597_v54 = vsel %vm5324_vm15, %v1595_v60, %v1596_v20  ;;  %v4104_v44 = vor.u32 %v4464_v16, %v4103_v15  ;;  %v4108_v46 = vor.u32 %v4463_v38, %v4105_v39  ;;  %v4446_v57 = vld [vmem:[%s6725_s4 + $0x1e4] sm:$0xf0]  ;;  %v4445_v13 = vld [vmem:[%s6725_s4 + $0x1e4] sm:$0xf]  ;;  %v4033_v51 = vld [vmem:[%s6725_s4 + $0x1e8] sm:$0xf0] }
  0x82   : > { %6772 = vst [vmem:[#allocation8_spill] sm:$0xff] %v5368_v29  ;;  %1299 = vmatmul.bf16.gmra.mxu2 %v5368_v29  ;;  %1348 = vmatmul.bf16.gmra.mxu3 %v5368_v29  ;;  %v1016_v47 = vrot.slane %v1015_v30, 4  ;;  %v1030_v48 = vrot.slane %v1028_v31, 5  ;;  %v1664_v53 = vunpack.c.l.b16 %v1597_v54  ;;  %v4032_v60 = vor.u32 %v4446_v57, %v4031_v55  ;;  %v4095_v14 = vld [vmem:[%s6725_s4 + $0x260] sm:$0xf] }
  0x83   : > { %v1026_v58 = vrot.slane %v1025_v41, 4  ;;  %2056 = vmatpush.bf16.msra.mxu3 %v4044_v37  ;;  %2261 = vmatpush.bf16.msra.mxu0 %v4104_v44  ;;  %v3906_v62 = vrot.slane %v5113_v26, 9  ;;  %v1600_v1 = vrot.slane %v5108_v22, 5  ;;  %v1603_v4 = vrot.slane %v5117_v34, 5  ;;  %v4462_v16 = vld [vmem:[%s6725_s4 + $0x264] sm:$0xf0] }
  0x84   : > { %v1021_v45 = vsel %vm5011_vm12, %v1016_v47, %v1020_v18  ;;  %v1679_v3 = vpack.c.b16 %v1664_v53, %v1663_v24  ;;  %2310 = vmatpush.bf16.msra.mxu1 %v4108_v46  ;;  %2008 = vmatpush.bf16.msra.mxu2 %v4032_v60  ;;  %v4036_v15 = vor.u32 %v4445_v13, %v4033_v51  ;;  %v4461_v18 = vld [vmem:[%s6725_s4 + $0x264] sm:$0xf]  ;;  %v4097_v19 = vld [vmem:[%s6725_s4 + $0x268] sm:$0xf0]  ;;  %v1607_v31 = vrot.slane %v5213_v25, 5 }
  0x85   : > { %v1031_v6 = vsel %vm5011_vm12, %v1026_v58, %v1030_v48  ;;  %v1150_v7 = vunpack.c.l.b16 %v1021_v45  ;;  %v1601_v9 = vsel %vm5324_vm15, %v3906_v62, %v1600_v1  ;;  %v1602_v10 = vrot.slane %v1600_v1, 4  ;;  %v4375_v30 = vld [vmem:[#allocation2] sm:$0xff]  ;;  %v4023_v37 = vld [vmem:[%s6725_s4 + $0x1d0] sm:$0xf]  ;;  %v4444_v38 = vld [vmem:[%s6725_s4 + $0x1d4] sm:$0xf0] }
  0x86   : > { %v1151_v11 = vunpack.c.l.b16 %v1031_v6  ;;  %v1665_v26 = vunpack.c.l.b16 %v1601_v9  ;;  %v4096_v20 = vor.u32 %v4462_v16, %v4095_v14  ;;  %v4100_v24 = vor.u32 %v4461_v18, %v4097_v19  ;;  %v4087_v55 = vld [vmem:[%s6725_s4 + $0x250] sm:$0xf]  ;;  %v4460_v58 = vld [vmem:[%s6725_s4 + $0x254] sm:$0xf0]  ;;  %v4459_v60 = vld [vmem:[%s6725_s4 + $0x254] sm:$0xf] }
  0x87   : > { %v1604_v22 = vsel %vm5324_vm15, %v1602_v10, %v1603_v4  ;;  %2057 = vmatpush.bf16.msra.mxu3 %v4036_v15  ;;  %v3907_v39 = vrot.slane %v5218_v36, 9  ;;  %v1610_v41 = vrot.slane %v5224_v43, 5  ;;  %v4024_v54 = vor.u32 %v4444_v38, %v4023_v37  ;;  %v4443_v36 = vld [vmem:[%s6725_s4 + $0x1d4] sm:$0xf]  ;;  %v4025_v43 = vld [vmem:[%s6725_s4 + $0x1d8] sm:$0xf0] }
  0x88   : > { %v5398_v50 = vpack.c.b16 %v1151_v11, %v1150_v7  ;;  %v1666_v12 = vunpack.c.l.b16 %v1604_v22  ;;  %2262 = vmatpush.bf16.msra.mxu0 %v4096_v20  ;;  %2311 = vmatpush.bf16.msra.mxu1 %v4100_v24  ;;  %v1609_v44 = vrot.slane %v1607_v31, 4  ;;  %v4028_v57 = vor.u32 %v4443_v36, %v4025_v43  ;;  %v4089_v62 = vld [vmem:[%s6725_s4 + $0x258] sm:$0xf0]  ;;  %v4015_v6 = vld [vmem:[%s6725_s4 + $0x1c0] sm:$0xf]  ;;  %v5524_v43 = vld [vmem:[#allocation2 + $0x24] sm:$0xff] }
  0x89   : > { %v1608_v46 = vsel %vm5324_vm15, %v3907_v39, %v1607_v31  ;;  %2009 = vmatpush.bf16.msra.mxu2 %v4024_v54  ;;  %v4088_v1 = vor.u32 %v4460_v58, %v4087_v55  ;;  %v4092_v45 = vor.u32 %v4459_v60, %v4089_v62  ;;  %v1614_v4 = vrot.slane %v5338_v0, 5  ;;  %v4442_v7 = vld [vmem:[%s6725_s4 + $0x1c4] sm:$0xf0]  ;;  %v4079_v14 = vld [vmem:[%s6725_s4 + $0x240] sm:$0xf] }
  0x8a   : > { %6773 = vst [vmem:[#allocation9_spill] sm:$0xff] %v5398_v50  ;;  %1279 = vmatmul.bf16.gmra.mxu0 %v5398_v50  ;;  %1328 = vmatmul.bf16.gmra.mxu1 %v5398_v50  ;;  %v5402_v34 = vpack.c.b16 %v1666_v12, %v1665_v26  ;;  %v1611_v25 = vsel %vm5324_vm15, %v1609_v44, %v1610_v41  ;;  %v1667_v47 = vunpack.c.l.b16 %v1608_v46  ;;  %v3908_v9 = vrot.slane %v5329_v56, 9  ;;  %v4441_v56 = vld [vmem:[%s6725_s4 + $0x1c4] sm:$0xf]  ;;  %v4458_v16 = vld [vmem:[%s6725_s4 + $0x244] sm:$0xf0] }
  0x8b   : > { %v1668_v48 = vunpack.c.l.b16 %v1611_v25  ;;  %2058 = vmatpush.bf16.msra.mxu3 %v4028_v57  ;;  %v1617_v10 = vrot.slane %v5365_v17, 5  ;;  %v4016_v11 = vor.u32 %v4442_v7, %v4015_v6  ;;  %v1616_v26 = vrot.slane %v1614_v4, 4  ;;  %v4017_v17 = vld [vmem:[%s6725_s4 + $0x1c8] sm:$0xf0]  ;;  %v4457_v18 = vld [vmem:[%s6725_s4 + $0x244] sm:$0xf] }
  0x8c   : > { %2263 = vmatpush.bf16.msra.mxu0 %v4088_v1  ;;  %2312 = vmatpush.bf16.msra.mxu1 %v4092_v45  ;;  %v1615_v0 = vsel %vm5324_vm15, %v3908_v9, %v1614_v4  ;;  %v4020_v15 = vor.u32 %v4441_v56, %v4017_v17  ;;  %v4081_v19 = vld [vmem:[%s6725_s4 + $0x248] sm:$0xf0]  ;;  %v4080_v20 = vor.u32 %v4458_v16, %v4079_v14  ;;  %v4007_v31 = vld [vmem:[%s6725_s4 + $0x1b0] sm:$0xf]  ;;  %v4440_v37 = vld [vmem:[%s6725_s4 + $0x1b4] sm:$0xf0] }
  0x8d   : > { %v5435_v53 = vpack.c.b16 %v1668_v48, %v1667_v47  ;;  %2010 = vmatpush.bf16.msra.mxu2 %v4016_v11  ;;  %v1618_v22 = vsel %vm5324_vm15, %v1616_v26, %v1617_v10  ;;  %v1669_v12 = vunpack.c.l.b16 %v1615_v0  ;;  %v4084_v24 = vor.u32 %v4457_v18, %v4081_v19  ;;  %v4439_v39 = vld [vmem:[%s6725_s4 + $0x1b4] sm:$0xf]  ;;  %v4009_v41 = vld [vmem:[%s6725_s4 + $0x1b8] sm:$0xf0]  ;;  %v4071_v54 = vld [vmem:[%s6725_s4 + $0x230] sm:$0xf] }
  0x8e   : > { %v1670_v13 = vunpack.c.l.b16 %v1618_v22  ;;  %v4008_v38 = vor.u32 %v4440_v37, %v4007_v31  ;;  %v4012_v44 = vor.u32 %v4439_v39, %v4009_v41  ;;  %v4456_v46 = vld [vmem:[%s6725_s4 + $0x234] sm:$0xf0]  ;;  %v4455_v25 = vld [vmem:[%s6725_s4 + $0x234] sm:$0xf]  ;;  %v4073_v47 = vld [vmem:[%s6725_s4 + $0x238] sm:$0xf0] }
  0x8f   : > { %2059 = vmatpush.bf16.msra.mxu3 %v4020_v15  ;;  %v4072_v48 = vor.u32 %v4456_v46, %v4071_v54  ;;  %v4076_v36 = vor.u32 %v4455_v25, %v4073_v47  ;;  %v3999_v55 = vld [vmem:[%s6725_s4 + $0x1a0] sm:$0xf]  ;;  %v4438_v57 = vld [vmem:[%s6725_s4 + $0x1a4] sm:$0xf0]  ;;  %v4634_v60 = vld [vmem:[#allocation2 + $0x34] sm:$0xf] }
  0x90   : > { %v5472_v51 = vpack.c.b16 %v1670_v13, %v1669_v12  ;;  %2264 = vmatpush.bf16.msra.mxu0 %v4080_v20  ;;  %2313 = vmatpush.bf16.msra.mxu1 %v4084_v24  ;;  %v4000_v58 = vor.u32 %v4438_v57, %v3999_v55  ;;  %v1621_v62 = vrot.slane %v4634_v60, 5  ;;  %v4635_v4 = vld [vmem:[#allocation2 + $0x30] sm:$0xf]  ;;  %v4636_v9 = vld [vmem:[#allocation2 + $0x38] sm:$0x1] }
  0x91   : > { %2011 = vmatpush.bf16.msra.mxu2 %v4008_v38  ;;  %v3909_v6 = vrot.slane %v4635_v4, 9  ;;  %v1624_v10 = vrot.slane %v4636_v9, 5  ;;  %v4437_v11 = vld [vmem:[%s6725_s4 + $0x1a4] sm:$0xf]  ;;  %v4001_v26 = vld [vmem:[%s6725_s4 + $0x1a8] sm:$0xf0] }
  0x92   : > { %1490 = vmatmul.bf16.vlgmr.msrb.gmra.mxu2 %v4375_v30  ;;  %1539 = vmatmul.bf16.vlgmr.msrb.gmra.mxu3 %v4375_v30  ;;  %6774 = vst [vmem:[#allocation10_spill] sm:$0xff] %v5472_v51  ;;  %v5494_v30 = vld [vmem:[#allocation2 + $0x18] sm:$0xff]  ;;  %v1623_v7 = vrot.slane %v1621_v62, 4  ;;  %v4063_v0 = vld [vmem:[%s6725_s4 + $0x220] sm:$0xf]  ;;  %v4004_v13 = vor.u32 %v4437_v11, %v4001_v26  ;;  %v5562_v18 = vld [vmem:[#allocation2 + $0x30] sm:$0xff] }
  0x93   : > { %2060 = vmatpush.bf16.msra.mxu3 %v4012_v44  ;;  %v4454_v56 = vld [vmem:[%s6725_s4 + $0x224] sm:$0xf0]  ;;  %v4453_v17 = vld [vmem:[%s6725_s4 + $0x224] sm:$0xf]  ;;  %v4065_v14 = vld [vmem:[%s6725_s4 + $0x228] sm:$0xf0]  ;;  %v1622_v19 = vsel %vm5324_vm15, %v3909_v6, %v1621_v62 }
  0x94   : > { %2265 = vmatpush.bf16.msra.mxu0 %v4072_v48  ;;  %2314 = vmatpush.bf16.msra.mxu1 %v4076_v36  ;;  %v4064_v15 = vor.u32 %v4454_v56, %v4063_v0  ;;  %v4068_v16 = vor.u32 %v4453_v17, %v4065_v14  ;;  %v1625_v20 = vsel %vm5324_vm15, %v1623_v7, %v1624_v10  ;;  %v1671_v24 = vunpack.c.l.b16 %v1622_v19  ;;  %v3991_v37 = vld [vmem:[%s6725_s4 + $0x190] sm:$0xf]  ;;  %v4436_v38 = vld [vmem:[%s6725_s4 + $0x194] sm:$0xf0]  ;;  %v4637_v25 = vld [vmem:[#allocation2 + $0x40] sm:$0xf] }
  0x95   : > { %2012 = vmatpush.bf16.msra.mxu2 %v4000_v58  ;;  %v1672_v31 = vunpack.c.l.b16 %v1625_v20  ;;  %v3992_v54 = vor.u32 %v4436_v38, %v3991_v37  ;;  %v1628_v47 = vrot.slane %v4637_v25, 5  ;;  %v4638_v36 = vld [vmem:[#allocation2 + $0x3c] sm:$0xf]  ;;  %v4639_v58 = vld [vmem:[#allocation2 + $0x44] sm:$0x1] }
  0x96   : > { %v3910_v55 = vrot.slane %v4638_v36, 9  ;;  %v1631_v60 = vrot.slane %v4639_v58, 5  ;;  %v4435_v62 = vld [vmem:[%s6725_s4 + $0x194] sm:$0xf]  ;;  %v3993_v4 = vld [vmem:[%s6725_s4 + $0x198] sm:$0xf0] }
  0x97   : > { %2061 = vmatpush.bf16.msra.mxu3 %v4004_v13  ;;  %v5584_v48 = vpack.c.b16 %v1672_v31, %v1671_v24  ;;  %v1630_v57 = vrot.slane %v1628_v47, 4  ;;  %v4055_v6 = vld [vmem:[%s6725_s4 + $0x210] sm:$0xf]  ;;  %v3996_v7 = vor.u32 %v4435_v62, %v3993_v4  ;;  %v4452_v9 = vld [vmem:[%s6725_s4 + $0x214] sm:$0xf0]  ;;  %v5610_v17 = vld [vmem:[#allocation2 + $0x3c] sm:$0xff] }
  0x98   : > { %2266 = vmatpush.bf16.msra.mxu0 %v4064_v15  ;;  %2315 = vmatpush.bf16.msra.mxu1 %v4068_v16  ;;  %v4451_v10 = vld [vmem:[%s6725_s4 + $0x214] sm:$0xf]  ;;  %v4057_v11 = vld [vmem:[%s6725_s4 + $0x218] sm:$0xf0]  ;;  %v4056_v26 = vor.u32 %v4452_v9, %v4055_v6  ;;  %v1629_v16 = vsel %vm5324_vm15, %v3910_v55, %v1628_v47  ;;  %v3983_v31 = vld [vmem:[%s6725_s4 + $0x180] sm:$0xf] }
  0x99   : > { %2013 = vmatpush.bf16.msra.mxu2 %v3992_v54  ;;  %6775 = vst [vmem:[#allocation11_spill] sm:$0xff] %v5584_v48  ;;  %v4060_v0 = vor.u32 %v4451_v10, %v4057_v11  ;;  %v1632_v19 = vsel %vm5324_vm15, %v1630_v57, %v1631_v60  ;;  %v1673_v20 = vunpack.c.l.b16 %v1629_v16  ;;  %v4434_v37 = vld [vmem:[%s6725_s4 + $0x184] sm:$0xf0]  ;;  %v1635_v36 = vrot.slane %v5161_v23, 5  ;;  %v4433_v58 = vld [vmem:[%s6725_s4 + $0x184] sm:$0xf] }
  0x9a   : > { %1783 = vmatmul.bf16.vlgmr.msrb.gmra.mxu0 %v1679_v3  ;;  %1832 = vmatmul.bf16.vlgmr.msrb.gmra.mxu1 %v1679_v3  ;;  %v5455_v3 = vld [vmem:[#allocation2 + $0xc] sm:$0xff]  ;;  %v1674_v24 = vunpack.c.l.b16 %v1632_v19  ;;  %v3984_v38 = vor.u32 %v4434_v37, %v3983_v31  ;;  %v4047_v23 = vld [vmem:[%s6725_s4 + $0x200] sm:$0xf]  ;;  %v3911_v62 = vrot.slane %v5168_v35, 9  ;;  %v1638_v6 = vrot.slane %v5175_v40, 5 }
  0x9b   : > { %2062 = vmatpush.bf16.msra.mxu3 %v3996_v7  ;;  %v3985_v60 = vld [vmem:[%s6725_s4 + $0x188] sm:$0xf0]  ;;  %v1637_v4 = vrot.slane %v1635_v36, 4  ;;  %v4450_v9 = vld [vmem:[%s6725_s4 + $0x204] sm:$0xf0] }
  0x9c   : > { %2267 = vmatpush.bf16.msra.mxu0 %v4056_v26  ;;  %2316 = vmatpush.bf16.msra.mxu1 %v4060_v0  ;;  %v5628_v54 = vpack.c.b16 %v1674_v24, %v1673_v20  ;;  %v3988_v7 = vor.u32 %v4433_v58, %v3985_v60  ;;  %v4048_v10 = vor.u32 %v4450_v9, %v4047_v23  ;;  %v5655_v11 = vld [vmem:[#allocation2 + $0x48] sm:$0xff]  ;;  %v4449_v35 = vld [vmem:[%s6725_s4 + $0x204] sm:$0xf]  ;;  %v4168_v37 = vld [vmem:[%s6725_s4 + $0x2f0] sm:$0xf] }
  0x9d   : > { %2014 = vmatpush.bf16.msra.mxu2 %v3984_v38  ;;  %v1636_v26 = vsel %vm5324_vm15, %v3911_v62, %v1635_v36  ;;  %v1639_v0 = vsel %vm5324_vm15, %v1637_v4, %v1638_v6  ;;  %v4049_v40 = vld [vmem:[%s6725_s4 + $0x208] sm:$0xf0]  ;;  %v4480_v38 = vld [vmem:[%s6725_s4 + $0x2f4] sm:$0xf0]  ;;  %v1642_v62 = vrot.slane %v5286_v2, 5  ;;  %v3912_v2 = vrot.slane %v5274_v59, 9 }
  0x9e   : > { %6776 = vst [vmem:[#allocation12_spill] sm:$0xff] %v5628_v54  ;;  %v4052_v16 = vor.u32 %v4449_v35, %v4049_v40  ;;  %v1675_v24 = vunpack.c.l.b16 %v1636_v26  ;;  %v1676_v31 = vunpack.c.l.b16 %v1639_v0  ;;  %v4169_v60 = vor.u32 %v4480_v38, %v4168_v37  ;;  %v4479_v4 = vld [vmem:[%s6725_s4 + $0x2f4] sm:$0xf]  ;;  %v4170_v6 = vld [vmem:[%s6725_s4 + $0x2f8] sm:$0xf0] }
  0x9f   : > { %2063 = vmatpush.bf16.msra.mxu3 %v3988_v7  ;;  %v4236_v7 = vld [vmem:[%s6725_s4 + $0x370] sm:$0xf]  ;;  %v1644_v26 = vrot.slane %v1642_v62, 4  ;;  %v1645_v0 = vrot.slane %v5292_v8, 5  ;;  %v4173_v35 = vor.u32 %v4479_v4, %v4170_v6  ;;  %v4496_v40 = vld [vmem:[%s6725_s4 + $0x374] sm:$0xf0]  ;;  %v1643_v59 = vsel %vm5324_vm15, %v3912_v2, %v1642_v62 }
  0xa0   : > { %2268 = vmatpush.bf16.msra.mxu0 %v4048_v10  ;;  %2317 = vmatpush.bf16.msra.mxu1 %v4052_v16  ;;  %v5683_v23 = vpack.c.b16 %v1676_v31, %v1675_v24  ;;  %v4237_v16 = vor.u32 %v4496_v40, %v4236_v7  ;;  %v5710_v37 = vld [vmem:[#allocation2 + $0x54] sm:$0xff]  ;;  %v1677_v6 = vunpack.c.l.b16 %v1643_v59  ;;  %v4160_v62 = vld [vmem:[%s6725_s4 + $0x2e0] sm:$0xf]  ;;  %v4478_v2 = vld [vmem:[%s6725_s4 + $0x2e4] sm:$0xf0] }
  0xa1   : > { %2499 = vmatpush.bf16.msrb.mxu2 %v4169_v60  ;;  %v1646_v8 = vsel %vm5324_vm15, %v1644_v26, %v1645_v0  ;;  %v4495_v38 = vld [vmem:[%s6725_s4 + $0x374] sm:$0xf]  ;;  %v4238_v60 = vld [vmem:[%s6725_s4 + $0x378] sm:$0xf0]  ;;  %v4161_v26 = vor.u32 %v4478_v2, %v4160_v62  ;;  %s590_s27 = scalar_select %p589_p11, 1, 0 }
  0xa2   : > { %1495 = vmatmul.bf16.gmra.mxu2 %v5455_v3  ;;  %1544 = vmatmul.bf16.gmra.mxu3 %v5455_v3  ;;  %6777 = vst [vmem:[#allocation13_spill] sm:$0xff] %v5683_v23  ;;  %v4241_v4 = vor.u32 %v4495_v38, %v4238_v60  ;;  %v1678_v7 = vunpack.c.l.b16 %v1646_v8  ;;  %v4477_v8 = vld [vmem:[%s6725_s4 + $0x2e4] sm:$0xf]  ;;  %v4162_v38 = vld [vmem:[%s6725_s4 + $0x2e8] sm:$0xf0] }
  0xa3   : > { %2548 = vmatpush.bf16.msrb.mxu3 %v4173_v35  ;;  %v4228_v60 = vld [vmem:[%s6725_s4 + $0x360] sm:$0xf]  ;;  %v4497_v63 = vld [vmem:[%s6725_s4 + $0x384] sm:$0xf] }
  0xa4   : > { %2731 = vmatpush.bf16.msrb.mxu0 %v4237_v16  ;;  %2780 = vmatpush.bf16.msrb.mxu1 %v4241_v4  ;;  %v5734_v40 = vpack.c.b16 %v1678_v7, %v1677_v6  ;;  %v4165_v4 = vor.u32 %v4477_v8, %v4162_v38  ;;  %v4494_v6 = vld [vmem:[%s6725_s4 + $0x364] sm:$0xf0]  ;;  %v4230_v8 = vld [vmem:[%s6725_s4 + $0x368] sm:$0xf0] }
  0xa5   : > { %2500 = vmatpush.bf16.msrb.mxu2 %v4161_v26  ;;  %v4229_v7 = vor.u32 %v4494_v6, %v4228_v60  ;;  %v4152_v60 = vld [vmem:[%s6725_s4 + $0x2d0] sm:$0xf] }
  0xa6   : > { %6778 = vst [vmem:[#allocation14_spill] sm:$0xff] %v5734_v40 }
  0xa7   : > { %2549 = vmatpush.bf16.msrb.mxu3 %v4165_v4  ;;  %v4476_v4 = vld [vmem:[%s6725_s4 + $0x2d4] sm:$0xf0] }
  0xa8   : > { %2732 = vmatpush.bf16.msrb.mxu0 %v4229_v7  ;;  %v4153_v6 = vor.u32 %v4476_v4, %v4152_v60 }
  0xaa   : > { %1788 = vmatmul.bf16.gmra.mxu0 %v5402_v34  ;;  %1837 = vmatmul.bf16.gmra.mxu1 %v5402_v34 }
  0xab   : > { %2501 = vmatpush.bf16.msrb.mxu2 %v4153_v6 }
  0xb2   : > { %1500 = vmatmul.bf16.gmra.mxu2 %v5494_v30  ;;  %1549 = vmatmul.bf16.gmra.mxu3 %v5494_v30 }
  0xba   : > { %1793 = vmatmul.bf16.gmra.mxu0 %v5435_v53  ;;  %1842 = vmatmul.bf16.gmra.mxu1 %v5435_v53 }
  0xc2   : > { %1505 = vmatmul.bf16.gmra.mxu2 %v5524_v43  ;;  %1554 = vmatmul.bf16.gmra.mxu3 %v5524_v43 }
  0xc3   : > { %v5534_v1 = vpop.f32.mrf.mxu2  ;;  %v5536_v45 = vpop.f32.mrf.mxu3 }
  0xc6   : > { %v5549_v22 = vpop.f32.mrf.mxu0  ;;  %v5551_v12 = vpop.f32.mrf.mxu1 }
  0xca   : > { %1798 = vmatmul.bf16.gmra.mxu0 %v5472_v51  ;;  %1847 = vmatmul.bf16.gmra.mxu1 %v5472_v51 }
  0xcb   : > { %v5576_v39 = vpop.f32.mrf.mxu2  ;;  %v5578_v41 = vpop.f32.mrf.mxu3 }
  0xce   : > { %v5580_v44 = vpop.f32.mrf.mxu0  ;;  %v5582_v46 = vpop.f32.mrf.mxu1 }
  0xd2   : > { %1510 = vmatmul.bf16.gmra.mxu2 %v5562_v18  ;;  %1559 = vmatmul.bf16.gmra.mxu3 %v5562_v18 }
  0xd3   : > { %v5606_v13 = vpop.f32.mrf.mxu2  ;;  %v5608_v56 = vpop.f32.mrf.mxu3 }
  0xda   : > { %1803 = vmatmul.bf16.gmra.mxu0 %v5584_v48  ;;  %1852 = vmatmul.bf16.gmra.mxu1 %v5584_v48  ;;  %v5612_v14 = vpop.f32.mrf.mxu0  ;;  %v5614_v15 = vpop.f32.mrf.mxu1 }
  0xdb   : > { %v5630_v25 = vpop.f32.mrf.mxu2  ;;  %v5632_v47 = vpop.f32.mrf.mxu3 }
  0xe2   : > { %1515 = vmatmul.bf16.gmra.mxu2 %v5610_v17  ;;  %1564 = vmatmul.bf16.gmra.mxu3 %v5610_v17  ;;  %v5635_v55 = vpop.f32.mrf.mxu0  ;;  %v5637_v57 = vpop.f32.mrf.mxu1 }
  0xea   : > { %1808 = vmatmul.bf16.gmra.mxu0 %v5628_v54  ;;  %1857 = vmatmul.bf16.gmra.mxu1 %v5628_v54 }
  0xec   : > { %v5667_v19 = vpop.f32.mrf.mxu2  ;;  %v5669_v20 = vpop.f32.mrf.mxu3 }
  0xf1   : > { %v5679_v36 = vpop.f32.mrf.mxu0  ;;  %v5681_v58 = vpop.f32.mrf.mxu1 }
  0xf2   : > { %1520 = vmatmul.bf16.gmra.mxu2 %v5655_v11  ;;  %1569 = vmatmul.bf16.gmra.mxu3 %v5655_v11 }
  0xf4   : > { %v5697_v9 = vpop.f32.mrf.mxu2  ;;  %v5699_v10 = vpop.f32.mrf.mxu3 }
  0xf9   : > { %v5706_v24 = vpop.f32.mrf.mxu0  ;;  %v5708_v31 = vpop.f32.mrf.mxu1 }
  0xfa   : > { %1813 = vmatmul.bf16.gmra.mxu0 %v5683_v23  ;;  %1862 = vmatmul.bf16.gmra.mxu1 %v5683_v23 }
 0x102   : > { %1525 = vmatmul.bf16.gmra.mxu2 %v5710_v37  ;;  %1574 = vmatmul.bf16.gmra.mxu3 %v5710_v37 }
 0x105   : > { %v5730_v0 = vpop.f32.mrf.mxu2  ;;  %v5732_v35 = vpop.f32.mrf.mxu3 }
 0x107   : > { %v5736_v16 = vpop.f32.mrf.mxu0  ;;  %v5738_v59 = vpop.f32.mrf.mxu1 }
 0x10a   : > { %1818 = vmatmul.bf16.gmra.mxu0 %v5734_v40  ;;  %1867 = vmatmul.bf16.gmra.mxu1 %v5734_v40  ;;  %v4493_v40 = vld [vmem:[%s6725_s4 + $0x364] sm:$0xf] }
 0x10b   : > { %v4233_v38 = vor.u32 %v4493_v40, %v4230_v8 }
 0x10d   : > { %v5754_v62 = vpop.f32.mrf.mxu2  ;;  %v5756_v2 = vpop.f32.mrf.mxu3  ;;  %2781 = vmatpush.bf16.msrb.mxu1 %v4233_v38  ;;  %v4475_v38 = vld [vmem:[%s6725_s4 + $0x2d4] sm:$0xf] }
 0x10f   : > { %v5758_v26 = vpop.f32.mrf.mxu0  ;;  %v5760_v49 = vpop.f32.mrf.mxu1 }
 0x112   : > { %2015 = vmatmul.bf16.vlgmr.msra.gmra.mxu2 %v5455_v3  ;;  %2064 = vmatmul.bf16.vlgmr.msra.gmra.mxu3 %v5455_v3 }
 0x115   : > { %v1491_v7 = vpop.f32.mrf.mxu2  ;;  %v1540_v23 = vpop.f32.mrf.mxu3 }
 0x116   : > { %v1492_v54 = vadd.f32 %v1491_v7, %v5549_v22  ;;  %v1541_v40 = vadd.f32 %v1540_v23, %v5551_v12  ;;  %v4154_v22 = vld [vmem:[%s6725_s4 + $0x2d8] sm:$0xf0]  ;;  %v4220_v12 = vld [vmem:[%s6725_s4 + $0x350] sm:$0xf] }
 0x117   : > { %v1784_v8 = vpop.f32.mrf.mxu0  ;;  %v1833_v48 = vpop.f32.mrf.mxu1 }
 0x118   : > { %v5778_v3 = vadd.f32 %v1784_v8, %v1492_v54  ;;  %v5780_v51 = vadd.f32 %v1833_v48, %v1541_v40  ;;  %v4157_v54 = vor.u32 %v4475_v38, %v4154_v22  ;;  %v4492_v48 = vld [vmem:[%s6725_s4 + $0x354] sm:$0xf0]  ;;  %v4491_v8 = vld [vmem:[%s6725_s4 + $0x354] sm:$0xf]  ;;  %v4222_v38 = vld [vmem:[%s6725_s4 + $0x358] sm:$0xf0] }
 0x119   : > { %v4221_v23 = vor.u32 %v4492_v48, %v4220_v12  ;;  %v4225_v22 = vor.u32 %v4491_v8, %v4222_v38  ;;  %v4473_v8 = vld [vmem:[%s6725_s4 + $0x2c4] sm:$0xf] }
 0x11a   : > { %2269 = vmatmul.bf16.vlgmr.msra.gmra.mxu0 %v5166_v33  ;;  %2318 = vmatmul.bf16.vlgmr.msra.gmra.mxu1 %v5166_v33 }
 0x11b   : > { %2550 = vmatpush.bf16.msrb.mxu3 %v4157_v54  ;;  %2733 = vmatpush.bf16.msrb.mxu0 %v4221_v23 }
 0x11c   : > { %2782 = vmatpush.bf16.msrb.mxu1 %v4225_v22  ;;  %v4490_v22 = vld [vmem:[%s6725_s4 + $0x344] sm:$0xf0] }
 0x11d   : > { %v1493_v60 = vpop.f32.mrf.mxu2  ;;  %v1542_v33 = vpop.f32.mrf.mxu3 }
 0x11e   : > { %v1494_v4 = vadd.f32 %v1493_v60, %v5580_v44  ;;  %v1543_v6 = vadd.f32 %v1542_v33, %v5582_v46  ;;  %v4144_v44 = vld [vmem:[%s6725_s4 + $0x2c0] sm:$0xf]  ;;  %v4474_v46 = vld [vmem:[%s6725_s4 + $0x2c4] sm:$0xf0] }
 0x11f   : > { %v1786_v7 = vpop.f32.mrf.mxu0  ;;  %v1835_v40 = vpop.f32.mrf.mxu1  ;;  %v4145_v54 = vor.u32 %v4474_v46, %v4144_v44 }
 0x120   : > { %v5804_v12 = vadd.f32 %v1786_v7, %v1494_v4  ;;  %v5806_v48 = vadd.f32 %v1835_v40, %v1543_v6 }
 0x121   : > { %2502 = vmatpush.bf16.msrb.mxu2 %v4145_v54 }
 0x122   : > { %2020 = vmatmul.bf16.gmra.mxu2 %v5494_v30  ;;  %2069 = vmatmul.bf16.gmra.mxu3 %v5494_v30 }
 0x125   : > { %v1496_v23 = vpop.f32.mrf.mxu2  ;;  %v1545_v60 = vpop.f32.mrf.mxu3 }
 0x126   : > { %v1497_v33 = vadd.f32 %v1496_v23, %v5612_v14  ;;  %v1546_v4 = vadd.f32 %v1545_v60, %v5614_v15  ;;  %v4146_v14 = vld [vmem:[%s6725_s4 + $0x2c8] sm:$0xf0]  ;;  %v4212_v15 = vld [vmem:[%s6725_s4 + $0x340] sm:$0xf] }
 0x127   : > { %v1789_v6 = vpop.f32.mrf.mxu0  ;;  %v1838_v7 = vpop.f32.mrf.mxu1  ;;  %v4149_v38 = vor.u32 %v4473_v8, %v4146_v14  ;;  %v4213_v44 = vor.u32 %v4490_v22, %v4212_v15 }
 0x128   : > { %v5818_v30 = vadd.f32 %v1789_v6, %v1497_v33  ;;  %v5820_v40 = vadd.f32 %v1838_v7, %v1546_v4  ;;  %v4489_v6 = vld [vmem:[%s6725_s4 + $0x344] sm:$0xf]  ;;  %v4214_v7 = vld [vmem:[%s6725_s4 + $0x348] sm:$0xf0] }
 0x129   : > { %2551 = vmatpush.bf16.msrb.mxu3 %v4149_v38  ;;  %2734 = vmatpush.bf16.msrb.mxu0 %v4213_v44  ;;  %v4217_v8 = vor.u32 %v4489_v6, %v4214_v7  ;;  %v4488_v7 = vld [vmem:[%s6725_s4 + $0x334] sm:$0xf0] }
 0x12a   : > { %2274 = vmatmul.bf16.gmra.mxu0 %v5269_v52  ;;  %2323 = vmatmul.bf16.gmra.mxu1 %v5269_v52 }
 0x12b   : > { %2783 = vmatpush.bf16.msrb.mxu1 %v4217_v8 }
 0x12d   : > { %v1498_v46 = vpop.f32.mrf.mxu2  ;;  %v1547_v54 = vpop.f32.mrf.mxu3 }
 0x12e   : > { %v1499_v23 = vadd.f32 %v1498_v46, %v5635_v55  ;;  %v1548_v60 = vadd.f32 %v1547_v54, %v5637_v57  ;;  %v4136_v55 = vld [vmem:[%s6725_s4 + $0x2b0] sm:$0xf]  ;;  %v4472_v57 = vld [vmem:[%s6725_s4 + $0x2b4] sm:$0xf0] }
 0x12f   : > { %v1791_v33 = vpop.f32.mrf.mxu0  ;;  %v1840_v4 = vpop.f32.mrf.mxu1  ;;  %v4137_v38 = vor.u32 %v4472_v57, %v4136_v55 }
 0x130   : > { %v5844_v14 = vadd.f32 %v1791_v33, %v1499_v23  ;;  %v5846_v15 = vadd.f32 %v1840_v4, %v1548_v60  ;;  %v4471_v4 = vld [vmem:[%s6725_s4 + $0x2b4] sm:$0xf] }
 0x131   : > { %2503 = vmatpush.bf16.msrb.mxu2 %v4137_v38 }
 0x132   : > { %2025 = vmatmul.bf16.gmra.mxu2 %v5524_v43  ;;  %2074 = vmatmul.bf16.gmra.mxu3 %v5524_v43 }
 0x135   : > { %v1501_v22 = vpop.f32.mrf.mxu2  ;;  %v1550_v44 = vpop.f32.mrf.mxu3 }
 0x136   : > { %v1502_v46 = vadd.f32 %v1501_v22, %v5679_v36  ;;  %v1551_v54 = vadd.f32 %v1550_v44, %v5681_v58  ;;  %v4138_v36 = vld [vmem:[%s6725_s4 + $0x2b8] sm:$0xf0]  ;;  %v4204_v58 = vld [vmem:[%s6725_s4 + $0x330] sm:$0xf] }
 0x137   : > { %v1794_v23 = vpop.f32.mrf.mxu0  ;;  %v1843_v60 = vpop.f32.mrf.mxu1  ;;  %v4141_v6 = vor.u32 %v4471_v4, %v4138_v36  ;;  %v4205_v8 = vor.u32 %v4488_v7, %v4204_v58 }
 0x138   : > { %v5858_v43 = vadd.f32 %v1794_v23, %v1502_v46  ;;  %v5860_v33 = vadd.f32 %v1843_v60, %v1551_v54  ;;  %v4487_v54 = vld [vmem:[%s6725_s4 + $0x334] sm:$0xf]  ;;  %v4206_v23 = vld [vmem:[%s6725_s4 + $0x338] sm:$0xf0] }
 0x139   : > { %2552 = vmatpush.bf16.msrb.mxu3 %v4141_v6  ;;  %2735 = vmatpush.bf16.msrb.mxu0 %v4205_v8  ;;  %v4209_v60 = vor.u32 %v4487_v54, %v4206_v23  ;;  %v4486_v54 = vld [vmem:[%s6725_s4 + $0x324] sm:$0xf0]  ;;  %v541_v23 = vld [vmem:[#allocation2 + $0x60] sm:$0x1] }
 0x13a   : > { %2279 = vmatmul.bf16.gmra.mxu0 %v5398_v50  ;;  %2328 = vmatmul.bf16.gmra.mxu1 %v5398_v50  ;;  %v4120_v50 = vld [vmem:[%s6725_s4 + $0x290] sm:$0xf] }
 0x13b   : > { %2784 = vmatpush.bf16.msrb.mxu1 %v4209_v60 }
 0x13d   : > { %v1503_v55 = vpop.f32.mrf.mxu2  ;;  %v1552_v57 = vpop.f32.mrf.mxu3 }
 0x13e   : > { %v1504_v38 = vadd.f32 %v1503_v55, %v5706_v24  ;;  %v1553_v22 = vadd.f32 %v1552_v57, %v5708_v31  ;;  %v4128_v24 = vld [vmem:[%s6725_s4 + $0x2a0] sm:$0xf]  ;;  %v4470_v31 = vld [vmem:[%s6725_s4 + $0x2a4] sm:$0xf0] }
 0x13f   : > { %v1796_v44 = vpop.f32.mrf.mxu0  ;;  %v1845_v46 = vpop.f32.mrf.mxu1  ;;  %v4129_v58 = vor.u32 %v4470_v31, %v4128_v24  ;;  %v542_v24 = vsel %vm4826_vm2, 0, %v541_v23 }
 0x140   : > { %v5884_v4 = vadd.f32 %v1796_v44, %v1504_v38  ;;  %v5886_v36 = vadd.f32 %v1845_v46, %v1553_v22  ;;  %v4469_v44 = vld [vmem:[%s6725_s4 + $0x2a4] sm:$0xf]  ;;  %543 = vst [vmem:[#allocation2 + $0x60] sm:$0x1] %v542_v24 }
 0x141   : > { %2504 = vmatpush.bf16.msrb.mxu2 %v4129_v58 }
 0x142   : > { %2030 = vmatmul.bf16.gmra.mxu2 %v5562_v18  ;;  %2079 = vmatmul.bf16.gmra.mxu3 %v5562_v18 }
 0x145   : > { %v1506_v6 = vpop.f32.mrf.mxu2  ;;  %v1555_v7 = vpop.f32.mrf.mxu3 }
 0x146   : > { %v1507_v8 = vadd.f32 %v1506_v6, %v5736_v16  ;;  %v1556_v55 = vadd.f32 %v1555_v7, %v5738_v59  ;;  %v4130_v16 = vld [vmem:[%s6725_s4 + $0x2a8] sm:$0xf0]  ;;  %v4196_v59 = vld [vmem:[%s6725_s4 + $0x320] sm:$0xf]  ;;  %v668_v6 = vld [vmem:[%s4888_s19 + $0x38] sm:$0xf] }
 0x147   : > { %v1799_v57 = vpop.f32.mrf.mxu0  ;;  %v1848_v38 = vpop.f32.mrf.mxu1  ;;  %v4133_v46 = vor.u32 %v4469_v44, %v4130_v16  ;;  %v4197_v60 = vor.u32 %v4486_v54, %v4196_v59  ;;  %v669_v7 = vld [vmem:[%s4888_s19 + $0x3c] sm:$0xf]  ;;  %v573_v44 = vld [vmem:[#allocation2 + $0x68] sm:$0x1]  ;;  %v4485_v59 = vld [vmem:[%s6725_s4 + $0x324] sm:$0xf] }
 0x148   : > { %v5898_v18 = vadd.f32 %v1799_v57, %v1507_v8  ;;  %v5900_v22 = vadd.f32 %v1848_v38, %v1556_v55  ;;  %v790_v57 = vshrl.u32 %v668_v6, 16  ;;  %v798_v38 = vshrl.u32 %v669_v7, 16  ;;  %s486_s19 = sadd.s32 8, %s4820_s18 }
 0x149   : > { %2553 = vmatpush.bf16.msrb.mxu3 %v4133_v46  ;;  %2736 = vmatpush.bf16.msrb.mxu0 %v4197_v60  ;;  %v4198_v46 = vld [vmem:[%s6725_s4 + $0x328] sm:$0xf0]  ;;  %v574_v54 = vsel %vm4840_vm4, 0, %v573_v44  ;;  %v801_v24 = vshll.u32 %v669_v7, 16  ;;  %v880_v44 = vld [vmem:[#allocation2 + $0x60] sm:$0xf] }
 0x14a   : > { %2284 = vmatmul.bf16.gmra.mxu0 %v5040_v61  ;;  %2333 = vmatmul.bf16.gmra.mxu1 %v5040_v61  ;;  %v792_v23 = vrot.slane %v790_v57, 7  ;;  %v800_v60 = vrot.slane %v798_v38, 7  ;;  %575 = vst [vmem:[#allocation2 + $0x68] sm:$0x1] %v574_v54  ;;  %v4468_v57 = vld [vmem:[%s6725_s4 + $0x294] sm:$0xf0] }
 0x14b   : > { %v4121_v7 = vor.u32 %v4468_v57, %v4120_v50  ;;  %p6230_p10 = scmp.lt.s32.totalorder %s486_s19, 15 }
 0x14c   : > { %v796_v38 = vrot.slane %v792_v23, 4  ;;  %v805_v54 = vrot.slane %v800_v60, 4 }
 0x14d   : > { %v1508_v31 = vpop.f32.mrf.mxu2  ;;  %v1557_v58 = vpop.f32.mrf.mxu3  ;;  %2505 = vmatpush.bf16.msrb.mxu2 %v4121_v7  ;;  %s6811_s19 = smov (!%p6230_p10, %s486_s19), 15 }
 0x14e   : > { %v1509_v8 = vadd.f32 %v1508_v31, %v5758_v26  ;;  %v1558_v55 = vadd.f32 %v1557_v58, %v5760_v49  ;;  %v4201_v26 = vor.u32 %v4485_v59, %v4198_v46  ;;  %v793_v49 = vshll.u32 %v668_v6, 16  ;;  %s6813_s19 = smov (!%p6230_p10, %s6811_s19), 15 }
 0x14f   : > { %v1801_v16 = vpop.f32.mrf.mxu0  ;;  %v1850_v61 = vpop.f32.mrf.mxu1  ;;  %s3738_s18 = sshll.u32 %s6813_s19, 1 }
 0x150   : > { %v5930_v31 = vadd.f32 %v1801_v16, %v1509_v8  ;;  %v5932_v58 = vadd.f32 %v1850_v61, %v1558_v55  ;;  %v795_v6 = vor.u32 %v793_v49, %v792_v23  ;;  %2785 = vmatpush.bf16.msrb.mxu1 %v4201_v26  ;;  %v803_v8 = vor.u32 %v801_v24, %v800_v60  ;;  %v4188_v60 = vld [vmem:[%s6725_s4 + $0x310] sm:$0xf]  ;;  %s495_s26 = sadd.s32 %s3738_s18, %s4856_s17 }
 0x151   : > { %v884_v50 = vld [vmem:[#allocation2 + $0x68] sm:$0x1]  ;;  %s3740_s14 = sshll.u32 %s495_s26, 2 }
 0x152   : > { %2035 = vmatmul.bf16.gmra.mxu2 %v5610_v17  ;;  %2084 = vmatmul.bf16.gmra.mxu3 %v5610_v17  ;;  %v804_v17 = vsel %vm4916_vm7, %v796_v38, %v803_v8  ;;  %v881_v16 = vsel %vm4924_vm8, %v795_v6, %v880_v44  ;;  %v885_v49 = vsel %vm4826_vm2, %v805_v54, %v884_v50  ;;  %v4484_v38 = vld [vmem:[%s6725_s4 + $0x314] sm:$0xf0]  ;;  %s497_s20 = scalar_lea.vmem %s6724_s3, %s3740_s14  ;;  %s6605_s14 = scalar_lea.vmem %s6729_s8, %s3723_s21 }
 0x153   : > { %882 = vst [vmem:[#allocation2 + $0x60] sm:$0xf] %v881_v16  ;;  %v4189_v7 = vor.u32 %v4484_v38, %v4188_v60 }
 0x154   : > { %883 = vst [vmem:[#allocation2 + $0x64] sm:$0xf] %v804_v17 }
 0x155   : > { %v1511_v61 = vpop.f32.mrf.mxu2  ;;  %v1560_v55 = vpop.f32.mrf.mxu3  ;;  %886 = vst [vmem:[#allocation2 + $0x68] sm:$0x1] %v885_v49  ;;  %2737 = vmatpush.bf16.msrb.mxu0 %v4189_v7 }
 0x156   : > { %v1512_v59 = vadd.f32 %v1511_v61, %v5534_v1  ;;  %v1561_v46 = vadd.f32 %v1560_v55, %v5536_v45  ;;  %v4467_v1 = vld [vmem:[%s6725_s4 + $0x294] sm:$0xf]  ;;  %v4122_v45 = vld [vmem:[%s6725_s4 + $0x298] sm:$0xf0] }
 0x157   : > { %v1804_v23 = vpop.f32.mrf.mxu0  ;;  %v1853_v26 = vpop.f32.mrf.mxu1  ;;  %v4125_v6 = vor.u32 %v4467_v1, %v4122_v45 }
 0x158   : > { %v5950_v24 = vadd.f32 %v1804_v23, %v1512_v59  ;;  %v5952_v57 = vadd.f32 %v1853_v26, %v1561_v46  ;;  %v4483_v59 = vld [vmem:[%s6725_s4 + $0x314] sm:$0xf]  ;;  %v4190_v46 = vld [vmem:[%s6725_s4 + $0x318] sm:$0xf0] }
 0x159   : > { %2554 = vmatpush.bf16.msrb.mxu3 %v4125_v6  ;;  %v4193_v54 = vor.u32 %v4483_v59, %v4190_v46 }
 0x15a   : > { %2289 = vmatmul.bf16.gmra.mxu0 %v5106_v21  ;;  %2338 = vmatmul.bf16.gmra.mxu1 %v5106_v21 }
 0x15b   : > { %2786 = vmatpush.bf16.msrb.mxu1 %v4193_v54 }
 0x15d   : > { %v1513_v8 = vpop.f32.mrf.mxu2  ;;  %v1562_v44 = vpop.f32.mrf.mxu3 }
 0x15e   : > { %v1514_v61 = vadd.f32 %v1513_v8, %v5576_v39  ;;  %v1563_v55 = vadd.f32 %v1562_v44, %v5578_v41  ;;  %v4112_v39 = vld [vmem:[%s6725_s4 + $0x280] sm:$0xf]  ;;  %v4466_v41 = vld [vmem:[%s6725_s4 + $0x284] sm:$0xf0]  ;;  %v4465_v8 = vld [vmem:[%s6725_s4 + $0x284] sm:$0xf] }
 0x15f   : > { %v1806_v17 = vpop.f32.mrf.mxu0  ;;  %v1855_v16 = vpop.f32.mrf.mxu1  ;;  %v4113_v50 = vor.u32 %v4466_v41, %v4112_v39  ;;  %v6005_v44 = vld [vmem:[#allocation2 + $0x60] sm:$0xf] }
 0x160   : > { %v5976_v23 = vadd.f32 %v1806_v17, %v1514_v61  ;;  %v5978_v26 = vadd.f32 %v1855_v16, %v1563_v55  ;;  %v4482_v55 = vld [vmem:[%s6725_s4 + $0x304] sm:$0xf0]  ;;  %v6010_v17 = vld [vmem:[#allocation2 + $0x64] sm:$0xf]  ;;  %v2138_v41 = vshrl.u32 %v6005_v44, 16 }
 0x161   : > { %2506 = vmatpush.bf16.msrb.mxu2 %v4113_v50  ;;  %v2141_v50 = vshll.u32 %v6005_v44, 16 }
 0x162   : > { %2040 = vmatmul.bf16.gmra.mxu2 %v5655_v11  ;;  %2089 = vmatmul.bf16.gmra.mxu3 %v5655_v11 }
 0x165   : > { %v1516_v49 = vpop.f32.mrf.mxu2  ;;  %v1565_v1 = vpop.f32.mrf.mxu3 }
 0x166   : > { %v1517_v45 = vadd.f32 %v1516_v49, %v5606_v13  ;;  %v1566_v60 = vadd.f32 %v1565_v1, %v5608_v56  ;;  %v4114_v13 = vld [vmem:[%s6725_s4 + $0x288] sm:$0xf0]  ;;  %v4180_v56 = vld [vmem:[%s6725_s4 + $0x300] sm:$0xf] }
 0x167   : > { %v1809_v6 = vpop.f32.mrf.mxu0  ;;  %v1858_v38 = vpop.f32.mrf.mxu1  ;;  %v4117_v61 = vor.u32 %v4465_v8, %v4114_v13  ;;  %v4181_v16 = vor.u32 %v4482_v55, %v4180_v56  ;;  %v2140_v13 = vrot.slane %v2138_v41, 4  ;;  %v4300_v56 = vld [vmem:[%s6725_s4 + $0x3f0] sm:$0xf]  ;;  %v2143_v55 = vrot.slane %v2141_v50, 5 }
 0x168   : > { %v5990_v11 = vadd.f32 %v1809_v6, %v1517_v45  ;;  %v5992_v7 = vadd.f32 %v1858_v38, %v1566_v60  ;;  %v2147_v45 = vshll.u32 %v6010_v17, 16  ;;  %v2151_v60 = vshrl.u32 %v6010_v17, 16  ;;  %v4481_v6 = vld [vmem:[%s6725_s4 + $0x304] sm:$0xf] }
 0x169   : > { %2555 = vmatpush.bf16.msrb.mxu3 %v4117_v61  ;;  %2738 = vmatpush.bf16.msrb.mxu0 %v4181_v16  ;;  %v4512_v61 = vld [vmem:[%s6725_s4 + $0x3f4] sm:$0xf0] }
 0x16a   : > { %2294 = vmatmul.bf16.gmra.mxu0 %v5222_v42  ;;  %2343 = vmatmul.bf16.gmra.mxu1 %v5222_v42  ;;  %v2149_v16 = vrot.slane %v2147_v45, 5 }
 0x16d   : > { %v1518_v59 = vpop.f32.mrf.mxu2  ;;  %v1567_v46 = vpop.f32.mrf.mxu3 }
 0x16e   : > { %v1519_v54 = vadd.f32 %v1518_v59, %v5630_v25  ;;  %v1568_v39 = vadd.f32 %v1567_v46, %v5632_v47  ;;  %v4182_v25 = vld [vmem:[%s6725_s4 + $0x308] sm:$0xf0]  ;;  %v2153_v59 = vrot.slane %v2151_v60, 4  ;;  %v4301_v46 = vor.u32 %v4512_v61, %v4300_v56  ;;  %v4365_v60 = vld [vmem:[%s6725_s4 + $0x470] sm:$0xf] }
 0x16f   : > { %v1811_v49 = vpop.f32.mrf.mxu0  ;;  %v1860_v1 = vpop.f32.mrf.mxu1  ;;  %v4185_v47 = vor.u32 %v4481_v6, %v4182_v25  ;;  %v2144_v25 = vor.u32 %v2143_v55, %v2140_v13  ;;  %v4528_v55 = vld [vmem:[%s6725_s4 + $0x474] sm:$0xf0] }
 0x170   : > { %v6024_v38 = vadd.f32 %v1811_v49, %v1519_v54  ;;  %v6026_v8 = vadd.f32 %v1860_v1, %v1568_v39  ;;  %v6036_v54 = vld [vmem:[#allocation2 + $0x68] sm:$0x1]  ;;  %2985 = vmatpush.bf16.msra.mxu2 %v4301_v46  ;;  %v2154_v42 = vor.u32 %v2153_v59, %v2149_v16  ;;  %v4366_v59 = vor.u32 %v4528_v55, %v4365_v60 }
 0x171   : > { %2787 = vmatpush.bf16.msrb.mxu1 %v4185_v47  ;;  %v2157_v32 = vshll.u32 %v6036_v54, 16  ;;  %v2145_v47 = vrot.slane %v2144_v25, 4  ;;  %v4527_v25 = vld [vmem:[%s6725_s4 + $0x474] sm:$0xf] }
 0x172   : > { %2045 = vmatmul.bf16.gmra.mxu2 %v5710_v37  ;;  %2094 = vmatmul.bf16.gmra.mxu3 %v5710_v37  ;;  %v2155_v13 = vrot.slane %v2154_v42, 4 }
 0x173   : > { %v2159_v56 = vrot.slane %v2157_v32, 5  ;;  %3223 = vmatpush.bf16.msra.mxu0 %v4366_v59  ;;  %v2150_v32 = vsel %vm5011_vm12, %v2145_v47, %v2149_v16  ;;  %v4292_v47 = vld [vmem:[%s6725_s4 + $0x3e0] sm:$0xf] }
 0x174   : > { %v2177_v16 = vunpack.c.l.b16 %v2150_v32  ;;  %v4509_v32 = vld [vmem:[%s6725_s4 + $0x3e4] sm:$0xf] }
 0x175   : > { %v1521_v39 = vpop.f32.mrf.mxu2  ;;  %v1570_v49 = vpop.f32.mrf.mxu3  ;;  %v2160_v42 = vsel %vm5011_vm12, %v2155_v13, %v2159_v56  ;;  %v4510_v13 = vld [vmem:[%s6725_s4 + $0x3e4] sm:$0xf0] }
 0x176   : > { %v1522_v37 = vadd.f32 %v1521_v39, %v5667_v19  ;;  %v1571_v41 = vadd.f32 %v1570_v49, %v5669_v20  ;;  %v4511_v19 = vld [vmem:[%s6725_s4 + $0x3f4] sm:$0xf]  ;;  %v4302_v20 = vld [vmem:[%s6725_s4 + $0x3f8] sm:$0xf0]  ;;  %v2178_v60 = vunpack.c.l.b16 %v2160_v42  ;;  %v4293_v56 = vor.u32 %v4510_v13, %v4292_v47 }
 0x177   : > { %v1814_v1 = vpop.f32.mrf.mxu0  ;;  %v1863_v6 = vpop.f32.mrf.mxu1  ;;  %v4305_v61 = vor.u32 %v4511_v19, %v4302_v20 }
 0x178   : > { %v6041_v50 = vadd.f32 %v1814_v1, %v1522_v37  ;;  %v6043_v45 = vadd.f32 %v1863_v6, %v1571_v41  ;;  %v6061_v41 = vld [vmem:[#allocation2 + $0x60] sm:$0xff]  ;;  %2986 = vmatpush.bf16.msra.mxu2 %v4293_v56 }
 0x179   : > { %3034 = vmatpush.bf16.msra.mxu3 %v4305_v61 }
 0x17a   : > { %2299 = vmatmul.bf16.gmra.mxu0 %v5368_v29  ;;  %2348 = vmatmul.bf16.gmra.mxu1 %v5368_v29 }
 0x17d   : > { %v1523_v46 = vpop.f32.mrf.mxu2  ;;  %v1572_v39 = vpop.f32.mrf.mxu3 }
 0x17e   : > { %v1524_v49 = vadd.f32 %v1523_v46, %v5697_v9  ;;  %v1573_v37 = vadd.f32 %v1572_v39, %v5699_v10  ;;  %v4367_v9 = vld [vmem:[%s6725_s4 + $0x478] sm:$0xf0]  ;;  %v6087_v39 = vpack.c.b16 %v2178_v60, %v2177_v16 }
 0x17f   : > { %v1816_v1 = vpop.f32.mrf.mxu0  ;;  %v1865_v6 = vpop.f32.mrf.mxu1  ;;  %v4370_v10 = vor.u32 %v4527_v25, %v4367_v9  ;;  %v4526_v25 = vld [vmem:[%s6725_s4 + $0x464] sm:$0xf0] }
 0x180   : > { %v6073_v19 = vadd.f32 %v1816_v1, %v1524_v49  ;;  %v6075_v20 = vadd.f32 %v1865_v6, %v1573_v37  ;;  %6779 = vst [vmem:[#allocation15_spill] sm:$0xff] %v6087_v39 }
 0x181   : > { %3272 = vmatpush.bf16.msra.mxu1 %v4370_v10 }
 0x182   : > { %2050 = vmatmul.bf16.gmra.mxu2 %v6061_v41  ;;  %2099 = vmatmul.bf16.gmra.mxu3 %v6061_v41 }
 0x185   : > { %v1526_v61 = vpop.f32.mrf.mxu2  ;;  %v1575_v55 = vpop.f32.mrf.mxu3 }
 0x186   : > { %v1527_v59 = vadd.f32 %v1526_v61, %v5730_v0  ;;  %v1576_v46 = vadd.f32 %v1575_v55, %v5732_v35  ;;  %v4294_v0 = vld [vmem:[%s6725_s4 + $0x3e8] sm:$0xf0]  ;;  %v4357_v35 = vld [vmem:[%s6725_s4 + $0x460] sm:$0xf]  ;;  %v4525_v61 = vld [vmem:[%s6725_s4 + $0x464] sm:$0xf] }
 0x187   : > { %v1819_v49 = vpop.f32.mrf.mxu0  ;;  %v1868_v37 = vpop.f32.mrf.mxu1  ;;  %v4297_v42 = vor.u32 %v4509_v32, %v4294_v0  ;;  %v4358_v9 = vor.u32 %v4526_v25, %v4357_v35  ;;  %v4359_v55 = vld [vmem:[%s6725_s4 + $0x468] sm:$0xf0] }
 0x188   : > { %v6089_v1 = vadd.f32 %v1819_v49, %v1527_v59  ;;  %v6091_v6 = vadd.f32 %v1868_v37, %v1576_v46  ;;  %v4362_v59 = vor.u32 %v4525_v61, %v4359_v55 }
 0x189   : > { %3035 = vmatpush.bf16.msra.mxu3 %v4297_v42  ;;  %3224 = vmatpush.bf16.msra.mxu0 %v4358_v9 }
 0x18a   : > { %2304 = vmatmul.bf16.gmra.mxu0 %v6087_v39  ;;  %2353 = vmatmul.bf16.gmra.mxu1 %v6087_v39 }
 0x18b   : > { %3273 = vmatpush.bf16.msra.mxu1 %v4362_v59 }
 0x18d   : > { %v1528_v10 = vpop.f32.mrf.mxu2  ;;  %v1577_v16 = vpop.f32.mrf.mxu3 }
 0x18e   : > { %v1529_v60 = vadd.f32 %v1528_v10, %v5754_v62  ;;  %v1578_v47 = vadd.f32 %v1577_v16, %v5756_v2  ;;  %v4284_v62 = vld [vmem:[%s6725_s4 + $0x3d0] sm:$0xf]  ;;  %v4508_v2 = vld [vmem:[%s6725_s4 + $0x3d4] sm:$0xf0] }
 0x18f   : > { %v1821_v13 = vpop.f32.mrf.mxu0  ;;  %v1870_v56 = vpop.f32.mrf.mxu1  ;;  %v4285_v37 = vor.u32 %v4508_v2, %v4284_v62  ;;  %v4640_v16 = vld [vmem:[#allocation2 + $0x18] sm:$0xff] }
 0x190   : > { %v6115_v46 = vadd.f32 %v1821_v13, %v1529_v60  ;;  %v6117_v49 = vadd.f32 %v1870_v56, %v1578_v47  ;;  %v4507_v60 = vld [vmem:[%s6725_s4 + $0x3d4] sm:$0xf]  ;;  %v4286_v47 = vld [vmem:[%s6725_s4 + $0x3d8] sm:$0xf0]  ;;  %v4524_v13 = vld [vmem:[%s6725_s4 + $0x454] sm:$0xf0] }
 0x191   : > { %2987 = vmatpush.bf16.msra.mxu2 %v4285_v37 }
 0x192   : > { %2507 = vmatmul.bf16.vlgmr.msrb.gmra.mxu2 %v5402_v34  ;;  %2556 = vmatmul.bf16.vlgmr.msrb.gmra.mxu3 %v5402_v34 }
 0x195   : > { %v2016_v32 = vpop.f32.mrf.mxu2  ;;  %v2065_v0 = vpop.f32.mrf.mxu3 }
 0x196   : > { %v2105_v35 = vadd.f32 %v2016_v32, %v5778_v3  ;;  %v2106_v42 = vadd.f32 %v2065_v0, %v5780_v51  ;;  %v4349_v51 = vld [vmem:[%s6725_s4 + $0x450] sm:$0xf]  ;;  %v4289_v3 = vor.u32 %v4507_v60, %v4286_v47  ;;  %v4523_v32 = vld [vmem:[%s6725_s4 + $0x454] sm:$0xf]  ;;  %v4351_v0 = vld [vmem:[%s6725_s4 + $0x458] sm:$0xf0] }
 0x197   : > { %v2270_v25 = vpop.f32.mrf.mxu0  ;;  %v2319_v9 = vpop.f32.mrf.mxu1  ;;  %v4350_v56 = vor.u32 %v4524_v13, %v4349_v51 }
 0x198   : > { %v6129_v34 = vadd.f32 %v2270_v25, %v2105_v35  ;;  %v6131_v10 = vadd.f32 %v2319_v9, %v2106_v42  ;;  %3036 = vmatpush.bf16.msra.mxu3 %v4289_v3  ;;  %v4354_v35 = vor.u32 %v4523_v32, %v4351_v0 }
 0x199   : > { %3225 = vmatpush.bf16.msra.mxu0 %v4350_v56 }
 0x19a   : > { %2739 = vmatmul.bf16.vlgmr.msrb.gmra.mxu0 %v4640_v16  ;;  %2788 = vmatmul.bf16.vlgmr.msrb.gmra.mxu1 %v4640_v16 }
 0x19b   : > { %3274 = vmatpush.bf16.msra.mxu1 %v4354_v35 }
 0x19d   : > { %v2018_v61 = vpop.f32.mrf.mxu2  ;;  %v2067_v55 = vpop.f32.mrf.mxu3 }
 0x19e   : > { %v2107_v59 = vadd.f32 %v2018_v61, %v5804_v12  ;;  %v2108_v62 = vadd.f32 %v2067_v55, %v5806_v48  ;;  %v4276_v12 = vld [vmem:[%s6725_s4 + $0x3c0] sm:$0xf]  ;;  %v4506_v48 = vld [vmem:[%s6725_s4 + $0x3c4] sm:$0xf0] }
 0x19f   : > { %v2272_v2 = vpop.f32.mrf.mxu0  ;;  %v2321_v37 = vpop.f32.mrf.mxu1  ;;  %v4277_v9 = vor.u32 %v4506_v48, %v4276_v12  ;;  %v4641_v55 = vld [vmem:[#allocation2 + $0x24] sm:$0xff] }
 0x1a0   : > { %v6153_v42 = vadd.f32 %v2272_v2, %v2107_v59  ;;  %v6155_v25 = vadd.f32 %v2321_v37, %v2108_v62  ;;  %v4505_v59 = vld [vmem:[%s6725_s4 + $0x3c4] sm:$0xf]  ;;  %v4278_v62 = vld [vmem:[%s6725_s4 + $0x3c8] sm:$0xf0]  ;;  %v4522_v2 = vld [vmem:[%s6725_s4 + $0x444] sm:$0xf0] }
 0x1a1   : > { %2988 = vmatpush.bf16.msra.mxu2 %v4277_v9 }
 0x1a2   : > { %2512 = vmatmul.bf16.gmra.mxu2 %v5435_v53  ;;  %2561 = vmatmul.bf16.gmra.mxu3 %v5435_v53 }
 0x1a5   : > { %v2021_v16 = vpop.f32.mrf.mxu2  ;;  %v2070_v60 = vpop.f32.mrf.mxu3 }
 0x1a6   : > { %v2109_v47 = vadd.f32 %v2021_v16, %v5818_v30  ;;  %v2110_v51 = vadd.f32 %v2070_v60, %v5820_v40  ;;  %v4341_v30 = vld [vmem:[%s6725_s4 + $0x440] sm:$0xf]  ;;  %v4281_v40 = vor.u32 %v4505_v59, %v4278_v62  ;;  %v4521_v16 = vld [vmem:[%s6725_s4 + $0x444] sm:$0xf]  ;;  %v4343_v60 = vld [vmem:[%s6725_s4 + $0x448] sm:$0xf0] }
 0x1a7   : > { %v2275_v3 = vpop.f32.mrf.mxu0  ;;  %v2324_v13 = vpop.f32.mrf.mxu1  ;;  %v4342_v37 = vor.u32 %v4522_v2, %v4341_v30 }
 0x1a8   : > { %v6167_v56 = vadd.f32 %v2275_v3, %v2109_v47  ;;  %v6169_v61 = vadd.f32 %v2324_v13, %v2110_v51  ;;  %3037 = vmatpush.bf16.msra.mxu3 %v4281_v40  ;;  %v4346_v47 = vor.u32 %v4521_v16, %v4343_v60  ;;  %v6780_v13 = vld [vmem:[#allocation10_spill] sm:$0xff] }
 0x1a9   : > { %3226 = vmatpush.bf16.msra.mxu0 %v4342_v37 }
 0x1aa   : > { %2744 = vmatmul.bf16.gmra.mxu0 %v4641_v55  ;;  %2793 = vmatmul.bf16.gmra.mxu1 %v4641_v55 }
 0x1ab   : > { %3275 = vmatpush.bf16.msra.mxu1 %v4346_v47 }
 0x1ad   : > { %v2023_v32 = vpop.f32.mrf.mxu2  ;;  %v2072_v0 = vpop.f32.mrf.mxu3 }
 0x1ae   : > { %v2111_v35 = vadd.f32 %v2023_v32, %v5844_v14  ;;  %v2112_v12 = vadd.f32 %v2072_v0, %v5846_v15  ;;  %v4268_v14 = vld [vmem:[%s6725_s4 + $0x3b0] sm:$0xf]  ;;  %v4504_v15 = vld [vmem:[%s6725_s4 + $0x3b4] sm:$0xf0] }
 0x1af   : > { %v2277_v48 = vpop.f32.mrf.mxu0  ;;  %v2326_v9 = vpop.f32.mrf.mxu1  ;;  %v4269_v55 = vor.u32 %v4504_v15, %v4268_v14 }
 0x1b0   : > { %v6191_v51 = vadd.f32 %v2277_v48, %v2111_v35  ;;  %v6193_v3 = vadd.f32 %v2326_v9, %v2112_v12  ;;  %v4642_v35 = vld [vmem:[#allocation2 + $0x30] sm:$0xff]  ;;  %v4520_v9 = vld [vmem:[%s6725_s4 + $0x434] sm:$0xf0] }
 0x1b1   : > { %2989 = vmatpush.bf16.msra.mxu2 %v4269_v55  ;;  %v4503_v12 = vld [vmem:[%s6725_s4 + $0x3b4] sm:$0xf] }
 0x1b2   : > { %2517 = vmatmul.bf16.gmra.mxu2 %v6780_v13  ;;  %2566 = vmatmul.bf16.gmra.mxu3 %v6780_v13 }
 0x1b5   : > { %v2026_v59 = vpop.f32.mrf.mxu2  ;;  %v2075_v62 = vpop.f32.mrf.mxu3 }
 0x1b6   : > { %v2113_v30 = vadd.f32 %v2026_v59, %v5858_v43  ;;  %v2114_v40 = vadd.f32 %v2075_v62, %v5860_v33  ;;  %v4270_v43 = vld [vmem:[%s6725_s4 + $0x3b8] sm:$0xf0]  ;;  %v4333_v33 = vld [vmem:[%s6725_s4 + $0x430] sm:$0xf]  ;;  %v4519_v62 = vld [vmem:[%s6725_s4 + $0x434] sm:$0xf] }
 0x1b7   : > { %v2280_v2 = vpop.f32.mrf.mxu0  ;;  %v2329_v37 = vpop.f32.mrf.mxu1  ;;  %v4273_v48 = vor.u32 %v4503_v12, %v4270_v43  ;;  %v4334_v16 = vor.u32 %v4520_v9, %v4333_v33 }
 0x1b8   : > { %v6205_v32 = vadd.f32 %v2280_v2, %v2113_v30  ;;  %v6207_v0 = vadd.f32 %v2329_v37, %v2114_v40  ;;  %v4335_v30 = vld [vmem:[%s6725_s4 + $0x438] sm:$0xf0]  ;;  %v4260_v37 = vld [vmem:[%s6725_s4 + $0x3a0] sm:$0xf] }
 0x1b9   : > { %3038 = vmatpush.bf16.msra.mxu3 %v4273_v48  ;;  %3227 = vmatpush.bf16.msra.mxu0 %v4334_v16  ;;  %v4338_v40 = vor.u32 %v4519_v62, %v4335_v30  ;;  %v6782_v2 = vld [vmem:[#allocation11_spill] sm:$0xff]  ;;  %v4518_v62 = vld [vmem:[%s6725_s4 + $0x424] sm:$0xf0] }
 0x1ba   : > { %2749 = vmatmul.bf16.gmra.mxu0 %v4642_v35  ;;  %2798 = vmatmul.bf16.gmra.mxu1 %v4642_v35  ;;  %v4502_v35 = vld [vmem:[%s6725_s4 + $0x3a4] sm:$0xf0] }
 0x1bb   : > { %3276 = vmatpush.bf16.msra.mxu1 %v4338_v40  ;;  %v4261_v12 = vor.u32 %v4502_v35, %v4260_v37 }
 0x1bd   : > { %v2028_v60 = vpop.f32.mrf.mxu2  ;;  %v2077_v47 = vpop.f32.mrf.mxu3  ;;  %2990 = vmatpush.bf16.msra.mxu2 %v4261_v12 }
 0x1be   : > { %v2115_v14 = vadd.f32 %v2028_v60, %v5884_v4  ;;  %v2116_v15 = vadd.f32 %v2077_v47, %v5886_v36 }
 0x1bf   : > { %v2282_v55 = vpop.f32.mrf.mxu0  ;;  %v2331_v59 = vpop.f32.mrf.mxu1 }
 0x1c0   : > { %v6234_v4 = vadd.f32 %v2282_v55, %v2115_v14  ;;  %v6236_v36 = vadd.f32 %v2331_v59, %v2116_v15  ;;  %v4643_v15 = vld [vmem:[#allocation2 + $0x3c] sm:$0xff]  ;;  %v4501_v55 = vld [vmem:[%s6725_s4 + $0x3a4] sm:$0xf] }
 0x1c2   : > { %2522 = vmatmul.bf16.gmra.mxu2 %v6782_v2  ;;  %2571 = vmatmul.bf16.gmra.mxu3 %v6782_v2 }
 0x1c5   : > { %v2031_v43 = vpop.f32.mrf.mxu2  ;;  %v2080_v33 = vpop.f32.mrf.mxu3 }
 0x1c6   : > { %v2117_v48 = vadd.f32 %v2031_v43, %v5898_v18  ;;  %v2118_v9 = vadd.f32 %v2080_v33, %v5900_v22  ;;  %v4262_v18 = vld [vmem:[%s6725_s4 + $0x3a8] sm:$0xf0]  ;;  %v4325_v22 = vld [vmem:[%s6725_s4 + $0x420] sm:$0xf] }
 0x1c7   : > { %v2285_v16 = vpop.f32.mrf.mxu0  ;;  %v2334_v60 = vpop.f32.mrf.mxu1  ;;  %v4265_v59 = vor.u32 %v4501_v55, %v4262_v18  ;;  %v4326_v30 = vor.u32 %v4518_v62, %v4325_v22  ;;  %v4500_v55 = vld [vmem:[%s6725_s4 + $0x394] sm:$0xf0] }
 0x1c8   : > { %v6252_v47 = vadd.f32 %v2285_v16, %v2117_v48  ;;  %v6254_v14 = vadd.f32 %v2334_v60, %v2118_v9  ;;  %v4517_v48 = vld [vmem:[%s6725_s4 + $0x424] sm:$0xf]  ;;  %v4327_v9 = vld [vmem:[%s6725_s4 + $0x428] sm:$0xf0] }
 0x1c9   : > { %3039 = vmatpush.bf16.msra.mxu3 %v4265_v59  ;;  %3228 = vmatpush.bf16.msra.mxu0 %v4326_v30  ;;  %v4330_v16 = vor.u32 %v4517_v48, %v4327_v9  ;;  %v582_v48 = vld [vmem:[%s497_s20 + $0x4] sm:$0xf] }
 0x1ca   : > { %2754 = vmatmul.bf16.gmra.mxu0 %v4643_v15  ;;  %2803 = vmatmul.bf16.gmra.mxu1 %v4643_v15 }
 0x1cb   : > { %3277 = vmatpush.bf16.msra.mxu1 %v4330_v16 }
 0x1cd   : > { %v2033_v40 = vpop.f32.mrf.mxu2  ;;  %v2082_v37 = vpop.f32.mrf.mxu3 }
 0x1ce   : > { %v2119_v35 = vadd.f32 %v2033_v40, %v5930_v31  ;;  %v2120_v12 = vadd.f32 %v2082_v37, %v5932_v58  ;;  %v6783_v31 = vld [vmem:[#allocation12_spill] sm:$0xff]  ;;  %v4252_v58 = vld [vmem:[%s6725_s4 + $0x390] sm:$0xf]  ;;  %v544_v40 = vld [vmem:[#allocation2 + $0x6c] sm:$0x1] }
 0x1cf   : > { %v2287_v43 = vpop.f32.mrf.mxu0  ;;  %v2336_v33 = vpop.f32.mrf.mxu1  ;;  %v4253_v18 = vor.u32 %v4500_v55, %v4252_v58  ;;  %v4644_v58 = vld [vmem:[#allocation2 + $0x48] sm:$0xff]  ;;  %v4317_v55 = vld [vmem:[%s6725_s4 + $0x410] sm:$0xf] }
 0x1d0   : > { %v6278_v60 = vadd.f32 %v2287_v43, %v2119_v35  ;;  %v6280_v15 = vadd.f32 %v2336_v33, %v2120_v12  ;;  %v545_v12 = vsel %vm4826_vm2, 0, %v544_v40  ;;  %v591_v43 = vstv %s590_s27  ;;  %v581_v33 = vld [vmem:[%s497_s20] sm:$0xf] }
 0x1d1   : > { %2991 = vmatpush.bf16.msra.mxu2 %v4253_v18  ;;  %546 = vst [vmem:[#allocation2 + $0x6c] sm:$0x1] %v545_v12  ;;  %vm592_vm0 = vcmp.eq.s32.totalorder %v591_v43, 1 }
 0x1d2   : > { %2527 = vmatmul.bf16.gmra.mxu2 %v6783_v31  ;;  %2576 = vmatmul.bf16.gmra.mxu3 %v6783_v31 }
 0x1d5   : > { %v2036_v22 = vpop.f32.mrf.mxu2  ;;  %v2085_v59 = vpop.f32.mrf.mxu3 }
 0x1d6   : > { %v2121_v62 = vadd.f32 %v2036_v22, %v5950_v24  ;;  %v2122_v30 = vadd.f32 %v2085_v59, %v5952_v57  ;;  %v4499_v24 = vld [vmem:[%s6725_s4 + $0x394] sm:$0xf]  ;;  %v4254_v57 = vld [vmem:[%s6725_s4 + $0x398] sm:$0xf0]  ;;  %v4516_v22 = vld [vmem:[%s6725_s4 + $0x414] sm:$0xf0] }
 0x1d7   : > { %v2290_v37 = vpop.f32.mrf.mxu0  ;;  %v2339_v35 = vpop.f32.mrf.mxu1  ;;  %v4257_v18 = vor.u32 %v4499_v24, %v4254_v57  ;;  %v593_v59 = vsel %vm592_vm0, %v581_v33, 0  ;;  %v4515_v33 = vld [vmem:[%s6725_s4 + $0x414] sm:$0xf] }
 0x1d8   : > { %v6297_v9 = vadd.f32 %v2290_v37, %v2121_v62  ;;  %v6299_v16 = vadd.f32 %v2339_v35, %v2122_v30  ;;  %v594_v62 = vsel %vm592_vm0, %v582_v48, 0  ;;  %v4318_v30 = vor.u32 %v4516_v22, %v4317_v55  ;;  %v4319_v48 = vld [vmem:[%s6725_s4 + $0x418] sm:$0xf0] }
 0x1d9   : > { %v627_v40 = vshrl.u32 %v593_v59, 16  ;;  %v630_v37 = vshll.u32 %v593_v59, 16  ;;  %v635_v35 = vshrl.u32 %v594_v62, 16  ;;  %3040 = vmatpush.bf16.msra.mxu3 %v4257_v18  ;;  %v4322_v55 = vor.u32 %v4515_v33, %v4319_v48  ;;  %v4645_v48 = vld [vmem:[#allocation2 + $0x54] sm:$0xff] }
 0x1da   : > { %6784 = vst [vmem:[#allocation10_spill] sm:$0xff] %v6299_v16  ;;  %2759 = vmatmul.bf16.gmra.mxu0 %v4644_v58  ;;  %2808 = vmatmul.bf16.gmra.mxu1 %v4644_v58  ;;  %v638_v58 = vshll.u32 %v594_v62, 16 }
 0x1db   : > { %3229 = vmatpush.bf16.msra.mxu0 %v4318_v30  ;;  %v629_v24 = vrot.slane %v627_v40, 7  ;;  %v6315_v57 = vrot.slane %v635_v35, 7  ;;  %v6785_v30 = vld [vmem:[#allocation13_spill] sm:$0xff]  ;;  %v4244_v40 = vld [vmem:[%s6725_s4 + $0x380] sm:$0xf]  ;;  %3278 = vmatpush.bf16.msra.mxu1 %v4322_v55 }
 0x1dc   : > { %v4246_v55 = vld [vmem:[%s6725_s4 + $0x388] sm:$0xf0] }
 0x1dd   : > { %v2038_v12 = vpop.f32.mrf.mxu2  ;;  %v2087_v43 = vpop.f32.mrf.mxu3  ;;  %v632_v18 = vor.u32 %v630_v37, %v629_v24  ;;  %v633_v22 = vrot.slane %v629_v24, 4  ;;  %v4498_v37 = vld [vmem:[%s6725_s4 + $0x384] sm:$0xf0] }
 0x1de   : > { %v2123_v28 = vadd.f32 %v2038_v12, %v5976_v23  ;;  %v2124_v39 = vadd.f32 %v2087_v43, %v5978_v26  ;;  %v647_v23 = vld [vmem:[#allocation2 + $0x6c] sm:$0xf]  ;;  %v640_v26 = vor.u32 %v638_v58, %v6315_v57 }
 0x1df   : > { %v2292_v29 = vpop.f32.mrf.mxu0  ;;  %v2341_v16 = vpop.f32.mrf.mxu1  ;;  %v648_v35 = vsel %vm4924_vm8, %v632_v18, %v647_v23  ;;  %v4514_v18 = vld [vmem:[%s6725_s4 + $0x404] sm:$0xf0] }
 0x1e0   : > { %v6324_v59 = vadd.f32 %v2292_v29, %v2123_v28  ;;  %v6326_v62 = vadd.f32 %v2341_v16, %v2124_v39  ;;  %v4245_v28 = vor.u32 %v4498_v37, %v4244_v40  ;;  %v641_v29 = vsel %vm4916_vm7, %v633_v22, %v640_v26  ;;  %649 = vst [vmem:[#allocation2 + $0x6c] sm:$0xf] %v648_v35 }
 0x1e1   : > { %650 = vst [vmem:[#allocation2 + $0x70] sm:$0xf] %v641_v29  ;;  %v2394_v29 = vrot.slane %v6010_v17, 5 }
 0x1e2   : > { %2532 = vmatmul.bf16.gmra.mxu2 %v6785_v30  ;;  %2581 = vmatmul.bf16.gmra.mxu3 %v6785_v30 }
 0x1e3   : > { %2992 = vmatpush.bf16.msra.mxu2 %v4245_v28  ;;  %v2396_v17 = vrot.slane %v2394_v29, 4 }
 0x1e5   : > { %v2041_v39 = vpop.f32.mrf.mxu2  ;;  %v2090_v16 = vpop.f32.mrf.mxu3 }
 0x1e6   : > { %v2125_v12 = vadd.f32 %v2041_v39, %v5990_v11  ;;  %v2126_v43 = vadd.f32 %v2090_v16, %v5992_v7  ;;  %v4309_v11 = vld [vmem:[%s6725_s4 + $0x400] sm:$0xf]  ;;  %v4249_v7 = vor.u32 %v4497_v63, %v4246_v55  ;;  %v4513_v39 = vld [vmem:[%s6725_s4 + $0x404] sm:$0xf]  ;;  %v4311_v16 = vld [vmem:[%s6725_s4 + $0x408] sm:$0xf0] }
 0x1e7   : > { %v2295_v58 = vpop.f32.mrf.mxu0  ;;  %v2344_v24 = vpop.f32.mrf.mxu1  ;;  %v4310_v22 = vor.u32 %v4514_v18, %v4309_v11 }
 0x1e8   : > { %v6342_v33 = vadd.f32 %v2295_v58, %v2125_v12  ;;  %v6344_v5 = vadd.f32 %v2344_v24, %v2126_v43  ;;  %3041 = vmatpush.bf16.msra.mxu3 %v4249_v7  ;;  %v4314_v12 = vor.u32 %v4513_v39, %v4311_v16  ;;  %v2397_v24 = vrot.slane %v6036_v54, 5 }
 0x1e9   : > { %3230 = vmatpush.bf16.msra.mxu0 %v4310_v22 }
 0x1ea   : > { %2764 = vmatmul.bf16.gmra.mxu0 %v4645_v48  ;;  %2813 = vmatmul.bf16.gmra.mxu1 %v4645_v48 }
 0x1eb   : > { %3279 = vmatpush.bf16.msra.mxu1 %v4314_v12 }
 0x1ed   : > { %v2043_v23 = vpop.f32.mrf.mxu2  ;;  %v2092_v26 = vpop.f32.mrf.mxu3 }
 0x1ee   : > { %v2127_v40 = vadd.f32 %v2043_v23, %v6024_v38  ;;  %v2128_v37 = vadd.f32 %v2092_v26, %v6026_v8  ;;  %v6786_v38 = vld [vmem:[#allocation14_spill] sm:$0xff]  ;;  %v4109_v8 = vrot.slane %v6005_v44, 9  ;;  %v2398_v26 = vsel %vm5324_vm15, %v2396_v17, %v2397_v24 }
 0x1ef   : > { %v2297_v35 = vpop.f32.mrf.mxu0  ;;  %v2346_v28 = vpop.f32.mrf.mxu1 }
 0x1f0   : > { %v6367_v43 = vadd.f32 %v2297_v35, %v2127_v40  ;;  %v6369_v58 = vadd.f32 %v2346_v28, %v2128_v37  ;;  %v2395_v23 = vsel %vm5324_vm15, %v4109_v8, %v2394_v29 }
 0x1f1   : > { %v2415_v54 = vunpack.c.l.b16 %v2395_v23 }
 0x1f2   : > { %2537 = vmatmul.bf16.gmra.mxu2 %v6786_v38  ;;  %2586 = vmatmul.bf16.gmra.mxu3 %v6786_v38 }
 0x1f5   : > { %v2046_v48 = vpop.f32.mrf.mxu2  ;;  %v2095_v63 = vpop.f32.mrf.mxu3 }
 0x1f6   : > { %v2129_v55 = vadd.f32 %v2046_v48, %v6041_v50  ;;  %v2130_v11 = vadd.f32 %v2095_v63, %v6043_v45  ;;  %v2416_v50 = vunpack.c.l.b16 %v2398_v26  ;;  %v4384_v48 = vld [vmem:[#allocation2 + $0x6c] sm:$0xff] }
 0x1f7   : > { %v2300_v7 = vpop.f32.mrf.mxu0  ;;  %v2349_v18 = vpop.f32.mrf.mxu1 }
 0x1f8   : > { %v6381_v40 = vadd.f32 %v2300_v7, %v2129_v55  ;;  %v6383_v44 = vadd.f32 %v2349_v18, %v2130_v11  ;;  %v6389_v29 = vpack.c.b16 %v2416_v50, %v2415_v54 }
 0x1fa   : > { %2769 = vmatmul.bf16.gmra.mxu0 %v6061_v41  ;;  %2818 = vmatmul.bf16.gmra.mxu1 %v6061_v41 }
 0x1fd   : > { %v2048_v37 = vpop.f32.mrf.mxu2  ;;  %v2097_v45 = vpop.f32.mrf.mxu3 }
 0x1fe   : > { %v2131_v35 = vadd.f32 %v2048_v37, %v6073_v19  ;;  %v2132_v28 = vadd.f32 %v2097_v45, %v6075_v20 }
 0x1ff   : > { %v2302_v39 = vpop.f32.mrf.mxu0  ;;  %v2351_v16 = vpop.f32.mrf.mxu1 }
 0x200   : > { %v6391_v12 = vadd.f32 %v2302_v39, %v2131_v35  ;;  %v6393_v8 = vadd.f32 %v2351_v16, %v2132_v28 }
 0x202   : > { %2542 = vmatmul.bf16.gmra.mxu2 %v6389_v29  ;;  %2591 = vmatmul.bf16.gmra.mxu3 %v6389_v29 }
 0x205   : > { %v2051_v41 = vpop.f32.mrf.mxu2  ;;  %v2100_v17 = vpop.f32.mrf.mxu3 }
 0x206   : > { %v2133_v24 = vadd.f32 %v2051_v41, %v6089_v1  ;;  %v2134_v19 = vadd.f32 %v2100_v17, %v6091_v6 }
 0x207   : > { %v2305_v20 = vpop.f32.mrf.mxu0  ;;  %v2354_v63 = vpop.f32.mrf.mxu1 }
 0x208   : > { %v6399_v55 = vadd.f32 %v2305_v20, %v2133_v24  ;;  %v6401_v11 = vadd.f32 %v2354_v63, %v2134_v19  ;;  %v6788_v20 = vld [vmem:[#allocation9_spill] sm:$0xff] }
 0x20a   : > { %2774 = vmatmul.bf16.gmra.mxu0 %v4384_v48  ;;  %2823 = vmatmul.bf16.gmra.mxu1 %v4384_v48 }
 0x20d   : > { %v2053_v7 = vpop.f32.mrf.mxu2  ;;  %v2102_v18 = vpop.f32.mrf.mxu3 }
 0x20e   : > { %v2135_v23 = vadd.f32 %v2053_v7, %v6115_v46  ;;  %v2136_v26 = vadd.f32 %v2102_v18, %v6117_v49 }
 0x20f   : > { %v2307_v54 = vpop.f32.mrf.mxu0  ;;  %v2356_v50 = vpop.f32.mrf.mxu1 }
 0x210   : > { %v6405_v1 = vadd.f32 %v2307_v54, %v2135_v23  ;;  %v6407_v6 = vadd.f32 %v2356_v50, %v2136_v26 }
 0x212   : > { %2993 = vmatmul.bf16.vlgmr.msra.gmra.mxu2 %v5269_v52  ;;  %3042 = vmatmul.bf16.vlgmr.msra.gmra.mxu3 %v5269_v52 }
 0x215   : > { %v2508_v37 = vpop.f32.mrf.mxu2  ;;  %v2557_v45 = vpop.f32.mrf.mxu3 }
 0x216   : > { %v2597_v35 = vadd.f32 %v2508_v37, %v6129_v34  ;;  %v2598_v28 = vadd.f32 %v2557_v45, %v6131_v10 }
 0x217   : > { %v2740_v39 = vpop.f32.mrf.mxu0  ;;  %v2789_v46 = vpop.f32.mrf.mxu1 }
 0x218   : > { %v6413_v16 = vadd.f32 %v2740_v39, %v2597_v35  ;;  %v6415_v49 = vadd.f32 %v2789_v46, %v2598_v28  ;;  %v6789_v39 = vld [vmem:[#allocation5_spill] sm:$0xff] }
 0x21a   : > { %3231 = vmatmul.bf16.vlgmr.msra.gmra.mxu0 %v5435_v53  ;;  %3280 = vmatmul.bf16.vlgmr.msra.gmra.mxu1 %v5435_v53 }
 0x21d   : > { %v2510_v41 = vpop.f32.mrf.mxu2  ;;  %v2559_v17 = vpop.f32.mrf.mxu3 }
 0x21e   : > { %v2599_v52 = vadd.f32 %v2510_v41, %v6153_v42  ;;  %v2600_v24 = vadd.f32 %v2559_v17, %v6155_v25 }
 0x21f   : > { %v2742_v19 = vpop.f32.mrf.mxu0  ;;  %v2791_v34 = vpop.f32.mrf.mxu1 }
 0x220   : > { %v6421_v48 = vadd.f32 %v2742_v19, %v2599_v52  ;;  %v6423_v10 = vadd.f32 %v2791_v34, %v2600_v24 }
 0x222   : > { %2998 = vmatmul.bf16.gmra.mxu2 %v6788_v20  ;;  %3047 = vmatmul.bf16.gmra.mxu3 %v6788_v20 }
 0x225   : > { %v2513_v63 = vpop.f32.mrf.mxu2  ;;  %v2562_v7 = vpop.f32.mrf.mxu3 }
 0x226   : > { %v2601_v53 = vadd.f32 %v2513_v63, %v6167_v56  ;;  %v2602_v18 = vadd.f32 %v2562_v7, %v6169_v61 }
 0x227   : > { %v2745_v23 = vpop.f32.mrf.mxu0  ;;  %v2794_v42 = vpop.f32.mrf.mxu1 }
 0x228   : > { %v6429_v26 = vadd.f32 %v2745_v23, %v2601_v53  ;;  %v6431_v25 = vadd.f32 %v2794_v42, %v2602_v18 }
 0x22a   : > { %3236 = vmatmul.bf16.gmra.mxu0 %v6780_v13  ;;  %3285 = vmatmul.bf16.gmra.mxu1 %v6780_v13 }
 0x22d   : > { %v2515_v54 = vpop.f32.mrf.mxu2  ;;  %v2564_v50 = vpop.f32.mrf.mxu3 }
 0x22e   : > { %v2603_v37 = vadd.f32 %v2515_v54, %v6191_v51  ;;  %v2604_v45 = vadd.f32 %v2564_v50, %v6193_v3 }
 0x22f   : > { %v2747_v35 = vpop.f32.mrf.mxu0  ;;  %v2796_v56 = vpop.f32.mrf.mxu1 }
 0x230   : > { %v6437_v28 = vadd.f32 %v2747_v35, %v2603_v37  ;;  %v6439_v61 = vadd.f32 %v2796_v56, %v2604_v45  ;;  %v576_v37 = vld [vmem:[#allocation2 + $0x74] sm:$0x1]  ;;  %v6496_v45 = vld [vmem:[#allocation2 + $0x6c] sm:$0xf] }
 0x232   : > { %3003 = vmatmul.bf16.gmra.mxu2 %v6789_v39  ;;  %3052 = vmatmul.bf16.gmra.mxu3 %v6789_v39 }
 0x235   : > { %v2518_v46 = vpop.f32.mrf.mxu2  ;;  %v2567_v41 = vpop.f32.mrf.mxu3 }
 0x236   : > { %v2605_v13 = vadd.f32 %v2518_v46, %v6205_v32  ;;  %v2606_v17 = vadd.f32 %v2567_v41, %v6207_v0  ;;  %v642_v41 = vrot.slane %v6315_v57, 4 }
 0x237   : > { %v2750_v52 = vpop.f32.mrf.mxu0  ;;  %v2799_v51 = vpop.f32.mrf.mxu1 }
 0x238   : > { %v6445_v24 = vadd.f32 %v2750_v52, %v2605_v13  ;;  %v6447_v3 = vadd.f32 %v2799_v51, %v2606_v17 }
 0x23a   : > { %3241 = vmatmul.bf16.gmra.mxu0 %v6782_v2  ;;  %3290 = vmatmul.bf16.gmra.mxu1 %v6782_v2 }
 0x23d   : > { %v2520_v19 = vpop.f32.mrf.mxu2  ;;  %v2569_v34 = vpop.f32.mrf.mxu3 }
 0x23e   : > { %v2607_v20 = vadd.f32 %v2520_v19, %v6234_v4  ;;  %v2608_v63 = vadd.f32 %v2569_v34, %v6236_v36  ;;  %v6792_v34 = vld [vmem:[#allocation10_spill] sm:$0xff] }
 0x23f   : > { %v2752_v7 = vpop.f32.mrf.mxu0  ;;  %v2801_v32 = vpop.f32.mrf.mxu1 }
 0x240   : > { %v6453_v53 = vadd.f32 %v2752_v7, %v2607_v20  ;;  %v6455_v0 = vadd.f32 %v2801_v32, %v2608_v63 }
 0x242   : > { %3008 = vmatmul.bf16.gmra.mxu2 %v5106_v21  ;;  %3057 = vmatmul.bf16.gmra.mxu3 %v5106_v21  ;;  %v577_v21 = vsel %vm4840_vm4, 0, %v576_v37  ;;  %v6793_v37 = vld [vmem:[#allocation8_spill] sm:$0xff] }
 0x243   : > { %578 = vst [vmem:[#allocation2 + $0x74] sm:$0x1] %v577_v21  ;;  %v6498_v21 = vld [vmem:[#allocation2 + $0x70] sm:$0xf] }
 0x245   : > { %v2523_v18 = vpop.f32.mrf.mxu2  ;;  %v2572_v23 = vpop.f32.mrf.mxu3 }
 0x246   : > { %v2609_v2 = vadd.f32 %v2523_v18, %v6252_v47  ;;  %v2610_v42 = vadd.f32 %v2572_v23, %v6254_v14 }
 0x247   : > { %v2755_v54 = vpop.f32.mrf.mxu0  ;;  %v2804_v4 = vpop.f32.mrf.mxu1 }
 0x248   : > { %v6461_v50 = vadd.f32 %v2755_v54, %v2609_v2  ;;  %v6463_v36 = vadd.f32 %v2804_v4, %v2610_v42 }
 0x24a   : > { %3246 = vmatmul.bf16.gmra.mxu0 %v6783_v31  ;;  %3295 = vmatmul.bf16.gmra.mxu1 %v6783_v31  ;;  %v6791_v31 = vld [vmem:[#allocation6_spill] sm:$0xff] }
 0x24b   : > { %v651_v52 = vld [vmem:[#allocation2 + $0x74] sm:$0x1] }
 0x24c   : > { %v652_v51 = vsel %vm4826_vm2, %v642_v41, %v651_v52  ;;  %v2875_v41 = vshrl.u32 %v6498_v21, 16 }
 0x24d   : > { %v2525_v35 = vpop.f32.mrf.mxu2  ;;  %v2574_v56 = vpop.f32.mrf.mxu3  ;;  %653 = vst [vmem:[#allocation2 + $0x74] sm:$0x1] %v652_v51 }
 0x24e   : > { %v2611_v47 = vadd.f32 %v2525_v35, %v6278_v60  ;;  %v2612_v14 = vadd.f32 %v2574_v56, %v6280_v15 }
 0x24f   : > { %v2757_v39 = vpop.f32.mrf.mxu0  ;;  %v2806_v46 = vpop.f32.mrf.mxu1 }
 0x250   : > { %v6472_v13 = vadd.f32 %v2757_v39, %v2611_v47  ;;  %v6474_v17 = vadd.f32 %v2806_v46, %v2612_v14  ;;  %v2862_v14 = vshrl.u32 %v6496_v45, 16  ;;  %v2865_v39 = vshll.u32 %v6496_v45, 16 }
 0x251   : > { %v2871_v46 = vshll.u32 %v6498_v21, 16 }
 0x252   : > { %3013 = vmatmul.bf16.gmra.mxu2 %v6791_v31  ;;  %3062 = vmatmul.bf16.gmra.mxu3 %v6791_v31 }
 0x253   : > { %v2873_v51 = vrot.slane %v2871_v46, 5 }
 0x255   : > { %v2528_v19 = vpop.f32.mrf.mxu2  ;;  %v2577_v60 = vpop.f32.mrf.mxu3 }
 0x256   : > { %v2613_v15 = vadd.f32 %v2528_v19, %v6297_v9  ;;  %v2614_v20 = vadd.f32 %v2577_v60, %v6792_v34  ;;  %v2877_v19 = vrot.slane %v2875_v41, 4  ;;  %v916_v60 = vld [vmem:[#allocation2 + $0x74] sm:$0x1]  ;;  %v3118_v41 = vrot.slane %v6498_v21, 5 }
 0x257   : > { %v2760_v57 = vpop.f32.mrf.mxu0  ;;  %v2809_v63 = vpop.f32.mrf.mxu1 }
 0x258   : > { %v6482_v7 = vadd.f32 %v2760_v57, %v2613_v15  ;;  %v6484_v32 = vadd.f32 %v2809_v63, %v2614_v20 }
 0x25a   : > { %3251 = vmatmul.bf16.gmra.mxu0 %v6785_v30  ;;  %3300 = vmatmul.bf16.gmra.mxu1 %v6785_v30 }
 0x25d   : > { %v2530_v18 = vpop.f32.mrf.mxu2  ;;  %v2579_v27 = vpop.f32.mrf.mxu3 }
 0x25e   : > { %v2615_v23 = vadd.f32 %v2530_v18, %v6324_v59  ;;  %v2616_v2 = vadd.f32 %v2579_v27, %v6326_v62 }
 0x25f   : > { %v2762_v42 = vpop.f32.mrf.mxu0  ;;  %v2811_v9 = vpop.f32.mrf.mxu1 }
 0x260   : > { %v6490_v54 = vadd.f32 %v2762_v42, %v2615_v23  ;;  %v6492_v4 = vadd.f32 %v2811_v9, %v2616_v2  ;;  %v2878_v23 = vor.u32 %v2877_v19, %v2873_v51  ;;  %v2881_v2 = vshll.u32 %v916_v60, 16 }
 0x261   : > { %v4306_v19 = vrot.slane %v6496_v45, 9 }
 0x262   : > { %3018 = vmatmul.bf16.gmra.mxu2 %v6793_v37  ;;  %3067 = vmatmul.bf16.gmra.mxu3 %v6793_v37 }
 0x265   : > { %v2533_v30 = vpop.f32.mrf.mxu2  ;;  %v2582_v35 = vpop.f32.mrf.mxu3 }
 0x266   : > { %v2617_v59 = vadd.f32 %v2533_v30, %v6342_v33  ;;  %v2618_v62 = vadd.f32 %v2582_v35, %v6344_v5  ;;  %v2864_v33 = vrot.slane %v2862_v14, 4  ;;  %v2867_v5 = vrot.slane %v2865_v39, 5 }
 0x267   : > { %v2765_v56 = vpop.f32.mrf.mxu0  ;;  %v2814_v47 = vpop.f32.mrf.mxu1  ;;  %v2879_v30 = vrot.slane %v2878_v23, 4  ;;  %v2883_v35 = vrot.slane %v2881_v2, 5  ;;  %v3119_v23 = vsel %vm5324_vm15, %v4306_v19, %v3118_v41 }
 0x268   : > { %v6506_v31 = vadd.f32 %v2765_v56, %v2617_v59  ;;  %v6508_v52 = vadd.f32 %v2814_v47, %v2618_v62  ;;  %v2868_v27 = vor.u32 %v2867_v5, %v2864_v33 }
 0x269   : > { %v2884_v46 = vsel %vm5011_vm12, %v2879_v30, %v2883_v35 }
 0x26a   : > { %3256 = vmatmul.bf16.gmra.mxu0 %v6786_v38  ;;  %3305 = vmatmul.bf16.gmra.mxu1 %v6786_v38  ;;  %v6794_v38 = vld [vmem:[#allocation15_spill] sm:$0xff]  ;;  %v2869_v37 = vrot.slane %v2868_v27, 4 }
 0x26c   : > { %v2874_v39 = vsel %vm5011_vm12, %v2869_v37, %v2873_v51 }
 0x26d   : > { %v2535_v15 = vpop.f32.mrf.mxu2  ;;  %v2584_v34 = vpop.f32.mrf.mxu3 }
 0x26e   : > { %v2619_v20 = vadd.f32 %v2535_v15, %v6367_v43  ;;  %v2620_v57 = vadd.f32 %v2584_v34, %v6369_v58  ;;  %v3120_v15 = vrot.slane %v3118_v41, 4  ;;  %v3121_v34 = vrot.slane %v916_v60, 5  ;;  %v6565_v41 = vld [vmem:[%s6727_s6] ss:$0 sm:$0xff] }
 0x26f   : > { %v2767_v63 = vpop.f32.mrf.mxu0  ;;  %v2816_v18 = vpop.f32.mrf.mxu1  ;;  %v3139_v60 = vunpack.c.l.b16 %v3119_v23 }
 0x270   : > { %v6514_v42 = vadd.f32 %v2767_v63, %v2619_v20  ;;  %v6516_v9 = vadd.f32 %v2816_v18, %v2620_v57 }
 0x272   : > { %3023 = vmatmul.bf16.gmra.mxu2 %v6794_v38  ;;  %3072 = vmatmul.bf16.gmra.mxu3 %v6794_v38 }
 0x275   : > { %v2538_v59 = vpop.f32.mrf.mxu2  ;;  %v2587_v43 = vpop.f32.mrf.mxu3 }
 0x276   : > { %v2621_v58 = vadd.f32 %v2538_v59, %v6381_v40  ;;  %v2622_v62 = vadd.f32 %v2587_v43, %v6383_v44  ;;  %v2901_v40 = vunpack.c.l.b16 %v2874_v39  ;;  %v2902_v44 = vunpack.c.l.b16 %v2884_v46 }
 0x277   : > { %v2770_v56 = vpop.f32.mrf.mxu0  ;;  %v2819_v47 = vpop.f32.mrf.mxu1 }
 0x278   : > { %v6527_v33 = vadd.f32 %v2770_v56, %v2621_v58  ;;  %v6529_v5 = vadd.f32 %v2819_v47, %v2622_v62  ;;  %v2903_v63 = vpack.c.b16 %v2902_v44, %v2901_v40 }
 0x27a   : > { %3261 = vmatmul.bf16.gmra.mxu0 %v6389_v29  ;;  %3310 = vmatmul.bf16.gmra.mxu1 %v6389_v29  ;;  %v3122_v29 = vsel %vm5324_vm15, %v3120_v15, %v3121_v34 }
 0x27d   : > { %v2540_v51 = vpop.f32.mrf.mxu2  ;;  %v2589_v20 = vpop.f32.mrf.mxu3 }
 0x27e   : > { %v2623_v57 = vadd.f32 %v2540_v51, %v6391_v12  ;;  %v2624_v21 = vadd.f32 %v2589_v20, %v6393_v8  ;;  %v3140_v12 = vunpack.c.l.b16 %v3122_v29  ;;  %v6578_v51 = vld [vmem:[%s6728_s7] ss:$0 sm:$0xff]  ;;  %v3392_v29 = vld [vmem:[%s6556_s16 + $0x8] sm:$0xff] }
 0x27f   : > { %v2772_v18 = vpop.f32.mrf.mxu0  ;;  %v2821_v27 = vpop.f32.mrf.mxu1 }
 0x280   : > { %v6540_v2 = vadd.f32 %v2772_v18, %v2623_v57  ;;  %v6542_v45 = vadd.f32 %v2821_v27, %v2624_v21  ;;  %v3141_v35 = vpack.c.b16 %v3140_v12, %v3139_v60 }
 0x282   : > { %3028 = vmatmul.bf16.gmra.mxu2 %v2903_v63  ;;  %3077 = vmatmul.bf16.gmra.mxu3 %v2903_v63 }
 0x285   : > { %v2543_v38 = vpop.f32.mrf.mxu2  ;;  %v2592_v8 = vpop.f32.mrf.mxu3 }
 0x286   : > { %v2625_v37 = vadd.f32 %v2543_v38, %v6399_v55  ;;  %v2626_v30 = vadd.f32 %v2592_v8, %v6401_v11  ;;  %v3412_v38 = vsub.f32 %v3392_v29, %v6565_v41 }
 0x287   : > { %v2775_v59 = vpop.f32.mrf.mxu0  ;;  %v2824_v43 = vpop.f32.mrf.mxu1 }
 0x288   : > { %v6546_v22 = vadd.f32 %v2775_v59, %v2625_v37  ;;  %v6548_v58 = vadd.f32 %v2824_v43, %v2626_v30 }
 0x28a   : > { %3266 = vmatmul.bf16.gmra.mxu0 %v3141_v35  ;;  %3315 = vmatmul.bf16.gmra.mxu1 %v3141_v35 }
 0x28d   : > { %v2545_v62 = vpop.f32.mrf.mxu2  ;;  %v2594_v56 = vpop.f32.mrf.mxu3 }
 0x28e   : > { %v2627_v47 = vadd.f32 %v2545_v62, %v6405_v1  ;;  %v2628_v14 = vadd.f32 %v2594_v56, %v6407_v6  ;;  %v3353_v1 = vld [vmem:[%s6726_s5] sm:$0x3] }
 0x28f   : > { %v2777_v39 = vpop.f32.mrf.mxu0  ;;  %v2826_v55 = vpop.f32.mrf.mxu1  ;;  %v3391_v6 = vld [vmem:[%s6556_s16] sm:$0xff]  ;;  %v6572_v15 = vperm.slane %v3353_v1, 0 }
 0x290   : > { %v6558_v11 = vadd.f32 %v2777_v39, %v2627_v47  ;;  %v6560_v46 = vadd.f32 %v2826_v55, %v2628_v14  ;;  %v3411_v34 = vsub.f32 %v3391_v6, %v6565_v41  ;;  %v3432_v14 = vmul.f32 %v6578_v51, %v3412_v38  ;;  %v3393_v55 = vld [vmem:[%s6556_s16 + $0x10] sm:$0xff] }
 0x292   : > { %v3431_v27 = vmul.f32 %v6578_v51, %v3411_v34 }
 0x295   : > { %v2994_v40 = vpop.f32.mrf.mxu2  ;;  %v3043_v44 = vpop.f32.mrf.mxu3 }
 0x296   : > { %v3083_v19 = vadd.f32 %v2994_v40, %v6413_v16  ;;  %v3084_v20 = vadd.f32 %v3043_v44, %v6415_v49  ;;  %v6583_v16 = vperm.slane %v3353_v1, 1  ;;  %v3413_v40 = vsub.f32 %v3393_v55, %v6565_v41 }
 0x297   : > { %v3232_v57 = vpop.f32.mrf.mxu0  ;;  %v3281_v21 = vpop.f32.mrf.mxu1 }
 0x298   : > { %v3321_v63 = vadd.f32 %v3232_v57, %v3083_v19  ;;  %v3322_v23 = vadd.f32 %v3281_v21, %v3084_v20 }
 0x29a   : > { %v3359_v18 = vadd.f32 %v6572_v15, %v3321_v63  ;;  %v3360_v49 = vadd.f32 %v6583_v16, %v3322_v23 }
 0x29c   : > { %v3447_v60 = vadd.f32 1.0, %v3359_v18  ;;  %v3433_v18 = vmul.f32 %v6578_v51, %v3413_v40 }
 0x29d   : > { %v2996_v12 = vpop.f32.mrf.mxu2  ;;  %v3045_v8 = vpop.f32.mrf.mxu3 }
 0x29e   : > { %v3463_v37 = vmul.f32 %v3447_v60, %v3431_v27  ;;  %v3085_v30 = vadd.f32 %v2996_v12, %v6421_v48  ;;  %v3086_v35 = vadd.f32 %v3045_v8, %v6423_v10  ;;  %v3394_v12 = vld [vmem:[%s6556_s16 + $0x18] sm:$0xff] }
 0x29f   : > { %v3234_v59 = vpop.f32.mrf.mxu0  ;;  %v3283_v43 = vpop.f32.mrf.mxu1  ;;  %v3414_v8 = vsub.f32 %v3394_v12, %v6565_v41 }
 0x2a0   : > { %v3479_v62 = vadd.f32 %v3463_v37, %v3360_v49  ;;  %v3323_v56 = vadd.f32 %v3234_v59, %v3085_v30  ;;  %v3324_v39 = vadd.f32 %v3283_v43, %v3086_v35 }
 0x2a2   : > { %v3361_v47 = vadd.f32 %v6572_v15, %v3323_v56  ;;  %v3362_v10 = vadd.f32 %v6583_v16, %v3324_v39  ;;  %v3495_v27 = vmax.f32 %v3479_v62, 0.0  ;;  %v3434_v39 = vmul.f32 %v6578_v51, %v3414_v8 }
 0x2a4   : > { %v3448_v1 = vadd.f32 1.0, %v3361_v47 }
 0x2a5   : > { %v2999_v6 = vpop.f32.mrf.mxu2  ;;  %v3048_v44 = vpop.f32.mrf.mxu3 }
 0x2a6   : > { %v3464_v48 = vmul.f32 %v3448_v1, %v3432_v14  ;;  %v3087_v19 = vadd.f32 %v2999_v6, %v6429_v26  ;;  %v3088_v34 = vadd.f32 %v3048_v44, %v6431_v25  ;;  %v3395_v1 = vld [vmem:[%s6556_s16 + $0x20] sm:$0xff] }
 0x2a7   : > { %v3237_v20 = vpop.f32.mrf.mxu0  ;;  %v3286_v57 = vpop.f32.mrf.mxu1  ;;  %v3415_v44 = vsub.f32 %v3395_v1, %v6565_v41 }
 0x2a8   : > { %v3480_v21 = vadd.f32 %v3464_v48, %v3362_v10  ;;  %v3325_v63 = vadd.f32 %v3237_v20, %v3087_v19  ;;  %v3326_v60 = vadd.f32 %v3286_v57, %v3088_v34 }
 0x2aa   : > { %v3496_v23 = vmax.f32 %v3480_v21, 0.0  ;;  %v3363_v29 = vadd.f32 %v6572_v15, %v3325_v63  ;;  %v3364_v30 = vadd.f32 %v6583_v16, %v3326_v60  ;;  %v3435_v63 = vmul.f32 %v6578_v51, %v3415_v44  ;;  %v3396_v60 = vld [vmem:[%s6556_s16 + $0x28] sm:$0xff] }
 0x2ac   : > { %v4532_v26 = vpack.c.bf16 %v3496_v23, %v3495_v27  ;;  %v3449_v25 = vadd.f32 1.0, %v3363_v29 }
 0x2ad   : > { %v3001_v38 = vpop.f32.mrf.mxu2  ;;  %v3050_v37 = vpop.f32.mrf.mxu3 }
 0x2ae   : > { %4533 = vst [vmem:[%s6605_s14] sm:$0xff] %v4532_v26   ;;  %v3465_v49 = vmul.f32 %v3449_v25, %v3433_v18  ;;  %v3089_v35 = vadd.f32 %v3001_v38, %v6437_v28  ;;  %v3090_v59 = vadd.f32 %v3050_v37, %v6439_v61 }
 0x2af   : > { %v3239_v43 = vpop.f32.mrf.mxu0  ;;  %v3288_v62 = vpop.f32.mrf.mxu1 }
 0x2b0   : > { %v3481_v56 = vadd.f32 %v3465_v49, %v3364_v30  ;;  %v3327_v47 = vadd.f32 %v3239_v43, %v3089_v35  ;;  %v3328_v55 = vadd.f32 %v3288_v62, %v3090_v59 }
 0x2b2   : > { %v3365_v14 = vadd.f32 %v6572_v15, %v3327_v47  ;;  %v3366_v28 = vadd.f32 %v6583_v16, %v3328_v55  ;;  %v3497_v18 = vmax.f32 %v3481_v56, 0.0 }
 0x2b4   : > { %v3450_v6 = vadd.f32 1.0, %v3365_v14  ;;  %v3397_v14 = vld [vmem:[%s6556_s16 + $0x30] sm:$0xff] }
 0x2b5   : > { %v3004_v40 = vpop.f32.mrf.mxu2  ;;  %v3053_v48 = vpop.f32.mrf.mxu3  ;;  %v3417_v1 = vsub.f32 %v3397_v14, %v6565_v41 }
 0x2b6   : > { %v3466_v10 = vmul.f32 %v3450_v6, %v3434_v39  ;;  %v3091_v61 = vadd.f32 %v3004_v40, %v6445_v24  ;;  %v3092_v19 = vadd.f32 %v3053_v48, %v6447_v3  ;;  %v3416_v24 = vsub.f32 %v3396_v60, %v6565_v41 }
 0x2b7   : > { %v3242_v34 = vpop.f32.mrf.mxu0  ;;  %v3291_v20 = vpop.f32.mrf.mxu1 }
 0x2b8   : > { %v3482_v57 = vadd.f32 %v3466_v10, %v3366_v28  ;;  %v3329_v21 = vadd.f32 %v3242_v34, %v3091_v61  ;;  %v3330_v29 = vadd.f32 %v3291_v20, %v3092_v19  ;;  %v3436_v56 = vmul.f32 %v6578_v51, %v3416_v24 }
 0x2b9   : > { %v3437_v19 = vmul.f32 %v6578_v51, %v3417_v1 }
 0x2ba   : > { %v3498_v27 = vmax.f32 %v3482_v57, 0.0  ;;  %v3367_v23 = vadd.f32 %v6572_v15, %v3329_v21  ;;  %v3368_v8 = vadd.f32 %v6583_v16, %v3330_v29 }
 0x2bc   : > { %v4537_v12 = vpack.c.bf16 %v3498_v27, %v3497_v18  ;;  %v3451_v26 = vadd.f32 1.0, %v3367_v23 }
 0x2bd   : > { %v3006_v25 = vpop.f32.mrf.mxu2  ;;  %v3055_v3 = vpop.f32.mrf.mxu3 }
 0x2be   : > { %4569 = vst [vmem:[%s6605_s14 + $0x8] sm:$0xff] %v4537_v12   ;;  %v3467_v38 = vmul.f32 %v3451_v26, %v3435_v63  ;;  %v3093_v37 = vadd.f32 %v3006_v25, %v6453_v53  ;;  %v3094_v49 = vadd.f32 %v3055_v3, %v6455_v0  ;;  %v3398_v63 = vld [vmem:[%s6556_s16 + $0x38] sm:$0xff] }
 0x2bf   : > { %v3244_v30 = vpop.f32.mrf.mxu0  ;;  %v3293_v35 = vpop.f32.mrf.mxu1 }
 0x2c0   : > { %v3483_v59 = vadd.f32 %v3467_v38, %v3368_v8  ;;  %v3331_v43 = vadd.f32 %v3244_v30, %v3093_v37  ;;  %v3332_v47 = vadd.f32 %v3293_v35, %v3094_v49  ;;  %v3399_v30 = vld [vmem:[%s6556_s16 + $0x40] sm:$0xff] }
 0x2c2   : > { %v3369_v62 = vadd.f32 %v6572_v15, %v3331_v43  ;;  %v3370_v53 = vadd.f32 %v6583_v16, %v3332_v47  ;;  %v3499_v34 = vmax.f32 %v3483_v59, 0.0  ;;  %v3419_v43 = vsub.f32 %v3399_v30, %v6565_v41 }
 0x2c4   : > { %v3452_v39 = vadd.f32 1.0, %v3369_v62 }
 0x2c5   : > { %v3009_v55 = vpop.f32.mrf.mxu2  ;;  %v3058_v6 = vpop.f32.mrf.mxu3 }
 0x2c6   : > { %v3468_v40 = vmul.f32 %v3452_v39, %v3436_v56  ;;  %v3095_v0 = vadd.f32 %v3009_v55, %v6461_v50  ;;  %v3096_v44 = vadd.f32 %v3058_v6, %v6463_v36  ;;  %v3418_v50 = vsub.f32 %v3398_v63, %v6565_v41 }
 0x2c7   : > { %v3247_v48 = vpop.f32.mrf.mxu0  ;;  %v3296_v10 = vpop.f32.mrf.mxu1  ;;  %v3439_v6 = vmul.f32 %v6578_v51, %v3419_v43 }
 0x2c8   : > { %v3484_v28 = vadd.f32 %v3468_v40, %v3370_v53  ;;  %v3333_v61 = vadd.f32 %v3247_v48, %v3095_v0  ;;  %v3334_v21 = vadd.f32 %v3296_v10, %v3096_v44  ;;  %v3438_v37 = vmul.f32 %v6578_v51, %v3418_v50  ;;  %v3400_v48 = vld [vmem:[%s6556_s16 + $0x48] sm:$0xff] }
 0x2ca   : > { %v3500_v20 = vmax.f32 %v3484_v28, 0.0  ;;  %v3371_v57 = vadd.f32 %v6572_v15, %v3333_v61  ;;  %v3372_v60 = vadd.f32 %v6583_v16, %v3334_v21 }
 0x2cc   : > { %v4542_v18 = vpack.c.bf16 %v3500_v20, %v3499_v34  ;;  %v3453_v27 = vadd.f32 1.0, %v3371_v57 }
 0x2cd   : > { %v3011_v23 = vpop.f32.mrf.mxu2  ;;  %v3060_v36 = vpop.f32.mrf.mxu3 }
 0x2ce   : > { %4570 = vst [vmem:[%s6605_s14 + $0x10] sm:$0xff] %v4542_v18   ;;  %v3469_v29 = vmul.f32 %v3453_v27, %v3437_v19  ;;  %v3097_v12 = vadd.f32 %v3011_v23, %v6472_v13  ;;  %v3098_v26 = vadd.f32 %v3060_v36, %v6474_v17 }
 0x2cf   : > { %v3249_v25 = vpop.f32.mrf.mxu0  ;;  %v3298_v24 = vpop.f32.mrf.mxu1 }
 0x2d0   : > { %v3485_v3 = vadd.f32 %v3469_v29, %v3372_v60  ;;  %v3335_v38 = vadd.f32 %v3249_v25, %v3097_v12  ;;  %v3336_v49 = vadd.f32 %v3298_v24, %v3098_v26  ;;  %v3401_v29 = vld [vmem:[%s6556_s16 + $0x50] sm:$0xff] }
 0x2d1   : > { %v3421_v26 = vsub.f32 %v3401_v29, %v6565_v41 }
 0x2d2   : > { %v3373_v8 = vadd.f32 %v6572_v15, %v3335_v38  ;;  %v3374_v13 = vadd.f32 %v6583_v16, %v3336_v49  ;;  %v3501_v40 = vmax.f32 %v3485_v3, 0.0 }
 0x2d3   : > { %v3441_v30 = vmul.f32 %v6578_v51, %v3421_v26 }
 0x2d4   : > { %v3454_v35 = vadd.f32 1.0, %v3373_v8 }
 0x2d5   : > { %v3014_v59 = vpop.f32.mrf.mxu2  ;;  %v3063_v62 = vpop.f32.mrf.mxu3 }
 0x2d6   : > { %v3470_v56 = vmul.f32 %v3454_v35, %v3438_v37  ;;  %v3099_v17 = vadd.f32 %v3014_v59, %v6482_v7  ;;  %v3100_v47 = vadd.f32 %v3063_v62, %v6484_v32  ;;  %v3420_v7 = vsub.f32 %v3400_v48, %v6565_v41 }
 0x2d7   : > { %v3252_v14 = vpop.f32.mrf.mxu0  ;;  %v3301_v39 = vpop.f32.mrf.mxu1 }
 0x2d8   : > { %v3486_v55 = vadd.f32 %v3470_v56, %v3374_v13  ;;  %v3337_v1 = vadd.f32 %v3252_v14, %v3099_v17  ;;  %v3338_v44 = vadd.f32 %v3301_v39, %v3100_v47  ;;  %v3440_v50 = vmul.f32 %v6578_v51, %v3420_v7  ;;  %v3402_v56 = vld [vmem:[%s6556_s16 + $0x58] sm:$0xff] }
 0x2da   : > { %v3502_v53 = vmax.f32 %v3486_v55, 0.0  ;;  %v3375_v0 = vadd.f32 %v6572_v15, %v3337_v1  ;;  %v3376_v34 = vadd.f32 %v6583_v16, %v3338_v44 }
 0x2dc   : > { %v4547_v10 = vpack.c.bf16 %v3502_v53, %v3501_v40  ;;  %v3455_v28 = vadd.f32 1.0, %v3375_v0 }
 0x2dd   : > { %v3016_v61 = vpop.f32.mrf.mxu2  ;;  %v3065_v32 = vpop.f32.mrf.mxu3 }
 0x2de   : > { %4571 = vst [vmem:[%s6605_s14 + $0x18] sm:$0xff] %v4547_v10   ;;  %v3471_v19 = vmul.f32 %v3455_v28, %v3439_v6  ;;  %v3101_v20 = vadd.f32 %v3016_v61, %v6490_v54  ;;  %v3102_v57 = vadd.f32 %v3065_v32, %v6492_v4  ;;  %v3403_v28 = vld [vmem:[%s6556_s16 + $0x60] sm:$0xff] }
 0x2df   : > { %v3254_v21 = vpop.f32.mrf.mxu0  ;;  %v3303_v63 = vpop.f32.mrf.mxu1  ;;  %v3423_v32 = vsub.f32 %v3403_v28, %v6565_v41 }
 0x2e0   : > { %v3487_v18 = vadd.f32 %v3471_v19, %v3376_v34  ;;  %v3339_v27 = vadd.f32 %v3254_v21, %v3101_v20  ;;  %v3340_v36 = vadd.f32 %v3303_v63, %v3102_v57 }
 0x2e2   : > { %v3377_v23 = vadd.f32 %v6572_v15, %v3339_v27  ;;  %v3378_v54 = vadd.f32 %v6583_v16, %v3340_v36  ;;  %v3503_v35 = vmax.f32 %v3487_v18, 0.0  ;;  %v3443_v27 = vmul.f32 %v6578_v51, %v3423_v32 }
 0x2e4   : > { %v3456_v60 = vadd.f32 1.0, %v3377_v23 }
 0x2e5   : > { %v3019_v12 = vpop.f32.mrf.mxu2  ;;  %v3068_v25 = vpop.f32.mrf.mxu3 }
 0x2e6   : > { %v3472_v24 = vmul.f32 %v3456_v60, %v3440_v50  ;;  %v3103_v4 = vadd.f32 %v3019_v12, %v6506_v31  ;;  %v3104_v3 = vadd.f32 %v3068_v25, %v6508_v52  ;;  %v3422_v31 = vsub.f32 %v3402_v56, %v6565_v41  ;;  %v3404_v60 = vld [vmem:[%s6556_s16 + $0x68] sm:$0xff] }
 0x2e7   : > { %v3257_v38 = vpop.f32.mrf.mxu0  ;;  %v3306_v8 = vpop.f32.mrf.mxu1 }
 0x2e8   : > { %v3488_v37 = vadd.f32 %v3472_v24, %v3378_v54  ;;  %v3341_v49 = vadd.f32 %v3257_v38, %v3103_v4  ;;  %v3342_v62 = vadd.f32 %v3306_v8, %v3104_v3  ;;  %v3442_v48 = vmul.f32 %v6578_v51, %v3422_v31 }
 0x2ea   : > { %v3504_v59 = vmax.f32 %v3488_v37, 0.0  ;;  %v3379_v43 = vadd.f32 %v6572_v15, %v3341_v49  ;;  %v3380_v39 = vadd.f32 %v6583_v16, %v3342_v62 }
 0x2ec   : > { %v4552_v13 = vpack.c.bf16 %v3504_v59, %v3503_v35  ;;  %v3457_v17 = vadd.f32 1.0, %v3379_v43  ;;  %v3405_v43 = vld [vmem:[%s6556_s16 + $0x70] sm:$0xff] }
 0x2ed   : > { %v3021_v47 = vpop.f32.mrf.mxu2  ;;  %v3070_v52 = vpop.f32.mrf.mxu3 }
 0x2ee   : > { %4572 = vst [vmem:[%s6605_s14 + $0x20] sm:$0xff] %v4552_v13   ;;  %v3473_v14 = vmul.f32 %v3457_v17, %v3441_v30  ;;  %v3105_v55 = vadd.f32 %v3021_v47, %v6514_v42  ;;  %v3106_v1 = vadd.f32 %v3070_v52, %v6516_v9  ;;  %v3425_v13 = vsub.f32 %v3405_v43, %v6565_v41 }
 0x2ef   : > { %v3259_v6 = vpop.f32.mrf.mxu0  ;;  %v3308_v40 = vpop.f32.mrf.mxu1 }
 0x2f0   : > { %v3489_v53 = vadd.f32 %v3473_v14, %v3380_v39  ;;  %v3343_v0 = vadd.f32 %v3259_v6, %v3105_v55  ;;  %v3344_v10 = vadd.f32 %v3308_v40, %v3106_v1  ;;  %v3445_v1 = vmul.f32 %v6578_v51, %v3425_v13 }
 0x2f2   : > { %v3381_v44 = vadd.f32 %v6572_v15, %v3343_v0  ;;  %v3382_v42 = vadd.f32 %v6583_v16, %v3344_v10  ;;  %v3505_v23 = vmax.f32 %v3489_v53, 0.0 }
 0x2f4   : > { %v3458_v61 = vadd.f32 1.0, %v3381_v44  ;;  %v3406_v44 = vld [vmem:[%s6556_s16 + $0x78] sm:$0xff] }
 0x2f5   : > { %v3024_v7 = vpop.f32.mrf.mxu2  ;;  %v3073_v19 = vpop.f32.mrf.mxu3 }
 0x2f6   : > { %v3474_v34 = vmul.f32 %v3458_v61, %v3442_v48  ;;  %v3107_v9 = vadd.f32 %v3024_v7, %v6527_v33  ;;  %v3108_v20 = vadd.f32 %v3073_v19, %v6529_v5  ;;  %v3424_v33 = vsub.f32 %v3404_v60, %v6565_v41 }
 0x2f7   : > { %v3262_v57 = vpop.f32.mrf.mxu0  ;;  %v3311_v21 = vpop.f32.mrf.mxu1 }
 0x2f8   : > { %v3490_v63 = vadd.f32 %v3474_v34, %v3382_v42  ;;  %v3345_v18 = vadd.f32 %v3262_v57, %v3107_v9  ;;  %v3346_v29 = vadd.f32 %v3311_v21, %v3108_v20  ;;  %v3444_v35 = vmul.f32 %v6578_v51, %v3424_v33 }
 0x2fa   : > { %v3506_v50 = vmax.f32 %v3490_v63, 0.0  ;;  %v3383_v36 = vadd.f32 %v6572_v15, %v3345_v18  ;;  %v3384_v54 = vadd.f32 %v6583_v16, %v3346_v29 }
 0x2fc   : > { %v4557_v12 = vpack.c.bf16 %v3506_v50, %v3505_v23  ;;  %v3459_v26 = vadd.f32 1.0, %v3383_v36 }
 0x2fd   : > { %v3026_v25 = vpop.f32.mrf.mxu2  ;;  %v3075_v5 = vpop.f32.mrf.mxu3 }
 0x2fe   : > { %4573 = vst [vmem:[%s6605_s14 + $0x28] sm:$0xff] %v4557_v12   ;;  %v3475_v24 = vmul.f32 %v3459_v26, %v3443_v27  ;;  %v3109_v4 = vadd.f32 %v3026_v25, %v6540_v2  ;;  %v3110_v3 = vadd.f32 %v3075_v5, %v6542_v45 }
 0x2ff   : > { %v3264_v38 = vpop.f32.mrf.mxu0  ;;  %v3313_v8 = vpop.f32.mrf.mxu1 }
 0x300   : > { %v3491_v37 = vadd.f32 %v3475_v24, %v3384_v54  ;;  %v3347_v49 = vadd.f32 %v3264_v38, %v3109_v4  ;;  %v3348_v59 = vadd.f32 %v3313_v8, %v3110_v3 }
 0x302   : > { %v3385_v30 = vadd.f32 %v6572_v15, %v3347_v49  ;;  %v3386_v2 = vadd.f32 %v6583_v16, %v3348_v59  ;;  %v3507_v6 = vmax.f32 %v3491_v37, 0.0 }
 0x304   : > { %v3460_v62 = vadd.f32 1.0, %v3385_v30 }
 0x305   : > { %v3029_v56 = vpop.f32.mrf.mxu2  ;;  %v3078_v17 = vpop.f32.mrf.mxu3 }
 0x306   : > { %v3476_v47 = vmul.f32 %v3460_v62, %v3444_v35  ;;  %v3111_v45 = vadd.f32 %v3029_v56, %v6546_v22  ;;  %v3112_v31 = vadd.f32 %v3078_v17, %v6548_v58  ;;  %v3426_v22 = vsub.f32 %v3406_v44, %v6565_v41 }
 0x307   : > { %v3267_v52 = vpop.f32.mrf.mxu0  ;;  %v3316_v14 = vpop.f32.mrf.mxu1 }
 0x308   : > { %v3492_v39 = vadd.f32 %v3476_v47, %v3386_v2  ;;  %v3349_v55 = vadd.f32 %v3267_v52, %v3111_v45  ;;  %v3350_v0 = vadd.f32 %v3316_v14, %v3112_v31  ;;  %v3446_v21 = vmul.f32 %v6578_v51, %v3426_v22 }
 0x30a   : > { %v3508_v40 = vmax.f32 %v3492_v39, 0.0  ;;  %v3387_v53 = vadd.f32 %v6572_v15, %v3349_v55  ;;  %v3388_v7 = vadd.f32 %v6583_v16, %v3350_v0 }
 0x30c   : > { %v4562_v48 = vpack.c.bf16 %v3508_v40, %v3507_v6  ;;  %v3461_v10 = vadd.f32 1.0, %v3387_v53 }
 0x30d   : > { %v3031_v28 = vpop.f32.mrf.mxu2  ;;  %v3080_v61 = vpop.f32.mrf.mxu3 }
 0x30e   : > { %4574 = vst [vmem:[%s6605_s14 + $0x30] sm:$0xff] %v4562_v48   ;;  %v3477_v58 = vmul.f32 %v3461_v10, %v3445_v1  ;;  %v3113_v32 = vadd.f32 %v3031_v28, %v6558_v11  ;;  %v3114_v19 = vadd.f32 %v3080_v61, %v6560_v46 }
 0x30f   : > { %v3269_v34 = vpop.f32.mrf.mxu0  ;;  %v3318_v20 = vpop.f32.mrf.mxu1 }
 0x310   : > { %v3493_v42 = vadd.f32 %v3477_v58, %v3388_v7  ;;  %v3351_v9 = vadd.f32 %v3269_v34, %v3113_v32  ;;  %v3352_v63 = vadd.f32 %v3318_v20, %v3114_v19 }
 0x312   : > { %v3389_v57 = vadd.f32 %v6572_v15, %v3351_v9  ;;  %v3390_v27 = vadd.f32 %v6583_v16, %v3352_v63  ;;  %v3509_v50 = vmax.f32 %v3493_v42, 0.0 }
 0x314   : > { %v3462_v41 = vadd.f32 1.0, %v3389_v57 }
 0x316   : > { %v3478_v18 = vmul.f32 %v3462_v41, %v3446_v21 }
 0x318   : > { %v3494_v23 = vadd.f32 %v3478_v18, %v3390_v27 }
 0x31a   : > { %v3510_v36 = vmax.f32 %v3494_v23, 0.0 }
 0x31c   : > { %v4567_v11 = vpack.c.bf16 %v3510_v36, %v3509_v50 }
 0x31e   : > { %4575 = vst [vmem:[%s6605_s14 + $0x38] sm:$0xff] %v4567_v11  }
 0x31f PF: > { %s18_s9 = sadd.s32 1, %s4684_s9   ;;  %s6796_s27 = smov %s4676_s29 }
 0x320   : > { %p15_p12 = scmp.ge.s32.totalorder %s18_s9, 6   ;;  %s6797_s28 = smov %s4680_s30 }
 0x321   : > { %s6798_s29 = smov %s6801_s10  ;;  %s6799_s30 = smov %s6805_s11 }
 0x322   :  { %17 = sbr.rel (!%p15_p12) target bundleno = 3 (0x3), region = 93 }

// kernel: residual_spade_block.25
= control target key start
LH: loop header
LB: loop body
LE: loop exit
PB: predicated region body
PF: predicated region fallthrough
CT: control target
= control target key end

     0   :  { %s3292_s21 = smov 0   ;;  %s3294_s22 = smov 0   ;;  %s4212_s0 = inlined_call_operand.vmem [shape: bf16[2,16,16,128], index: 0, kind: input, shape index: {}, may-alias: {0,1,2}]   ;;  %s4213_s1 = inlined_call_operand.vmem [shape: bf16[2,16,16,128], index: 1, kind: input, shape index: {}, may-alias: {0,1,2}]   ;;  %s4214_s2 = inlined_call_operand.vmem [shape: bf16[2,16,16,128], index: 2, kind: input, shape index: {}, may-alias: {0,1,2}]   ;;  %s4215_s3 = inlined_call_operand.vmem [shape: bf16[1152,128], index: 3, kind: input, shape index: {}]   ;;  %s4216_s4 = inlined_call_operand.vmem [shape: f32[1,128], index: 4, kind: input, shape index: {}]   ;;  %s4217_s5 = inlined_call_operand.vmem [shape: f32[2,16,16,128], index: 5, kind: input, shape index: {}]   ;;  %s4218_s6 = inlined_call_operand.vmem [shape: f32[2,16,16,128], index: 6, kind: output, shape index: {}]  }
   0x1   :  { %s3296_s23 = smov 0   ;;  %s3298_s24 = smov 0  }
   0x2   :  { %s3300_s25 = smov 0  }
   0x3 LB: > { %s25_s26 = sadd.s32 1, %s3247_s23  ;;  %s28_s27 = sadd.s32 1, %s3251_s24  ;;  %s3255_s25 = sphi %s3300_s25, %s16_s25   ;;  %s3251_s24 = sphi %s3298_s24, %s4235_s24   ;;  %s3247_s23 = sphi %s3296_s23, %s4234_s23   ;;  %s3243_s22 = sphi %s3294_s22, %s4233_s22   ;;  %s3239_s21 = sphi %s3292_s21, %s4232_s21  }
   0x4   : > { %p26_p0 = scmp.ge.s32.totalorder %s25_s26, 2  ;;  %p2698_p1 = scmp.ge.s32.totalorder %s3255_s25, 1 }
   0x5   : > { %p316_p2 = scmp.lt.s32.totalorder %s3255_s25, 5 }
   0x6   : > { %s4237_s26 = smov (%p26_p0, %s25_s26), 0  ;;  %s4239_s27 = smov (!%p26_p0, %s28_s27), %s3251_s24 }
   0x7   : > { %p317_p3 = pnand %p2698_p1, %p316_p2  ;;  %p30_p4 = scmp.ge.s32.totalorder %s4239_s27, 2 }
   0x8   : > { %s3328_s30 = sshll.u32 (!%p317_p3), %s3239_s21, 3  ;;  %p393_p5 = scmp.lt.s32.totalorder (!%p317_p3), %s3243_s22, 1 }
   0x9   : > { %s4241_s27 = smov (%p30_p4, %s4239_s27), 0  ;;  %320 = sbr.rel (%p317_p3) target bundleno = 514 (0x202), region = 44 }
   0xa   : > { %p395_p6 = scmp.lt.s32.totalorder (!%p317_p3), %s3328_s30, 15  ;;  %s3352_s11 = sadd.s32 (!%p317_p3), 4294967295, %s3328_s30 }
   0xb   : > { %p405_p7 = scmp.gt.s32.totalorder (!%p317_p3), %s3352_s11, 0  ;;  %p2705_p8 = scmp.lt.s32.totalorder (!%p317_p3), %s3352_s11, 15 }
   0xc   : > { %p529_p9 = scmp.gt.s32.totalorder (!%p317_p3), %s3239_s21, 0  ;;  %p535_p11 = scmp.lt.s32.totalorder (!%p317_p3), %s3239_s21, 1 }
   0xe   : > { %v3095_v0 = vld [vmem:[%s4215_s3 + $0x78] sm:$0xff]  ;;  %vm460_vm0 = vcmask 1040384   ;;  %vm461_vm1 = vsmask.f32 256  ;;  %v3094_v1 = vld [vmem:[%s4215_s3 + $0x70] sm:$0xff]  ;;  %s4243_s22 = smov (!%p393_p5, %s3243_s22), 1 }
   0xf   : > { %3152 = vmatpush.bf16.msra.mxu1 %v3095_v0  ;;  %3153 = vmatpush.bf16.msra.mxu2 %v3095_v0  ;;  %vm3335_vm2 = vmand %vm460_vm0, %vm461_vm1  ;;  %vm493_vm3 = vsmask.f32 7938  ;;  %s396_s9 = scalar_select %p395_p6, %s3328_s30, 15  ;;  %v469_v3 = vld [vmem:[#allocation2 + $0x18] sm:$0x1]  ;;  %v3093_v8 = vld [vmem:[%s4215_s3 + $0x68] sm:$0xff] }
  0x10   : > { %3154 = vmatpush.bf16.msra.mxu3 %v3095_v0  ;;  %1170 = vmatpush.bf16.msra.mxu0 %v3095_v0  ;;  %vm3341_vm4 = vmand %vm460_vm0, %vm493_vm3  ;;  %v501_v5 = vld [vmem:[#allocation2 + $0x20] sm:$0x1]  ;;  %s3345_s10 = sshll.u32 %s4243_s22, 5  ;;  %v470_v6 = vsel %vm3335_vm2, 0, %v469_v3  ;;  %vm541_vm5 = vsmask.f32 4368 }
  0x11   : > { %v502_v7 = vsel %vm3341_vm4, 0, %v501_v5  ;;  %s2700_s14 = sshll.u32 %s396_s9, 1  ;;  %471 = vst [vmem:[#allocation2 + $0x18] sm:$0x1] %v470_v6  ;;  %vm563_vm6 = vcmask 1043456   ;;  %v3092_v13 = vld [vmem:[%s4215_s3 + $0x60] sm:$0xff]  ;;  %vm3391_vm8 = vmor %vm461_vm1, %vm541_vm5 }
  0x12   : > { %s3358_s15 = sadd.s32 %s3345_s10, %s2700_s14  ;;  %503 = vst [vmem:[#allocation2 + $0x20] sm:$0x1] %v502_v7  ;;  %v475_v9 = vld [vmem:[#allocation2 + $0x30] sm:$0x1]  ;;  %v507_v11 = vld [vmem:[#allocation2 + $0x38] sm:$0x1]  ;;  %vm3385_vm7 = vmand %vm563_vm6, %vm493_vm3 }
  0x13   : > { %3155 = vmatpush.bf16.msra.mxu1 %v3094_v1  ;;  %3156 = vmatpush.bf16.msra.mxu2 %v3094_v1  ;;  %s2702_s16 = sshll.u32 %s3358_s15, 2  ;;  %v476_v10 = vsel %vm3335_vm2, 0, %v475_v9  ;;  %v481_v12 = vld [vmem:[#allocation2 + $0x48] sm:$0x1]  ;;  %v508_v14 = vsel %vm3341_vm4, 0, %v507_v11  ;;  %v3091_v27 = vld [vmem:[%s4215_s3 + $0x58] sm:$0xff] }
  0x14   : > { %3157 = vmatpush.bf16.msra.mxu3 %v3094_v1  ;;  %1171 = vmatpush.bf16.msra.mxu0 %v3094_v1  ;;  %s3370_s22 = scalar_lea.vmem %s4212_s0, %s2702_s16  ;;  %477 = vst [vmem:[#allocation2 + $0x30] sm:$0x1] %v476_v10  ;;  %v482_v15 = vsel %vm3335_vm2, 0, %v481_v12  ;;  %v513_v16 = vld [vmem:[#allocation2 + $0x50] sm:$0x1]  ;;  %v3089_v9 = vld [vmem:[%s4215_s3 + $0x48] sm:$0xff] }
  0x15   : > { %v602_v17 = vld [vmem:[%s3370_s22 + $0x8] sm:$0xf]  ;;  %v603_v18 = vld [vmem:[%s3370_s22 + $0xc] sm:$0xf]  ;;  %509 = vst [vmem:[#allocation2 + $0x38] sm:$0x1] %v508_v14 }
  0x16   : > { %v634_v19 = vshrl.u32 %v602_v17, 16  ;;  %v637_v20 = vshll.u32 %v602_v17, 16  ;;  %v642_v21 = vshrl.u32 %v603_v18, 16  ;;  %v645_v22 = vshll.u32 %v603_v18, 16  ;;  %v606_v23 = vld [vmem:[%s3370_s22 + $0x18] sm:$0xf] }
  0x17   : > { %3158 = vmatpush.bf16.msra.mxu1 %v3093_v8  ;;  %3159 = vmatpush.bf16.msra.mxu2 %v3093_v8  ;;  %v607_v24 = vld [vmem:[%s3370_s22 + $0x1c] sm:$0xf]  ;;  %v668_v25 = vshrl.u32 %v606_v23, 16  ;;  %v671_v26 = vshll.u32 %v606_v23, 16  ;;  %483 = vst [vmem:[#allocation2 + $0x48] sm:$0x1] %v482_v15 }
  0x18   : > { %3160 = vmatpush.bf16.msra.mxu3 %v3093_v8  ;;  %1172 = vmatpush.bf16.msra.mxu0 %v3093_v8  ;;  %v636_v29 = vrot.slane %v634_v19, 7  ;;  %v644_v30 = vrot.slane %v642_v21, 7  ;;  %v784_v31 = vld [vmem:[#allocation2 + $0x18] sm:$0xf]  ;;  %v676_v32 = vshrl.u32 %v607_v24, 16  ;;  %v679_v33 = vshll.u32 %v607_v24, 16 }
  0x19   : > { %v788_v35 = vld [vmem:[#allocation2 + $0x20] sm:$0x1]  ;;  %v670_v36 = vrot.slane %v668_v25, 7  ;;  %v514_v37 = vsel %vm3341_vm4, 0, %v513_v16  ;;  %v610_v38 = vld [vmem:[%s3370_s22 + $0x28] sm:$0xf] }
  0x1a   : > { %v639_v39 = vor.u32 %v637_v20, %v636_v29  ;;  %v640_v40 = vrot.slane %v636_v29, 4  ;;  %v647_v41 = vor.u32 %v645_v22, %v644_v30  ;;  %v649_v42 = vrot.slane %v644_v30, 4  ;;  %515 = vst [vmem:[#allocation2 + $0x50] sm:$0x1] %v514_v37  ;;  %v611_v43 = vld [vmem:[%s3370_s22 + $0x2c] sm:$0xf] }
  0x1b   : > { %3161 = vmatpush.bf16.msra.mxu1 %v3092_v13  ;;  %3162 = vmatpush.bf16.msra.mxu2 %v3092_v13  ;;  %v673_v44 = vor.u32 %v671_v26, %v670_v36  ;;  %v674_v45 = vrot.slane %v670_v36, 4  ;;  %v678_v46 = vrot.slane %v676_v32, 7  ;;  %v798_v47 = vld [vmem:[#allocation2 + $0x30] sm:$0xf]  ;;  %v702_v48 = vshrl.u32 %v610_v38, 16  ;;  %s406_s7 = scalar_select %p405_p7, %s3352_s11, 0 }
  0x1c   : > { %3163 = vmatpush.bf16.msra.mxu3 %v3092_v13  ;;  %1173 = vmatpush.bf16.msra.mxu0 %v3092_v13  ;;  %v648_v49 = vsel %vm3391_vm8, %v640_v40, %v647_v41  ;;  %v785_v50 = vsel %vm3385_vm7, %v639_v39, %v784_v31  ;;  %v789_v51 = vsel %vm3335_vm2, %v649_v42, %v788_v35  ;;  %v802_v52 = vld [vmem:[#allocation2 + $0x38] sm:$0x1]  ;;  %v705_v53 = vshll.u32 %v610_v38, 16  ;;  %v3090_v54 = vld [vmem:[%s4215_s3 + $0x50] sm:$0xff]  ;;  %v463_v1 = vld [vmem:[#allocation2] sm:$0x1] }
  0x1d   : > { %786 = vst [vmem:[#allocation2 + $0x18] sm:$0xf] %v785_v50  ;;  %v681_v55 = vor.u32 %v679_v33, %v678_v46  ;;  %v683_v56 = vrot.slane %v678_v46, 4  ;;  %v799_v57 = vsel %vm3385_vm7, %v673_v44, %v798_v47  ;;  %v704_v58 = vrot.slane %v702_v48, 7  ;;  %s4245_s7 = smov (!%p2705_p8, %s406_s7), 15  ;;  %v3088_v14 = vld [vmem:[%s4215_s3 + $0x40] sm:$0xff] }
  0x1e   : > { %787 = vst [vmem:[#allocation2 + $0x1c] sm:$0xf] %v648_v49  ;;  %v710_v59 = vshrl.u32 %v611_v43, 16  ;;  %v713_v60 = vshll.u32 %v611_v43, 16  ;;  %v812_v61 = vld [vmem:[#allocation2 + $0x48] sm:$0xf] }
  0x1f   : > { %3164 = vmatpush.bf16.msra.mxu1 %v3091_v27  ;;  %3165 = vmatpush.bf16.msra.mxu2 %v3091_v27  ;;  %790 = vst [vmem:[#allocation2 + $0x20] sm:$0x1] %v789_v51  ;;  %v682_v62 = vsel %vm3391_vm8, %v674_v45, %v681_v55  ;;  %v803_v63 = vsel %vm3335_vm2, %v683_v56, %v802_v52  ;;  %vm879_vm9 = vsmask.f32 3328  ;;  %v708_v3 = vrot.slane %v704_v58, 4  ;;  %s2710_s11 = sshll.u32 %s4245_s7, 1 }
  0x20   : > { %3166 = vmatpush.bf16.msra.mxu3 %v3091_v27  ;;  %1174 = vmatpush.bf16.msra.mxu0 %v3091_v27  ;;  %v707_v0 = vor.u32 %v705_v53, %v704_v58  ;;  %800 = vst [vmem:[#allocation2 + $0x30] sm:$0xf] %v799_v57  ;;  %v712_v5 = vrot.slane %v710_v59, 7  ;;  %v464_v8 = vsel %vm3335_vm2, 0, %v463_v1  ;;  %s3426_s14 = sadd.s32 %s2710_s11, %s3345_s10  ;;  %v495_v12 = vld [vmem:[#allocation2 + $0x8] sm:$0x1] }
  0x21   : > { %801 = vst [vmem:[#allocation2 + $0x34] sm:$0xf] %v682_v62  ;;  %v816_v7 = vld [vmem:[#allocation2 + $0x50] sm:$0x1]  ;;  %vm880_vm10 = vsmask.f32 7440 }
  0x22   : > { %v813_v6 = vsel %vm3385_vm7, %v707_v0, %v812_v61  ;;  %804 = vst [vmem:[#allocation2 + $0x38] sm:$0x1] %v803_v63  ;;  %v715_v10 = vor.u32 %v713_v60, %v712_v5  ;;  %v717_v11 = vrot.slane %v712_v5, 4  ;;  %s2712_s16 = sshll.u32 %s3426_s14, 2  ;;  %v496_v13 = vsel %vm3341_vm4, 0, %v495_v12  ;;  %v3103_v22 = vld [vmem:[%s4215_s3 + $0xb8] sm:$0xff]  ;;  %vm3475_vm11 = vmor %vm879_vm9, %vm880_vm10 }
  0x23   : > { %3167 = vmatpush.bf16.msra.mxu1 %v3090_v54  ;;  %3168 = vmatpush.bf16.msra.mxu2 %v3090_v54  ;;  %814 = vst [vmem:[#allocation2 + $0x48] sm:$0xf] %v813_v6  ;;  %v3440_v18 = vld [vmem:[#allocation2 + $0x24] sm:$0x1]  ;;  %v3087_v26 = vld [vmem:[%s4215_s3 + $0x38] sm:$0xff]  ;;  %s415_s12 = scalar_lea.vmem %s4213_s1, %s2712_s16  ;;  %vm1372_vm13 = vcmask 1042432  }
  0x24   : > { %3169 = vmatpush.bf16.msra.mxu3 %v3090_v54  ;;  %1175 = vmatpush.bf16.msra.mxu0 %v3090_v54  ;;  %v3434_v15 = vld [vmem:[#allocation2 + $0x18] sm:$0xf]  ;;  %v716_v16 = vsel %vm3391_vm8, %v708_v3, %v715_v10  ;;  %v817_v17 = vsel %vm3335_vm2, %v717_v11, %v816_v7  ;;  %465 = vst [vmem:[#allocation2] sm:$0x1] %v464_v8  ;;  %v473_v32 = vsel %vm3335_vm2, 0, %v3440_v18  ;;  %v3102_v18 = vld [vmem:[%s4215_s3 + $0xb0] sm:$0xff] }
  0x25   : > { %v3442_v19 = vld [vmem:[#allocation2 + $0x1c] sm:$0xf]  ;;  %v931_v20 = vshrl.u32 %v3434_v15, 16  ;;  %v934_v21 = vshll.u32 %v3434_v15, 16  ;;  %815 = vst [vmem:[#allocation2 + $0x4c] sm:$0xf] %v716_v16 }
  0x26   : > { %v3449_v23 = vld [vmem:[#allocation2 + $0x20] sm:$0x1]  ;;  %v940_v24 = vshll.u32 %v3442_v19, 16  ;;  %v944_v25 = vshrl.u32 %v3442_v19, 16  ;;  %818 = vst [vmem:[#allocation2 + $0x50] sm:$0x1] %v817_v17 }
  0x27   : > { %3170 = vmatpush.bf16.msra.mxu1 %v3089_v9  ;;  %3171 = vmatpush.bf16.msra.mxu2 %v3089_v9  ;;  %v933_v27 = vrot.slane %v931_v20, 4  ;;  %v936_v29 = vrot.slane %v934_v21, 5  ;;  %v950_v30 = vshll.u32 %v3449_v23, 16  ;;  %v3457_v31 = vld [vmem:[#allocation2 + $0x30] sm:$0xf]  ;;  %v3111_v44 = vld [vmem:[%s4215_s3 + $0xf8] sm:$0xff] }
  0x28   : > { %3172 = vmatpush.bf16.msra.mxu3 %v3089_v9  ;;  %1176 = vmatpush.bf16.msra.mxu0 %v3089_v9  ;;  %v942_v33 = vrot.slane %v940_v24, 5  ;;  %v946_v35 = vrot.slane %v944_v25, 4  ;;  %v3462_v36 = vld [vmem:[#allocation2 + $0x34] sm:$0xf]  ;;  %v979_v37 = vshrl.u32 %v3457_v31, 16  ;;  %v982_v38 = vshll.u32 %v3457_v31, 16 }
  0x29   : > { %v937_v39 = vor.u32 %v936_v29, %v933_v27  ;;  %v952_v40 = vrot.slane %v950_v30, 5  ;;  %v3466_v41 = vld [vmem:[#allocation2 + $0x38] sm:$0x1]  ;;  %v988_v42 = vshll.u32 %v3462_v36, 16  ;;  %v992_v43 = vshrl.u32 %v3462_v36, 16  ;;  %v3086_v20 = vld [vmem:[%s4215_s3 + $0x30] sm:$0xff] }
  0x2a   : > { %v947_v46 = vor.u32 %v946_v35, %v942_v33  ;;  %v981_v47 = vrot.slane %v979_v37, 4  ;;  %v984_v48 = vrot.slane %v982_v38, 5  ;;  %v998_v49 = vshll.u32 %v3466_v41, 16  ;;  %v3480_v50 = vld [vmem:[#allocation2 + $0x48] sm:$0xf]  ;;  %v3110_v21 = vld [vmem:[%s4215_s3 + $0xf0] sm:$0xff] }
  0x2b   : > { %3173 = vmatpush.bf16.msra.mxu1 %v3088_v14  ;;  %3174 = vmatpush.bf16.msra.mxu2 %v3088_v14  ;;  %v938_v51 = vrot.slane %v937_v39, 4  ;;  %v990_v52 = vrot.slane %v988_v42, 5  ;;  %v994_v53 = vrot.slane %v992_v43, 4  ;;  %v1027_v54 = vshrl.u32 %v3480_v50, 16  ;;  %497 = vst [vmem:[#allocation2 + $0x8] sm:$0x1] %v496_v13 }
  0x2c   : > { %3175 = vmatpush.bf16.msra.mxu3 %v3088_v14  ;;  %v948_v55 = vrot.slane %v947_v46, 4  ;;  %v985_v56 = vor.u32 %v984_v48, %v981_v47  ;;  %v1000_v57 = vrot.slane %v998_v49, 5  ;;  %v3489_v58 = vld [vmem:[#allocation2 + $0x4c] sm:$0xf]  ;;  %v1030_v59 = vshll.u32 %v3480_v50, 16  ;;  %1177 = vmatpush.bf16.msra.mxu0 %v3088_v14  ;;  %v3119_v27 = vld [vmem:[%s4215_s3 + $0x138] sm:$0xff] }
  0x2d   : > { %v943_v60 = vsel %vm3475_vm11, %v938_v51, %v942_v33  ;;  %v995_v61 = vor.u32 %v994_v53, %v990_v52  ;;  %v3494_v62 = vld [vmem:[#allocation2 + $0x50] sm:$0x1]  ;;  %v1029_v63 = vrot.slane %v1027_v54, 4  ;;  %v1036_v0 = vshll.u32 %v3489_v58, 16  ;;  %v525_v7 = vld [vmem:[%s415_s12] sm:$0xf] }
  0x2e   : > { %v953_v1 = vsel %vm3475_vm11, %v948_v55, %v952_v40  ;;  %v1094_v3 = vunpack.c.l.b16 %v943_v60  ;;  %v986_v5 = vrot.slane %v985_v56, 4  ;;  %v1032_v6 = vrot.slane %v1030_v59, 5  ;;  %s530_s13 = scalar_select %p529_p9, 1, 0  ;;  %v526_v12 = vld [vmem:[%s415_s12 + $0x4] sm:$0xf] }
  0x2f   : > { %1527 = vmatpush.bf16.msrb.mxu2 %v3103_v22  ;;  %1315 = vmatpush.bf16.msrb.mxu1 %v3087_v26  ;;  %v1095_v8 = vunpack.c.l.b16 %v953_v1  ;;  %v996_v9 = vrot.slane %v995_v61, 4  ;;  %v1038_v10 = vrot.slane %v1036_v0, 5  ;;  %v1040_v11 = vshrl.u32 %v3489_v58, 16  ;;  %474 = vst [vmem:[#allocation2 + $0x24] sm:$0x1] %v473_v32  ;;  %v3085_v32 = vld [vmem:[%s4215_s3 + $0x28] sm:$0xff] }
  0x30   : > { %1662 = vmatpush.bf16.msrb.mxu3 %v3111_v44  ;;  %v991_v13 = vsel %vm3475_vm11, %v986_v5, %v990_v52  ;;  %v1033_v14 = vor.u32 %v1032_v6, %v1029_v63  ;;  %v1046_v16 = vshll.u32 %v3494_v62, 16  ;;  %v531_v17 = vstv %s530_s13  ;;  %v3101_v39 = vld [vmem:[%s4215_s3 + $0xa8] sm:$0xff]  ;;  %1819 = vmatpush.bf16.msrb.mxu0 %v3119_v27  ;;  %v3118_v47 = vld [vmem:[%s4215_s3 + $0x130] sm:$0xff]  ;;  %v565_v54 = vld [vmem:[#allocation2] sm:$0xf]  ;;  %s421_s7 = sadd.s32 8, %s3328_s30 }
  0x31   : > { %v3514_v22 = vpack.c.b16 %v1095_v8, %v1094_v3  ;;  %v1001_v24 = vsel %vm3475_vm11, %v996_v9, %v1000_v57  ;;  %v1098_v25 = vunpack.c.l.b16 %v991_v13  ;;  %v1042_v26 = vrot.slane %v1040_v11, 4  ;;  %v3109_v40 = vld [vmem:[%s4215_s3 + $0xe8] sm:$0xff]  ;;  %v3100_v55 = vld [vmem:[%s4215_s3 + $0xa0] sm:$0xff]  ;;  %v604_v57 = vld [vmem:[%s3370_s22 + $0x10] sm:$0xf]  ;;  %p4028_p10 = scmp.lt.s32.totalorder %s421_s7, 15 }
  0x32   : > { %v1099_v29 = vunpack.c.l.b16 %v1001_v24  ;;  %v1034_v30 = vrot.slane %v1033_v14, 4  ;;  %vm532_vm12 = vcmp.eq.s32.totalorder %v531_v17, 1  ;;  %v1048_v35 = vrot.slane %v1046_v16, 5  ;;  %v504_v48 = vld [vmem:[#allocation2 + $0x2c] sm:$0x1]  ;;  %v3084_v56 = vld [vmem:[%s4215_s3 + $0x20] sm:$0xff] }
  0x33   : > { %1528 = vmatpush.bf16.msrb.mxu2 %v3102_v18  ;;  %1316 = vmatpush.bf16.msrb.mxu1 %v3086_v20  ;;  %v1043_v33 = vor.u32 %v1042_v26, %v1038_v10  ;;  %v533_v37 = vsel %vm532_vm12, %v525_v7, 0  ;;  %v534_v38 = vsel %vm532_vm12, %v526_v12, 0  ;;  %v569_v60 = vld [vmem:[#allocation2 + $0x8] sm:$0x1]  ;;  %v505_v61 = vsel %vm3341_vm4, 0, %v504_v48  ;;  %v3108_v6 = vld [vmem:[%s4215_s3 + $0xe0] sm:$0xff] }
  0x34   : > { %1188 = vmatmul.bf16.vlgmr.msra.gmra.mxu1 %v3514_v22  ;;  %1663 = vmatpush.bf16.msrb.mxu3 %v3110_v21  ;;  %v3531_v42 = vpack.c.b16 %v1099_v29, %v1098_v25  ;;  %v1039_v43 = vsel %vm3475_vm11, %v1034_v30, %v1038_v10  ;;  %v544_v44 = vshrl.u32 %v533_v37, 16  ;;  %v547_v46 = vshll.u32 %v533_v37, 16  ;;  %v605_v63 = vld [vmem:[%s3370_s22 + $0x14] sm:$0xf]  ;;  %506 = vst [vmem:[#allocation2 + $0x2c] sm:$0x1] %v505_v61 }
  0x35   : > { %v1044_v49 = vrot.slane %v1043_v33, 4  ;;  %v1102_v51 = vunpack.c.l.b16 %v1039_v43  ;;  %v552_v52 = vshrl.u32 %v534_v38, 16  ;;  %v555_v53 = vshll.u32 %v534_v38, 16  ;;  %1820 = vmatpush.bf16.msrb.mxu0 %v3118_v47  ;;  %v3117_v12 = vld [vmem:[%s4215_s3 + $0x128] sm:$0xff]  ;;  %v478_v14 = vld [vmem:[#allocation2 + $0x3c] sm:$0x1] }
  0x36   : > { %1198 = vmatmul.bf16.vlgmr.msra.gmra.mxu2 %v3531_v42  ;;  %v546_v59 = vrot.slane %v544_v44, 7  ;;  %v651_v0 = vshrl.u32 %v604_v57, 16  ;;  %v654_v1 = vshll.u32 %v604_v57, 16  ;;  %v659_v7 = vshrl.u32 %v605_v63, 16  ;;  %v791_v20 = vld [vmem:[#allocation2 + $0x24] sm:$0xf] }
  0x37   : > { %1317 = vmatpush.bf16.msrb.mxu1 %v3085_v32  ;;  %v1049_v3 = vsel %vm3475_vm11, %v1044_v49, %v1048_v35  ;;  %v554_v5 = vrot.slane %v552_v52, 7  ;;  %1529 = vmatpush.bf16.msrb.mxu2 %v3101_v39  ;;  %v662_v8 = vshll.u32 %v605_v63, 16  ;;  %v479_v21 = vsel %vm3335_vm2, 0, %v478_v14  ;;  %v608_v29 = vld [vmem:[%s3370_s22 + $0x20] sm:$0xf]  ;;  %s4247_s7 = smov (!%p4028_p10, %s421_s7), 15 }
  0x38   : > { %1664 = vmatpush.bf16.msrb.mxu3 %v3109_v40  ;;  %v1103_v9 = vunpack.c.l.b16 %v1049_v3  ;;  %v549_v10 = vor.u32 %v547_v46, %v546_v59  ;;  %v550_v11 = vrot.slane %v546_v59, 4  ;;  %v653_v13 = vrot.slane %v651_v0, 7  ;;  %480 = vst [vmem:[#allocation2 + $0x3c] sm:$0x1] %v479_v21  ;;  %v510_v35 = vld [vmem:[#allocation2 + $0x44] sm:$0x1] }
  0x39   : > { %v557_v16 = vor.u32 %v555_v53, %v554_v5  ;;  %v559_v17 = vrot.slane %v554_v5, 4  ;;  %v661_v18 = vrot.slane %v659_v7, 7  ;;  %v609_v37 = vld [vmem:[%s3370_s22 + $0x24] sm:$0xf]  ;;  %1821 = vmatpush.bf16.msrb.mxu0 %v3117_v12  ;;  %v685_v40 = vshrl.u32 %v608_v29, 16  ;;  %s4249_s7 = smov (!%p4028_p10, %s4247_s7), 15 }
  0x3a   : > { %v3559_v24 = vpack.c.b16 %v1103_v9, %v1102_v51  ;;  %v566_v25 = vsel %vm3385_vm7, %v549_v10, %v565_v54  ;;  %v656_v26 = vor.u32 %v654_v1, %v653_v13  ;;  %v657_v27 = vrot.slane %v653_v13, 4  ;;  %v484_v43 = vld [vmem:[#allocation2 + $0x54] sm:$0x1]  ;;  %s2717_s30 = sshll.u32 %s4249_s7, 1  ;;  %s2723_s21 = sshll.u32 %s3358_s15, 3 }
  0x3b   : > { %1318 = vmatpush.bf16.msrb.mxu1 %v3084_v56  ;;  %v558_v30 = vsel %vm3391_vm8, %v550_v11, %v557_v16  ;;  %567 = vst [vmem:[#allocation2] sm:$0xf] %v566_v25  ;;  %v570_v32 = vsel %vm3335_vm2, %v559_v17, %v569_v60  ;;  %1530 = vmatpush.bf16.msrb.mxu2 %v3100_v55  ;;  %v666_v38 = vrot.slane %v661_v18, 4  ;;  %v688_v46 = vshll.u32 %v608_v29, 16  ;;  %v795_v49 = vld [vmem:[#allocation2 + $0x2c] sm:$0x1]  ;;  %s430_s9 = sadd.s32 %s2717_s30, %s3345_s10  ;;  %s4122_s18 = scalar_lea.vmem %s4217_s5, %s2723_s21 }
  0x3c   : > { %1665 = vmatpush.bf16.msrb.mxu3 %v3108_v6  ;;  %v664_v33 = vor.u32 %v662_v8, %v661_v18  ;;  %568 = vst [vmem:[#allocation2 + $0x4] sm:$0xf] %v558_v30  ;;  %v792_v39 = vsel %vm3385_vm7, %v656_v26, %v791_v20  ;;  %v693_v47 = vshrl.u32 %v609_v37, 16  ;;  %v696_v48 = vshll.u32 %v609_v37, 16  ;;  %v516_v56 = vld [vmem:[#allocation2 + $0x5c] sm:$0x1]  ;;  %s4135_s29 = scalar_lea.vmem %s4218_s6, %s2723_s21 }
  0x3d   : > { %1208 = vmatmul.bf16.vlgmr.msra.gmra.mxu3 %v3559_v24  ;;  %571 = vst [vmem:[#allocation2 + $0x8] sm:$0x1] %v570_v32  ;;  %v511_v51 = vsel %vm3341_vm4, 0, %v510_v35  ;;  %v687_v52 = vrot.slane %v685_v40, 7  ;;  %v796_v53 = vsel %vm3335_vm2, %v666_v38, %v795_v49  ;;  %v485_v55 = vsel %vm3335_vm2, 0, %v484_v43  ;;  %s2719_s11 = sshll.u32 %s430_s9, 2 }
  0x3e   : > { %v665_v44 = vsel %vm3391_vm8, %v657_v27, %v664_v33  ;;  %793 = vst [vmem:[#allocation2 + $0x24] sm:$0xf] %v792_v39  ;;  %v695_v54 = vrot.slane %v693_v47, 7  ;;  %v3581_v60 = vld [vmem:[%s3370_s22 + $0x30] sm:$0xf]  ;;  %v517_v6 = vsel %vm3341_vm4, 0, %v516_v56  ;;  %s432_s16 = scalar_lea.vmem %s4214_s2, %s2719_s11 }
  0x3f   : > { %794 = vst [vmem:[#allocation2 + $0x28] sm:$0xf] %v665_v44  ;;  %v690_v57 = vor.u32 %v688_v46, %v687_v52  ;;  %v691_v59 = vrot.slane %v687_v52, 4  ;;  %v805_v63 = vld [vmem:[#allocation2 + $0x3c] sm:$0xf]  ;;  %v719_v0 = vshrl.u32 %v3581_v60, 16 }
  0x40   : > { %797 = vst [vmem:[#allocation2 + $0x2c] sm:$0x1] %v796_v53  ;;  %v698_v61 = vor.u32 %v696_v48, %v695_v54  ;;  %v700_v3 = vrot.slane %v695_v54, 4  ;;  %vm1373_vm14 = vcmask 1046532   ;;  %s536_s12 = scalar_select %p535_p11, 1, 0 }
  0x41   : > { %512 = vst [vmem:[#allocation2 + $0x44] sm:$0x1] %v511_v51  ;;  %v806_v5 = vsel %vm3385_vm7, %v690_v57, %v805_v63  ;;  %v3603_v20 = vrot.slane %v719_v0, 7  ;;  %vm3728_vm15 = vmor %vm1372_vm13, %vm1373_vm14 }
  0x42   : > { %v3584_v1 = vld [vmem:[#allocation2] sm:$0xf]  ;;  %486 = vst [vmem:[#allocation2 + $0x54] sm:$0x1] %v485_v55  ;;  %v699_v10 = vsel %vm3391_vm8, %v691_v59, %v698_v61 }
  0x43   : > { %v3590_v7 = vld [vmem:[#allocation2 + $0x4] sm:$0xf]  ;;  %v883_v8 = vshrl.u32 %v3584_v1, 16  ;;  %v886_v9 = vshll.u32 %v3584_v1, 16  ;;  %807 = vst [vmem:[#allocation2 + $0x3c] sm:$0xf] %v806_v5 }
  0x44   : > { %v3596_v11 = vld [vmem:[#allocation2 + $0x8] sm:$0x1]  ;;  %v892_v12 = vshll.u32 %v3590_v7, 16  ;;  %v896_v13 = vshrl.u32 %v3590_v7, 16  ;;  %808 = vst [vmem:[#allocation2 + $0x40] sm:$0xf] %v699_v10 }
  0x45   : > { %v885_v14 = vrot.slane %v883_v8, 4  ;;  %v888_v16 = vrot.slane %v886_v9, 5  ;;  %v902_v17 = vshll.u32 %v3596_v11, 16  ;;  %v3601_v18 = vld [vmem:[#allocation2 + $0x24] sm:$0xf]  ;;  %v3083_v8 = vld [vmem:[%s4215_s3 + $0x18] sm:$0xff] }
  0x46   : > { %v894_v21 = vrot.slane %v892_v12, 5  ;;  %v898_v25 = vrot.slane %v896_v13, 4  ;;  %v3605_v26 = vld [vmem:[#allocation2 + $0x28] sm:$0xf]  ;;  %v955_v27 = vshrl.u32 %v3601_v18, 16  ;;  %v958_v29 = vshll.u32 %v3601_v18, 16  ;;  %1319 = vmatpush.bf16.msrb.mxu1 %v3083_v8 }
  0x47   : > { %v889_v30 = vor.u32 %v888_v16, %v885_v14  ;;  %v904_v32 = vrot.slane %v902_v17, 5  ;;  %v3609_v33 = vld [vmem:[#allocation2 + $0x2c] sm:$0x1]  ;;  %v964_v35 = vshll.u32 %v3605_v26, 16  ;;  %v968_v37 = vshrl.u32 %v3605_v26, 16  ;;  %v3107_v9 = vld [vmem:[%s4215_s3 + $0xd8] sm:$0xff] }
  0x48   : > { %v899_v38 = vor.u32 %v898_v25, %v894_v21  ;;  %v957_v39 = vrot.slane %v955_v27, 4  ;;  %v960_v40 = vrot.slane %v958_v29, 5  ;;  %v974_v43 = vshll.u32 %v3609_v33, 16  ;;  %v809_v44 = vld [vmem:[#allocation2 + $0x44] sm:$0x1]  ;;  %1666 = vmatpush.bf16.msrb.mxu3 %v3107_v9 }
  0x49   : > { %v890_v46 = vrot.slane %v889_v30, 4  ;;  %v966_v47 = vrot.slane %v964_v35, 5  ;;  %v970_v48 = vrot.slane %v968_v37, 4  ;;  %v810_v49 = vsel %vm3335_vm2, %v700_v3, %v809_v44  ;;  %518 = vst [vmem:[#allocation2 + $0x5c] sm:$0x1] %v517_v6  ;;  %v3099_v6 = vld [vmem:[%s4215_s3 + $0x98] sm:$0xff] }
  0x4a   : > { %v900_v51 = vrot.slane %v899_v38, 4  ;;  %v961_v52 = vor.u32 %v960_v40, %v957_v39  ;;  %v976_v53 = vrot.slane %v974_v43, 5  ;;  %811 = vst [vmem:[#allocation2 + $0x44] sm:$0x1] %v810_v49  ;;  %v3616_v54 = vld [vmem:[#allocation2 + $0x3c] sm:$0xf]  ;;  %1531 = vmatpush.bf16.msrb.mxu2 %v3099_v6 }
  0x4b   : > { %v895_v55 = vsel %vm3475_vm11, %v890_v46, %v894_v21  ;;  %v971_v56 = vor.u32 %v970_v48, %v966_v47  ;;  %v3620_v57 = vld [vmem:[#allocation2 + $0x40] sm:$0xf]  ;;  %v1003_v59 = vshrl.u32 %v3616_v54, 16  ;;  %v1006_v61 = vshll.u32 %v3616_v54, 16  ;;  %v613_v16 = vld [vmem:[%s3370_s22 + $0x34] sm:$0xf] }
  0x4c   : > { %v905_v63 = vsel %vm3475_vm11, %v900_v51, %v904_v32  ;;  %v1090_v0 = vunpack.c.l.b16 %v895_v55  ;;  %v962_v3 = vrot.slane %v961_v52, 4  ;;  %v1012_v5 = vshll.u32 %v3620_v57, 16  ;;  %v3116_v17 = vld [vmem:[%s4215_s3 + $0x120] sm:$0xff]  ;;  %v466_v30 = vld [vmem:[#allocation2 + $0xc] sm:$0x1] }
  0x4d   : > { %v1091_v10 = vunpack.c.l.b16 %v905_v63  ;;  %v972_v12 = vrot.slane %v971_v56, 4  ;;  %v1005_v13 = vrot.slane %v1003_v59, 4  ;;  %v1008_v14 = vrot.slane %v1006_v61, 5  ;;  %v819_v39 = vld [vmem:[#allocation2 + $0x54] sm:$0xf]  ;;  %1822 = vmatpush.bf16.msrb.mxu0 %v3116_v17 }
  0x4e   : > { %v967_v21 = vsel %vm3475_vm11, %v962_v3, %v966_v47  ;;  %v1014_v25 = vrot.slane %v1012_v5, 5  ;;  %v1016_v27 = vshrl.u32 %v3620_v57, 16  ;;  %v722_v29 = vshll.u32 %v3581_v60, 16  ;;  %v498_v40 = vld [vmem:[#allocation2 + $0x14] sm:$0x1] }
  0x4f   : > { %v1106_v32 = vpack.c.b16 %v1091_v10, %v1090_v0  ;;  %v977_v35 = vsel %vm3475_vm11, %v972_v12, %v976_v53  ;;  %v1096_v37 = vunpack.c.l.b16 %v967_v21  ;;  %v1009_v38 = vor.u32 %v1008_v14, %v1005_v13  ;;  %v600_v47 = vld [vmem:[%s3370_s22] sm:$0xf]  ;;  %v3650_v48 = vld [vmem:[%s3370_s22 + $0x4] sm:$0xf]  ;;  %v3098_v0 = vld [vmem:[%s4215_s3 + $0x90] sm:$0xff] }
  0x50   : > { %v1097_v43 = vunpack.c.l.b16 %v977_v35  ;;  %v1018_v44 = vrot.slane %v1016_v27, 4  ;;  %v724_v46 = vor.u32 %v722_v29, %v3603_v20  ;;  %v725_v60 = vrot.slane %v3603_v20, 4  ;;  %v823_v63 = vld [vmem:[#allocation2 + $0x5c] sm:$0x1]  ;;  %v3082_v3 = vld [vmem:[%s4215_s3 + $0x10] sm:$0xff]  ;;  %1532 = vmatpush.bf16.msrb.mxu2 %v3098_v0  ;;  %v3097_v21 = vld [vmem:[%s4215_s3 + $0x88] sm:$0xff] }
  0x51   : > { %1178 = vmatmul.bf16.vlgmr.msra.gmra.mxu0 %v1106_v32  ;;  %v3652_v49 = vld [vmem:[#allocation2 + $0x44] sm:$0x1]  ;;  %v1010_v51 = vrot.slane %v1009_v38, 4  ;;  %v727_v52 = vshrl.u32 %v613_v16, 16  ;;  %v730_v53 = vshll.u32 %v613_v16, 16  ;;  %v467_v55 = vsel %vm3335_vm2, 0, %v466_v30  ;;  %1320 = vmatpush.bf16.msrb.mxu1 %v3082_v3 }
  0x52   : > { %v3656_v56 = vpack.c.b16 %v1097_v43, %v1096_v37  ;;  %v1019_v59 = vor.u32 %v1018_v44, %v1014_v25  ;;  %v1022_v61 = vshll.u32 %v3652_v49, 16  ;;  %v820_v20 = vsel %vm3385_vm7, %v724_v46, %v819_v39  ;;  %468 = vst [vmem:[#allocation2 + $0xc] sm:$0x1] %v467_v55  ;;  %v3106_v5 = vld [vmem:[%s4215_s3 + $0xd0] sm:$0xff]  ;;  %v3115_v12 = vld [vmem:[%s4215_s3 + $0x118] sm:$0xff]  ;;  %v3081_v32 = vld [vmem:[%s4215_s3 + $0x8] sm:$0xff] }
  0x53   : > { %v1015_v6 = vsel %vm3475_vm11, %v1010_v51, %v1014_v25  ;;  %v729_v8 = vrot.slane %v727_v52, 7  ;;  %821 = vst [vmem:[#allocation2 + $0x54] sm:$0xf] %v820_v20  ;;  %v499_v9 = vsel %vm3341_vm4, 0, %v498_v40  ;;  %v617_v10 = vshrl.u32 %v600_v47, 16  ;;  %1667 = vmatpush.bf16.msrb.mxu3 %v3106_v5  ;;  %v3105_v35 = vld [vmem:[%s4215_s3 + $0xc8] sm:$0xff]  ;;  %1823 = vmatpush.bf16.msrb.mxu0 %v3115_v12 }
  0x54   : > { %1193 = vmatmul.bf16.gmra.mxu1 %v3656_v56  ;;  %v1020_v13 = vrot.slane %v1019_v59, 4  ;;  %v1024_v14 = vrot.slane %v1022_v61, 5  ;;  %v1100_v16 = vunpack.c.l.b16 %v1015_v6  ;;  %500 = vst [vmem:[#allocation2 + $0x14] sm:$0x1] %v499_v9  ;;  %v620_v17 = vshll.u32 %v600_v47, 16  ;;  %v3114_v39 = vld [vmem:[%s4215_s3 + $0x110] sm:$0xff]  ;;  %1533 = vmatpush.bf16.msrb.mxu2 %v3097_v21 }
  0x55   : > { %v732_v25 = vor.u32 %v730_v53, %v729_v8  ;;  %v734_v27 = vrot.slane %v729_v8, 4  ;;  %v619_v29 = vrot.slane %v617_v10, 7  ;;  %v625_v30 = vshrl.u32 %v3650_v48, 16  ;;  %v3096_v47 = vld [vmem:[%s4215_s3 + $0x80] sm:$0xff]  ;;  %1321 = vmatpush.bf16.msrb.mxu1 %v3081_v32  ;;  %v3143_v21 = vld [vmem:[%s4215_s3 + $0x1f8] sm:$0xff] }
  0x56   : > { %v1025_v37 = vsel %vm3475_vm11, %v1020_v13, %v1024_v14  ;;  %v628_v38 = vshll.u32 %v3650_v48, 16  ;;  %v3080_v48 = vld [vmem:[%s4215_s3] sm:$0xff]  ;;  %v1377_v53 = vrot.slane %v3590_v7, 5  ;;  %v3113_v7 = vld [vmem:[%s4215_s3 + $0x108] sm:$0xff]  ;;  %v2824_v3 = vrot.slane %v3584_v1, 9 }
  0x57   : > { %v1101_v40 = vunpack.c.l.b16 %v1025_v37  ;;  %v733_v43 = vsel %vm3391_vm8, %v725_v60, %v732_v25  ;;  %v824_v44 = vsel %vm3335_vm2, %v734_v27, %v823_v63  ;;  %v622_v46 = vor.u32 %v620_v17, %v619_v29  ;;  %v3104_v60 = vld [vmem:[%s4215_s3 + $0xc0] sm:$0xff]  ;;  %1668 = vmatpush.bf16.msrb.mxu3 %v3105_v35  ;;  %1824 = vmatpush.bf16.msrb.mxu0 %v3114_v39  ;;  %v3135_v17 = vld [vmem:[%s4215_s3 + $0x1b8] sm:$0xff] }
  0x58   : > { %822 = vst [vmem:[#allocation2 + $0x58] sm:$0xf] %v733_v43  ;;  %v623_v51 = vrot.slane %v619_v29, 4  ;;  %v627_v52 = vrot.slane %v625_v30, 7  ;;  %1534 = vmatpush.bf16.msrb.mxu2 %v3096_v47  ;;  %v1379_v12 = vrot.slane %v1377_v53, 4  ;;  %v1380_v13 = vrot.slane %v3596_v11, 5 }
  0x59   : > { %v3708_v55 = vpack.c.b16 %v1101_v40, %v1100_v16  ;;  %825 = vst [vmem:[#allocation2 + $0x5c] sm:$0x1] %v824_v44  ;;  %v777_v59 = vld [vmem:[#allocation2 + $0xc] sm:$0xf]  ;;  %1322 = vmatpush.bf16.msrb.mxu1 %v3080_v48  ;;  %v3112_v11 = vld [vmem:[%s4215_s3 + $0x100] sm:$0xff]  ;;  %v1378_v37 = vsel %vm3728_vm15, %v2824_v3, %v1377_v53  ;;  %v3151_v53 = vld [vmem:[%s4215_s3 + $0x238] sm:$0xff] }
  0x5a   : > { %v3710_v61 = vld [vmem:[#allocation2 + $0x54] sm:$0xf]  ;;  %v630_v20 = vor.u32 %v628_v38, %v627_v52  ;;  %v632_v63 = vrot.slane %v627_v52, 4  ;;  %v778_v0 = vsel %vm3385_vm7, %v622_v46, %v777_v59  ;;  %v3070_v35 = vld [vmem:[#allocation2] sm:$0xff]  ;;  %v1381_v38 = vsel %vm3728_vm15, %v1379_v12, %v1380_v13 }
  0x5b   : > { %1203 = vmatmul.bf16.gmra.mxu2 %v3708_v55  ;;  %v1051_v5 = vshrl.u32 %v3710_v61, 16  ;;  %v1054_v6 = vshll.u32 %v3710_v61, 16  ;;  %779 = vst [vmem:[#allocation2 + $0xc] sm:$0xf] %v778_v0  ;;  %v781_v8 = vld [vmem:[#allocation2 + $0x14] sm:$0x1]  ;;  %1669 = vmatpush.bf16.msrb.mxu3 %v3104_v60  ;;  %v1448_v52 = vunpack.c.l.b16 %v1381_v38 }
  0x5c   : > { %v631_v9 = vsel %vm3391_vm8, %v623_v51, %v630_v20  ;;  %v782_v10 = vsel %vm3335_vm2, %v632_v63, %v781_v8  ;;  %1825 = vmatpush.bf16.msrb.mxu0 %v3113_v7  ;;  %2095 = vmatpush.bf16.msra.mxu2 %v3135_v17  ;;  %v1447_v51 = vunpack.c.l.b16 %v1378_v37  ;;  %v3127_v60 = vld [vmem:[%s4215_s3 + $0x178] sm:$0xff] }
  0x5d   : > { %v1053_v14 = vrot.slane %v1051_v5, 4  ;;  %v1056_v1 = vrot.slane %v1054_v6, 5  ;;  %780 = vst [vmem:[#allocation2 + $0x10] sm:$0xf] %v631_v9  ;;  %1960 = vmatpush.bf16.msra.mxu1 %v3127_v60 }
  0x5e   : > { %783 = vst [vmem:[#allocation2 + $0x14] sm:$0x1] %v782_v10 }
  0x5f   : > { %v3741_v25 = vld [vmem:[#allocation2 + $0x58] sm:$0xf]  ;;  %v1057_v27 = vor.u32 %v1056_v1, %v1053_v14  ;;  %2252 = vmatpush.bf16.msra.mxu3 %v3143_v21  ;;  %v1463_v1 = vpack.c.b16 %v1448_v52, %v1447_v51  ;;  %v3142_v51 = vld [vmem:[%s4215_s3 + $0x1f0] sm:$0xff] }
  0x60   : > { %v3743_v29 = vld [vmem:[#allocation2 + $0x5c] sm:$0x1]  ;;  %v1060_v30 = vshll.u32 %v3741_v25, 16  ;;  %v1064_v32 = vshrl.u32 %v3741_v25, 16  ;;  %1826 = vmatpush.bf16.msrb.mxu0 %v3112_v11 }
  0x61   : > { %v1058_v39 = vrot.slane %v1057_v27, 4  ;;  %v1070_v40 = vshll.u32 %v3743_v29, 16 }
  0x62   : > { %v1062_v43 = vrot.slane %v1060_v30, 5  ;;  %v1066_v44 = vrot.slane %v1064_v32, 4  ;;  %v836_v46 = vld [vmem:[#allocation2 + $0xc] sm:$0xf] }
  0x63   : > { %v907_v47 = vshrl.u32 %v836_v46, 16  ;;  %v910_v48 = vshll.u32 %v836_v46, 16  ;;  %v1072_v63 = vrot.slane %v1070_v40, 5  ;;  %v2825_v40 = vrot.slane %v836_v46, 9  ;;  %2253 = vmatpush.bf16.msra.mxu3 %v3142_v51 }
  0x64   : > { %v1063_v59 = vsel %vm3475_vm11, %v1058_v39, %v1062_v43  ;;  %v1067_v20 = vor.u32 %v1066_v44, %v1062_v43  ;;  %v837_v0 = vld [vmem:[#allocation2 + $0x10] sm:$0xf]  ;;  %1323 = vmatmul.bf16.vlgmr.msrb.gmra.mxu1 %v3070_v35  ;;  %2393 = vmatpush.bf16.msra.mxu0 %v3151_v53  ;;  %v1405_v51 = vrot.slane %v3462_v36, 5 }
  0x65   : > { %v838_v7 = vld [vmem:[#allocation2 + $0x14] sm:$0x1]  ;;  %v909_v3 = vrot.slane %v907_v47, 4  ;;  %v912_v5 = vrot.slane %v910_v48, 5  ;;  %v916_v6 = vshll.u32 %v837_v0, 16  ;;  %v920_v9 = vshrl.u32 %v837_v0, 16 }
  0x66   : > { %v1068_v8 = vrot.slane %v1067_v20, 4  ;;  %v926_v10 = vshll.u32 %v838_v7, 16  ;;  %v1104_v12 = vunpack.c.l.b16 %v1063_v59  ;;  %v1384_v21 = vrot.slane %v837_v0, 5  ;;  %v3134_v48 = vld [vmem:[%s4215_s3 + $0x1b0] sm:$0xff] }
  0x67   : > { %v913_v13 = vor.u32 %v912_v5, %v909_v3  ;;  %v918_v14 = vrot.slane %v916_v6, 5  ;;  %v922_v11 = vrot.slane %v920_v9, 4  ;;  %v1387_v44 = vrot.slane %v838_v7, 5  ;;  %2096 = vmatpush.bf16.msra.mxu2 %v3134_v48  ;;  %v3071_v20 = vld [vmem:[#allocation2 + $0xc] sm:$0xff]  ;;  %v3148_v48 = vld [vmem:[%s4215_s3 + $0x220] sm:$0xff] }
  0x68   : > { %v1073_v17 = vsel %vm3475_vm11, %v1068_v8, %v1072_v63  ;;  %v928_v35 = vrot.slane %v926_v10, 5  ;;  %v1386_v43 = vrot.slane %v1384_v21, 4  ;;  %v1385_v46 = vsel %vm3728_vm15, %v2825_v40, %v1384_v21  ;;  %v3126_v7 = vld [vmem:[%s4215_s3 + $0x170] sm:$0xff] }
  0x69   : > { %v1105_v27 = vunpack.c.l.b16 %v1073_v17  ;;  %v914_v30 = vrot.slane %v913_v13, 4  ;;  %v923_v32 = vor.u32 %v922_v11, %v918_v14  ;;  %v1449_v63 = vunpack.c.l.b16 %v1385_v46  ;;  %v3150_v3 = vld [vmem:[%s4215_s3 + $0x230] sm:$0xff]  ;;  %1961 = vmatpush.bf16.msra.mxu1 %v3126_v7  ;;  %v3141_v13 = vld [vmem:[%s4215_s3 + $0x1e8] sm:$0xff]  ;;  %v3147_v7 = vld [vmem:[%s4215_s3 + $0x218] sm:$0xff] }
  0x6a   : > { %v1388_v53 = vsel %vm3728_vm15, %v1386_v43, %v1387_v44  ;;  %2394 = vmatpush.bf16.msra.mxu0 %v3150_v3  ;;  %v1391_v6 = vrot.slane %v3442_v19, 5  ;;  %v2826_v8 = vrot.slane %v3434_v15, 9  ;;  %v1394_v10 = vrot.slane %v3449_v23, 5  ;;  %2254 = vmatpush.bf16.msra.mxu3 %v3141_v13  ;;  %v3801_v19 = vld [vmem:[#allocation2 + $0x18] sm:$0xff]  ;;  %v3125_v17 = vld [vmem:[%s4215_s3 + $0x168] sm:$0xff]  ;;  %v3138_v13 = vld [vmem:[%s4215_s3 + $0x1d0] sm:$0xff] }
  0x6b   : > { %v3762_v37 = vpack.c.b16 %v1105_v27, %v1104_v12  ;;  %v919_v38 = vsel %vm3475_vm11, %v914_v30, %v918_v14  ;;  %1535 = vmatmul.bf16.vlgmr.msrb.gmra.mxu2 %v1463_v1  ;;  %v924_v39 = vrot.slane %v923_v32, 4  ;;  %v1450_v0 = vunpack.c.l.b16 %v1388_v53  ;;  %v3133_v12 = vld [vmem:[%s4215_s3 + $0x1a8] sm:$0xff]  ;;  %v3131_v53 = vld [vmem:[%s4215_s3 + $0x198] sm:$0xff] }
  0x6c   : > { %v1092_v47 = vunpack.c.l.b16 %v919_v38  ;;  %v1393_v9 = vrot.slane %v1391_v6, 4  ;;  %v1392_v14 = vsel %vm3728_vm15, %v2826_v8, %v1391_v6  ;;  %2097 = vmatpush.bf16.msra.mxu2 %v3133_v12  ;;  %v3149_v11 = vld [vmem:[%s4215_s3 + $0x228] sm:$0xff]  ;;  %v2827_v21 = vrot.slane %v3601_v18, 9  ;;  %v3130_v12 = vld [vmem:[%s4215_s3 + $0x190] sm:$0xff] }
  0x6d   : > { %1213 = vmatmul.bf16.gmra.mxu3 %v3762_v37  ;;  %v929_v52 = vsel %vm3475_vm11, %v924_v39, %v928_v35  ;;  %v3785_v5 = vpack.c.b16 %v1450_v0, %v1449_v63  ;;  %v1451_v23 = vunpack.c.l.b16 %v1392_v14  ;;  %v1398_v27 = vrot.slane %v3605_v26, 5  ;;  %1962 = vmatpush.bf16.msra.mxu1 %v3125_v17  ;;  %v3132_v26 = vld [vmem:[%s4215_s3 + $0x1a0] sm:$0xff]  ;;  %v3123_v0 = vld [vmem:[%s4215_s3 + $0x158] sm:$0xff] }
  0x6e   : > { %v1093_v60 = vunpack.c.l.b16 %v929_v52  ;;  %v1395_v15 = vsel %vm3728_vm15, %v1393_v9, %v1394_v10  ;;  %v1401_v30 = vrot.slane %v3609_v33, 5  ;;  %2395 = vmatpush.bf16.msra.mxu0 %v3149_v11  ;;  %v3140_v33 = vld [vmem:[%s4215_s3 + $0x1e0] sm:$0xff]  ;;  %v2828_v52 = vrot.slane %v3457_v31, 9 }
  0x6f   : > { %v1452_v1 = vunpack.c.l.b16 %v1395_v15  ;;  %v1399_v32 = vsel %vm3728_vm15, %v2827_v21, %v1398_v27  ;;  %v1400_v35 = vrot.slane %v1398_v27, 4  ;;  %2255 = vmatpush.bf16.msra.mxu3 %v3140_v33  ;;  %v3829_v44 = vld [vmem:[#allocation2 + $0x24] sm:$0xff]  ;;  %v1408_v46 = vrot.slane %v3466_v41, 5  ;;  %v487_v17 = vld [vmem:[#allocation2 + $0x60] sm:$0x1] }
  0x70   : > { %v1107_v59 = vpack.c.b16 %v1093_v60, %v1092_v47  ;;  %v1453_v38 = vunpack.c.l.b16 %v1399_v32  ;;  %2098 = vmatpush.bf16.msra.mxu2 %v3132_v26  ;;  %v3124_v47 = vld [vmem:[%s4215_s3 + $0x160] sm:$0xff]  ;;  %v1407_v60 = vrot.slane %v1405_v51, 4  ;;  %v1406_v36 = vsel %vm3728_vm15, %v2828_v52, %v1405_v51  ;;  %v614_v21 = vld [vmem:[%s3370_s22 + $0x38] sm:$0xf]  ;;  %v615_v27 = vld [vmem:[%s3370_s22 + $0x3c] sm:$0xf] }
  0x71   : > { %v3815_v39 = vpack.c.b16 %v1452_v1, %v1451_v23  ;;  %v1402_v40 = vsel %vm3728_vm15, %v1400_v35, %v1401_v30  ;;  %1963 = vmatpush.bf16.msra.mxu1 %v3124_v47  ;;  %v1455_v41 = vunpack.c.l.b16 %v1406_v36  ;;  %v1412_v6 = vrot.slane %v3620_v57, 5  ;;  %v3122_v23 = vld [vmem:[%s4215_s3 + $0x150] sm:$0xff]  ;;  %v3129_v36 = vld [vmem:[%s4215_s3 + $0x188] sm:$0xff] }
  0x72   : > { %1183 = vmatmul.bf16.gmra.mxu0 %v1107_v59  ;;  %v1454_v43 = vunpack.c.l.b16 %v1402_v40  ;;  %v1409_v31 = vsel %vm3728_vm15, %v1407_v60, %v1408_v46  ;;  %v2829_v8 = vrot.slane %v3616_v54, 9  ;;  %v1415_v10 = vrot.slane %v3652_v49, 5  ;;  %v3881_v49 = vld [vmem:[#allocation2 + $0x3c] sm:$0xff]  ;;  %v3146_v1 = vld [vmem:[%s4215_s3 + $0x210] sm:$0xff] }
  0x73   : > { %2396 = vmatpush.bf16.msra.mxu0 %v3148_v48  ;;  %v1456_v63 = vunpack.c.l.b16 %v1409_v31  ;;  %v1414_v9 = vrot.slane %v1412_v6, 4  ;;  %v488_v11 = vsel %vm3335_vm2, 0, %v487_v17  ;;  %v736_v32 = vshrl.u32 %v614_v21, 16  ;;  %v3137_v31 = vld [vmem:[%s4215_s3 + $0x1c8] sm:$0xff] }
  0x74   : > { %1328 = vmatmul.bf16.gmra.mxu1 %v3071_v20  ;;  %v3819_v18 = vpack.c.b16 %v1454_v43, %v1453_v38  ;;  %2099 = vmatpush.bf16.msra.mxu2 %v3131_v53  ;;  %v1413_v54 = vsel %vm3728_vm15, %v2829_v8, %v1412_v6  ;;  %489 = vst [vmem:[#allocation2 + $0x60] sm:$0x1] %v488_v11  ;;  %v744_v35 = vshrl.u32 %v615_v27, 16  ;;  %v519_v38 = vld [vmem:[#allocation2 + $0x68] sm:$0x1]  ;;  %v1419_v40 = vrot.slane %v3489_v58, 5 }
  0x75   : > { %1964 = vmatpush.bf16.msra.mxu1 %v3123_v0  ;;  %v3864_v3 = vpack.c.b16 %v1456_v63, %v1455_v41  ;;  %v1416_v57 = vsel %vm3728_vm15, %v1414_v9, %v1415_v10  ;;  %v1457_v14 = vunpack.c.l.b16 %v1413_v54  ;;  %v520_v43 = vsel %vm3341_vm4, 0, %v519_v38  ;;  %v3922_v9 = vld [vmem:[#allocation2 + $0x48] sm:$0xff] }
  0x76   : > { %v1458_v15 = vunpack.c.l.b16 %v1416_v57  ;;  %v738_v26 = vrot.slane %v736_v32, 7  ;;  %v739_v33 = vshll.u32 %v614_v21, 16  ;;  %v746_v47 = vrot.slane %v744_v35, 7  ;;  %521 = vst [vmem:[#allocation2 + $0x68] sm:$0x1] %v520_v43  ;;  %v3145_v54 = vld [vmem:[%s4215_s3 + $0x208] sm:$0xff] }
  0x77   : > { %2397 = vmatpush.bf16.msra.mxu0 %v3147_v7  ;;  %v747_v48 = vshll.u32 %v615_v27, 16  ;;  %v2830_v46 = vrot.slane %v3480_v50, 9  ;;  %v1421_v53 = vrot.slane %v1419_v40, 4  ;;  %v1429_v11 = vrot.slane %v3743_v29, 5  ;;  %v3128_v21 = vld [vmem:[%s4215_s3 + $0x180] sm:$0xff]  ;;  %v3955_v29 = vld [vmem:[#allocation2 + $0x54] sm:$0xff] }
  0x78   : > { %2100 = vmatpush.bf16.msra.mxu2 %v3130_v12  ;;  %v3895_v30 = vpack.c.b16 %v1458_v15, %v1457_v14  ;;  %v741_v51 = vor.u32 %v739_v33, %v738_v26  ;;  %v742_v52 = vrot.slane %v738_v26, 4  ;;  %v1426_v15 = vrot.slane %v3741_v25, 5 }
  0x79   : > { %1965 = vmatpush.bf16.msra.mxu1 %v3122_v23  ;;  %v749_v60 = vor.u32 %v747_v48, %v746_v47  ;;  %v1420_v0 = vsel %vm3728_vm15, %v2830_v46, %v1419_v40  ;;  %v3120_v40 = vld [vmem:[%s4215_s3 + $0x140] sm:$0xff] }
  0x7a   : > { %v1459_v10 = vunpack.c.l.b16 %v1420_v0  ;;  %v1428_v17 = vrot.slane %v1426_v15, 4  ;;  %v3144_v46 = vld [vmem:[%s4215_s3 + $0x200] sm:$0xff] }
  0x7b   : > { %1540 = vmatmul.bf16.gmra.mxu2 %v3785_v5  ;;  %2398 = vmatpush.bf16.msra.mxu0 %v3146_v1  ;;  %v750_v41 = vsel %vm3391_vm8, %v742_v52, %v749_v60  ;;  %v826_v63 = vld [vmem:[#allocation2 + $0x60] sm:$0xf]  ;;  %v2831_v1 = vrot.slane %v3710_v61, 9 }
  0x7c   : > { %v827_v50 = vsel %vm3385_vm7, %v741_v51, %v826_v63  ;;  %829 = vst [vmem:[#allocation2 + $0x64] sm:$0xf] %v750_v41  ;;  %2101 = vmatpush.bf16.msra.mxu2 %v3129_v36  ;;  %v1430_v25 = vsel %vm3728_vm15, %v1428_v17, %v1429_v11  ;;  %v3136_v61 = vld [vmem:[%s4215_s3 + $0x1c0] sm:$0xff] }
  0x7d   : > { %1670 = vmatmul.bf16.vlgmr.msrb.gmra.mxu3 %v3071_v20  ;;  %v3854_v20 = vld [vmem:[#allocation2 + $0x30] sm:$0xff]  ;;  %828 = vst [vmem:[#allocation2 + $0x60] sm:$0xf] %v827_v50  ;;  %v830_v6 = vld [vmem:[#allocation2 + $0x68] sm:$0x1]  ;;  %v1427_v27 = vsel %vm3728_vm15, %v2831_v1, %v1426_v15  ;;  %v1462_v38 = vunpack.c.l.b16 %v1430_v25 }
  0x7e   : > { %v1461_v35 = vunpack.c.l.b16 %v1427_v27 }
  0x7f   : > { %2399 = vmatpush.bf16.msra.mxu0 %v3145_v54 }
  0x80   : > { %2102 = vmatpush.bf16.msra.mxu2 %v3128_v21 }
  0x82   : > { %1827 = vmatmul.bf16.vlgmr.msrb.gmra.mxu0 %v1107_v59  ;;  %v3139_v59 = vld [vmem:[%s4215_s3 + $0x1d8] sm:$0xff] }
  0x83   : > { %2256 = vmatpush.bf16.msra.mxu3 %v3139_v59  ;;  %v1422_v59 = vrot.slane %v3494_v62, 5  ;;  %v751_v62 = vrot.slane %v746_v47, 4  ;;  %v3966_v33 = vld [vmem:[#allocation2 + $0x64] sm:$0xf]  ;;  %v3968_v47 = vpack.c.b16 %v1462_v38, %v1461_v35  ;;  %2400 = vmatpush.bf16.msra.mxu0 %v3144_v46 }
  0x84   : > { %1333 = vmatmul.bf16.gmra.mxu1 %v3801_v19  ;;  %v3964_v26 = vld [vmem:[#allocation2 + $0x60] sm:$0xf]  ;;  %v1737_v52 = vshll.u32 %v3966_v33, 16  ;;  %v1741_v60 = vshrl.u32 %v3966_v33, 16 }
  0x85   : > { %v1423_v7 = vsel %vm3728_vm15, %v1421_v53, %v1422_v59  ;;  %v831_v8 = vsel %vm3335_vm2, %v751_v62, %v830_v6  ;;  %v1728_v48 = vshrl.u32 %v3964_v26, 16  ;;  %v1731_v51 = vshll.u32 %v3964_v26, 16  ;;  %v3998_v25 = vld [vmem:[#allocation2 + $0x60] sm:$0xff] }
  0x86   : > { %832 = vst [vmem:[#allocation2 + $0x68] sm:$0x1] %v831_v8  ;;  %v1460_v12 = vunpack.c.l.b16 %v1423_v7  ;;  %v1739_v63 = vrot.slane %v1737_v52, 5  ;;  %v1743_v50 = vrot.slane %v1741_v60, 4  ;;  %v2932_v2 = vrot.slane %v3964_v26, 9 }
  0x87   : > { %2257 = vmatpush.bf16.msra.mxu3 %v3138_v13  ;;  %v3121_v13 = vld [vmem:[%s4215_s3 + $0x148] sm:$0xff]  ;;  %v1733_v41 = vrot.slane %v1731_v51, 5 }
  0x88   : > { %1966 = vmatpush.bf16.msra.mxu1 %v3121_v13  ;;  %v3932_v57 = vpack.c.b16 %v1460_v12, %v1459_v10  ;;  %v1744_v6 = vor.u32 %v1743_v50, %v1739_v63 }
  0x8a   : > { %v1745_v54 = vrot.slane %v1744_v6, 4 }
  0x8b   : > { %1545 = vmatmul.bf16.gmra.mxu2 %v3815_v39  ;;  %2258 = vmatpush.bf16.msra.mxu3 %v3137_v31  ;;  %v1730_v31 = vrot.slane %v1728_v48, 4 }
  0x8c   : > { %1967 = vmatpush.bf16.msra.mxu1 %v3120_v40 }
  0x8d   : > { %1675 = vmatmul.bf16.gmra.mxu3 %v3801_v19  ;;  %v3983_v62 = vld [vmem:[#allocation2 + $0x68] sm:$0x1]  ;;  %v1734_v7 = vor.u32 %v1733_v41, %v1730_v31 }
  0x8e   : > { %v1747_v8 = vshll.u32 %v3983_v62, 16 }
  0x8f   : > { %2259 = vmatpush.bf16.msra.mxu3 %v3136_v61  ;;  %v1735_v13 = vrot.slane %v1734_v7, 4 }
  0x90   : > { %v1749_v15 = vrot.slane %v1747_v8, 5 }
  0x91   : > { %v1740_v21 = vsel %vm3475_vm11, %v1735_v13, %v1739_v63 }
  0x92   : > { %1832 = vmatmul.bf16.gmra.mxu0 %v3514_v22  ;;  %v1750_v27 = vsel %vm3475_vm11, %v1745_v54, %v1749_v15  ;;  %v1767_v38 = vunpack.c.l.b16 %v1740_v21 }
  0x93   : > { %v1768_v40 = vunpack.c.l.b16 %v1750_v27 }
  0x94   : > { %1338 = vmatmul.bf16.gmra.mxu1 %v3829_v44 }
  0x95   : > { %v4002_v48 = vpack.c.b16 %v1768_v40, %v1767_v38 }
  0x9b   : > { %1550 = vmatmul.bf16.gmra.mxu2 %v3819_v18 }
  0x9d   : > { %1680 = vmatmul.bf16.gmra.mxu3 %v3829_v44 }
  0xa2   : > { %1837 = vmatmul.bf16.gmra.mxu0 %v3656_v56 }
  0xa4   : > { %1343 = vmatmul.bf16.gmra.mxu1 %v3854_v20 }
  0xab   : > { %1555 = vmatmul.bf16.gmra.mxu2 %v3864_v3 }
  0xad   : > { %1685 = vmatmul.bf16.gmra.mxu3 %v3854_v20 }
  0xb1   : > { %v3904_v58 = vpop.f32.mrf.mxu1 }
  0xb2   : > { %1842 = vmatmul.bf16.gmra.mxu0 %v3531_v42 }
  0xb4   : > { %1348 = vmatmul.bf16.gmra.mxu1 %v3881_v49 }
  0xb9   : > { %v3934_v14 = vpop.f32.mrf.mxu1  ;;  %v3937_v23 = vpop.f32.mrf.mxu2 }
  0xbb   : > { %1560 = vmatmul.bf16.gmra.mxu2 %v3895_v30 }
  0xbd   : > { %1690 = vmatmul.bf16.gmra.mxu3 %v3881_v49 }
  0xc0   : > { %v3979_v59 = vpop.f32.mrf.mxu3 }
  0xc1   : > { %v3961_v43 = vpop.f32.mrf.mxu2 }
  0xc2   : > { %1847 = vmatmul.bf16.gmra.mxu0 %v3708_v55 }
  0xc4   : > { %1353 = vmatmul.bf16.gmra.mxu1 %v3922_v9 }
  0xc8   : > { %v3990_v1 = vpop.f32.mrf.mxu3 }
  0xcb   : > { %1565 = vmatmul.bf16.gmra.mxu2 %v3932_v57 }
  0xcd   : > { %1695 = vmatmul.bf16.gmra.mxu3 %v3922_v9 }
  0xce   : > { %v1179_v36 = vpop.f32.mrf.mxu0 }
  0xd1   : > { %v3953_v32 = vpop.f32.mrf.mxu1 }
  0xd2   : > { %1852 = vmatmul.bf16.gmra.mxu0 %v3559_v24 }
  0xd4   : > { %1358 = vmatmul.bf16.gmra.mxu1 %v3955_v29 }
  0xd6   : > { %v1181_v17 = vpop.f32.mrf.mxu0 }
  0xd9   : > { %v3977_v53 = vpop.f32.mrf.mxu1 }
  0xdb   : > { %1570 = vmatmul.bf16.gmra.mxu2 %v3968_v47 }
  0xdd   : > { %1700 = vmatmul.bf16.gmra.mxu3 %v3955_v29 }
  0xde   : > { %v3985_v0 = vpop.f32.mrf.mxu2 }
  0xe1   : > { %v1324_v10 = vpop.f32.mrf.mxu1 }
  0xe2   : > { %v1325_v12 = vadd.f32 %v1324_v10, %v1179_v36  ;;  %1857 = vmatmul.bf16.gmra.mxu0 %v3762_v37 }
  0xe4   : > { %1968 = vmatmul.bf16.vlgmr.msra.gmra.mxu1 %v3785_v5 }
  0xe6   : > { %v3992_v11 = vpop.f32.mrf.mxu2 }
  0xe9   : > { %v1326_v61 = vpop.f32.mrf.mxu1 }
  0xea   : > { %v1327_v35 = vadd.f32 %v1326_v61, %v1181_v17 }
  0xeb   : > { %2103 = vmatmul.bf16.vlgmr.msra.gmra.mxu2 %v3801_v19 }
  0xed   : > { %1705 = vmatmul.bf16.gmra.mxu3 %v3998_v25 }
  0xee   : > { %v1536_v5 = vpop.f32.mrf.mxu2 }
  0xef   : > { %v1576_v51 = vadd.f32 %v1536_v5, %v1325_v12  ;;  %v1184_v52 = vpop.f32.mrf.mxu0 }
  0xf0   : > { %v4004_v60 = vpop.f32.mrf.mxu3 }
  0xf1   : > { %v1329_v46 = vpop.f32.mrf.mxu1 }
  0xf2   : > { %v1330_v36 = vadd.f32 %v1329_v46, %v1184_v52  ;;  %1862 = vmatmul.bf16.gmra.mxu0 %v4002_v48 }
  0xf4   : > { %1973 = vmatmul.bf16.gmra.mxu1 %v3815_v39 }
  0xf6   : > { %v1538_v31 = vpop.f32.mrf.mxu2 }
  0xf7   : > { %v1577_v41 = vadd.f32 %v1538_v31, %v1327_v35  ;;  %v1186_v63 = vpop.f32.mrf.mxu0 }
  0xf8   : > { %v4008_v50 = vpop.f32.mrf.mxu3 }
  0xf9   : > { %v1331_v19 = vpop.f32.mrf.mxu1 }
  0xfa   : > { %v1332_v7 = vadd.f32 %v1331_v19, %v1186_v63 }
  0xfb   : > { %2108 = vmatmul.bf16.gmra.mxu2 %v3829_v44 }
  0xfd   : > { %2260 = vmatmul.bf16.vlgmr.msra.gmra.mxu3 %v3514_v22 }
  0xfe   : > { %v1541_v6 = vpop.f32.mrf.mxu2 }
  0xff   : > { %v1578_v8 = vadd.f32 %v1541_v6, %v1330_v36  ;;  %v1828_v10 = vpop.f32.mrf.mxu0 }
 0x100   : > { %v1671_v12 = vpop.f32.mrf.mxu3 }
 0x101   : > { %v1711_v13 = vadd.f32 %v1671_v12, %v1576_v51  ;;  %v1334_v54 = vpop.f32.mrf.mxu1 }
 0x102   : > { %v1335_v15 = vadd.f32 %v1334_v54, %v3904_v58  ;;  %2401 = vmatmul.bf16.vlgmr.msra.gmra.mxu0 %v3815_v39 }
 0x103   : > { %v4014_v17 = vadd.f32 %v1828_v10, %v1711_v13 }
 0x104   : > { %1978 = vmatmul.bf16.gmra.mxu1 %v3819_v18 }
 0x106   : > { %v1543_v21 = vpop.f32.mrf.mxu2 }
 0x107   : > { %v1579_v27 = vadd.f32 %v1543_v21, %v1332_v7  ;;  %v1830_v61 = vpop.f32.mrf.mxu0 }
 0x108   : > { %v1673_v44 = vpop.f32.mrf.mxu3 }
 0x109   : > { %v1712_v35 = vadd.f32 %v1673_v44, %v1577_v41  ;;  %v1336_v22 = vpop.f32.mrf.mxu1 }
 0x10a   : > { %v1337_v38 = vadd.f32 %v1336_v22, %v3934_v14  ;;  %v490_v22 = vld [vmem:[#allocation2 + $0x6c] sm:$0x1] }
 0x10b   : > { %2113 = vmatmul.bf16.gmra.mxu2 %v3854_v20  ;;  %v4019_v40 = vadd.f32 %v1830_v61, %v1712_v35 }
 0x10d   : > { %2265 = vmatmul.bf16.gmra.mxu3 %v3656_v56 }
 0x10e   : > { %v1546_v39 = vpop.f32.mrf.mxu2 }
 0x10f   : > { %v1580_v58 = vadd.f32 %v1546_v39, %v1335_v15  ;;  %v1833_v5 = vpop.f32.mrf.mxu0 }
 0x110   : > { %v1676_v51 = vpop.f32.mrf.mxu3 }
 0x111   : > { %v1713_v52 = vadd.f32 %v1676_v51, %v1578_v8  ;;  %v1339_v46 = vpop.f32.mrf.mxu1 }
 0x112   : > { %v1340_v36 = vadd.f32 %v1339_v46, %v3953_v32  ;;  %2406 = vmatmul.bf16.gmra.mxu0 %v3819_v18 }
 0x113   : > { %v4024_v31 = vadd.f32 %v1833_v5, %v1713_v52  ;;  %v527_v52 = vld [vmem:[%s432_s16] sm:$0xf] }
 0x114   : > { %1983 = vmatmul.bf16.gmra.mxu1 %v3864_v3 }
 0x116   : > { %v1548_v14 = vpop.f32.mrf.mxu2 }
 0x117   : > { %v1581_v20 = vadd.f32 %v1548_v14, %v1337_v38  ;;  %v1835_v41 = vpop.f32.mrf.mxu0 }
 0x118   : > { %v1678_v63 = vpop.f32.mrf.mxu3 }
 0x119   : > { %v1714_v56 = vadd.f32 %v1678_v63, %v1579_v27  ;;  %v1341_v19 = vpop.f32.mrf.mxu1 }
 0x11a   : > { %v1342_v32 = vadd.f32 %v1341_v19, %v3977_v53 }
 0x11b   : > { %2118 = vmatmul.bf16.gmra.mxu2 %v3881_v49  ;;  %v4034_v18 = vadd.f32 %v1835_v41, %v1714_v56 }
 0x11d   : > { %2270 = vmatmul.bf16.gmra.mxu3 %v3531_v42 }
 0x11e   : > { %v1551_v7 = vpop.f32.mrf.mxu2 }
 0x11f   : > { %v1582_v6 = vadd.f32 %v1551_v7, %v1340_v36  ;;  %v1838_v8 = vpop.f32.mrf.mxu0  ;;  %v522_v36 = vld [vmem:[#allocation2 + $0x74] sm:$0x1] }
 0x120   : > { %v1681_v10 = vpop.f32.mrf.mxu3  ;;  %v523_v63 = vsel %vm3341_vm4, 0, %v522_v36 }
 0x121   : > { %v1715_v12 = vadd.f32 %v1681_v10, %v1580_v58  ;;  %v1344_v13 = vpop.f32.mrf.mxu1  ;;  %v537_v58 = vstv %s536_s12  ;;  %524 = vst [vmem:[#allocation2 + $0x74] sm:$0x1] %v523_v63 }
 0x122   : > { %2411 = vmatmul.bf16.gmra.mxu0 %v3864_v3  ;;  %v1345_v3 = vadd.f32 %v1344_v13, %v3937_v23  ;;  %vm538_vm0 = vcmp.eq.s32.totalorder %v537_v58, 1 }
 0x123   : > { %v4042_v53 = vadd.f32 %v1838_v8, %v1715_v12  ;;  %v539_v23 = vsel %vm538_vm0, %v527_v52, 0 }
 0x124   : > { %1988 = vmatmul.bf16.gmra.mxu1 %v3895_v30  ;;  %v576_v19 = vshll.u32 %v539_v23, 16 }
 0x126   : > { %v1553_v42 = vpop.f32.mrf.mxu2 }
 0x127   : > { %v1583_v49 = vadd.f32 %v1553_v42, %v1342_v32  ;;  %v1840_v54 = vpop.f32.mrf.mxu0 }
 0x128   : > { %v1683_v15 = vpop.f32.mrf.mxu3 }
 0x129   : > { %v1716_v21 = vadd.f32 %v1683_v15, %v1581_v20  ;;  %v1346_v27 = vpop.f32.mrf.mxu1  ;;  %v573_v20 = vshrl.u32 %v539_v23, 16 }
 0x12a   : > { %v1347_v56 = vadd.f32 %v1346_v27, %v3961_v43 }
 0x12b   : > { %2123 = vmatmul.bf16.gmra.mxu2 %v3922_v9  ;;  %v4048_v61 = vadd.f32 %v1840_v54, %v1716_v21  ;;  %v491_v9 = vsel %vm3335_vm2, 0, %v490_v22 }
 0x12c   : > { %492 = vst [vmem:[#allocation2 + $0x6c] sm:$0x1] %v491_v9 }
 0x12d   : > { %2275 = vmatmul.bf16.gmra.mxu3 %v3708_v55  ;;  %v528_v55 = vld [vmem:[%s432_s16 + $0x4] sm:$0xf] }
 0x12e   : > { %v1556_v44 = vpop.f32.mrf.mxu2  ;;  %v540_v46 = vsel %vm538_vm0, %v528_v55, 0  ;;  %v1890_v55 = vrot.slane %v3983_v62, 5 }
 0x12f   : > { %v1584_v35 = vadd.f32 %v1556_v44, %v1345_v3  ;;  %v1843_v38 = vpop.f32.mrf.mxu0  ;;  %v581_v41 = vshrl.u32 %v540_v46, 16  ;;  %v584_v32 = vshll.u32 %v540_v46, 16 }
 0x130   : > { %v1686_v39 = vpop.f32.mrf.mxu3 }
 0x131   : > { %v1717_v5 = vadd.f32 %v1686_v39, %v1582_v6  ;;  %v1349_v51 = vpop.f32.mrf.mxu1  ;;  %v575_v6 = vrot.slane %v573_v20, 7 }
 0x132   : > { %2416 = vmatmul.bf16.gmra.mxu0 %v3895_v30  ;;  %v583_v30 = vrot.slane %v581_v41, 7  ;;  %v1350_v22 = vadd.f32 %v1349_v51, %v3985_v0 }
 0x133   : > { %v4058_v14 = vadd.f32 %v1843_v38, %v1717_v5  ;;  %v578_v13 = vor.u32 %v576_v19, %v575_v6  ;;  %v579_v42 = vrot.slane %v575_v6, 4  ;;  %v593_v15 = vld [vmem:[#allocation2 + $0x6c] sm:$0xf]  ;;  %v597_v38 = vld [vmem:[#allocation2 + $0x74] sm:$0x1]  ;;  %v1887_v5 = vrot.slane %v3966_v33, 5 }
 0x134   : > { %1993 = vmatmul.bf16.gmra.mxu1 %v3932_v57  ;;  %v586_v54 = vor.u32 %v584_v32, %v583_v30  ;;  %v588_v27 = vrot.slane %v583_v30, 4 }
 0x135   : > { %v594_v43 = vsel %vm3385_vm7, %v578_v13, %v593_v15  ;;  %v1889_v51 = vrot.slane %v1887_v5, 4 }
 0x136   : > { %v1558_v7 = vpop.f32.mrf.mxu2  ;;  %v587_v4 = vsel %vm3391_vm8, %v579_v42, %v586_v54  ;;  %595 = vst [vmem:[#allocation2 + $0x6c] sm:$0xf] %v594_v43  ;;  %v598_v34 = vsel %vm3335_vm2, %v588_v27, %v597_v38 }
 0x137   : > { %v1585_v8 = vadd.f32 %v1558_v7, %v1347_v56  ;;  %v1845_v10 = vpop.f32.mrf.mxu0  ;;  %596 = vst [vmem:[#allocation2 + $0x70] sm:$0xf] %v587_v4  ;;  %v1891_v33 = vsel %vm3728_vm15, %v1889_v51, %v1890_v55 }
 0x138   : > { %v1688_v12 = vpop.f32.mrf.mxu3  ;;  %599 = vst [vmem:[#allocation2 + $0x74] sm:$0x1] %v598_v34  ;;  %v1909_v41 = vunpack.c.l.b16 %v1891_v33 }
 0x139   : > { %v1718_v21 = vadd.f32 %v1688_v12, %v1583_v49  ;;  %v1351_v3 = vpop.f32.mrf.mxu1 }
 0x13b   : > { %2128 = vmatmul.bf16.gmra.mxu2 %v3955_v29  ;;  %v4069_v44 = vadd.f32 %v1845_v10, %v1718_v21 }
 0x13d   : > { %2280 = vmatmul.bf16.gmra.mxu3 %v3559_v24  ;;  %v1352_v24 = vadd.f32 %v1351_v3, %v3992_v11  ;;  %v860_v19 = vld [vmem:[#allocation2 + $0x6c] sm:$0xf] }
 0x13e   : > { %v1561_v49 = vpop.f32.mrf.mxu2  ;;  %v861_v32 = vld [vmem:[#allocation2 + $0x70] sm:$0xf]  ;;  %v2161_v12 = vshrl.u32 %v860_v19, 16  ;;  %v2164_v13 = vshll.u32 %v860_v19, 16 }
 0x13f   : > { %v1586_v39 = vadd.f32 %v1561_v49, %v1350_v22  ;;  %v1848_v28 = vpop.f32.mrf.mxu0  ;;  %v2174_v42 = vshrl.u32 %v861_v32, 16  ;;  %v3079_v27 = vld [vmem:[#allocation2 + $0x6c] sm:$0xff]  ;;  %v862_v22 = vld [vmem:[#allocation2 + $0x74] sm:$0x1] }
 0x140   : > { %v1691_v9 = vpop.f32.mrf.mxu3  ;;  %v2163_v15 = vrot.slane %v2161_v12, 4  ;;  %v2166_v21 = vrot.slane %v2164_v13, 5  ;;  %v2323_v33 = vrot.slane %v862_v22, 5 }
 0x141   : > { %v1719_v58 = vadd.f32 %v1691_v9, %v1584_v35  ;;  %v1354_v29 = vpop.f32.mrf.mxu1  ;;  %v2176_v4 = vrot.slane %v2174_v42, 4 }
 0x142   : > { %2421 = vmatmul.bf16.gmra.mxu0 %v3932_v57  ;;  %v1888_v57 = vsel %vm3728_vm15, %v2932_v2, %v1887_v5  ;;  %v1355_v26 = vadd.f32 %v1354_v29, %v3979_v59 }
 0x143   : > { %v4077_v52 = vadd.f32 %v1848_v28, %v1719_v58  ;;  %v1908_v62 = vunpack.c.l.b16 %v1888_v57  ;;  %v2167_v28 = vor.u32 %v2166_v21, %v2163_v15 }
 0x144   : > { %1998 = vmatmul.bf16.gmra.mxu1 %v3968_v47 }
 0x145   : > { %v2168_v29 = vrot.slane %v2167_v28, 4 }
 0x146   : > { %v1563_v0 = vpop.f32.mrf.mxu2 }
 0x147   : > { %v1587_v23 = vadd.f32 %v1563_v0, %v1352_v24  ;;  %v1850_v46 = vpop.f32.mrf.mxu0 }
 0x148   : > { %v1693_v35 = vpop.f32.mrf.mxu3 }
 0x149   : > { %v1720_v36 = vadd.f32 %v1693_v35, %v1585_v8  ;;  %v1356_v20 = vpop.f32.mrf.mxu1  ;;  %v1910_v8 = vpack.c.b16 %v1909_v41, %v1908_v62 }
 0x14a   : > { %v1357_v59 = vadd.f32 %v1356_v20, %v3990_v1 }
 0x14b   : > { %2133 = vmatmul.bf16.gmra.mxu2 %v3998_v25  ;;  %v4088_v11 = vadd.f32 %v1850_v46, %v1720_v36  ;;  %v2170_v25 = vshll.u32 %v861_v32, 16  ;;  %v2320_v46 = vrot.slane %v861_v32, 5 }
 0x14d   : > { %2285 = vmatmul.bf16.gmra.mxu3 %v3762_v37  ;;  %v2172_v3 = vrot.slane %v2170_v25, 5  ;;  %v2322_v57 = vrot.slane %v2320_v46, 4 }
 0x14e   : > { %v1566_v63 = vpop.f32.mrf.mxu2 }
 0x14f   : > { %v1588_v56 = vadd.f32 %v1566_v63, %v1355_v26  ;;  %v1853_v7 = vpop.f32.mrf.mxu0  ;;  %v2177_v9 = vor.u32 %v2176_v4, %v2172_v3  ;;  %v2173_v36 = vsel %vm3475_vm11, %v2168_v29, %v2172_v3  ;;  %v2324_v45 = vsel %vm3728_vm15, %v2322_v57, %v2323_v33 }
 0x150   : > { %v1696_v6 = vpop.f32.mrf.mxu3  ;;  %v2200_v26 = vunpack.c.l.b16 %v2173_v36  ;;  %v2342_v12 = vunpack.c.l.b16 %v2324_v45 }
 0x151   : > { %v1721_v30 = vadd.f32 %v1696_v6, %v1586_v39  ;;  %v1359_v10 = vpop.f32.mrf.mxu1  ;;  %v2178_v5 = vrot.slane %v2177_v9, 4 }
 0x152   : > { %2426 = vmatmul.bf16.gmra.mxu0 %v3968_v47  ;;  %v2180_v47 = vshll.u32 %v862_v22, 16  ;;  %v1360_v1 = vadd.f32 %v1359_v10, %v4004_v60  ;;  %v3033_v60 = vrot.slane %v860_v19, 9 }
 0x153   : > { %v4093_v37 = vadd.f32 %v1853_v7, %v1721_v30 }
 0x154   : > { %2003 = vmatmul.bf16.gmra.mxu1 %v1910_v8  ;;  %v2182_v24 = vrot.slane %v2180_v47, 5  ;;  %v2321_v6 = vsel %vm3728_vm15, %v3033_v60, %v2320_v46  ;;  %v4127_v47 = vld [vmem:[%s4216_s4] ss:$0 sm:$0xff] }
 0x155   : > { %v2341_v19 = vunpack.c.l.b16 %v2321_v6 }
 0x156   : > { %v1568_v54 = vpop.f32.mrf.mxu2  ;;  %v2183_v20 = vsel %vm3475_vm11, %v2178_v5, %v2182_v24  ;;  %v2478_v5 = vld [vmem:[%s4122_s18] sm:$0xff] }
 0x157   : > { %v1589_v43 = vadd.f32 %v1568_v54, %v1357_v59  ;;  %v1855_v38 = vpop.f32.mrf.mxu0  ;;  %v2201_v62 = vunpack.c.l.b16 %v2183_v20  ;;  %v2479_v20 = vld [vmem:[%s4122_s18 + $0x8] sm:$0xff] }
 0x158   : > { %v1698_v49 = vpop.f32.mrf.mxu3 }
 0x159   : > { %v1722_v34 = vadd.f32 %v1698_v49, %v1587_v23  ;;  %v1361_v39 = vpop.f32.mrf.mxu1 }
 0x15a   : > { %v1362_v41 = vadd.f32 %v1361_v39, %v4008_v50  ;;  %v2343_v50 = vpack.c.b16 %v2342_v12, %v2341_v19 }
 0x15b   : > { %2138 = vmatmul.bf16.gmra.mxu2 %v3079_v27  ;;  %v4096_v58 = vadd.f32 %v1855_v38, %v1722_v34 }
 0x15d   : > { %2290 = vmatmul.bf16.gmra.mxu3 %v4002_v48 }
 0x15e   : > { %v1571_v0 = vpop.f32.mrf.mxu2 }
 0x15f   : > { %v1590_v2 = vadd.f32 %v1571_v0, %v1360_v1  ;;  %v1858_v51 = vpop.f32.mrf.mxu0 }
 0x160   : > { %v1701_v55 = vpop.f32.mrf.mxu3 }
 0x161   : > { %v1723_v23 = vadd.f32 %v1701_v55, %v1588_v56  ;;  %v1969_v35 = vpop.f32.mrf.mxu1 }
 0x162   : > { %2431 = vmatmul.bf16.gmra.mxu0 %v1910_v8  ;;  %v2202_v8 = vpack.c.b16 %v2201_v62, %v2200_v26  ;;  %v2009_v22 = vadd.f32 %v1969_v35, %v4014_v17 }
 0x163   : > { %v4104_v48 = vadd.f32 %v1858_v51, %v1723_v23 }
 0x166   : > { %v1573_v63 = vpop.f32.mrf.mxu2 }
 0x167   : > { %v1591_v32 = vadd.f32 %v1573_v63, %v1362_v41  ;;  %v1860_v56 = vpop.f32.mrf.mxu0 }
 0x168   : > { %v1703_v7 = vpop.f32.mrf.mxu3 }
 0x169   : > { %v1724_v30 = vadd.f32 %v1703_v7, %v1589_v43  ;;  %v1971_v10 = vpop.f32.mrf.mxu1  ;;  %v2480_v7 = vld [vmem:[%s4122_s18 + $0x10] sm:$0xff] }
 0x16a   : > { %v2010_v29 = vadd.f32 %v1971_v10, %v4019_v40 }
 0x16b   : > { %v4111_v13 = vadd.f32 %v1860_v56, %v1724_v30 }
 0x16d   : > { %2295 = vmatmul.bf16.gmra.mxu3 %v2202_v8 }
 0x16e   : > { %v2104_v25 = vpop.f32.mrf.mxu2 }
 0x16f   : > { %v1863_v42 = vpop.f32.mrf.mxu0  ;;  %v2144_v49 = vadd.f32 %v2104_v25, %v2009_v22 }
 0x170   : > { %v1706_v59 = vpop.f32.mrf.mxu3 }
 0x171   : > { %v1725_v54 = vadd.f32 %v1706_v59, %v1590_v2  ;;  %v1974_v15 = vpop.f32.mrf.mxu1 }
 0x172   : > { %2436 = vmatmul.bf16.gmra.mxu0 %v2343_v50  ;;  %v2011_v40 = vadd.f32 %v1974_v15, %v4024_v31 }
 0x173   : > { %v4113_v21 = vadd.f32 %v1863_v42, %v1725_v54  ;;  %v2481_v42 = vld [vmem:[%s4122_s18 + $0x18] sm:$0xff] }
 0x176   : > { %v2106_v16 = vpop.f32.mrf.mxu2 }
 0x177   : > { %v1865_v3 = vpop.f32.mrf.mxu0  ;;  %v2145_v0 = vadd.f32 %v2106_v16, %v2010_v29 }
 0x178   : > { %v1708_v4 = vpop.f32.mrf.mxu3 }
 0x179   : > { %v1726_v43 = vadd.f32 %v1708_v4, %v1591_v32  ;;  %v1976_v27 = vpop.f32.mrf.mxu1 }
 0x17a   : > { %v2012_v56 = vadd.f32 %v1976_v27, %v4034_v18 }
 0x17b   : > { %v4116_v38 = vadd.f32 %v1865_v3, %v1726_v43 }
 0x17e   : > { %v2109_v34 = vpop.f32.mrf.mxu2 }
 0x17f   : > { %v2402_v39 = vpop.f32.mrf.mxu0  ;;  %v2146_v57 = vadd.f32 %v2109_v34, %v2011_v40 }
 0x180   : > { %v2261_v28 = vpop.f32.mrf.mxu3 }
 0x181   : > { %v2301_v9 = vadd.f32 %v2261_v28, %v2144_v49  ;;  %v1979_v17 = vpop.f32.mrf.mxu1  ;;  %v2482_v49 = vld [vmem:[%s4122_s18 + $0x20] sm:$0xff] }
 0x182   : > { %v2013_v50 = vadd.f32 %v1979_v17, %v4042_v53 }
 0x183   : > { %v2442_v1 = vadd.f32 %v2402_v39, %v2301_v9 }
 0x185   : > { %v2462_v24 = vadd.f32 %v4127_v47, %v2442_v1 }
 0x186   : > { %v2111_v2 = vpop.f32.mrf.mxu2 }
 0x187   : > { %v2494_v51 = vadd.f32 %v2478_v5, %v2462_v24  ;;  %v2404_v55 = vpop.f32.mrf.mxu0  ;;  %v2147_v31 = vadd.f32 %v2111_v2, %v2012_v56 }
 0x188   : > { %v2263_v46 = vpop.f32.mrf.mxu3 }
 0x189   : > { %2510 = vst [vmem:[%s4135_s29] sm:$0xff] %v2494_v51  ;;  %v2302_v23 = vadd.f32 %v2263_v46, %v2145_v0  ;;  %v1981_v36 = vpop.f32.mrf.mxu1  ;;  %v2483_v0 = vld [vmem:[%s4122_s18 + $0x28] sm:$0xff] }
 0x18a   : > { %v2014_v22 = vadd.f32 %v1981_v36, %v4048_v61 }
 0x18b   : > { %v2443_v35 = vadd.f32 %v2404_v55, %v2302_v23 }
 0x18d   : > { %v2463_v60 = vadd.f32 %v4127_v47, %v2443_v35 }
 0x18e   : > { %v2114_v33 = vpop.f32.mrf.mxu2 }
 0x18f   : > { %v2495_v26 = vadd.f32 %v2479_v20, %v2463_v60  ;;  %v2407_v62 = vpop.f32.mrf.mxu0  ;;  %v2148_v18 = vadd.f32 %v2114_v33, %v2013_v50  ;;  %v2484_v60 = vld [vmem:[%s4122_s18 + $0x30] sm:$0xff]  ;;  %v2486_v50 = vld [vmem:[%s4122_s18 + $0x40] sm:$0xff] }
 0x190   : > { %v2266_v41 = vpop.f32.mrf.mxu3 }
 0x191   : > { %2511 = vst [vmem:[%s4135_s29 + $0x8] sm:$0xff] %v2495_v26  ;;  %v2303_v63 = vadd.f32 %v2266_v41, %v2146_v57  ;;  %v1984_v45 = vpop.f32.mrf.mxu1 }
 0x192   : > { %v2015_v24 = vadd.f32 %v1984_v45, %v4058_v14 }
 0x193   : > { %v2444_v32 = vadd.f32 %v2407_v62, %v2303_v63 }
 0x195   : > { %v2464_v6 = vadd.f32 %v4127_v47, %v2444_v32 }
 0x196   : > { %v2116_v30 = vpop.f32.mrf.mxu2 }
 0x197   : > { %v2496_v8 = vadd.f32 %v2480_v7, %v2464_v6  ;;  %v2409_v10 = vpop.f32.mrf.mxu0  ;;  %v2149_v53 = vadd.f32 %v2116_v30, %v2014_v22  ;;  %v2485_v7 = vld [vmem:[%s4122_s18 + $0x38] sm:$0xff] }
 0x198   : > { %v2268_v19 = vpop.f32.mrf.mxu3 }
 0x199   : > { %2512 = vst [vmem:[%s4135_s29 + $0x10] sm:$0xff] %v2496_v8  ;;  %v2304_v12 = vadd.f32 %v2268_v19, %v2147_v31  ;;  %v1986_v16 = vpop.f32.mrf.mxu1 }
 0x19a   : > { %v2016_v36 = vadd.f32 %v1986_v16, %v4069_v44 }
 0x19b   : > { %v2445_v25 = vadd.f32 %v2409_v10, %v2304_v12 }
 0x19d   : > { %v2465_v59 = vadd.f32 %v4127_v47, %v2445_v25 }
 0x19e   : > { %v2119_v54 = vpop.f32.mrf.mxu2 }
 0x19f   : > { %v2497_v15 = vadd.f32 %v2481_v42, %v2465_v59  ;;  %v2412_v3 = vpop.f32.mrf.mxu0  ;;  %v2150_v61 = vadd.f32 %v2119_v54, %v2015_v24 }
 0x1a0   : > { %v2271_v4 = vpop.f32.mrf.mxu3 }
 0x1a1   : > { %2513 = vst [vmem:[%s4135_s29 + $0x18] sm:$0xff] %v2497_v15  ;;  %v2305_v43 = vadd.f32 %v2271_v4, %v2148_v18  ;;  %v1989_v29 = vpop.f32.mrf.mxu1 }
 0x1a2   : > { %v2017_v56 = vadd.f32 %v1989_v29, %v4077_v52  ;;  %v2488_v29 = vld [vmem:[%s4122_s18 + $0x50] sm:$0xff] }
 0x1a3   : > { %v2446_v27 = vadd.f32 %v2412_v3, %v2305_v43 }
 0x1a5   : > { %v2466_v34 = vadd.f32 %v4127_v47, %v2446_v27  ;;  %v2487_v27 = vld [vmem:[%s4122_s18 + $0x48] sm:$0xff] }
 0x1a6   : > { %v2121_v39 = vpop.f32.mrf.mxu2 }
 0x1a7   : > { %v2498_v28 = vadd.f32 %v2482_v49, %v2466_v34  ;;  %v2414_v9 = vpop.f32.mrf.mxu0  ;;  %v2151_v14 = vadd.f32 %v2121_v39, %v2016_v36 }
 0x1a8   : > { %v2273_v17 = vpop.f32.mrf.mxu3 }
 0x1a9   : > { %2514 = vst [vmem:[%s4135_s29 + $0x20] sm:$0xff] %v2498_v28  ;;  %v2306_v1 = vadd.f32 %v2273_v17, %v2149_v53  ;;  %v1991_v20 = vpop.f32.mrf.mxu1 }
 0x1aa   : > { %v2018_v25 = vadd.f32 %v1991_v20, %v4088_v11 }
 0x1ab   : > { %v2447_v5 = vadd.f32 %v2414_v9, %v2306_v1 }
 0x1ad   : > { %v2467_v2 = vadd.f32 %v4127_v47, %v2447_v5 }
 0x1ae   : > { %v2124_v51 = vpop.f32.mrf.mxu2 }
 0x1af   : > { %v2499_v55 = vadd.f32 %v2483_v0, %v2467_v2  ;;  %v2417_v46 = vpop.f32.mrf.mxu0  ;;  %v2152_v44 = vadd.f32 %v2124_v51, %v2017_v56 }
 0x1b0   : > { %v2276_v23 = vpop.f32.mrf.mxu3 }
 0x1b1   : > { %2515 = vst [vmem:[%s4135_s29 + $0x28] sm:$0xff] %v2499_v55  ;;  %v2307_v35 = vadd.f32 %v2276_v23, %v2150_v61  ;;  %v1994_v31 = vpop.f32.mrf.mxu1  ;;  %v2489_v23 = vld [vmem:[%s4122_s18 + $0x58] sm:$0xff] }
 0x1b2   : > { %v2019_v43 = vadd.f32 %v1994_v31, %v4093_v37 }
 0x1b3   : > { %v2448_v40 = vadd.f32 %v2417_v46, %v2307_v35 }
 0x1b5   : > { %v2468_v57 = vadd.f32 %v4127_v47, %v2448_v40 }
 0x1b6   : > { %v2126_v33 = vpop.f32.mrf.mxu2 }
 0x1b7   : > { %v2500_v26 = vadd.f32 %v2484_v60, %v2468_v57  ;;  %v2419_v62 = vpop.f32.mrf.mxu0  ;;  %v2153_v52 = vadd.f32 %v2126_v33, %v2018_v25 }
 0x1b8   : > { %v2278_v41 = vpop.f32.mrf.mxu3 }
 0x1b9   : > { %2516 = vst [vmem:[%s4135_s29 + $0x30] sm:$0xff] %v2500_v26  ;;  %v2308_v63 = vadd.f32 %v2278_v41, %v2151_v14  ;;  %v1996_v18 = vpop.f32.mrf.mxu1  ;;  %v2490_v26 = vld [vmem:[%s4122_s18 + $0x60] sm:$0xff] }
 0x1ba   : > { %v2020_v17 = vadd.f32 %v1996_v18, %v4096_v58 }
 0x1bb   : > { %v2449_v32 = vadd.f32 %v2419_v62, %v2308_v63 }
 0x1bd   : > { %v2469_v6 = vadd.f32 %v4127_v47, %v2449_v32 }
 0x1be   : > { %v2129_v30 = vpop.f32.mrf.mxu2 }
 0x1bf   : > { %v2501_v45 = vadd.f32 %v2485_v7, %v2469_v6  ;;  %v2422_v8 = vpop.f32.mrf.mxu0  ;;  %v2154_v11 = vadd.f32 %v2129_v30, %v2019_v43  ;;  %v2493_v43 = vld [vmem:[%s4122_s18 + $0x78] sm:$0xff] }
 0x1c0   : > { %v2281_v10 = vpop.f32.mrf.mxu3 }
 0x1c1   : > { %2517 = vst [vmem:[%s4135_s29 + $0x38] sm:$0xff] %v2501_v45  ;;  %v2309_v19 = vadd.f32 %v2281_v10, %v2152_v44  ;;  %v1999_v28 = vpop.f32.mrf.mxu1  ;;  %v2491_v45 = vld [vmem:[%s4122_s18 + $0x68] sm:$0xff] }
 0x1c2   : > { %v2021_v55 = vadd.f32 %v1999_v28, %v4104_v48 }
 0x1c3   : > { %v2450_v12 = vadd.f32 %v2422_v8, %v2309_v19 }
 0x1c5   : > { %v2470_v42 = vadd.f32 %v4127_v47, %v2450_v12 }
 0x1c6   : > { %v2131_v3 = vpop.f32.mrf.mxu2 }
 0x1c7   : > { %v2502_v59 = vadd.f32 %v2486_v50, %v2470_v42  ;;  %v2424_v54 = vpop.f32.mrf.mxu0  ;;  %v2155_v37 = vadd.f32 %v2131_v3, %v2020_v17 }
 0x1c8   : > { %v2283_v15 = vpop.f32.mrf.mxu3 }
 0x1c9   : > { %2518 = vst [vmem:[%s4135_s29 + $0x40] sm:$0xff] %v2502_v59  ;;  %v2310_v16 = vadd.f32 %v2283_v15, %v2153_v52  ;;  %v2001_v46 = vpop.f32.mrf.mxu1  ;;  %v2492_v59 = vld [vmem:[%s4122_s18 + $0x70] sm:$0xff] }
 0x1ca   : > { %v2022_v33 = vadd.f32 %v2001_v46, %v4111_v13 }
 0x1cb   : > { %v2451_v4 = vadd.f32 %v2424_v54, %v2310_v16 }
 0x1cd   : > { %v2471_v22 = vadd.f32 %v4127_v47, %v2451_v4 }
 0x1ce   : > { %v2134_v1 = vpop.f32.mrf.mxu2 }
 0x1cf   : > { %v2503_v49 = vadd.f32 %v2487_v27, %v2471_v22  ;;  %v2427_v34 = vpop.f32.mrf.mxu0  ;;  %v2156_v58 = vadd.f32 %v2134_v1, %v2021_v55 }
 0x1d0   : > { %v2286_v53 = vpop.f32.mrf.mxu3 }
 0x1d1   : > { %2519 = vst [vmem:[%s4135_s29 + $0x48] sm:$0xff] %v2503_v49  ;;  %v2311_v39 = vadd.f32 %v2286_v53, %v2154_v11  ;;  %v2004_v41 = vpop.f32.mrf.mxu1 }
 0x1d2   : > { %v2023_v31 = vadd.f32 %v2004_v41, %v4113_v21 }
 0x1d3   : > { %v2452_v9 = vadd.f32 %v2427_v34, %v2311_v39 }
 0x1d5   : > { %v2472_v5 = vadd.f32 %v4127_v47, %v2452_v9 }
 0x1d6   : > { %v2136_v40 = vpop.f32.mrf.mxu2 }
 0x1d7   : > { %v2504_v24 = vadd.f32 %v2488_v29, %v2472_v5  ;;  %v2429_v0 = vpop.f32.mrf.mxu0  ;;  %v2157_v48 = vadd.f32 %v2136_v40, %v2022_v33 }
 0x1d8   : > { %v2288_v2 = vpop.f32.mrf.mxu3 }
 0x1d9   : > { %2520 = vst [vmem:[%s4135_s29 + $0x50] sm:$0xff] %v2504_v24  ;;  %v2312_v61 = vadd.f32 %v2288_v2, %v2155_v37  ;;  %v2006_v10 = vpop.f32.mrf.mxu1 }
 0x1da   : > { %v2024_v52 = vadd.f32 %v2006_v10, %v4116_v38 }
 0x1db   : > { %v2453_v51 = vadd.f32 %v2429_v0, %v2312_v61 }
 0x1dd   : > { %v2473_v35 = vadd.f32 %v4127_v47, %v2453_v51 }
 0x1de   : > { %v2139_v32 = vpop.f32.mrf.mxu2 }
 0x1df   : > { %v2505_v36 = vadd.f32 %v2489_v23, %v2473_v35  ;;  %v2432_v20 = vpop.f32.mrf.mxu0  ;;  %v2158_v13 = vadd.f32 %v2139_v32, %v2023_v31 }
 0x1e0   : > { %v2291_v60 = vpop.f32.mrf.mxu3 }
 0x1e1   : > { %2521 = vst [vmem:[%s4135_s29 + $0x58] sm:$0xff] %v2505_v36  ;;  %v2313_v57 = vadd.f32 %v2291_v60, %v2156_v58 }
 0x1e3   : > { %v2454_v14 = vadd.f32 %v2432_v20, %v2313_v57 }
 0x1e5   : > { %v2474_v62 = vadd.f32 %v4127_v47, %v2454_v14 }
 0x1e6   : > { %v2141_v50 = vpop.f32.mrf.mxu2 }
 0x1e7   : > { %v2506_v63 = vadd.f32 %v2490_v26, %v2474_v62  ;;  %v2434_v56 = vpop.f32.mrf.mxu0  ;;  %v2159_v18 = vadd.f32 %v2141_v50, %v2024_v52 }
 0x1e8   : > { %v2293_v7 = vpop.f32.mrf.mxu3 }
 0x1e9   : > { %2522 = vst [vmem:[%s4135_s29 + $0x60] sm:$0xff] %v2506_v63  ;;  %v2314_v6 = vadd.f32 %v2293_v7, %v2157_v48 }
 0x1eb   : > { %v2455_v44 = vadd.f32 %v2434_v56, %v2314_v6 }
 0x1ed   : > { %v2475_v30 = vadd.f32 %v4127_v47, %v2455_v44 }
 0x1ef   : > { %v2507_v8 = vadd.f32 %v2491_v45, %v2475_v30  ;;  %v2437_v19 = vpop.f32.mrf.mxu0 }
 0x1f0   : > { %v2296_v12 = vpop.f32.mrf.mxu3 }
 0x1f1   : > { %2523 = vst [vmem:[%s4135_s29 + $0x68] sm:$0xff] %v2507_v8  ;;  %v2315_v25 = vadd.f32 %v2296_v12, %v2158_v13 }
 0x1f3   : > { %v2456_v42 = vadd.f32 %v2437_v19, %v2315_v25 }
 0x1f5   : > { %v2476_v21 = vadd.f32 %v4127_v47, %v2456_v42 }
 0x1f7   : > { %v2508_v54 = vadd.f32 %v2492_v59, %v2476_v21  ;;  %v2439_v3 = vpop.f32.mrf.mxu0 }
 0x1f8   : > { %v2298_v15 = vpop.f32.mrf.mxu3 }
 0x1f9   : > { %2524 = vst [vmem:[%s4135_s29 + $0x70] sm:$0xff] %v2508_v54  ;;  %v2316_v16 = vadd.f32 %v2298_v15, %v2159_v18 }
 0x1fb   : > { %v2457_v4 = vadd.f32 %v2439_v3, %v2316_v16 }
 0x1fd   : > { %v2477_v27 = vadd.f32 %v4127_v47, %v2457_v4 }
 0x1ff   : > { %v2509_v22 = vadd.f32 %v2493_v43, %v2477_v27 }
 0x201   : > { %2525 = vst [vmem:[%s4135_s29 + $0x78] sm:$0xff] %v2509_v22 }
 0x202 PF: > { %s16_s25 = sadd.s32 1, %s3255_s25   ;;  %s4232_s21 = smov %s3247_s23 }
 0x203   : > { %p13_p12 = scmp.ge.s32.totalorder %s16_s25, 6   ;;  %s4233_s22 = smov %s3251_s24 }
 0x204   : > { %s4234_s23 = smov %s4237_s26  ;;  %s4235_s24 = smov %s4241_s27 }
 0x205   :  { %15 = sbr.rel (!%p13_p12) target bundleno = 3 (0x3), region = 85 }

</bundles_post_ra>
